<compile_context>
chip_gen: v6e
topology: v6e:2x2x1
jax: 0.10.0
libtpu: 0.0.40
codegen_flags: <defaults>
</compile_context>

<pallas_src>
import functools

import jax
import jax.numpy as jnp
from jax.experimental import pallas as pl
from jax.experimental.pallas import tpu as pltpu


def _conv_mm_kernel(a_ref, b_ref, bias_ref, o_ref):
    """One (tm, tn) output tile, accumulating over the K grid axis.

    a_ref:    (tm, tk)   bf16 im2col patch tile
    b_ref:    (tk, tn)   bf16 reshaped conv-weight tile
    bias_ref: (1, tn)    f32 conv bias tile
    o_ref:    (tm, tn)   f32 output tile; used directly as the accumulator
                         (its block index (i, j) is constant across k).
    """
    k = pl.program_id(2)

    @pl.when(k == 0)
    def _():
        o_ref[...] = jnp.zeros_like(o_ref)

    o_ref[...] += jnp.dot(
        a_ref[...], b_ref[...], preferred_element_type=jnp.float32
    )

    @pl.when(k == pl.num_programs(2) - 1)
    def _():
        o_ref[...] = jnp.maximum(o_ref[...] + bias_ref[...], 0.0)


def prepare_weight(weight):
    """One-time weight prep (do NOT call per forward pass).

    (Cout, Cin, 3, 3) -> (kh, kw, ci, cout) -> (9*Cin, Cout), cast to bf16.
    """
    cout, cin = weight.shape[0], weight.shape[1]
    w = jnp.transpose(weight, (2, 3, 1, 0)).reshape(9 * cin, cout)
    return w.astype(jnp.bfloat16)


@functools.partial(jax.jit, static_argnames=("tm", "tn", "tk"))
def compressor1_forward(x_nchw, w_mat, bias, *, tm=128, tn=512, tk=2304):
    """x_nchw: (N, Cin, H, W) f32; w_mat: (9*Cin, Cout) bf16 (from prepare_weight);
    bias: (Cout,) f32."""
    N, Cin, H, W = x_nchw.shape
    K, Cout = w_mat.shape
    assert K == 9 * Cin, (K, Cin)

    # --- glue: NCHW -> NHWC (bf16), zero-pad spatially, im2col -------------
    x_nhwc = jnp.transpose(x_nchw, (0, 2, 3, 1)).astype(jnp.bfloat16)   # (N,H,W,Cin)
    xp = jnp.pad(x_nhwc, ((0, 0), (1, 1), (1, 1), (0, 0)))              # (N,H+2,W+2,Cin)
    # patches last-axis ordering: (kh, kw, ci) — matches prepare_weight.
    patches = jnp.concatenate(
        [xp[:, kh:kh + H, kw:kw + W, :] for kh in range(3) for kw in range(3)],
        axis=-1,
    )                                                                    # (N,H,W,9*Cin)
    M = N * H * W
    a = patches.reshape(M, K)                                            # bf16
    bias2d = bias.reshape(1, Cout).astype(jnp.float32)

    assert M % tm == 0 and Cout % tn == 0 and K % tk == 0, (M, Cout, K, tm, tn, tk)

    grid = (M // tm, Cout // tn, K // tk)
    out_flat = pl.pallas_call(
        _conv_mm_kernel,
        out_shape=jax.ShapeDtypeStruct((M, Cout), jnp.float32),
        grid_spec=pltpu.PrefetchScalarGridSpec(
            num_scalar_prefetch=0,
            grid=grid,
            in_specs=[
                pl.BlockSpec((tm, tk), lambda i, j, k: (i, k)),   # patches (bf16)
                pl.BlockSpec((tk, tn), lambda i, j, k: (k, j)),   # weight  (bf16)
                pl.BlockSpec((1, tn), lambda i, j, k: (0, j)),    # bias    (f32)
            ],
            out_specs=pl.BlockSpec((tm, tn), lambda i, j, k: (i, j)),
        ),
        compiler_params=pltpu.CompilerParams(
            dimension_semantics=("parallel", "parallel", "arbitrary"),
            vmem_limit_bytes=48 * 1024 * 1024,
        ),
    )(a, w_mat, bias2d)

    # --- glue: (N*H*W, Cout) -> NCHW ---------------------------------------
    out = out_flat.reshape(N, H, W, Cout)
    return jnp.transpose(out, (0, 3, 1, 2))


def _reference_forward(x_nchw, weight, bias):
    out = jax.lax.conv_general_dilated(
        x_nchw, weight,
        window_strides=(1, 1), padding=((1, 1), (1, 1)),
        dimension_numbers=("NCHW", "OIHW", "NCHW"),
    )
    return jnp.maximum(out + bias.reshape(1, -1, 1, 1), 0.0)


if __name__ == "__main__":
    # Small spatial size (the module fixes Cin=2048, Cout=1024).
    N, Cin, H, W, Cout = 2, 2048, 8, 8, 1024

    key = jax.random.PRNGKey(0)
    kx, kw, kb = jax.random.split(key, 3)
    x = jax.random.normal(kx, (N, Cin, H, W), dtype=jnp.float32)
    # deterministic synthetic parameters (roughly Kaiming-scale)
    fan_in = Cin * 3 * 3
    weight = jax.random.normal(kw, (Cout, Cin, 3, 3), dtype=jnp.float32) * (
        1.0 / jnp.sqrt(fan_in)
    )
    bias = jax.random.normal(kb, (Cout,), dtype=jnp.float32) * 0.01

    # One-time weight transform (hoisted out of the per-call forward path).
    w_mat = jax.block_until_ready(prepare_weight(weight))

    out = compressor1_forward(x, w_mat, bias)
    out = jax.block_until_ready(out)

    ref = _reference_forward(x, weight, bias)
    assert out.shape == (N, Cout, H, W), out.shape
    # bf16 operands with f32 accumulation over K=18432 -> slightly looser tol.
    assert jnp.allclose(out, ref, rtol=3e-2, atol=3e-2), float(
        jnp.max(jnp.abs(out - ref))
    )

    print("KERNEL_OK")
</pallas_src>

<mosaic_0001>
module attributes {stable_mosaic.version = 11 : i64} {
  func.func @_conv_mm_kernel(%arg0: i32, %arg1: i32, %arg2: i32, %arg3: memref<128x2304xbf16, #tpu.memory_space<vmem>>, %arg4: memref<2304x512xbf16, #tpu.memory_space<vmem>>, %arg5: memref<1x512xf32, #tpu.memory_space<vmem>>, %arg6: memref<128x512xf32, #tpu.memory_space<vmem>>) attributes {dimension_semantics = [#tpu.dimension_semantics<parallel>, #tpu.dimension_semantics<parallel>, #tpu.dimension_semantics<arbitrary>], iteration_bounds = array<i64: 1, 2, 8>, scalar_prefetch = 0 : i64, scratch_operands = 0 : i64, tpu.core_type = #tpu.core_type<tc>, window_params = [{transform_indices = @transform_0, window_bounds = array<i64: 128, 2304>}, {transform_indices = @transform_1, window_bounds = array<i64: 2304, 512>}, {transform_indices = @transform_2, window_bounds = array<i64: 1, 512>}, {transform_indices = @transform_3, window_bounds = array<i64: 128, 512>}]} {
    %c0_i32 = arith.constant 0 : i32
    %0 = arith.cmpi eq, %arg2, %c0_i32 : i32
    %1 = arith.extui %0 : i1 to i32
    %c0_i32_0 = arith.constant 0 : i32
    %2 = arith.cmpi ne, %1, %c0_i32_0 : i32
    scf.if %2 {
      %cst_9 = arith.constant 0.000000e+00 : f32
      %12 = vector.broadcast %cst_9 : f32 to vector<128x512xf32>
      %c0_10 = arith.constant 0 : index
      %c0_11 = arith.constant 0 : index
      %13 = vector.load %arg6[%c0_10, %c0_11] : memref<128x512xf32, #tpu.memory_space<vmem>>, vector<128x512xf32>
      tpu.vector_store %arg6[%c0_10, %c0_11], %12 {strides = array<i32>} : memref<128x512xf32, #tpu.memory_space<vmem>>, vector<128x512xf32>,
    } else {
    }
    %c0 = arith.constant 0 : index
    %c0_1 = arith.constant 0 : index
    %3 = vector.load %arg6[%c0, %c0_1] : memref<128x512xf32, #tpu.memory_space<vmem>>, vector<128x512xf32>
    %c0_2 = arith.constant 0 : index
    %c0_3 = arith.constant 0 : index
    %4 = vector.load %arg3[%c0_2, %c0_3] : memref<128x2304xbf16, #tpu.memory_space<vmem>>, vector<128x2304xbf16>
    %c0_4 = arith.constant 0 : index
    %c0_5 = arith.constant 0 : index
    %5 = vector.load %arg4[%c0_4, %c0_5] : memref<2304x512xbf16, #tpu.memory_space<vmem>>, vector<2304x512xbf16>
    %cst = arith.constant dense<0.000000e+00> : vector<128x512xf32>
    %6 = tpu.matmul %4, %5, %cst {dimension_numbers = #tpu.dot_dimension_numbers<[1], [0], [0], [1], [0, 0, 1, 1], [], []>} : vector<128x2304xbf16>, vector<2304x512xbf16>, vector<128x512xf32> -> vector<128x512xf32>
    %7 = arith.addf %3, %6 : vector<128x512xf32>
    %c0_6 = arith.constant 0 : index
    %c0_7 = arith.constant 0 : index
    %8 = vector.load %arg6[%c0_6, %c0_7] : memref<128x512xf32, #tpu.memory_space<vmem>>, vector<128x512xf32>
    tpu.vector_store %arg6[%c0_6, %c0_7], %7 {strides = array<i32>} : memref<128x512xf32, #tpu.memory_space<vmem>>, vector<128x512xf32>,
    %c7_i32 = arith.constant 7 : i32
    %9 = arith.cmpi eq, %arg2, %c7_i32 : i32
    %10 = arith.extui %9 : i1 to i32
    %c0_i32_8 = arith.constant 0 : i32
    %11 = arith.cmpi ne, %10, %c0_i32_8 : i32
    scf.if %11 {
      %c0_9 = arith.constant 0 : index
      %c0_10 = arith.constant 0 : index
      %12 = vector.load %arg6[%c0_9, %c0_10] : memref<128x512xf32, #tpu.memory_space<vmem>>, vector<128x512xf32>
      %c0_11 = arith.constant 0 : index
      %c0_12 = arith.constant 0 : index
      %13 = vector.load %arg5[%c0_11, %c0_12] : memref<1x512xf32, #tpu.memory_space<vmem>>, vector<1x512xf32>
      %14 = vector.broadcast %13 : vector<1x512xf32> to vector<128x512xf32>
      %15 = arith.addf %12, %14 : vector<128x512xf32>
      %cst_13 = arith.constant 0.000000e+00 : f32
      %16 = vector.broadcast %cst_13 : f32 to vector<128x512xf32>
      %17 = arith.maximumf %15, %16 : vector<128x512xf32>
      %c0_14 = arith.constant 0 : index
      %c0_15 = arith.constant 0 : index
      %18 = vector.load %arg6[%c0_14, %c0_15] : memref<128x512xf32, #tpu.memory_space<vmem>>, vector<128x512xf32>
      tpu.vector_store %arg6[%c0_14, %c0_15], %17 {strides = array<i32>} : memref<128x512xf32, #tpu.memory_space<vmem>>, vector<128x512xf32>,
    } else {
    }
    return
  }
  func.func @transform_0(%arg0: i32, %arg1: i32, %arg2: i32) -> (i32, i32) {
    %c0_i32 = arith.constant 0 : i32
    return %arg0, %arg2 : i32, i32
  }
  func.func @transform_1(%arg0: i32, %arg1: i32, %arg2: i32) -> (i32, i32) {
    %c0_i32 = arith.constant 0 : i32
    return %arg2, %arg1 : i32, i32
  }
  func.func @transform_2(%arg0: i32, %arg1: i32, %arg2: i32) -> (i32, i32) {
    %c0_i32 = arith.constant 0 : i32
    %c0_i32_0 = arith.constant 0 : i32
    return %c0_i32, %arg1 : i32, i32
  }
  func.func @transform_3(%arg0: i32, %arg1: i32, %arg2: i32) -> (i32, i32) {
    %c0_i32 = arith.constant 0 : i32
    return %arg0, %arg1 : i32, i32
  }
}

</mosaic_0001>

<bundles_post_ra>
// kernel: compressor1_forward.1
= control target key start
LH: loop header
LB: loop body
LE: loop exit
PB: predicated region body
PF: predicated region fallthrough
CT: control target
= control target key end

     0   :  { %s12714_s0 = inlined_call_operand.vmem [shape: bf16[128,18432], index: 0, kind: input, shape index: {}]   ;;  %s12715_s1 = inlined_call_operand.hbm [shape: bf16[18432,1024], index: 1, kind: input, shape index: {}]   ;;  %s12716_s2 = inlined_call_operand.vmem [shape: f32[1,1024], index: 2, kind: input, shape index: {}]   ;;  %s12717_s3 = inlined_call_operand.hbm [shape: f32[128,1024], index: 3, kind: output, shape index: {}]  }
   0x1   :  { %12724 = sst [smem:[#allocation63_spill]] %s12714_s0 }
   0x2   :  { %8 = vsyncpa [#allocation4], 0 }
   0x3   :  { %10 = vsyncpa [#allocation4 + $0x1], 0 }
   0x4   :  { %11 = vsyncpa [#allocation5], 0 }
   0x5   :  { %13 = vsyncpa [#allocation5 + $0x1], 0  ;;  %s9889_s12 = smov 0   ;;  %s9891_s13 = smov 0  }
   0x6   :  { %s9893_s14 = smov 0   ;;  %s9895_s15 = smov 0  }
   0x7   :  { %s9897_s16 = smov 0   ;;  %s9899_s17 = smov 0  }
   0x8   :  { %s9901_s18 = smov 0   ;;  %s9903_s19 = smov 0  }
   0x9   :  { %s9905_s20 = smov 0   ;;  %s9907_s21 = smov 0  }
   0xa   :  { %s9909_s22 = smov 0   ;;  %s9911_s23 = smov 0  }
   0xb   :  { %s9913_s24 = smov 0  }
   0xc LB: > { %12725 = sst [smem:[#allocation9_spill]] %s9818_s14  ;;  %s7607_s25 = sadd.s32 4294967295, %s9858_s24   ;;  %s9858_s24 = sphi %s9913_s24, %s19_s24   ;;  %s9854_s23 = sphi %s9911_s23, %s12924_s23   ;;  %s9850_s22 = sphi %s9909_s22, %s12931_s22   ;;  %s9846_s21 = sphi %s9907_s21, %s12922_s21   ;;  %s9842_s20 = sphi %s9905_s20, %s12930_s20   ;;  %s9838_s19 = sphi %s9903_s19, %s12921_s19   ;;  %s9834_s18 = sphi %s9901_s18, %s12920_s18   ;;  %s9830_s17 = sphi %s9899_s17, %s12919_s17   ;;  %s9826_s16 = sphi %s9897_s16, %s12929_s16   ;;  %s9822_s15 = sphi %s9895_s15, %s12928_s15   ;;  %s9818_s14 = sphi %s9893_s14, %s12917_s14   ;;  %s9814_s13 = sphi %s9891_s13, %s12927_s13   ;;  %s9810_s12 = sphi %s9889_s12, %s12926_s12  }
   0xd   : > { %12726 = sst [smem:[#allocation10_spill]] %s9830_s17  ;;  %s31_s27 = sadd.s32 1, %s9850_s22 }
   0xe   : > { %12727 = sst [smem:[#allocation11_spill]] %s9838_s19  ;;  %s34_s28 = sadd.s32 1, %s9854_s23 }
   0xf   : > { %12728 = sst [smem:[#allocation12_spill]] %s9854_s23  ;;  %p32_p0 = scmp.ge.s32.totalorder %s31_s27, 8 }
  0x10   : > { %s47_s29 = sadd.s32 1, %s9838_s19  ;;  %p54_p1 = scmp.ne.s32.totalorder %s9838_s19, %s9834_s18 }
  0x11   : > { %p55_p2 = scmp.eq.s32.totalorder %s9858_s24, 0  ;;  %s12933_s27 = smov (%p32_p0, %s31_s27), 0 }
  0x12   : > { %12729 = sst [smem:[#allocation13_spill]] %s12933_s27  ;;  %s12935_s28 = smov (!%p32_p0, %s34_s28), %s9854_s23 }
  0x13   : > { %s43_s30 = ssub.s32 %s9850_s22, %s12933_s27  ;;  %p9967_p3 = por %p55_p2, %p54_p1 }
  0x14   : > { %p36_p4 = scmp.ge.s32.totalorder %s12935_s28, 2  ;;  %p45_p5 = scmp.eq.s32.totalorder %s43_s30, 0 }
  0x15   : > { %s75_s5 = sadd.s32 1, %s9830_s17  ;;  %p82_p6 = scmp.ne.s32.totalorder %s9830_s17, %s9826_s16 }
  0x16   : > { %s12937_s28 = smov (%p36_p4, %s12935_s28), 0  ;;  %p88_p8 = scmp.ne.s32.totalorder %s9826_s16, %s9822_s15 }
  0x17   : > { %12731 = sst [smem:[#allocation14_spill]] %s12937_s28  ;;  %s71_s7 = ssub.s32 %s9854_s23, %s12937_s28 }
  0x18   : > { %s9977_s6 = scalar_select %p45_p5, %s9838_s19, %s47_s29  }
  0x19   : > { %p9981_p7 = por %p82_p6, %p55_p2  ;;  %s72_s9 = sor.u32 %s71_s7, %s43_s30 }
  0x1a   : > { %12732 = sst [smem:[#allocation15_spill]] %s9977_s6  ;;  %p73_p9 = scmp.eq.s32.totalorder %s72_s9, 0 }
  0x1b   : > { %p89_p10 = scmp.eq.s32.totalorder %s7607_s25, 0  ;;  %p127_p11 = scmp.eq.s32.totalorder %s71_s7, 0 }
  0x1c   : > { %s129_s10 = sadd.s32 1, %s9818_s14  ;;  %p139_p13 = scmp.ne.s32.totalorder %s9818_s14, %s9814_s13 }
  0x1d   : > { %s9991_s11 = scalar_select %p73_p9, %s9830_s17, %s75_s5  }
  0x1e   : > { %p9993_p12 = por %p89_p10, %p88_p8  ;;  %p140_p0 = scmp.eq.s32.totalorder %s7607_s25, 15 }
  0x1f   : > { %12734 = sst [smem:[#allocation16_spill]] %s9991_s11  ;;  %p145_p1 = scmp.ne.s32.totalorder %s9814_s13, %s9810_s12 }
  0x20   : > { %s10000_s29 = scalar_select %p127_p11, %s9818_s14, %s129_s10  }
  0x21   : > { %s12737_s28 = sadd.s32 4294967294, %s9858_s24   ;;  %p10008_p4 = por %p140_p0, %p139_p13 }
  0x22   : > { %12736 = sst [smem:[#allocation17_spill]] %s10000_s29  ;;  %p146_p2 = scmp.eq.s32.totalorder %s12737_s28, 15 }
  0x23   : > { %p7610_p6 = scmp.ge.s32.totalorder %s9858_s24, 16 }
  0x24   : > { %p10012_p5 = por %p146_p2, %p145_p1 }
  0x25   : > { %162 = sbr.rel (%p7610_p6) target bundleno = 141 (0x8d), region = 16 }
  0x2a   : > { %165 = sbr.rel (!%p9967_p3) target bundleno = 123 (0x7b), region = 20  ;;  %s167_s25 = sand.u32 (%p9967_p3), 1, %s9838_s19  }
  0x2b   : > { %s8345_s5 = smul.u32 (%p9967_p3), 72, %s9850_s22  ;;  %s12740_s0 = sld [smem:[#allocation63_spill]] (%p9967_p3) }
  0x2c   : > { %s8348_s7 = smul.u32 (%p9967_p3), 1152, %s167_s25 }
  0x2e   : > { %s10029_s4 = scalar_lea.vmem (%p9967_p3), [#allocation2], %s8348_s7 }
  0x31   : > { %s10024_s10 = scalar_lea.vmem %s12740_s0, %s8345_s5 }
  0x32   : > { %v188_v0 = vld [vmem:[%s10024_s10] sm:$0xff]  ;;  %v190_v1 = vld [vmem:[%s10024_s10 + $0x8] sm:$0xff]  ;;  %v192_v2 = vld [vmem:[%s10024_s10 + $0x10] sm:$0xff] }
  0x33   : > { %189 = vst [vmem:[%s10029_s4] sm:$0xff] %v188_v0  ;;  %191 = vst [vmem:[%s10029_s4 + $0x8] sm:$0xff] %v190_v1  ;;  %v194_v3 = vld [vmem:[%s10024_s10 + $0x18] sm:$0xff]  ;;  %v196_v4 = vld [vmem:[%s10024_s10 + $0x20] sm:$0xff] }
  0x34   : > { %193 = vst [vmem:[%s10029_s4 + $0x10] sm:$0xff] %v192_v2  ;;  %v198_v5 = vld [vmem:[%s10024_s10 + $0x28] sm:$0xff]  ;;  %195 = vst [vmem:[%s10029_s4 + $0x18] sm:$0xff] %v194_v3  ;;  %v200_v6 = vld [vmem:[%s10024_s10 + $0x30] sm:$0xff] }
  0x35   : > { %197 = vst [vmem:[%s10029_s4 + $0x20] sm:$0xff] %v196_v4  ;;  %199 = vst [vmem:[%s10029_s4 + $0x28] sm:$0xff] %v198_v5  ;;  %v202_v7 = vld [vmem:[%s10024_s10 + $0x38] sm:$0xff]  ;;  %v204_v8 = vld [vmem:[%s10024_s10 + $0x40] sm:$0xff] }
  0x36   : > { %201 = vst [vmem:[%s10029_s4 + $0x30] sm:$0xff] %v200_v6  ;;  %203 = vst [vmem:[%s10029_s4 + $0x38] sm:$0xff] %v202_v7  ;;  %v206_v9 = vld [vmem:[%s10024_s10 + $0x240] sm:$0xff]  ;;  %v208_v10 = vld [vmem:[%s10024_s10 + $0x248] sm:$0xff] }
  0x37   : > { %205 = vst [vmem:[%s10029_s4 + $0x40] sm:$0xff] %v204_v8  ;;  %v210_v11 = vld [vmem:[%s10024_s10 + $0x250] sm:$0xff]  ;;  %207 = vst [vmem:[%s10029_s4 + $0x48] sm:$0xff] %v206_v9  ;;  %v212_v12 = vld [vmem:[%s10024_s10 + $0x258] sm:$0xff] }
  0x38   : > { %209 = vst [vmem:[%s10029_s4 + $0x50] sm:$0xff] %v208_v10  ;;  %211 = vst [vmem:[%s10029_s4 + $0x58] sm:$0xff] %v210_v11  ;;  %v214_v13 = vld [vmem:[%s10024_s10 + $0x260] sm:$0xff]  ;;  %v216_v14 = vld [vmem:[%s10024_s10 + $0x268] sm:$0xff] }
  0x39   : > { %213 = vst [vmem:[%s10029_s4 + $0x60] sm:$0xff] %v212_v12  ;;  %215 = vst [vmem:[%s10029_s4 + $0x68] sm:$0xff] %v214_v13  ;;  %v218_v15 = vld [vmem:[%s10024_s10 + $0x270] sm:$0xff]  ;;  %v220_v16 = vld [vmem:[%s10024_s10 + $0x278] sm:$0xff] }
  0x3a   : > { %217 = vst [vmem:[%s10029_s4 + $0x70] sm:$0xff] %v216_v14  ;;  %v222_v17 = vld [vmem:[%s10024_s10 + $0x280] sm:$0xff]  ;;  %219 = vst [vmem:[%s10029_s4 + $0x78] sm:$0xff] %v218_v15  ;;  %v226_v19 = vld [vmem:[%s10024_s10 + $0x488] sm:$0xff] }
  0x3b   : > { %221 = vst [vmem:[%s10029_s4 + $0x80] sm:$0xff] %v220_v16  ;;  %223 = vst [vmem:[%s10029_s4 + $0x88] sm:$0xff] %v222_v17  ;;  %v224_v18 = vld [vmem:[%s10024_s10 + $0x480] sm:$0xff]  ;;  %v228_v20 = vld [vmem:[%s10024_s10 + $0x490] sm:$0xff] }
  0x3c   : > { %225 = vst [vmem:[%s10029_s4 + $0x90] sm:$0xff] %v224_v18  ;;  %227 = vst [vmem:[%s10029_s4 + $0x98] sm:$0xff] %v226_v19  ;;  %v230_v21 = vld [vmem:[%s10024_s10 + $0x498] sm:$0xff]  ;;  %v232_v22 = vld [vmem:[%s10024_s10 + $0x4a0] sm:$0xff] }
  0x3d   : > { %229 = vst [vmem:[%s10029_s4 + $0xa0] sm:$0xff] %v228_v20  ;;  %v234_v23 = vld [vmem:[%s10024_s10 + $0x4a8] sm:$0xff]  ;;  %231 = vst [vmem:[%s10029_s4 + $0xa8] sm:$0xff] %v230_v21  ;;  %v236_v24 = vld [vmem:[%s10024_s10 + $0x4b0] sm:$0xff] }
  0x3e   : > { %233 = vst [vmem:[%s10029_s4 + $0xb0] sm:$0xff] %v232_v22  ;;  %235 = vst [vmem:[%s10029_s4 + $0xb8] sm:$0xff] %v234_v23  ;;  %v238_v25 = vld [vmem:[%s10024_s10 + $0x4b8] sm:$0xff]  ;;  %v240_v26 = vld [vmem:[%s10024_s10 + $0x4c0] sm:$0xff] }
  0x3f   : > { %237 = vst [vmem:[%s10029_s4 + $0xc0] sm:$0xff] %v236_v24  ;;  %239 = vst [vmem:[%s10029_s4 + $0xc8] sm:$0xff] %v238_v25  ;;  %v242_v27 = vld [vmem:[%s10024_s10 + $0x6c0] sm:$0xff]  ;;  %v244_v28 = vld [vmem:[%s10024_s10 + $0x6c8] sm:$0xff] }
  0x40   : > { %241 = vst [vmem:[%s10029_s4 + $0xd0] sm:$0xff] %v240_v26  ;;  %v246_v29 = vld [vmem:[%s10024_s10 + $0x6d0] sm:$0xff]  ;;  %243 = vst [vmem:[%s10029_s4 + $0xd8] sm:$0xff] %v242_v27  ;;  %v248_v30 = vld [vmem:[%s10024_s10 + $0x6d8] sm:$0xff] }
  0x41   : > { %245 = vst [vmem:[%s10029_s4 + $0xe0] sm:$0xff] %v244_v28  ;;  %247 = vst [vmem:[%s10029_s4 + $0xe8] sm:$0xff] %v246_v29  ;;  %v250_v31 = vld [vmem:[%s10024_s10 + $0x6e0] sm:$0xff]  ;;  %v252_v32 = vld [vmem:[%s10024_s10 + $0x6e8] sm:$0xff] }
  0x42   : > { %249 = vst [vmem:[%s10029_s4 + $0xf0] sm:$0xff] %v248_v30  ;;  %251 = vst [vmem:[%s10029_s4 + $0xf8] sm:$0xff] %v250_v31  ;;  %v254_v33 = vld [vmem:[%s10024_s10 + $0x6f0] sm:$0xff]  ;;  %v256_v34 = vld [vmem:[%s10024_s10 + $0x6f8] sm:$0xff] }
  0x43   : > { %253 = vst [vmem:[%s10029_s4 + $0x100] sm:$0xff] %v252_v32  ;;  %v258_v35 = vld [vmem:[%s10024_s10 + $0x700] sm:$0xff]  ;;  %255 = vst [vmem:[%s10029_s4 + $0x108] sm:$0xff] %v254_v33  ;;  %v262_v37 = vld [vmem:[%s10024_s10 + $0x908] sm:$0xff] }
  0x44   : > { %257 = vst [vmem:[%s10029_s4 + $0x110] sm:$0xff] %v256_v34  ;;  %259 = vst [vmem:[%s10029_s4 + $0x118] sm:$0xff] %v258_v35  ;;  %v260_v36 = vld [vmem:[%s10024_s10 + $0x900] sm:$0xff]  ;;  %v264_v38 = vld [vmem:[%s10024_s10 + $0x910] sm:$0xff] }
  0x45   : > { %261 = vst [vmem:[%s10029_s4 + $0x120] sm:$0xff] %v260_v36  ;;  %263 = vst [vmem:[%s10029_s4 + $0x128] sm:$0xff] %v262_v37  ;;  %v266_v39 = vld [vmem:[%s10024_s10 + $0x918] sm:$0xff]  ;;  %v268_v40 = vld [vmem:[%s10024_s10 + $0x920] sm:$0xff] }
  0x46   : > { %265 = vst [vmem:[%s10029_s4 + $0x130] sm:$0xff] %v264_v38  ;;  %v270_v41 = vld [vmem:[%s10024_s10 + $0x928] sm:$0xff]  ;;  %267 = vst [vmem:[%s10029_s4 + $0x138] sm:$0xff] %v266_v39  ;;  %v272_v42 = vld [vmem:[%s10024_s10 + $0x930] sm:$0xff] }
  0x47   : > { %269 = vst [vmem:[%s10029_s4 + $0x140] sm:$0xff] %v268_v40  ;;  %271 = vst [vmem:[%s10029_s4 + $0x148] sm:$0xff] %v270_v41  ;;  %v274_v43 = vld [vmem:[%s10024_s10 + $0x938] sm:$0xff]  ;;  %v276_v44 = vld [vmem:[%s10024_s10 + $0x940] sm:$0xff] }
  0x48   : > { %273 = vst [vmem:[%s10029_s4 + $0x150] sm:$0xff] %v272_v42  ;;  %275 = vst [vmem:[%s10029_s4 + $0x158] sm:$0xff] %v274_v43  ;;  %v278_v45 = vld [vmem:[%s10024_s10 + $0xb40] sm:$0xff]  ;;  %v280_v46 = vld [vmem:[%s10024_s10 + $0xb48] sm:$0xff] }
  0x49   : > { %277 = vst [vmem:[%s10029_s4 + $0x160] sm:$0xff] %v276_v44  ;;  %v282_v47 = vld [vmem:[%s10024_s10 + $0xb50] sm:$0xff]  ;;  %279 = vst [vmem:[%s10029_s4 + $0x168] sm:$0xff] %v278_v45  ;;  %v284_v48 = vld [vmem:[%s10024_s10 + $0xb58] sm:$0xff] }
  0x4a   : > { %281 = vst [vmem:[%s10029_s4 + $0x170] sm:$0xff] %v280_v46  ;;  %283 = vst [vmem:[%s10029_s4 + $0x178] sm:$0xff] %v282_v47  ;;  %v286_v49 = vld [vmem:[%s10024_s10 + $0xb60] sm:$0xff]  ;;  %v288_v50 = vld [vmem:[%s10024_s10 + $0xb68] sm:$0xff] }
  0x4b   : > { %285 = vst [vmem:[%s10029_s4 + $0x180] sm:$0xff] %v284_v48  ;;  %287 = vst [vmem:[%s10029_s4 + $0x188] sm:$0xff] %v286_v49  ;;  %v290_v51 = vld [vmem:[%s10024_s10 + $0xb70] sm:$0xff]  ;;  %v292_v52 = vld [vmem:[%s10024_s10 + $0xb78] sm:$0xff] }
  0x4c   : > { %289 = vst [vmem:[%s10029_s4 + $0x190] sm:$0xff] %v288_v50  ;;  %v294_v53 = vld [vmem:[%s10024_s10 + $0xb80] sm:$0xff]  ;;  %291 = vst [vmem:[%s10029_s4 + $0x198] sm:$0xff] %v290_v51  ;;  %v298_v55 = vld [vmem:[%s10024_s10 + $0xd88] sm:$0xff] }
  0x4d   : > { %293 = vst [vmem:[%s10029_s4 + $0x1a0] sm:$0xff] %v292_v52  ;;  %295 = vst [vmem:[%s10029_s4 + $0x1a8] sm:$0xff] %v294_v53  ;;  %v296_v54 = vld [vmem:[%s10024_s10 + $0xd80] sm:$0xff]  ;;  %v300_v56 = vld [vmem:[%s10024_s10 + $0xd90] sm:$0xff] }
  0x4e   : > { %297 = vst [vmem:[%s10029_s4 + $0x1b0] sm:$0xff] %v296_v54  ;;  %299 = vst [vmem:[%s10029_s4 + $0x1b8] sm:$0xff] %v298_v55  ;;  %v302_v57 = vld [vmem:[%s10024_s10 + $0xd98] sm:$0xff]  ;;  %v304_v58 = vld [vmem:[%s10024_s10 + $0xda0] sm:$0xff] }
  0x4f   : > { %301 = vst [vmem:[%s10029_s4 + $0x1c0] sm:$0xff] %v300_v56  ;;  %v306_v59 = vld [vmem:[%s10024_s10 + $0xda8] sm:$0xff]  ;;  %303 = vst [vmem:[%s10029_s4 + $0x1c8] sm:$0xff] %v302_v57  ;;  %v308_v60 = vld [vmem:[%s10024_s10 + $0xdb0] sm:$0xff] }
  0x50   : > { %305 = vst [vmem:[%s10029_s4 + $0x1d0] sm:$0xff] %v304_v58  ;;  %307 = vst [vmem:[%s10029_s4 + $0x1d8] sm:$0xff] %v306_v59  ;;  %v310_v61 = vld [vmem:[%s10024_s10 + $0xdb8] sm:$0xff]  ;;  %v312_v62 = vld [vmem:[%s10024_s10 + $0xdc0] sm:$0xff] }
  0x51   : > { %309 = vst [vmem:[%s10029_s4 + $0x1e0] sm:$0xff] %v308_v60  ;;  %311 = vst [vmem:[%s10029_s4 + $0x1e8] sm:$0xff] %v310_v61  ;;  %v314_v63 = vld [vmem:[%s10024_s10 + $0xfc0] sm:$0xff]  ;;  %v316_v0 = vld [vmem:[%s10024_s10 + $0xfc8] sm:$0xff] }
  0x52   : > { %313 = vst [vmem:[%s10029_s4 + $0x1f0] sm:$0xff] %v312_v62  ;;  %v318_v1 = vld [vmem:[%s10024_s10 + $0xfd0] sm:$0xff]  ;;  %315 = vst [vmem:[%s10029_s4 + $0x1f8] sm:$0xff] %v314_v63  ;;  %v320_v2 = vld [vmem:[%s10024_s10 + $0xfd8] sm:$0xff] }
  0x53   : > { %317 = vst [vmem:[%s10029_s4 + $0x200] sm:$0xff] %v316_v0  ;;  %319 = vst [vmem:[%s10029_s4 + $0x208] sm:$0xff] %v318_v1  ;;  %v322_v3 = vld [vmem:[%s10024_s10 + $0xfe0] sm:$0xff]  ;;  %v324_v4 = vld [vmem:[%s10024_s10 + $0xfe8] sm:$0xff] }
  0x54   : > { %321 = vst [vmem:[%s10029_s4 + $0x210] sm:$0xff] %v320_v2  ;;  %323 = vst [vmem:[%s10029_s4 + $0x218] sm:$0xff] %v322_v3  ;;  %v326_v5 = vld [vmem:[%s10024_s10 + $0xff0] sm:$0xff]  ;;  %v328_v6 = vld [vmem:[%s10024_s10 + $0xff8] sm:$0xff] }
  0x55   : > { %325 = vst [vmem:[%s10029_s4 + $0x220] sm:$0xff] %v324_v4  ;;  %v330_v7 = vld [vmem:[%s10024_s10 + $0x1000] sm:$0xff]  ;;  %327 = vst [vmem:[%s10029_s4 + $0x228] sm:$0xff] %v326_v5  ;;  %v334_v9 = vld [vmem:[%s10024_s10 + $0x1208] sm:$0xff] }
  0x56   : > { %329 = vst [vmem:[%s10029_s4 + $0x230] sm:$0xff] %v328_v6  ;;  %331 = vst [vmem:[%s10029_s4 + $0x238] sm:$0xff] %v330_v7  ;;  %v332_v8 = vld [vmem:[%s10024_s10 + $0x1200] sm:$0xff]  ;;  %v336_v10 = vld [vmem:[%s10024_s10 + $0x1210] sm:$0xff] }
  0x57   : > { %333 = vst [vmem:[%s10029_s4 + $0x240] sm:$0xff] %v332_v8  ;;  %335 = vst [vmem:[%s10029_s4 + $0x248] sm:$0xff] %v334_v9  ;;  %v338_v11 = vld [vmem:[%s10024_s10 + $0x1218] sm:$0xff]  ;;  %v340_v12 = vld [vmem:[%s10024_s10 + $0x1220] sm:$0xff] }
  0x58   : > { %337 = vst [vmem:[%s10029_s4 + $0x250] sm:$0xff] %v336_v10  ;;  %v342_v13 = vld [vmem:[%s10024_s10 + $0x1228] sm:$0xff]  ;;  %339 = vst [vmem:[%s10029_s4 + $0x258] sm:$0xff] %v338_v11  ;;  %v344_v14 = vld [vmem:[%s10024_s10 + $0x1230] sm:$0xff] }
  0x59   : > { %341 = vst [vmem:[%s10029_s4 + $0x260] sm:$0xff] %v340_v12  ;;  %343 = vst [vmem:[%s10029_s4 + $0x268] sm:$0xff] %v342_v13  ;;  %v346_v15 = vld [vmem:[%s10024_s10 + $0x1238] sm:$0xff]  ;;  %v348_v16 = vld [vmem:[%s10024_s10 + $0x1240] sm:$0xff] }
  0x5a   : > { %345 = vst [vmem:[%s10029_s4 + $0x270] sm:$0xff] %v344_v14  ;;  %347 = vst [vmem:[%s10029_s4 + $0x278] sm:$0xff] %v346_v15  ;;  %v350_v17 = vld [vmem:[%s10024_s10 + $0x1440] sm:$0xff]  ;;  %v352_v18 = vld [vmem:[%s10024_s10 + $0x1448] sm:$0xff] }
  0x5b   : > { %349 = vst [vmem:[%s10029_s4 + $0x280] sm:$0xff] %v348_v16  ;;  %v354_v19 = vld [vmem:[%s10024_s10 + $0x1450] sm:$0xff]  ;;  %351 = vst [vmem:[%s10029_s4 + $0x288] sm:$0xff] %v350_v17  ;;  %v356_v20 = vld [vmem:[%s10024_s10 + $0x1458] sm:$0xff] }
  0x5c   : > { %353 = vst [vmem:[%s10029_s4 + $0x290] sm:$0xff] %v352_v18  ;;  %355 = vst [vmem:[%s10029_s4 + $0x298] sm:$0xff] %v354_v19  ;;  %v358_v21 = vld [vmem:[%s10024_s10 + $0x1460] sm:$0xff]  ;;  %v360_v22 = vld [vmem:[%s10024_s10 + $0x1468] sm:$0xff] }
  0x5d   : > { %357 = vst [vmem:[%s10029_s4 + $0x2a0] sm:$0xff] %v356_v20  ;;  %359 = vst [vmem:[%s10029_s4 + $0x2a8] sm:$0xff] %v358_v21  ;;  %v362_v23 = vld [vmem:[%s10024_s10 + $0x1470] sm:$0xff]  ;;  %v364_v24 = vld [vmem:[%s10024_s10 + $0x1478] sm:$0xff] }
  0x5e   : > { %361 = vst [vmem:[%s10029_s4 + $0x2b0] sm:$0xff] %v360_v22  ;;  %v366_v25 = vld [vmem:[%s10024_s10 + $0x1480] sm:$0xff]  ;;  %363 = vst [vmem:[%s10029_s4 + $0x2b8] sm:$0xff] %v362_v23  ;;  %v370_v27 = vld [vmem:[%s10024_s10 + $0x1688] sm:$0xff] }
  0x5f   : > { %365 = vst [vmem:[%s10029_s4 + $0x2c0] sm:$0xff] %v364_v24  ;;  %367 = vst [vmem:[%s10029_s4 + $0x2c8] sm:$0xff] %v366_v25  ;;  %v368_v26 = vld [vmem:[%s10024_s10 + $0x1680] sm:$0xff]  ;;  %v372_v28 = vld [vmem:[%s10024_s10 + $0x1690] sm:$0xff] }
  0x60   : > { %369 = vst [vmem:[%s10029_s4 + $0x2d0] sm:$0xff] %v368_v26  ;;  %371 = vst [vmem:[%s10029_s4 + $0x2d8] sm:$0xff] %v370_v27  ;;  %v374_v29 = vld [vmem:[%s10024_s10 + $0x1698] sm:$0xff]  ;;  %v376_v30 = vld [vmem:[%s10024_s10 + $0x16a0] sm:$0xff] }
  0x61   : > { %373 = vst [vmem:[%s10029_s4 + $0x2e0] sm:$0xff] %v372_v28  ;;  %v378_v31 = vld [vmem:[%s10024_s10 + $0x16a8] sm:$0xff]  ;;  %375 = vst [vmem:[%s10029_s4 + $0x2e8] sm:$0xff] %v374_v29  ;;  %v380_v32 = vld [vmem:[%s10024_s10 + $0x16b0] sm:$0xff] }
  0x62   : > { %377 = vst [vmem:[%s10029_s4 + $0x2f0] sm:$0xff] %v376_v30  ;;  %379 = vst [vmem:[%s10029_s4 + $0x2f8] sm:$0xff] %v378_v31  ;;  %v382_v33 = vld [vmem:[%s10024_s10 + $0x16b8] sm:$0xff]  ;;  %v384_v34 = vld [vmem:[%s10024_s10 + $0x16c0] sm:$0xff] }
  0x63   : > { %381 = vst [vmem:[%s10029_s4 + $0x300] sm:$0xff] %v380_v32  ;;  %383 = vst [vmem:[%s10029_s4 + $0x308] sm:$0xff] %v382_v33  ;;  %v386_v35 = vld [vmem:[%s10024_s10 + $0x18c0] sm:$0xff]  ;;  %v388_v36 = vld [vmem:[%s10024_s10 + $0x18c8] sm:$0xff] }
  0x64   : > { %385 = vst [vmem:[%s10029_s4 + $0x310] sm:$0xff] %v384_v34  ;;  %v390_v37 = vld [vmem:[%s10024_s10 + $0x18d0] sm:$0xff]  ;;  %387 = vst [vmem:[%s10029_s4 + $0x318] sm:$0xff] %v386_v35  ;;  %v392_v38 = vld [vmem:[%s10024_s10 + $0x18d8] sm:$0xff] }
  0x65   : > { %389 = vst [vmem:[%s10029_s4 + $0x320] sm:$0xff] %v388_v36  ;;  %391 = vst [vmem:[%s10029_s4 + $0x328] sm:$0xff] %v390_v37  ;;  %v394_v39 = vld [vmem:[%s10024_s10 + $0x18e0] sm:$0xff]  ;;  %v396_v40 = vld [vmem:[%s10024_s10 + $0x18e8] sm:$0xff] }
  0x66   : > { %393 = vst [vmem:[%s10029_s4 + $0x330] sm:$0xff] %v392_v38  ;;  %395 = vst [vmem:[%s10029_s4 + $0x338] sm:$0xff] %v394_v39  ;;  %v398_v41 = vld [vmem:[%s10024_s10 + $0x18f0] sm:$0xff]  ;;  %v400_v42 = vld [vmem:[%s10024_s10 + $0x18f8] sm:$0xff] }
  0x67   : > { %397 = vst [vmem:[%s10029_s4 + $0x340] sm:$0xff] %v396_v40  ;;  %v402_v43 = vld [vmem:[%s10024_s10 + $0x1900] sm:$0xff]  ;;  %399 = vst [vmem:[%s10029_s4 + $0x348] sm:$0xff] %v398_v41  ;;  %v406_v45 = vld [vmem:[%s10024_s10 + $0x1b08] sm:$0xff] }
  0x68   : > { %401 = vst [vmem:[%s10029_s4 + $0x350] sm:$0xff] %v400_v42  ;;  %403 = vst [vmem:[%s10029_s4 + $0x358] sm:$0xff] %v402_v43  ;;  %v404_v44 = vld [vmem:[%s10024_s10 + $0x1b00] sm:$0xff]  ;;  %v408_v46 = vld [vmem:[%s10024_s10 + $0x1b10] sm:$0xff] }
  0x69   : > { %405 = vst [vmem:[%s10029_s4 + $0x360] sm:$0xff] %v404_v44  ;;  %407 = vst [vmem:[%s10029_s4 + $0x368] sm:$0xff] %v406_v45  ;;  %v410_v47 = vld [vmem:[%s10024_s10 + $0x1b18] sm:$0xff]  ;;  %v412_v48 = vld [vmem:[%s10024_s10 + $0x1b20] sm:$0xff] }
  0x6a   : > { %409 = vst [vmem:[%s10029_s4 + $0x370] sm:$0xff] %v408_v46  ;;  %v414_v49 = vld [vmem:[%s10024_s10 + $0x1b28] sm:$0xff]  ;;  %411 = vst [vmem:[%s10029_s4 + $0x378] sm:$0xff] %v410_v47  ;;  %v416_v50 = vld [vmem:[%s10024_s10 + $0x1b30] sm:$0xff] }
  0x6b   : > { %413 = vst [vmem:[%s10029_s4 + $0x380] sm:$0xff] %v412_v48  ;;  %415 = vst [vmem:[%s10029_s4 + $0x388] sm:$0xff] %v414_v49  ;;  %v418_v51 = vld [vmem:[%s10024_s10 + $0x1b38] sm:$0xff]  ;;  %v420_v52 = vld [vmem:[%s10024_s10 + $0x1b40] sm:$0xff] }
  0x6c   : > { %417 = vst [vmem:[%s10029_s4 + $0x390] sm:$0xff] %v416_v50  ;;  %419 = vst [vmem:[%s10029_s4 + $0x398] sm:$0xff] %v418_v51  ;;  %v422_v53 = vld [vmem:[%s10024_s10 + $0x1d40] sm:$0xff]  ;;  %v424_v54 = vld [vmem:[%s10024_s10 + $0x1d48] sm:$0xff] }
  0x6d   : > { %421 = vst [vmem:[%s10029_s4 + $0x3a0] sm:$0xff] %v420_v52  ;;  %v426_v55 = vld [vmem:[%s10024_s10 + $0x1d50] sm:$0xff]  ;;  %423 = vst [vmem:[%s10029_s4 + $0x3a8] sm:$0xff] %v422_v53  ;;  %v428_v56 = vld [vmem:[%s10024_s10 + $0x1d58] sm:$0xff] }
  0x6e   : > { %425 = vst [vmem:[%s10029_s4 + $0x3b0] sm:$0xff] %v424_v54  ;;  %427 = vst [vmem:[%s10029_s4 + $0x3b8] sm:$0xff] %v426_v55  ;;  %v430_v57 = vld [vmem:[%s10024_s10 + $0x1d60] sm:$0xff]  ;;  %v432_v58 = vld [vmem:[%s10024_s10 + $0x1d68] sm:$0xff] }
  0x6f   : > { %429 = vst [vmem:[%s10029_s4 + $0x3c0] sm:$0xff] %v428_v56  ;;  %431 = vst [vmem:[%s10029_s4 + $0x3c8] sm:$0xff] %v430_v57  ;;  %v434_v59 = vld [vmem:[%s10024_s10 + $0x1d70] sm:$0xff]  ;;  %v436_v60 = vld [vmem:[%s10024_s10 + $0x1d78] sm:$0xff] }
  0x70   : > { %433 = vst [vmem:[%s10029_s4 + $0x3d0] sm:$0xff] %v432_v58  ;;  %v438_v61 = vld [vmem:[%s10024_s10 + $0x1d80] sm:$0xff]  ;;  %435 = vst [vmem:[%s10029_s4 + $0x3d8] sm:$0xff] %v434_v59  ;;  %v442_v63 = vld [vmem:[%s10024_s10 + $0x1f88] sm:$0xff] }
  0x71   : > { %437 = vst [vmem:[%s10029_s4 + $0x3e0] sm:$0xff] %v436_v60  ;;  %439 = vst [vmem:[%s10029_s4 + $0x3e8] sm:$0xff] %v438_v61  ;;  %v440_v62 = vld [vmem:[%s10024_s10 + $0x1f80] sm:$0xff]  ;;  %v444_v0 = vld [vmem:[%s10024_s10 + $0x1f90] sm:$0xff] }
  0x72   : > { %441 = vst [vmem:[%s10029_s4 + $0x3f0] sm:$0xff] %v440_v62  ;;  %443 = vst [vmem:[%s10029_s4 + $0x3f8] sm:$0xff] %v442_v63  ;;  %v446_v1 = vld [vmem:[%s10024_s10 + $0x1f98] sm:$0xff]  ;;  %v448_v2 = vld [vmem:[%s10024_s10 + $0x1fa0] sm:$0xff] }
  0x73   : > { %445 = vst [vmem:[%s10029_s4 + $0x400] sm:$0xff] %v444_v0  ;;  %v450_v3 = vld [vmem:[%s10024_s10 + $0x1fa8] sm:$0xff]  ;;  %447 = vst [vmem:[%s10029_s4 + $0x408] sm:$0xff] %v446_v1  ;;  %v452_v4 = vld [vmem:[%s10024_s10 + $0x1fb0] sm:$0xff] }
  0x74   : > { %449 = vst [vmem:[%s10029_s4 + $0x410] sm:$0xff] %v448_v2  ;;  %451 = vst [vmem:[%s10029_s4 + $0x418] sm:$0xff] %v450_v3  ;;  %v454_v5 = vld [vmem:[%s10024_s10 + $0x1fb8] sm:$0xff]  ;;  %v456_v6 = vld [vmem:[%s10024_s10 + $0x1fc0] sm:$0xff] }
  0x75   : > { %453 = vst [vmem:[%s10029_s4 + $0x420] sm:$0xff] %v452_v4  ;;  %455 = vst [vmem:[%s10029_s4 + $0x428] sm:$0xff] %v454_v5  ;;  %v458_v7 = vld [vmem:[%s10024_s10 + $0x21c0] sm:$0xff]  ;;  %v460_v8 = vld [vmem:[%s10024_s10 + $0x21c8] sm:$0xff] }
  0x76   : > { %457 = vst [vmem:[%s10029_s4 + $0x430] sm:$0xff] %v456_v6  ;;  %v462_v9 = vld [vmem:[%s10024_s10 + $0x21d0] sm:$0xff]  ;;  %459 = vst [vmem:[%s10029_s4 + $0x438] sm:$0xff] %v458_v7  ;;  %v464_v10 = vld [vmem:[%s10024_s10 + $0x21d8] sm:$0xff] }
  0x77   : > { %461 = vst [vmem:[%s10029_s4 + $0x440] sm:$0xff] %v460_v8  ;;  %463 = vst [vmem:[%s10029_s4 + $0x448] sm:$0xff] %v462_v9  ;;  %v466_v11 = vld [vmem:[%s10024_s10 + $0x21e0] sm:$0xff]  ;;  %v468_v12 = vld [vmem:[%s10024_s10 + $0x21e8] sm:$0xff] }
  0x78   : > { %465 = vst [vmem:[%s10029_s4 + $0x450] sm:$0xff] %v464_v10  ;;  %467 = vst [vmem:[%s10029_s4 + $0x458] sm:$0xff] %v466_v11  ;;  %v470_v13 = vld [vmem:[%s10024_s10 + $0x21f0] sm:$0xff]  ;;  %v472_v14 = vld [vmem:[%s10024_s10 + $0x21f8] sm:$0xff] }
  0x79   : > { %469 = vst [vmem:[%s10029_s4 + $0x460] sm:$0xff] %v468_v12  ;;  %v474_v15 = vld [vmem:[%s10024_s10 + $0x2200] sm:$0xff]  ;;  %471 = vst [vmem:[%s10029_s4 + $0x468] sm:$0xff] %v470_v13 }
  0x7a   : > { %473 = vst [vmem:[%s10029_s4 + $0x470] sm:$0xff] %v472_v14  ;;  %475 = vst [vmem:[%s10029_s4 + $0x478] sm:$0xff] %v474_v15 }
  0x7b PF: > { %s482_s25 = sand.u32 1, %s9830_s17   ;;  %s7612_s5 = sshll.u32 %s9854_s23, 2 }
  0x7c   : > { %s8349_s7 = smul.u32 4608, %s482_s25  ;;  %s483_s29 = scalar_lea.sflag [#allocation4], %s482_s25 }
  0x7d   : > { %s8346_s28 = smul.u32 2304, %s9850_s22  ;;  %s9860_s14 = smov [#allocation3]  }
  0x7e   : > { %s486_s0 = scalar_lea.vmem [#allocation3], %s8349_s7  ;;  %s9712_s17 = sshll.u32 %s9860_s14, 4  ;;  %s9713_s17 = int_to_ptr.vmem [resolvable:$false] %s9712_s17 }
  0x7f   : > { %s493_s9 = sadd.s32 %s8346_s28, %s7612_s5  ;;  %s496_s27 = sshll.u32 %s486_s0, 4  ;;  %s497_s27 = int_to_ptr.vmem [resolvable:$true] %s496_s27 }
  0x80   : > { %s7614_s6 = sshll.u32 %s493_s9, 6  ;;  %s9708_s4 = scalar_lea.vmem %s497_s27, 73728 }
  0x81   : > { %s495_s10 = scalar_lea.hbm %s12715_s1, %s7614_s6  ;;  %p9709_p3 = scmp.ne.s32.totalorder %s497_s27, %s9708_s4 }
  0x82   : > { %s9714_s23 = scalar_lea.vmem %s9713_s17, 147456  ;;  %p9715_p10 = scmp.lt.s32.totalorder %s497_s27, %s9713_s17 }
  0x83   : > { %p9710_p8 = pnand %p9709_p3, %p9981_p7  ;;  %p9716_p11 = scmp.lt.s32.totalorder %s9714_s23, %s9708_s4 }
  0x85   : > { %p9711_p9 = pneg %p9710_p8  ;;  %p9717_p13 = por %p9716_p11, %p9715_p10 }
  0x87   : > { %p9718_p0 = pnand %p9717_p13, %p9711_p9 }
  0x89   : > { %9721 = shalt.err (!%p9718_p0)
}
  0x8a   : > { %s9861_s0 = smov 512   ;;  %s9862_s5 = smov 256  }
  0x8b   : > { %s9863_s19 = smov 16  }
  0x8c   : > { %8352 = dma.hbm_to_vmem [thread:$0]  (%p9981_p7), %s495_s10, 73728, %s497_s27, %s483_s29, %s9861_s0, %s9862_s5, %s9863_s19  }
  0x8d PF: > { %p7615_p1 = scmp.ge.s32.totalorder %s9858_s24, 1  ;;  %p512_p2 = scmp.lt.s32.totalorder %s9858_s24, 17 }
  0x8f   : > { %p513_p6 = pnand %p7615_p1, %p512_p2 }
  0x91   : > { %516 = sbr.rel (%p513_p6) target bundleno = 1108 (0x454), region = 51 }
  0x96   : > { %s519_s14 = sand.u32 1, %s9834_s18   ;;  %s525_s17 = sand.u32 1, %s9826_s16  }
  0x97   : > { %s8350_s23 = smul.u32 1152, %s519_s14  ;;  %s526_s25 = scalar_lea.sflag [#allocation4], %s525_s17 }
  0x98   : > { %s8351_s6 = smul.u32 4608, %s525_s17 }
  0x99   : > { %s10330_s11 = scalar_lea.vmem [#allocation2], %s8350_s23 }
  0x9a   : > { %s10332_s7 = scalar_lea.vmem [#allocation3], %s8351_s6 }
  0x9b   : > { %9801 = dma.done.wait (%p9993_p12), %s526_s25, 73728  }
  0x9c   : > { %9803 = vsyncadd (%p9993_p12), %s526_s25, 4294893568  ;;  %s557_s27 = sand.u32 1, %s9814_s13   ;;  %s7617_s8 = sshll.u32 %s9846_s21, 2 }
  0x9d   : > { %s7616_s18 = sshll.u32 %s557_s27, 9  ;;  %p565_p7 = scmp.lt.s32.totalorder %s7617_s8, 7 }
  0x9e   : > { %s10348_s10 = scalar_lea.vmem [#allocation6], %s7616_s18  ;;  %p7618_p3 = scmp.ne.s32.totalorder %s9842_s20, 0 }
  0x9f   : > { %s12939_s8 = smov (!%p565_p7, %s7617_s8), 7 }
  0xa0   : > { %s567_s9 = scalar_lea.vmem %s12716_s2, %s12939_s8  ;;  %574 = sbr.rel (%p7618_p3) target bundleno = 198 (0xc6), region = 63 }
  0xa5   : > { %v9864_v16 = vmov 0.0  }
  0xa6   : > { %575 = vst [vmem:[%s10348_s10] sm:$0xff] %v9864_v16  ;;  %576 = vst [vmem:[%s10348_s10 + $0x8] sm:$0xff] %v9864_v16 }
  0xa7   : > { %577 = vst [vmem:[%s10348_s10 + $0x10] sm:$0xff] %v9864_v16  ;;  %578 = vst [vmem:[%s10348_s10 + $0x18] sm:$0xff] %v9864_v16 }
  0xa8   : > { %579 = vst [vmem:[%s10348_s10 + $0x20] sm:$0xff] %v9864_v16  ;;  %580 = vst [vmem:[%s10348_s10 + $0x28] sm:$0xff] %v9864_v16 }
  0xa9   : > { %581 = vst [vmem:[%s10348_s10 + $0x30] sm:$0xff] %v9864_v16  ;;  %582 = vst [vmem:[%s10348_s10 + $0x38] sm:$0xff] %v9864_v16 }
  0xaa   : > { %583 = vst [vmem:[%s10348_s10 + $0x40] sm:$0xff] %v9864_v16  ;;  %584 = vst [vmem:[%s10348_s10 + $0x48] sm:$0xff] %v9864_v16 }
  0xab   : > { %585 = vst [vmem:[%s10348_s10 + $0x50] sm:$0xff] %v9864_v16  ;;  %586 = vst [vmem:[%s10348_s10 + $0x58] sm:$0xff] %v9864_v16 }
  0xac   : > { %587 = vst [vmem:[%s10348_s10 + $0x60] sm:$0xff] %v9864_v16  ;;  %588 = vst [vmem:[%s10348_s10 + $0x68] sm:$0xff] %v9864_v16 }
  0xad   : > { %589 = vst [vmem:[%s10348_s10 + $0x70] sm:$0xff] %v9864_v16  ;;  %590 = vst [vmem:[%s10348_s10 + $0x78] sm:$0xff] %v9864_v16 }
  0xae   : > { %591 = vst [vmem:[%s10348_s10 + $0x80] sm:$0xff] %v9864_v16  ;;  %592 = vst [vmem:[%s10348_s10 + $0x88] sm:$0xff] %v9864_v16 }
  0xaf   : > { %593 = vst [vmem:[%s10348_s10 + $0x90] sm:$0xff] %v9864_v16  ;;  %594 = vst [vmem:[%s10348_s10 + $0x98] sm:$0xff] %v9864_v16 }
  0xb0   : > { %595 = vst [vmem:[%s10348_s10 + $0xa0] sm:$0xff] %v9864_v16  ;;  %596 = vst [vmem:[%s10348_s10 + $0xa8] sm:$0xff] %v9864_v16 }
  0xb1   : > { %597 = vst [vmem:[%s10348_s10 + $0xb0] sm:$0xff] %v9864_v16  ;;  %598 = vst [vmem:[%s10348_s10 + $0xb8] sm:$0xff] %v9864_v16 }
  0xb2   : > { %599 = vst [vmem:[%s10348_s10 + $0xc0] sm:$0xff] %v9864_v16  ;;  %600 = vst [vmem:[%s10348_s10 + $0xc8] sm:$0xff] %v9864_v16 }
  0xb3   : > { %601 = vst [vmem:[%s10348_s10 + $0xd0] sm:$0xff] %v9864_v16  ;;  %602 = vst [vmem:[%s10348_s10 + $0xd8] sm:$0xff] %v9864_v16 }
  0xb4   : > { %603 = vst [vmem:[%s10348_s10 + $0xe0] sm:$0xff] %v9864_v16  ;;  %604 = vst [vmem:[%s10348_s10 + $0xe8] sm:$0xff] %v9864_v16 }
  0xb5   : > { %605 = vst [vmem:[%s10348_s10 + $0xf0] sm:$0xff] %v9864_v16  ;;  %606 = vst [vmem:[%s10348_s10 + $0xf8] sm:$0xff] %v9864_v16 }
  0xb6   : > { %607 = vst [vmem:[%s10348_s10 + $0x100] sm:$0xff] %v9864_v16  ;;  %608 = vst [vmem:[%s10348_s10 + $0x108] sm:$0xff] %v9864_v16 }
  0xb7   : > { %609 = vst [vmem:[%s10348_s10 + $0x110] sm:$0xff] %v9864_v16  ;;  %610 = vst [vmem:[%s10348_s10 + $0x118] sm:$0xff] %v9864_v16 }
  0xb8   : > { %611 = vst [vmem:[%s10348_s10 + $0x120] sm:$0xff] %v9864_v16  ;;  %612 = vst [vmem:[%s10348_s10 + $0x128] sm:$0xff] %v9864_v16 }
  0xb9   : > { %613 = vst [vmem:[%s10348_s10 + $0x130] sm:$0xff] %v9864_v16  ;;  %614 = vst [vmem:[%s10348_s10 + $0x138] sm:$0xff] %v9864_v16 }
  0xba   : > { %615 = vst [vmem:[%s10348_s10 + $0x140] sm:$0xff] %v9864_v16  ;;  %616 = vst [vmem:[%s10348_s10 + $0x148] sm:$0xff] %v9864_v16 }
  0xbb   : > { %617 = vst [vmem:[%s10348_s10 + $0x150] sm:$0xff] %v9864_v16  ;;  %618 = vst [vmem:[%s10348_s10 + $0x158] sm:$0xff] %v9864_v16 }
  0xbc   : > { %619 = vst [vmem:[%s10348_s10 + $0x160] sm:$0xff] %v9864_v16  ;;  %620 = vst [vmem:[%s10348_s10 + $0x168] sm:$0xff] %v9864_v16 }
  0xbd   : > { %621 = vst [vmem:[%s10348_s10 + $0x170] sm:$0xff] %v9864_v16  ;;  %622 = vst [vmem:[%s10348_s10 + $0x178] sm:$0xff] %v9864_v16 }
  0xbe   : > { %623 = vst [vmem:[%s10348_s10 + $0x180] sm:$0xff] %v9864_v16  ;;  %624 = vst [vmem:[%s10348_s10 + $0x188] sm:$0xff] %v9864_v16 }
  0xbf   : > { %625 = vst [vmem:[%s10348_s10 + $0x190] sm:$0xff] %v9864_v16  ;;  %626 = vst [vmem:[%s10348_s10 + $0x198] sm:$0xff] %v9864_v16 }
  0xc0   : > { %627 = vst [vmem:[%s10348_s10 + $0x1a0] sm:$0xff] %v9864_v16  ;;  %628 = vst [vmem:[%s10348_s10 + $0x1a8] sm:$0xff] %v9864_v16 }
  0xc1   : > { %629 = vst [vmem:[%s10348_s10 + $0x1b0] sm:$0xff] %v9864_v16  ;;  %630 = vst [vmem:[%s10348_s10 + $0x1b8] sm:$0xff] %v9864_v16 }
  0xc2   : > { %631 = vst [vmem:[%s10348_s10 + $0x1c0] sm:$0xff] %v9864_v16  ;;  %632 = vst [vmem:[%s10348_s10 + $0x1c8] sm:$0xff] %v9864_v16 }
  0xc3   : > { %633 = vst [vmem:[%s10348_s10 + $0x1d0] sm:$0xff] %v9864_v16  ;;  %634 = vst [vmem:[%s10348_s10 + $0x1d8] sm:$0xff] %v9864_v16 }
  0xc4   : > { %635 = vst [vmem:[%s10348_s10 + $0x1e0] sm:$0xff] %v9864_v16  ;;  %636 = vst [vmem:[%s10348_s10 + $0x1e8] sm:$0xff] %v9864_v16 }
  0xc5   : > { %637 = vst [vmem:[%s10348_s10 + $0x1f0] sm:$0xff] %v9864_v16  ;;  %638 = vst [vmem:[%s10348_s10 + $0x1f8] sm:$0xff] %v9864_v16 }
  0xc6 PF: > { %v8472_v17 = vld [vmem:[%s10332_s7 + $0xe4] ss:$16 sps:$4 sm:$0xff]   ;;  %v8476_v19 = vld [vmem:[%s10332_s7 + $0xe0] ss:$16 sps:$4 sm:$0xff]   ;;  %p8339_p12 = scmp.ne.s32.totalorder %s9842_s20, 7 }
  0xc7   : > { %v8474_v18 = vld [vmem:[%s10332_s7 + $0x2e4] ss:$16 sps:$4 sm:$0xff]   ;;  %5023 = vmatprep.subr.bf16.mxu0 %v8472_v17  ;;  %v8477_v20 = vld [vmem:[%s10332_s7 + $0x2e0] ss:$16 sps:$4 sm:$0xff]  }
  0xc8   : > { %5136 = vmatprep.subr.bf16.mxu1 %v8474_v18  ;;  %v8478_v21 = vld [vmem:[%s10332_s7 + $0xc4] ss:$16 sps:$4 sm:$0xff]   ;;  %5024 = vmatpush1.bf16.msra.mxu0 %v8476_v19  ;;  %v8482_v23 = vld [vmem:[%s10332_s7 + $0xc0] ss:$16 sps:$4 sm:$0xff]  }
  0xc9   : > { %5137 = vmatpush1.bf16.msra.mxu1 %v8477_v20  ;;  %v8480_v22 = vld [vmem:[%s10332_s7 + $0x2c4] ss:$16 sps:$4 sm:$0xff]   ;;  %5025 = vmatprep.subr.bf16.mxu0 %v8478_v21  ;;  %v8483_v24 = vld [vmem:[%s10332_s7 + $0x2c0] ss:$16 sps:$4 sm:$0xff]  }
  0xca   : > { %5138 = vmatprep.subr.bf16.mxu1 %v8480_v22  ;;  %v8484_v25 = vld [vmem:[%s10332_s7 + $0xa4] ss:$16 sps:$4 sm:$0xff]   ;;  %v8488_v27 = vld [vmem:[%s10332_s7 + $0xa0] ss:$16 sps:$4 sm:$0xff]  }
  0xcb   : > { %v8486_v26 = vld [vmem:[%s10332_s7 + $0x2a4] ss:$16 sps:$4 sm:$0xff]   ;;  %v8489_v28 = vld [vmem:[%s10332_s7 + $0x2a0] ss:$16 sps:$4 sm:$0xff]  }
  0xcc   : > { %5026 = vmatpush1.bf16.msra.mxu0 %v8482_v23  ;;  %v8490_v29 = vld [vmem:[%s10332_s7 + $0x84] ss:$16 sps:$4 sm:$0xff]   ;;  %v8494_v31 = vld [vmem:[%s10332_s7 + $0x80] ss:$16 sps:$4 sm:$0xff]  }
  0xcd   : > { %5139 = vmatpush1.bf16.msra.mxu1 %v8483_v24  ;;  %5027 = vmatprep.subr.bf16.mxu0 %v8484_v25  ;;  %v8492_v30 = vld [vmem:[%s10332_s7 + $0x284] ss:$16 sps:$4 sm:$0xff]   ;;  %v8495_v32 = vld [vmem:[%s10332_s7 + $0x280] ss:$16 sps:$4 sm:$0xff]  }
  0xce   : > { %5140 = vmatprep.subr.bf16.mxu1 %v8486_v26  ;;  %v8496_v33 = vld [vmem:[%s10332_s7 + $0x64] ss:$16 sps:$4 sm:$0xff]   ;;  %v8500_v35 = vld [vmem:[%s10332_s7 + $0x60] ss:$16 sps:$4 sm:$0xff]  }
  0xcf   : > { %v8498_v34 = vld [vmem:[%s10332_s7 + $0x264] ss:$16 sps:$4 sm:$0xff]   ;;  %v8501_v36 = vld [vmem:[%s10332_s7 + $0x260] ss:$16 sps:$4 sm:$0xff]  }
  0xd0   : > { %5028 = vmatpush1.bf16.msra.mxu0 %v8488_v27  ;;  %v8502_v37 = vld [vmem:[%s10332_s7 + $0x44] ss:$16 sps:$4 sm:$0xff]   ;;  %v8506_v39 = vld [vmem:[%s10332_s7 + $0x40] ss:$16 sps:$4 sm:$0xff]  }
  0xd1   : > { %5141 = vmatpush1.bf16.msra.mxu1 %v8489_v28  ;;  %5029 = vmatprep.subr.bf16.mxu0 %v8490_v29  ;;  %v8504_v38 = vld [vmem:[%s10332_s7 + $0x244] ss:$16 sps:$4 sm:$0xff]   ;;  %v8507_v40 = vld [vmem:[%s10332_s7 + $0x240] ss:$16 sps:$4 sm:$0xff]  }
  0xd2   : > { %5142 = vmatprep.subr.bf16.mxu1 %v8492_v30  ;;  %v8508_v41 = vld [vmem:[%s10332_s7 + $0x24] ss:$16 sps:$4 sm:$0xff]   ;;  %v8512_v43 = vld [vmem:[%s10332_s7 + $0x20] ss:$16 sps:$4 sm:$0xff]  }
  0xd3   : > { %v8510_v42 = vld [vmem:[%s10332_s7 + $0x224] ss:$16 sps:$4 sm:$0xff]   ;;  %v8513_v44 = vld [vmem:[%s10332_s7 + $0x220] ss:$16 sps:$4 sm:$0xff]  }
  0xd4   : > { %5030 = vmatpush1.bf16.msra.mxu0 %v8494_v31  ;;  %v8514_v45 = vld [vmem:[%s10332_s7 + $0x4] ss:$16 sps:$4 sm:$0xff]   ;;  %v8518_v47 = vld [vmem:[%s10332_s7] ss:$16 sps:$4 sm:$0xff]  }
  0xd5   : > { %5143 = vmatpush1.bf16.msra.mxu1 %v8495_v32  ;;  %5031 = vmatprep.subr.bf16.mxu0 %v8496_v33  ;;  %v8516_v46 = vld [vmem:[%s10332_s7 + $0x204] ss:$16 sps:$4 sm:$0xff]   ;;  %v8519_v48 = vld [vmem:[%s10332_s7 + $0x200] ss:$16 sps:$4 sm:$0xff]  }
  0xd6   : > { %5144 = vmatprep.subr.bf16.mxu1 %v8498_v34  ;;  %v8520_v49 = vld [vmem:[%s10332_s7 + $0x1e4] ss:$16 sps:$4 sm:$0xff]   ;;  %v8524_v51 = vld [vmem:[%s10332_s7 + $0x1e0] ss:$16 sps:$4 sm:$0xff]  }
  0xd7   : > { %v8522_v50 = vld [vmem:[%s10332_s7 + $0x3e4] ss:$16 sps:$4 sm:$0xff]   ;;  %v8525_v52 = vld [vmem:[%s10332_s7 + $0x3e0] ss:$16 sps:$4 sm:$0xff]  }
  0xd8   : > { %5032 = vmatpush1.bf16.msra.mxu0 %v8500_v35  ;;  %v8526_v53 = vld [vmem:[%s10332_s7 + $0x1c4] ss:$16 sps:$4 sm:$0xff]   ;;  %v8530_v55 = vld [vmem:[%s10332_s7 + $0x1c0] ss:$16 sps:$4 sm:$0xff]  }
  0xd9   : > { %5145 = vmatpush1.bf16.msra.mxu1 %v8501_v36  ;;  %5033 = vmatprep.subr.bf16.mxu0 %v8502_v37  ;;  %v8528_v54 = vld [vmem:[%s10332_s7 + $0x3c4] ss:$16 sps:$4 sm:$0xff]   ;;  %v8531_v56 = vld [vmem:[%s10332_s7 + $0x3c0] ss:$16 sps:$4 sm:$0xff]  }
  0xda   : > { %5146 = vmatprep.subr.bf16.mxu1 %v8504_v38  ;;  %v8532_v57 = vld [vmem:[%s10332_s7 + $0x1a4] ss:$16 sps:$4 sm:$0xff]   ;;  %v8536_v59 = vld [vmem:[%s10332_s7 + $0x1a0] ss:$16 sps:$4 sm:$0xff]  }
  0xdb   : > { %v8534_v58 = vld [vmem:[%s10332_s7 + $0x3a4] ss:$16 sps:$4 sm:$0xff]   ;;  %v8537_v60 = vld [vmem:[%s10332_s7 + $0x3a0] ss:$16 sps:$4 sm:$0xff]  }
  0xdc   : > { %5034 = vmatpush1.bf16.msra.mxu0 %v8506_v39  ;;  %v8538_v61 = vld [vmem:[%s10332_s7 + $0x184] ss:$16 sps:$4 sm:$0xff]   ;;  %v8542_v63 = vld [vmem:[%s10332_s7 + $0x180] ss:$16 sps:$4 sm:$0xff]  }
  0xdd   : > { %5147 = vmatpush1.bf16.msra.mxu1 %v8507_v40  ;;  %5035 = vmatprep.subr.bf16.mxu0 %v8508_v41  ;;  %v8540_v62 = vld [vmem:[%s10332_s7 + $0x384] ss:$16 sps:$4 sm:$0xff]   ;;  %v8543_v0 = vld [vmem:[%s10332_s7 + $0x380] ss:$16 sps:$4 sm:$0xff]  }
  0xde   : > { %5148 = vmatprep.subr.bf16.mxu1 %v8510_v42  ;;  %v8544_v1 = vld [vmem:[%s10332_s7 + $0x164] ss:$16 sps:$4 sm:$0xff]   ;;  %v8548_v5 = vld [vmem:[%s10332_s7 + $0x160] ss:$16 sps:$4 sm:$0xff]  }
  0xdf   : > { %v8570_v2 = vld [vmem:[%s10330_s11 + $0x4] ss:$72 sps:$4 sm:$0xff]   ;;  %v8549_v6 = vld [vmem:[%s10332_s7 + $0x360] ss:$16 sps:$4 sm:$0xff]   ;;  %v8586_v27 = vld [vmem:[%s10330_s11 + $0x94] ss:$72 sps:$4 sm:$0xff]  }
  0xe0   : > { %5036 = vmatpush1.bf16.msra.mxu0 %v8512_v43  ;;  %v8546_v3 = vld [vmem:[%s10332_s7 + $0x364] ss:$16 sps:$4 sm:$0xff]   ;;  %5055 = vmatprep.mubr.bf16.mxu0 %v8570_v2  ;;  %v8554_v9 = vld [vmem:[%s10332_s7 + $0x140] ss:$16 sps:$4 sm:$0xff]  }
  0xe1   : > { %5149 = vmatpush1.bf16.msra.mxu1 %v8513_v44  ;;  %5037 = vmatprep.subr.bf16.mxu0 %v8514_v45  ;;  %v8573_v4 = vld [vmem:[%s10330_s11 + $0xc] ss:$72 sps:$4 sm:$0xff]   ;;  %v8555_v10 = vld [vmem:[%s10332_s7 + $0x340] ss:$16 sps:$4 sm:$0xff]   ;;  %v8588_v28 = vld [vmem:[%s10330_s11 + $0x9c] ss:$72 sps:$4 sm:$0xff]  }
  0xe2   : > { %5150 = vmatprep.subr.bf16.mxu1 %v8516_v46  ;;  %5168 = vmatprep.mubr.bf16.mxu1 %v8573_v4  ;;  %v8550_v7 = vld [vmem:[%s10332_s7 + $0x144] ss:$16 sps:$4 sm:$0xff]   ;;  %v8560_v13 = vld [vmem:[%s10332_s7 + $0x120] ss:$16 sps:$4 sm:$0xff]  }
  0xe3   : > { %v8552_v8 = vld [vmem:[%s10332_s7 + $0x344] ss:$16 sps:$4 sm:$0xff]   ;;  %v8561_v14 = vld [vmem:[%s10332_s7 + $0x320] ss:$16 sps:$4 sm:$0xff]  }
  0xe4   : > { %5038 = vmatpush1.bf16.msra.mxu0 %v8518_v47  ;;  %v8556_v11 = vld [vmem:[%s10332_s7 + $0x124] ss:$16 sps:$4 sm:$0xff]   ;;  %v8566_v17 = vld [vmem:[%s10332_s7 + $0x100] ss:$16 sps:$4 sm:$0xff]  }
  0xe5   : > { %5151 = vmatpush1.bf16.msra.mxu1 %v8519_v48  ;;  %5039 = vmatprep.subr.bf16.mxu0 %v8520_v49  ;;  %v8558_v12 = vld [vmem:[%s10332_s7 + $0x324] ss:$16 sps:$4 sm:$0xff]   ;;  %v8567_v18 = vld [vmem:[%s10332_s7 + $0x300] ss:$16 sps:$4 sm:$0xff]  }
  0xe6   : > { %5152 = vmatprep.subr.bf16.mxu1 %v8522_v50  ;;  %v8562_v15 = vld [vmem:[%s10332_s7 + $0x104] ss:$16 sps:$4 sm:$0xff]   ;;  %v8568_v21 = vld [vmem:[%s10330_s11] ss:$72 sps:$4 sm:$0xff]   ;;  %v8590_v33 = vld [vmem:[%s10330_s11 + $0x90] ss:$72 sps:$4 sm:$0xff]  }
  0xe7   : > { %v8564_v16 = vld [vmem:[%s10332_s7 + $0x304] ss:$16 sps:$4 sm:$0xff]   ;;  %v8571_v22 = vld [vmem:[%s10330_s11 + $0x8] ss:$72 sps:$4 sm:$0xff]   ;;  %v8591_v34 = vld [vmem:[%s10330_s11 + $0x98] ss:$72 sps:$4 sm:$0xff]  }
  0xe8   : > { %5040 = vmatpush2.bf16.msra.mxu0 %v8524_v51  ;;  %v8576_v19 = vld [vmem:[%s10332_s7 + $0x4e4] ss:$16 sps:$4 sm:$0xff]   ;;  %v8574_v23 = vld [vmem:[%s10332_s7 + $0x4e0] ss:$16 sps:$4 sm:$0xff]  }
  0xe9   : > { %5153 = vmatpush2.bf16.msra.mxu1 %v8525_v52  ;;  %5041 = vmatprep.subr.bf16.mxu0 %v8526_v53  ;;  %v8579_v20 = vld [vmem:[%s10332_s7 + $0x6e4] ss:$16 sps:$4 sm:$0xff]   ;;  %v8577_v24 = vld [vmem:[%s10332_s7 + $0x6e0] ss:$16 sps:$4 sm:$0xff]  }
  0xea   : > { %5154 = vmatprep.subr.bf16.mxu1 %v8528_v54  ;;  %v8582_v25 = vld [vmem:[%s10332_s7 + $0x4c4] ss:$16 sps:$4 sm:$0xff]   ;;  %v8580_v29 = vld [vmem:[%s10332_s7 + $0x4c0] ss:$16 sps:$4 sm:$0xff]  }
  0xeb   : > { %v8585_v26 = vld [vmem:[%s10332_s7 + $0x6c4] ss:$16 sps:$4 sm:$0xff]   ;;  %v8583_v30 = vld [vmem:[%s10332_s7 + $0x6c0] ss:$16 sps:$4 sm:$0xff]  }
  0xec   : > { %5042 = vmatpush2.bf16.msra.mxu0 %v8530_v55  ;;  %v8594_v31 = vld [vmem:[%s10332_s7 + $0x4a4] ss:$16 sps:$4 sm:$0xff]   ;;  %v8592_v35 = vld [vmem:[%s10332_s7 + $0x4a0] ss:$16 sps:$4 sm:$0xff]  }
  0xed   : > { %5155 = vmatpush2.bf16.msra.mxu1 %v8531_v56  ;;  %5043 = vmatprep.subr.bf16.mxu0 %v8532_v57  ;;  %v8597_v32 = vld [vmem:[%s10332_s7 + $0x6a4] ss:$16 sps:$4 sm:$0xff]   ;;  %v8595_v36 = vld [vmem:[%s10332_s7 + $0x6a0] ss:$16 sps:$4 sm:$0xff]  }
  0xee   : > { %5156 = vmatprep.subr.bf16.mxu1 %v8534_v58  ;;  %v8600_v37 = vld [vmem:[%s10332_s7 + $0x484] ss:$16 sps:$4 sm:$0xff]   ;;  %v8598_v41 = vld [vmem:[%s10332_s7 + $0x480] ss:$16 sps:$4 sm:$0xff]  }
  0xef   : > { %v8603_v38 = vld [vmem:[%s10332_s7 + $0x684] ss:$16 sps:$4 sm:$0xff]   ;;  %v8601_v42 = vld [vmem:[%s10332_s7 + $0x680] ss:$16 sps:$4 sm:$0xff]  }
  0xf0   : > { %5044 = vmatpush2.bf16.msra.mxu0 %v8536_v59  ;;  %v8604_v39 = vld [vmem:[%s10330_s11 + $0x124] ss:$72 sps:$4 sm:$0xff]   ;;  %v8608_v45 = vld [vmem:[%s10330_s11 + $0x120] ss:$72 sps:$4 sm:$0xff]   ;;  %v8622_v51 = vld [vmem:[%s10330_s11 + $0x1b4] ss:$72 sps:$4 sm:$0xff]  }
  0xf1   : > { %5157 = vmatpush2.bf16.msra.mxu1 %v8537_v60  ;;  %5045 = vmatprep.subr.bf16.mxu0 %v8538_v61  ;;  %v8606_v40 = vld [vmem:[%s10330_s11 + $0x12c] ss:$72 sps:$4 sm:$0xff]   ;;  %v8609_v46 = vld [vmem:[%s10330_s11 + $0x128] ss:$72 sps:$4 sm:$0xff]   ;;  %v8624_v52 = vld [vmem:[%s10330_s11 + $0x1bc] ss:$72 sps:$4 sm:$0xff]  }
  0xf2   : > { %5158 = vmatprep.subr.bf16.mxu1 %v8540_v62  ;;  %v8612_v43 = vld [vmem:[%s10332_s7 + $0x464] ss:$16 sps:$4 sm:$0xff]   ;;  %v8610_v47 = vld [vmem:[%s10332_s7 + $0x460] ss:$16 sps:$4 sm:$0xff]  }
  0xf3   : > { %v8615_v44 = vld [vmem:[%s10332_s7 + $0x664] ss:$16 sps:$4 sm:$0xff]   ;;  %v8613_v48 = vld [vmem:[%s10332_s7 + $0x660] ss:$16 sps:$4 sm:$0xff]  }
  0xf4   : > { %5046 = vmatpush2.bf16.msra.mxu0 %v8542_v63  ;;  %v8618_v49 = vld [vmem:[%s10332_s7 + $0x444] ss:$16 sps:$4 sm:$0xff]   ;;  %v8616_v53 = vld [vmem:[%s10332_s7 + $0x440] ss:$16 sps:$4 sm:$0xff]  }
  0xf5   : > { %5159 = vmatpush2.bf16.msra.mxu1 %v8543_v0  ;;  %5047 = vmatprep.subr.bf16.mxu0 %v8544_v1  ;;  %v8621_v50 = vld [vmem:[%s10332_s7 + $0x644] ss:$16 sps:$4 sm:$0xff]   ;;  %v8619_v54 = vld [vmem:[%s10332_s7 + $0x640] ss:$16 sps:$4 sm:$0xff]  }
  0xf6   : > { %5160 = vmatprep.subr.bf16.mxu1 %v8546_v3  ;;  %v8630_v55 = vld [vmem:[%s10332_s7 + $0x424] ss:$16 sps:$4 sm:$0xff]   ;;  %v8626_v57 = vld [vmem:[%s10330_s11 + $0x1b0] ss:$72 sps:$4 sm:$0xff]  }
  0xf7   : > { %v8633_v56 = vld [vmem:[%s10332_s7 + $0x624] ss:$16 sps:$4 sm:$0xff]   ;;  %v8627_v58 = vld [vmem:[%s10330_s11 + $0x1b8] ss:$72 sps:$4 sm:$0xff]  }
  0xf8   : > { %5048 = vmatpush2.bf16.msra.mxu0 %v8548_v5  ;;  %v8628_v59 = vld [vmem:[%s10332_s7 + $0x420] ss:$16 sps:$4 sm:$0xff]   ;;  %v8636_v61 = vld [vmem:[%s10332_s7 + $0x404] ss:$16 sps:$4 sm:$0xff]  }
  0xf9   : > { %5161 = vmatpush2.bf16.msra.mxu1 %v8549_v6  ;;  %5049 = vmatprep.subr.bf16.mxu0 %v8550_v7  ;;  %v8631_v60 = vld [vmem:[%s10332_s7 + $0x620] ss:$16 sps:$4 sm:$0xff]   ;;  %v8639_v62 = vld [vmem:[%s10332_s7 + $0x604] ss:$16 sps:$4 sm:$0xff]  }
  0xfa   : > { %5162 = vmatprep.subr.bf16.mxu1 %v8552_v8  ;;  %v8640_v63 = vld [vmem:[%s10330_s11 + $0x244] ss:$72 sps:$4 sm:$0xff]   ;;  %v8634_v1 = vld [vmem:[%s10332_s7 + $0x400] ss:$16 sps:$4 sm:$0xff]  }
  0xfb   : > { %v8642_v0 = vld [vmem:[%s10330_s11 + $0x24c] ss:$72 sps:$4 sm:$0xff]   ;;  %v8637_v2 = vld [vmem:[%s10332_s7 + $0x600] ss:$16 sps:$4 sm:$0xff]  }
  0xfc   : > { %5050 = vmatpush2.bf16.msra.mxu0 %v8554_v9  ;;  %v8648_v3 = vld [vmem:[%s10332_s7 + $0x5e4] ss:$16 sps:$4 sm:$0xff]   ;;  %v8644_v5 = vld [vmem:[%s10330_s11 + $0x240] ss:$72 sps:$4 sm:$0xff]  }
  0xfd   : > { %5163 = vmatpush2.bf16.msra.mxu1 %v8555_v10  ;;  %5051 = vmatprep.subr.bf16.mxu0 %v8556_v11  ;;  %v8651_v4 = vld [vmem:[%s10332_s7 + $0x7e4] ss:$16 sps:$4 sm:$0xff]   ;;  %v8645_v6 = vld [vmem:[%s10330_s11 + $0x248] ss:$72 sps:$4 sm:$0xff]  }
  0xfe   : > { %5164 = vmatprep.subr.bf16.mxu1 %v8558_v12  ;;  %v8646_v7 = vld [vmem:[%s10332_s7 + $0x5e0] ss:$16 sps:$4 sm:$0xff]   ;;  %v8654_v9 = vld [vmem:[%s10332_s7 + $0x5c4] ss:$16 sps:$4 sm:$0xff]  }
  0xff   : > { %v8649_v8 = vld [vmem:[%s10332_s7 + $0x7e0] ss:$16 sps:$4 sm:$0xff]   ;;  %v8657_v10 = vld [vmem:[%s10332_s7 + $0x7c4] ss:$16 sps:$4 sm:$0xff]  }
 0x100   : > { %5052 = vmatpush2.bf16.msra.mxu0 %v8560_v13  ;;  %v8658_v11 = vld [vmem:[%s10330_s11 + $0x2d4] ss:$72 sps:$4 sm:$0xff]   ;;  %v8652_v13 = vld [vmem:[%s10332_s7 + $0x5c0] ss:$16 sps:$4 sm:$0xff]  }
 0x101   : > { %5165 = vmatpush2.bf16.msra.mxu1 %v8561_v14  ;;  %5053 = vmatprep.subr.bf16.mxu0 %v8562_v15  ;;  %v8660_v12 = vld [vmem:[%s10330_s11 + $0x2dc] ss:$72 sps:$4 sm:$0xff]   ;;  %v8655_v14 = vld [vmem:[%s10332_s7 + $0x7c0] ss:$16 sps:$4 sm:$0xff]  }
 0x102   : > { %5166 = vmatprep.subr.bf16.mxu1 %v8564_v16  ;;  %v8666_v15 = vld [vmem:[%s10332_s7 + $0x5a4] ss:$16 sps:$4 sm:$0xff]  }
 0x103   : > { %v8669_v16 = vld [vmem:[%s10332_s7 + $0x7a4] ss:$16 sps:$4 sm:$0xff]  }
 0x104   : > { %5054 = vmatpush2.bf16.msra.mxu0 %v8566_v17  ;;  %v8662_v17 = vld [vmem:[%s10330_s11 + $0x2d0] ss:$72 sps:$4 sm:$0xff]  }
 0x105   : > { %5167 = vmatpush2.bf16.msra.mxu1 %v8567_v18  ;;  %5249 = vmatprep.subr.bf16.mxu0 %v8576_v19  ;;  %v8663_v18 = vld [vmem:[%s10330_s11 + $0x2d8] ss:$72 sps:$4 sm:$0xff]  }
 0x106   : > { %5362 = vmatprep.subr.bf16.mxu1 %v8579_v20  ;;  %v8664_v19 = vld [vmem:[%s10332_s7 + $0x5a0] ss:$16 sps:$4 sm:$0xff]  }
 0x107   : > { %5056 = vmatmul.mubr.bf16.vlgmr.msra.gmra.mxu0 %v8568_v21  ;;  %v8667_v20 = vld [vmem:[%s10332_s7 + $0x7a0] ss:$16 sps:$4 sm:$0xff]   ;;  %v8672_v21 = vld [vmem:[%s10332_s7 + $0x584] ss:$16 sps:$4 sm:$0xff]  }
 0x108   : > { %5169 = vmatmul.mubr.bf16.vlgmr.msra.gmra.mxu1 %v8571_v22  ;;  %5250 = vmatpush1.bf16.msra.mxu0 %v8574_v23  ;;  %v8675_v22 = vld [vmem:[%s10332_s7 + $0x784] ss:$16 sps:$4 sm:$0xff]  }
 0x109   : > { %5363 = vmatpush1.bf16.msra.mxu1 %v8577_v24  ;;  %5251 = vmatprep.subr.bf16.mxu0 %v8582_v25  ;;  %v8676_v23 = vld [vmem:[%s10330_s11 + $0x364] ss:$72 sps:$4 sm:$0xff]   ;;  %v8670_v25 = vld [vmem:[%s10332_s7 + $0x580] ss:$16 sps:$4 sm:$0xff]  }
 0x10a   : > { %5364 = vmatprep.subr.bf16.mxu1 %v8585_v26  ;;  %5065 = vmatprep.mubr.bf16.mxu0 %v8586_v27  ;;  %v8678_v24 = vld [vmem:[%s10330_s11 + $0x36c] ss:$72 sps:$4 sm:$0xff]   ;;  %v8673_v26 = vld [vmem:[%s10332_s7 + $0x780] ss:$16 sps:$4 sm:$0xff]  }
 0x10b   : > { %5178 = vmatprep.mubr.bf16.mxu1 %v8588_v28  ;;  %v8684_v27 = vld [vmem:[%s10332_s7 + $0x564] ss:$16 sps:$4 sm:$0xff]  }
 0x10c   : > { %5252 = vmatpush1.bf16.msra.mxu0 %v8580_v29  ;;  %v8687_v28 = vld [vmem:[%s10332_s7 + $0x764] ss:$16 sps:$4 sm:$0xff]   ;;  %v8680_v29 = vld [vmem:[%s10330_s11 + $0x360] ss:$72 sps:$4 sm:$0xff]  }
 0x10d   : > { %5365 = vmatpush1.bf16.msra.mxu1 %v8583_v30  ;;  %5253 = vmatprep.subr.bf16.mxu0 %v8594_v31  ;;  %v8681_v30 = vld [vmem:[%s10330_s11 + $0x368] ss:$72 sps:$4 sm:$0xff]  }
 0x10e   : > { %5366 = vmatprep.subr.bf16.mxu1 %v8597_v32  ;;  %v8682_v31 = vld [vmem:[%s10332_s7 + $0x560] ss:$16 sps:$4 sm:$0xff]  }
 0x10f   : > { %5066 = vmatmul.mubr.bf16.gmra.mxu0 %v8590_v33  ;;  %v8685_v32 = vld [vmem:[%s10332_s7 + $0x760] ss:$16 sps:$4 sm:$0xff]   ;;  %v8690_v33 = vld [vmem:[%s10332_s7 + $0x544] ss:$16 sps:$4 sm:$0xff]  }
 0x110   : > { %5179 = vmatmul.mubr.bf16.gmra.mxu1 %v8591_v34  ;;  %5254 = vmatpush1.bf16.msra.mxu0 %v8592_v35  ;;  %v8693_v34 = vld [vmem:[%s10332_s7 + $0x744] ss:$16 sps:$4 sm:$0xff]  }
 0x111   : > { %5367 = vmatpush1.bf16.msra.mxu1 %v8595_v36  ;;  %5255 = vmatprep.subr.bf16.mxu0 %v8600_v37  ;;  %v8694_v35 = vld [vmem:[%s10330_s11 + $0x3f4] ss:$72 sps:$4 sm:$0xff]   ;;  %v8688_v37 = vld [vmem:[%s10332_s7 + $0x540] ss:$16 sps:$4 sm:$0xff]  }
 0x112   : > { %5368 = vmatprep.subr.bf16.mxu1 %v8603_v38  ;;  %5075 = vmatprep.mubr.bf16.mxu0 %v8604_v39  ;;  %v8696_v36 = vld [vmem:[%s10330_s11 + $0x3fc] ss:$72 sps:$4 sm:$0xff]   ;;  %v8691_v38 = vld [vmem:[%s10332_s7 + $0x740] ss:$16 sps:$4 sm:$0xff]  }
 0x113   : > { %5188 = vmatprep.mubr.bf16.mxu1 %v8606_v40  ;;  %v8702_v39 = vld [vmem:[%s10332_s7 + $0x524] ss:$16 sps:$4 sm:$0xff]  }
 0x114   : > { %5256 = vmatpush1.bf16.msra.mxu0 %v8598_v41  ;;  %v8705_v40 = vld [vmem:[%s10332_s7 + $0x724] ss:$16 sps:$4 sm:$0xff]   ;;  %v8698_v41 = vld [vmem:[%s10330_s11 + $0x3f0] ss:$72 sps:$4 sm:$0xff]  }
 0x115   : > { %5369 = vmatpush1.bf16.msra.mxu1 %v8601_v42  ;;  %5257 = vmatprep.subr.bf16.mxu0 %v8612_v43  ;;  %v8699_v42 = vld [vmem:[%s10330_s11 + $0x3f8] ss:$72 sps:$4 sm:$0xff]  }
 0x116   : > { %5370 = vmatprep.subr.bf16.mxu1 %v8615_v44  ;;  %v8700_v43 = vld [vmem:[%s10332_s7 + $0x520] ss:$16 sps:$4 sm:$0xff]  }
 0x117   : > { %5076 = vmatmul.mubr.bf16.gmra.mxu0 %v8608_v45  ;;  %v8703_v44 = vld [vmem:[%s10332_s7 + $0x720] ss:$16 sps:$4 sm:$0xff]   ;;  %v8708_v45 = vld [vmem:[%s10332_s7 + $0x504] ss:$16 sps:$4 sm:$0xff]  }
 0x118   : > { %5189 = vmatmul.mubr.bf16.gmra.mxu1 %v8609_v46  ;;  %5258 = vmatpush1.bf16.msra.mxu0 %v8610_v47  ;;  %v8711_v46 = vld [vmem:[%s10332_s7 + $0x704] ss:$16 sps:$4 sm:$0xff]  }
 0x119   : > { %5371 = vmatpush1.bf16.msra.mxu1 %v8613_v48  ;;  %5259 = vmatprep.subr.bf16.mxu0 %v8618_v49  ;;  %v8714_v47 = vld [vmem:[%s10330_s11 + $0x14] ss:$72 sps:$4 sm:$0xff]   ;;  %v8706_v49 = vld [vmem:[%s10332_s7 + $0x500] ss:$16 sps:$4 sm:$0xff]  }
 0x11a   : > { %5372 = vmatprep.subr.bf16.mxu1 %v8621_v50  ;;  %5085 = vmatprep.mubr.bf16.mxu0 %v8622_v51  ;;  %v8717_v48 = vld [vmem:[%s10330_s11 + $0x1c] ss:$72 sps:$4 sm:$0xff]   ;;  %v8709_v50 = vld [vmem:[%s10332_s7 + $0x700] ss:$16 sps:$4 sm:$0xff]  }
 0x11b   : > { %5198 = vmatprep.mubr.bf16.mxu1 %v8624_v52  ;;  %v8720_v51 = vld [vmem:[%s10332_s7 + $0x8e4] ss:$16 sps:$4 sm:$0xff]  }
 0x11c   : > { %5260 = vmatpush1.bf16.msra.mxu0 %v8616_v53  ;;  %v8723_v52 = vld [vmem:[%s10332_s7 + $0xae4] ss:$16 sps:$4 sm:$0xff]   ;;  %v8712_v53 = vld [vmem:[%s10330_s11 + $0x10] ss:$72 sps:$4 sm:$0xff]  }
 0x11d   : > { %5373 = vmatpush1.bf16.msra.mxu1 %v8619_v54  ;;  %5261 = vmatprep.subr.bf16.mxu0 %v8630_v55  ;;  %v8715_v54 = vld [vmem:[%s10330_s11 + $0x18] ss:$72 sps:$4 sm:$0xff]  }
 0x11e   : > { %5374 = vmatprep.subr.bf16.mxu1 %v8633_v56  ;;  %v8718_v55 = vld [vmem:[%s10332_s7 + $0x8e0] ss:$16 sps:$4 sm:$0xff]  }
 0x11f   : > { %5086 = vmatmul.mubr.bf16.gmra.mxu0 %v8626_v57  ;;  %v8721_v56 = vld [vmem:[%s10332_s7 + $0xae0] ss:$16 sps:$4 sm:$0xff]   ;;  %v8726_v57 = vld [vmem:[%s10332_s7 + $0x8c4] ss:$16 sps:$4 sm:$0xff]  }
 0x120   : > { %5199 = vmatmul.mubr.bf16.gmra.mxu1 %v8627_v58  ;;  %5262 = vmatpush1.bf16.msra.mxu0 %v8628_v59  ;;  %v8729_v58 = vld [vmem:[%s10332_s7 + $0xac4] ss:$16 sps:$4 sm:$0xff]  }
 0x121   : > { %5375 = vmatpush1.bf16.msra.mxu1 %v8631_v60  ;;  %5263 = vmatprep.subr.bf16.mxu0 %v8636_v61  ;;  %v8730_v59 = vld [vmem:[%s10330_s11 + $0xa4] ss:$72 sps:$4 sm:$0xff]   ;;  %v8724_v61 = vld [vmem:[%s10332_s7 + $0x8c0] ss:$16 sps:$4 sm:$0xff]  }
 0x122   : > { %5376 = vmatprep.subr.bf16.mxu1 %v8639_v62  ;;  %5095 = vmatprep.mubr.bf16.mxu0 %v8640_v63  ;;  %v8732_v60 = vld [vmem:[%s10330_s11 + $0xac] ss:$72 sps:$4 sm:$0xff]   ;;  %v8727_v62 = vld [vmem:[%s10332_s7 + $0xac0] ss:$16 sps:$4 sm:$0xff]  }
 0x123   : > { %5208 = vmatprep.mubr.bf16.mxu1 %v8642_v0  ;;  %v8738_v63 = vld [vmem:[%s10332_s7 + $0x8a4] ss:$16 sps:$4 sm:$0xff]  }
 0x124   : > { %5264 = vmatpush1.bf16.msra.mxu0 %v8634_v1  ;;  %v8741_v0 = vld [vmem:[%s10332_s7 + $0xaa4] ss:$16 sps:$4 sm:$0xff]   ;;  %v8734_v1 = vld [vmem:[%s10330_s11 + $0xa0] ss:$72 sps:$4 sm:$0xff]  }
 0x125   : > { %5377 = vmatpush1.bf16.msra.mxu1 %v8637_v2  ;;  %5265 = vmatprep.subr.bf16.mxu0 %v8648_v3  ;;  %v8735_v2 = vld [vmem:[%s10330_s11 + $0xa8] ss:$72 sps:$4 sm:$0xff]  }
 0x126   : > { %5378 = vmatprep.subr.bf16.mxu1 %v8651_v4  ;;  %v8736_v3 = vld [vmem:[%s10332_s7 + $0x8a0] ss:$16 sps:$4 sm:$0xff]  }
 0x127   : > { %5096 = vmatmul.mubr.bf16.gmra.mxu0 %v8644_v5  ;;  %v8739_v4 = vld [vmem:[%s10332_s7 + $0xaa0] ss:$16 sps:$4 sm:$0xff]   ;;  %v8744_v5 = vld [vmem:[%s10332_s7 + $0x884] ss:$16 sps:$4 sm:$0xff]  }
 0x128   : > { %5209 = vmatmul.mubr.bf16.gmra.mxu1 %v8645_v6  ;;  %5266 = vmatpush2.bf16.msra.mxu0 %v8646_v7  ;;  %v8747_v6 = vld [vmem:[%s10332_s7 + $0xa84] ss:$16 sps:$4 sm:$0xff]  }
 0x129   : > { %5379 = vmatpush2.bf16.msra.mxu1 %v8649_v8  ;;  %5267 = vmatprep.subr.bf16.mxu0 %v8654_v9  ;;  %v8748_v7 = vld [vmem:[%s10330_s11 + $0x134] ss:$72 sps:$4 sm:$0xff]   ;;  %v8742_v9 = vld [vmem:[%s10332_s7 + $0x880] ss:$16 sps:$4 sm:$0xff]  }
 0x12a   : > { %5380 = vmatprep.subr.bf16.mxu1 %v8657_v10  ;;  %5105 = vmatprep.mubr.bf16.mxu0 %v8658_v11  ;;  %v8750_v8 = vld [vmem:[%s10330_s11 + $0x13c] ss:$72 sps:$4 sm:$0xff]   ;;  %v8745_v10 = vld [vmem:[%s10332_s7 + $0xa80] ss:$16 sps:$4 sm:$0xff]  }
 0x12b   : > { %5218 = vmatprep.mubr.bf16.mxu1 %v8660_v12  ;;  %v8756_v11 = vld [vmem:[%s10332_s7 + $0x864] ss:$16 sps:$4 sm:$0xff]  }
 0x12c   : > { %5268 = vmatpush2.bf16.msra.mxu0 %v8652_v13  ;;  %v8759_v12 = vld [vmem:[%s10332_s7 + $0xa64] ss:$16 sps:$4 sm:$0xff]   ;;  %v8752_v13 = vld [vmem:[%s10330_s11 + $0x130] ss:$72 sps:$4 sm:$0xff]  }
 0x12d   : > { %5381 = vmatpush2.bf16.msra.mxu1 %v8655_v14  ;;  %5269 = vmatprep.subr.bf16.mxu0 %v8666_v15  ;;  %v8753_v14 = vld [vmem:[%s10330_s11 + $0x138] ss:$72 sps:$4 sm:$0xff]  }
 0x12e   : > { %5382 = vmatprep.subr.bf16.mxu1 %v8669_v16  ;;  %v8754_v15 = vld [vmem:[%s10332_s7 + $0x860] ss:$16 sps:$4 sm:$0xff]  }
 0x12f   : > { %5106 = vmatmul.mubr.bf16.gmra.mxu0 %v8662_v17  ;;  %v8757_v16 = vld [vmem:[%s10332_s7 + $0xa60] ss:$16 sps:$4 sm:$0xff]   ;;  %v8762_v17 = vld [vmem:[%s10332_s7 + $0x844] ss:$16 sps:$4 sm:$0xff]  }
 0x130   : > { %5219 = vmatmul.mubr.bf16.gmra.mxu1 %v8663_v18  ;;  %5270 = vmatpush2.bf16.msra.mxu0 %v8664_v19  ;;  %v8765_v18 = vld [vmem:[%s10332_s7 + $0xa44] ss:$16 sps:$4 sm:$0xff]  }
 0x131   : > { %5383 = vmatpush2.bf16.msra.mxu1 %v8667_v20  ;;  %5271 = vmatprep.subr.bf16.mxu0 %v8672_v21  ;;  %v8766_v19 = vld [vmem:[%s10330_s11 + $0x1c4] ss:$72 sps:$4 sm:$0xff]   ;;  %v8760_v21 = vld [vmem:[%s10332_s7 + $0x840] ss:$16 sps:$4 sm:$0xff]  }
 0x132   : > { %5384 = vmatprep.subr.bf16.mxu1 %v8675_v22  ;;  %5115 = vmatprep.mubr.bf16.mxu0 %v8676_v23  ;;  %v8768_v20 = vld [vmem:[%s10330_s11 + $0x1cc] ss:$72 sps:$4 sm:$0xff]   ;;  %v8763_v22 = vld [vmem:[%s10332_s7 + $0xa40] ss:$16 sps:$4 sm:$0xff]  }
 0x133   : > { %5228 = vmatprep.mubr.bf16.mxu1 %v8678_v24  ;;  %v8774_v23 = vld [vmem:[%s10332_s7 + $0x824] ss:$16 sps:$4 sm:$0xff]  }
 0x134   : > { %5272 = vmatpush2.bf16.msra.mxu0 %v8670_v25  ;;  %v8777_v24 = vld [vmem:[%s10332_s7 + $0xa24] ss:$16 sps:$4 sm:$0xff]   ;;  %v8770_v25 = vld [vmem:[%s10330_s11 + $0x1c0] ss:$72 sps:$4 sm:$0xff]  }
 0x135   : > { %5385 = vmatpush2.bf16.msra.mxu1 %v8673_v26  ;;  %5273 = vmatprep.subr.bf16.mxu0 %v8684_v27  ;;  %v8771_v26 = vld [vmem:[%s10330_s11 + $0x1c8] ss:$72 sps:$4 sm:$0xff]  }
 0x136   : > { %5386 = vmatprep.subr.bf16.mxu1 %v8687_v28  ;;  %v8772_v27 = vld [vmem:[%s10332_s7 + $0x820] ss:$16 sps:$4 sm:$0xff]  }
 0x137   : > { %5116 = vmatmul.mubr.bf16.gmra.mxu0 %v8680_v29  ;;  %v8775_v28 = vld [vmem:[%s10332_s7 + $0xa20] ss:$16 sps:$4 sm:$0xff]   ;;  %v8780_v29 = vld [vmem:[%s10332_s7 + $0x804] ss:$16 sps:$4 sm:$0xff]  }
 0x138   : > { %5229 = vmatmul.mubr.bf16.gmra.mxu1 %v8681_v30  ;;  %5274 = vmatpush2.bf16.msra.mxu0 %v8682_v31  ;;  %v8783_v30 = vld [vmem:[%s10332_s7 + $0xa04] ss:$16 sps:$4 sm:$0xff]  }
 0x139   : > { %5387 = vmatpush2.bf16.msra.mxu1 %v8685_v32  ;;  %5275 = vmatprep.subr.bf16.mxu0 %v8690_v33  ;;  %v8784_v31 = vld [vmem:[%s10330_s11 + $0x254] ss:$72 sps:$4 sm:$0xff]   ;;  %v8778_v33 = vld [vmem:[%s10332_s7 + $0x800] ss:$16 sps:$4 sm:$0xff]  }
 0x13a   : > { %5388 = vmatprep.subr.bf16.mxu1 %v8693_v34  ;;  %5125 = vmatprep.mubr.bf16.mxu0 %v8694_v35  ;;  %v8786_v32 = vld [vmem:[%s10330_s11 + $0x25c] ss:$72 sps:$4 sm:$0xff]   ;;  %v8781_v34 = vld [vmem:[%s10332_s7 + $0xa00] ss:$16 sps:$4 sm:$0xff]  }
 0x13b   : > { %5238 = vmatprep.mubr.bf16.mxu1 %v8696_v36  ;;  %v8792_v35 = vld [vmem:[%s10332_s7 + $0x9e4] ss:$16 sps:$4 sm:$0xff]  }
 0x13c   : > { %5276 = vmatpush2.bf16.msra.mxu0 %v8688_v37  ;;  %v8795_v36 = vld [vmem:[%s10332_s7 + $0xbe4] ss:$16 sps:$4 sm:$0xff]   ;;  %v8788_v37 = vld [vmem:[%s10330_s11 + $0x250] ss:$72 sps:$4 sm:$0xff]  }
 0x13d   : > { %5389 = vmatpush2.bf16.msra.mxu1 %v8691_v38  ;;  %5277 = vmatprep.subr.bf16.mxu0 %v8702_v39  ;;  %v8789_v38 = vld [vmem:[%s10330_s11 + $0x258] ss:$72 sps:$4 sm:$0xff]  }
 0x13e   : > { %5390 = vmatprep.subr.bf16.mxu1 %v8705_v40  ;;  %v8790_v39 = vld [vmem:[%s10332_s7 + $0x9e0] ss:$16 sps:$4 sm:$0xff]  }
 0x13f   : > { %5126 = vmatmul.mubr.bf16.gmra.mxu0 %v8698_v41  ;;  %v8793_v40 = vld [vmem:[%s10332_s7 + $0xbe0] ss:$16 sps:$4 sm:$0xff]   ;;  %v8798_v41 = vld [vmem:[%s10332_s7 + $0x9c4] ss:$16 sps:$4 sm:$0xff]  }
 0x140   : > { %5239 = vmatmul.mubr.bf16.gmra.mxu1 %v8699_v42  ;;  %5278 = vmatpush2.bf16.msra.mxu0 %v8700_v43  ;;  %v8801_v42 = vld [vmem:[%s10332_s7 + $0xbc4] ss:$16 sps:$4 sm:$0xff]  }
 0x141   : > { %5391 = vmatpush2.bf16.msra.mxu1 %v8703_v44  ;;  %5279 = vmatprep.subr.bf16.mxu0 %v8708_v45  ;;  %v8802_v43 = vld [vmem:[%s10330_s11 + $0x2e4] ss:$72 sps:$4 sm:$0xff]   ;;  %v8796_v45 = vld [vmem:[%s10332_s7 + $0x9c0] ss:$16 sps:$4 sm:$0xff]  }
 0x142   : > { %5392 = vmatprep.subr.bf16.mxu1 %v8711_v46  ;;  %5281 = vmatprep.mubr.bf16.mxu0 %v8714_v47  ;;  %v8804_v44 = vld [vmem:[%s10330_s11 + $0x2ec] ss:$72 sps:$4 sm:$0xff]   ;;  %v8799_v46 = vld [vmem:[%s10332_s7 + $0xbc0] ss:$16 sps:$4 sm:$0xff]  }
 0x143   : > { %5394 = vmatprep.mubr.bf16.mxu1 %v8717_v48  ;;  %v8810_v47 = vld [vmem:[%s10332_s7 + $0x9a4] ss:$16 sps:$4 sm:$0xff]  }
 0x144   : > { %5280 = vmatpush2.bf16.msra.mxu0 %v8706_v49  ;;  %v8813_v48 = vld [vmem:[%s10332_s7 + $0xba4] ss:$16 sps:$4 sm:$0xff]   ;;  %v8806_v49 = vld [vmem:[%s10330_s11 + $0x2e0] ss:$72 sps:$4 sm:$0xff]  }
 0x145   : > { %5393 = vmatpush2.bf16.msra.mxu1 %v8709_v50  ;;  %5475 = vmatprep.subr.bf16.mxu0 %v8720_v51  ;;  %v8807_v50 = vld [vmem:[%s10330_s11 + $0x2e8] ss:$72 sps:$4 sm:$0xff]  }
 0x146   : > { %5588 = vmatprep.subr.bf16.mxu1 %v8723_v52  ;;  %v8808_v51 = vld [vmem:[%s10332_s7 + $0x9a0] ss:$16 sps:$4 sm:$0xff]  }
 0x147   : > { %5282 = vmatmul.mubr.bf16.vlgmr.msra.gmra.mxu0 %v8712_v53  ;;  %v8811_v52 = vld [vmem:[%s10332_s7 + $0xba0] ss:$16 sps:$4 sm:$0xff]   ;;  %v8816_v53 = vld [vmem:[%s10332_s7 + $0x984] ss:$16 sps:$4 sm:$0xff]  }
 0x148   : > { %5395 = vmatmul.mubr.bf16.vlgmr.msra.gmra.mxu1 %v8715_v54  ;;  %5476 = vmatpush1.bf16.msra.mxu0 %v8718_v55  ;;  %v8819_v54 = vld [vmem:[%s10332_s7 + $0xb84] ss:$16 sps:$4 sm:$0xff]  }
 0x149   : > { %5589 = vmatpush1.bf16.msra.mxu1 %v8721_v56  ;;  %5477 = vmatprep.subr.bf16.mxu0 %v8726_v57  ;;  %v8820_v55 = vld [vmem:[%s10330_s11 + $0x374] ss:$72 sps:$4 sm:$0xff]   ;;  %v8814_v57 = vld [vmem:[%s10332_s7 + $0x980] ss:$16 sps:$4 sm:$0xff]  }
 0x14a   : > { %5590 = vmatprep.subr.bf16.mxu1 %v8729_v58  ;;  %5291 = vmatprep.mubr.bf16.mxu0 %v8730_v59  ;;  %v8822_v56 = vld [vmem:[%s10330_s11 + $0x37c] ss:$72 sps:$4 sm:$0xff]   ;;  %v8817_v58 = vld [vmem:[%s10332_s7 + $0xb80] ss:$16 sps:$4 sm:$0xff]  }
 0x14b   : > { %5404 = vmatprep.mubr.bf16.mxu1 %v8732_v60  ;;  %v8828_v59 = vld [vmem:[%s10332_s7 + $0x964] ss:$16 sps:$4 sm:$0xff]  }
 0x14c   : > { %5478 = vmatpush1.bf16.msra.mxu0 %v8724_v61  ;;  %v8831_v60 = vld [vmem:[%s10332_s7 + $0xb64] ss:$16 sps:$4 sm:$0xff]   ;;  %v8824_v61 = vld [vmem:[%s10330_s11 + $0x370] ss:$72 sps:$4 sm:$0xff]  }
 0x14d   : > { %5591 = vmatpush1.bf16.msra.mxu1 %v8727_v62  ;;  %5479 = vmatprep.subr.bf16.mxu0 %v8738_v63  ;;  %v8825_v62 = vld [vmem:[%s10330_s11 + $0x378] ss:$72 sps:$4 sm:$0xff]  }
 0x14e   : > { %5592 = vmatprep.subr.bf16.mxu1 %v8741_v0  ;;  %v8826_v63 = vld [vmem:[%s10332_s7 + $0x960] ss:$16 sps:$4 sm:$0xff]  }
 0x14f   : > { %5292 = vmatmul.mubr.bf16.gmra.mxu0 %v8734_v1  ;;  %v8829_v0 = vld [vmem:[%s10332_s7 + $0xb60] ss:$16 sps:$4 sm:$0xff]   ;;  %v8834_v1 = vld [vmem:[%s10332_s7 + $0x944] ss:$16 sps:$4 sm:$0xff]  }
 0x150   : > { %5405 = vmatmul.mubr.bf16.gmra.mxu1 %v8735_v2  ;;  %5480 = vmatpush1.bf16.msra.mxu0 %v8736_v3  ;;  %v8837_v2 = vld [vmem:[%s10332_s7 + $0xb44] ss:$16 sps:$4 sm:$0xff]  }
 0x151   : > { %5593 = vmatpush1.bf16.msra.mxu1 %v8739_v4  ;;  %5481 = vmatprep.subr.bf16.mxu0 %v8744_v5  ;;  %v8838_v3 = vld [vmem:[%s10330_s11 + $0x404] ss:$72 sps:$4 sm:$0xff]   ;;  %v8832_v5 = vld [vmem:[%s10332_s7 + $0x940] ss:$16 sps:$4 sm:$0xff]  }
 0x152   : > { %5594 = vmatprep.subr.bf16.mxu1 %v8747_v6  ;;  %5301 = vmatprep.mubr.bf16.mxu0 %v8748_v7  ;;  %v8840_v4 = vld [vmem:[%s10330_s11 + $0x40c] ss:$72 sps:$4 sm:$0xff]   ;;  %v8835_v6 = vld [vmem:[%s10332_s7 + $0xb40] ss:$16 sps:$4 sm:$0xff]  }
 0x153   : > { %5414 = vmatprep.mubr.bf16.mxu1 %v8750_v8  ;;  %v8846_v7 = vld [vmem:[%s10332_s7 + $0x924] ss:$16 sps:$4 sm:$0xff]  }
 0x154   : > { %5482 = vmatpush1.bf16.msra.mxu0 %v8742_v9  ;;  %v8849_v8 = vld [vmem:[%s10332_s7 + $0xb24] ss:$16 sps:$4 sm:$0xff]   ;;  %v8842_v9 = vld [vmem:[%s10330_s11 + $0x400] ss:$72 sps:$4 sm:$0xff]  }
 0x155   : > { %5595 = vmatpush1.bf16.msra.mxu1 %v8745_v10  ;;  %5483 = vmatprep.subr.bf16.mxu0 %v8756_v11  ;;  %v8843_v10 = vld [vmem:[%s10330_s11 + $0x408] ss:$72 sps:$4 sm:$0xff]  }
 0x156   : > { %5596 = vmatprep.subr.bf16.mxu1 %v8759_v12  ;;  %v8844_v11 = vld [vmem:[%s10332_s7 + $0x920] ss:$16 sps:$4 sm:$0xff]  }
 0x157   : > { %5302 = vmatmul.mubr.bf16.gmra.mxu0 %v8752_v13  ;;  %v8847_v12 = vld [vmem:[%s10332_s7 + $0xb20] ss:$16 sps:$4 sm:$0xff]   ;;  %v8852_v13 = vld [vmem:[%s10332_s7 + $0x904] ss:$16 sps:$4 sm:$0xff]  }
 0x158   : > { %5415 = vmatmul.mubr.bf16.gmra.mxu1 %v8753_v14  ;;  %5484 = vmatpush1.bf16.msra.mxu0 %v8754_v15  ;;  %v8855_v14 = vld [vmem:[%s10332_s7 + $0xb04] ss:$16 sps:$4 sm:$0xff]  }
 0x159   : > { %5597 = vmatpush1.bf16.msra.mxu1 %v8757_v16  ;;  %5485 = vmatprep.subr.bf16.mxu0 %v8762_v17  ;;  %v8858_v15 = vld [vmem:[%s10330_s11 + $0x24] ss:$72 sps:$4 sm:$0xff]   ;;  %v8850_v17 = vld [vmem:[%s10332_s7 + $0x900] ss:$16 sps:$4 sm:$0xff]  }
 0x15a   : > { %5598 = vmatprep.subr.bf16.mxu1 %v8765_v18  ;;  %5311 = vmatprep.mubr.bf16.mxu0 %v8766_v19  ;;  %v8861_v16 = vld [vmem:[%s10330_s11 + $0x2c] ss:$72 sps:$4 sm:$0xff]   ;;  %v8853_v18 = vld [vmem:[%s10332_s7 + $0xb00] ss:$16 sps:$4 sm:$0xff]  }
 0x15b   : > { %5424 = vmatprep.mubr.bf16.mxu1 %v8768_v20  ;;  %v8864_v19 = vld [vmem:[%s10332_s7 + $0xce4] ss:$16 sps:$4 sm:$0xff]  }
 0x15c   : > { %5486 = vmatpush1.bf16.msra.mxu0 %v8760_v21  ;;  %v8867_v20 = vld [vmem:[%s10332_s7 + $0xee4] ss:$16 sps:$4 sm:$0xff]   ;;  %v8856_v21 = vld [vmem:[%s10330_s11 + $0x20] ss:$72 sps:$4 sm:$0xff]  }
 0x15d   : > { %5599 = vmatpush1.bf16.msra.mxu1 %v8763_v22  ;;  %5487 = vmatprep.subr.bf16.mxu0 %v8774_v23  ;;  %v8859_v22 = vld [vmem:[%s10330_s11 + $0x28] ss:$72 sps:$4 sm:$0xff]  }
 0x15e   : > { %5600 = vmatprep.subr.bf16.mxu1 %v8777_v24  ;;  %v8862_v23 = vld [vmem:[%s10332_s7 + $0xce0] ss:$16 sps:$4 sm:$0xff]  }
 0x15f   : > { %5312 = vmatmul.mubr.bf16.gmra.mxu0 %v8770_v25  ;;  %v8865_v24 = vld [vmem:[%s10332_s7 + $0xee0] ss:$16 sps:$4 sm:$0xff]   ;;  %v8870_v25 = vld [vmem:[%s10332_s7 + $0xcc4] ss:$16 sps:$4 sm:$0xff]  }
 0x160   : > { %5425 = vmatmul.mubr.bf16.gmra.mxu1 %v8771_v26  ;;  %5488 = vmatpush1.bf16.msra.mxu0 %v8772_v27  ;;  %v8873_v26 = vld [vmem:[%s10332_s7 + $0xec4] ss:$16 sps:$4 sm:$0xff]  }
 0x161   : > { %5601 = vmatpush1.bf16.msra.mxu1 %v8775_v28  ;;  %5489 = vmatprep.subr.bf16.mxu0 %v8780_v29  ;;  %v8874_v27 = vld [vmem:[%s10330_s11 + $0xb4] ss:$72 sps:$4 sm:$0xff]   ;;  %v8868_v29 = vld [vmem:[%s10332_s7 + $0xcc0] ss:$16 sps:$4 sm:$0xff]  }
 0x162   : > { %5602 = vmatprep.subr.bf16.mxu1 %v8783_v30  ;;  %5321 = vmatprep.mubr.bf16.mxu0 %v8784_v31  ;;  %v8876_v28 = vld [vmem:[%s10330_s11 + $0xbc] ss:$72 sps:$4 sm:$0xff]   ;;  %v8871_v30 = vld [vmem:[%s10332_s7 + $0xec0] ss:$16 sps:$4 sm:$0xff]  }
 0x163   : > { %5434 = vmatprep.mubr.bf16.mxu1 %v8786_v32  ;;  %v8882_v31 = vld [vmem:[%s10332_s7 + $0xca4] ss:$16 sps:$4 sm:$0xff]  }
 0x164   : > { %5490 = vmatpush1.bf16.msra.mxu0 %v8778_v33  ;;  %v8885_v32 = vld [vmem:[%s10332_s7 + $0xea4] ss:$16 sps:$4 sm:$0xff]   ;;  %v8878_v33 = vld [vmem:[%s10330_s11 + $0xb0] ss:$72 sps:$4 sm:$0xff]  }
 0x165   : > { %5603 = vmatpush1.bf16.msra.mxu1 %v8781_v34  ;;  %5491 = vmatprep.subr.bf16.mxu0 %v8792_v35  ;;  %v8879_v34 = vld [vmem:[%s10330_s11 + $0xb8] ss:$72 sps:$4 sm:$0xff]  }
 0x166   : > { %5604 = vmatprep.subr.bf16.mxu1 %v8795_v36  ;;  %v8880_v35 = vld [vmem:[%s10332_s7 + $0xca0] ss:$16 sps:$4 sm:$0xff]  }
 0x167   : > { %5322 = vmatmul.mubr.bf16.gmra.mxu0 %v8788_v37  ;;  %v8883_v36 = vld [vmem:[%s10332_s7 + $0xea0] ss:$16 sps:$4 sm:$0xff]   ;;  %v8888_v37 = vld [vmem:[%s10332_s7 + $0xc84] ss:$16 sps:$4 sm:$0xff]  }
 0x168   : > { %5435 = vmatmul.mubr.bf16.gmra.mxu1 %v8789_v38  ;;  %5492 = vmatpush2.bf16.msra.mxu0 %v8790_v39  ;;  %v8891_v38 = vld [vmem:[%s10332_s7 + $0xe84] ss:$16 sps:$4 sm:$0xff]  }
 0x169   : > { %5605 = vmatpush2.bf16.msra.mxu1 %v8793_v40  ;;  %5493 = vmatprep.subr.bf16.mxu0 %v8798_v41  ;;  %v8892_v39 = vld [vmem:[%s10330_s11 + $0x144] ss:$72 sps:$4 sm:$0xff]   ;;  %v8886_v41 = vld [vmem:[%s10332_s7 + $0xc80] ss:$16 sps:$4 sm:$0xff]  }
 0x16a   : > { %5606 = vmatprep.subr.bf16.mxu1 %v8801_v42  ;;  %5331 = vmatprep.mubr.bf16.mxu0 %v8802_v43  ;;  %v8894_v40 = vld [vmem:[%s10330_s11 + $0x14c] ss:$72 sps:$4 sm:$0xff]   ;;  %v8889_v42 = vld [vmem:[%s10332_s7 + $0xe80] ss:$16 sps:$4 sm:$0xff]  }
 0x16b   : > { %5444 = vmatprep.mubr.bf16.mxu1 %v8804_v44  ;;  %v8900_v43 = vld [vmem:[%s10332_s7 + $0xc64] ss:$16 sps:$4 sm:$0xff]  }
 0x16c   : > { %5494 = vmatpush2.bf16.msra.mxu0 %v8796_v45  ;;  %v8903_v44 = vld [vmem:[%s10332_s7 + $0xe64] ss:$16 sps:$4 sm:$0xff]   ;;  %v8896_v45 = vld [vmem:[%s10330_s11 + $0x140] ss:$72 sps:$4 sm:$0xff]  }
 0x16d   : > { %5607 = vmatpush2.bf16.msra.mxu1 %v8799_v46  ;;  %5495 = vmatprep.subr.bf16.mxu0 %v8810_v47  ;;  %v8897_v46 = vld [vmem:[%s10330_s11 + $0x148] ss:$72 sps:$4 sm:$0xff]  }
 0x16e   : > { %5608 = vmatprep.subr.bf16.mxu1 %v8813_v48  ;;  %v8898_v47 = vld [vmem:[%s10332_s7 + $0xc60] ss:$16 sps:$4 sm:$0xff]  }
 0x16f   : > { %5332 = vmatmul.mubr.bf16.gmra.mxu0 %v8806_v49  ;;  %v8901_v48 = vld [vmem:[%s10332_s7 + $0xe60] ss:$16 sps:$4 sm:$0xff]   ;;  %v8906_v49 = vld [vmem:[%s10332_s7 + $0xc44] ss:$16 sps:$4 sm:$0xff]  }
 0x170   : > { %5445 = vmatmul.mubr.bf16.gmra.mxu1 %v8807_v50  ;;  %5496 = vmatpush2.bf16.msra.mxu0 %v8808_v51  ;;  %v8909_v50 = vld [vmem:[%s10332_s7 + $0xe44] ss:$16 sps:$4 sm:$0xff]  }
 0x171   : > { %5609 = vmatpush2.bf16.msra.mxu1 %v8811_v52  ;;  %5497 = vmatprep.subr.bf16.mxu0 %v8816_v53  ;;  %v8910_v51 = vld [vmem:[%s10330_s11 + $0x1d4] ss:$72 sps:$4 sm:$0xff]   ;;  %v8904_v53 = vld [vmem:[%s10332_s7 + $0xc40] ss:$16 sps:$4 sm:$0xff]  }
 0x172   : > { %5610 = vmatprep.subr.bf16.mxu1 %v8819_v54  ;;  %5341 = vmatprep.mubr.bf16.mxu0 %v8820_v55  ;;  %v8912_v52 = vld [vmem:[%s10330_s11 + $0x1dc] ss:$72 sps:$4 sm:$0xff]   ;;  %v8907_v54 = vld [vmem:[%s10332_s7 + $0xe40] ss:$16 sps:$4 sm:$0xff]  }
 0x173   : > { %5454 = vmatprep.mubr.bf16.mxu1 %v8822_v56  ;;  %v8918_v55 = vld [vmem:[%s10332_s7 + $0xc24] ss:$16 sps:$4 sm:$0xff]  }
 0x174   : > { %5498 = vmatpush2.bf16.msra.mxu0 %v8814_v57  ;;  %v8921_v56 = vld [vmem:[%s10332_s7 + $0xe24] ss:$16 sps:$4 sm:$0xff]   ;;  %v8914_v57 = vld [vmem:[%s10330_s11 + $0x1d0] ss:$72 sps:$4 sm:$0xff]  }
 0x175   : > { %5611 = vmatpush2.bf16.msra.mxu1 %v8817_v58  ;;  %5499 = vmatprep.subr.bf16.mxu0 %v8828_v59  ;;  %v8915_v58 = vld [vmem:[%s10330_s11 + $0x1d8] ss:$72 sps:$4 sm:$0xff]  }
 0x176   : > { %5612 = vmatprep.subr.bf16.mxu1 %v8831_v60  ;;  %v8916_v59 = vld [vmem:[%s10332_s7 + $0xc20] ss:$16 sps:$4 sm:$0xff]  }
 0x177   : > { %5342 = vmatmul.mubr.bf16.gmra.mxu0 %v8824_v61  ;;  %v8919_v60 = vld [vmem:[%s10332_s7 + $0xe20] ss:$16 sps:$4 sm:$0xff]   ;;  %v8924_v61 = vld [vmem:[%s10332_s7 + $0xc04] ss:$16 sps:$4 sm:$0xff]  }
 0x178   : > { %5455 = vmatmul.mubr.bf16.gmra.mxu1 %v8825_v62  ;;  %5500 = vmatpush2.bf16.msra.mxu0 %v8826_v63  ;;  %v8927_v62 = vld [vmem:[%s10332_s7 + $0xe04] ss:$16 sps:$4 sm:$0xff]  }
 0x179   : > { %5613 = vmatpush2.bf16.msra.mxu1 %v8829_v0  ;;  %5501 = vmatprep.subr.bf16.mxu0 %v8834_v1  ;;  %v8928_v63 = vld [vmem:[%s10330_s11 + $0x264] ss:$72 sps:$4 sm:$0xff]   ;;  %v8922_v1 = vld [vmem:[%s10332_s7 + $0xc00] ss:$16 sps:$4 sm:$0xff]  }
 0x17a   : > { %5614 = vmatprep.subr.bf16.mxu1 %v8837_v2  ;;  %5351 = vmatprep.mubr.bf16.mxu0 %v8838_v3  ;;  %v8930_v0 = vld [vmem:[%s10330_s11 + $0x26c] ss:$72 sps:$4 sm:$0xff]   ;;  %v8925_v2 = vld [vmem:[%s10332_s7 + $0xe00] ss:$16 sps:$4 sm:$0xff]  }
 0x17b   : > { %5464 = vmatprep.mubr.bf16.mxu1 %v8840_v4  ;;  %v8936_v3 = vld [vmem:[%s10332_s7 + $0xde4] ss:$16 sps:$4 sm:$0xff]  }
 0x17c   : > { %5502 = vmatpush2.bf16.msra.mxu0 %v8832_v5  ;;  %v8939_v4 = vld [vmem:[%s10332_s7 + $0xfe4] ss:$16 sps:$4 sm:$0xff]   ;;  %v8932_v5 = vld [vmem:[%s10330_s11 + $0x260] ss:$72 sps:$4 sm:$0xff]  }
 0x17d   : > { %5615 = vmatpush2.bf16.msra.mxu1 %v8835_v6  ;;  %5503 = vmatprep.subr.bf16.mxu0 %v8846_v7  ;;  %v8933_v6 = vld [vmem:[%s10330_s11 + $0x268] ss:$72 sps:$4 sm:$0xff]  }
 0x17e   : > { %5616 = vmatprep.subr.bf16.mxu1 %v8849_v8  ;;  %v8934_v7 = vld [vmem:[%s10332_s7 + $0xde0] ss:$16 sps:$4 sm:$0xff]  }
 0x17f   : > { %5352 = vmatmul.mubr.bf16.gmra.mxu0 %v8842_v9  ;;  %v8937_v8 = vld [vmem:[%s10332_s7 + $0xfe0] ss:$16 sps:$4 sm:$0xff]   ;;  %v8942_v9 = vld [vmem:[%s10332_s7 + $0xdc4] ss:$16 sps:$4 sm:$0xff]  }
 0x180   : > { %5465 = vmatmul.mubr.bf16.gmra.mxu1 %v8843_v10  ;;  %5504 = vmatpush2.bf16.msra.mxu0 %v8844_v11  ;;  %v8945_v10 = vld [vmem:[%s10332_s7 + $0xfc4] ss:$16 sps:$4 sm:$0xff]  }
 0x181   : > { %5617 = vmatpush2.bf16.msra.mxu1 %v8847_v12  ;;  %5505 = vmatprep.subr.bf16.mxu0 %v8852_v13  ;;  %v8946_v11 = vld [vmem:[%s10330_s11 + $0x2f4] ss:$72 sps:$4 sm:$0xff]   ;;  %v8940_v13 = vld [vmem:[%s10332_s7 + $0xdc0] ss:$16 sps:$4 sm:$0xff]  }
 0x182   : > { %5618 = vmatprep.subr.bf16.mxu1 %v8855_v14  ;;  %5507 = vmatprep.mubr.bf16.mxu0 %v8858_v15  ;;  %v8948_v12 = vld [vmem:[%s10330_s11 + $0x2fc] ss:$72 sps:$4 sm:$0xff]   ;;  %v8943_v14 = vld [vmem:[%s10332_s7 + $0xfc0] ss:$16 sps:$4 sm:$0xff]  }
 0x183   : > { %5620 = vmatprep.mubr.bf16.mxu1 %v8861_v16  ;;  %v8954_v15 = vld [vmem:[%s10332_s7 + $0xda4] ss:$16 sps:$4 sm:$0xff]  }
 0x184   : > { %5506 = vmatpush2.bf16.msra.mxu0 %v8850_v17  ;;  %v8957_v16 = vld [vmem:[%s10332_s7 + $0xfa4] ss:$16 sps:$4 sm:$0xff]   ;;  %v8950_v17 = vld [vmem:[%s10330_s11 + $0x2f0] ss:$72 sps:$4 sm:$0xff]  }
 0x185   : > { %5619 = vmatpush2.bf16.msra.mxu1 %v8853_v18  ;;  %5701 = vmatprep.subr.bf16.mxu0 %v8864_v19  ;;  %v8951_v18 = vld [vmem:[%s10330_s11 + $0x2f8] ss:$72 sps:$4 sm:$0xff]  }
 0x186   : > { %5814 = vmatprep.subr.bf16.mxu1 %v8867_v20  ;;  %v8952_v19 = vld [vmem:[%s10332_s7 + $0xda0] ss:$16 sps:$4 sm:$0xff]  }
 0x187   : > { %5508 = vmatmul.mubr.bf16.vlgmr.msra.gmra.mxu0 %v8856_v21  ;;  %v8955_v20 = vld [vmem:[%s10332_s7 + $0xfa0] ss:$16 sps:$4 sm:$0xff]   ;;  %v8960_v21 = vld [vmem:[%s10332_s7 + $0xd84] ss:$16 sps:$4 sm:$0xff]  }
 0x188   : > { %5621 = vmatmul.mubr.bf16.vlgmr.msra.gmra.mxu1 %v8859_v22  ;;  %5702 = vmatpush1.bf16.msra.mxu0 %v8862_v23  ;;  %v8963_v22 = vld [vmem:[%s10332_s7 + $0xf84] ss:$16 sps:$4 sm:$0xff]  }
 0x189   : > { %5815 = vmatpush1.bf16.msra.mxu1 %v8865_v24  ;;  %5703 = vmatprep.subr.bf16.mxu0 %v8870_v25  ;;  %v8964_v23 = vld [vmem:[%s10330_s11 + $0x384] ss:$72 sps:$4 sm:$0xff]   ;;  %v8958_v25 = vld [vmem:[%s10332_s7 + $0xd80] ss:$16 sps:$4 sm:$0xff]  }
 0x18a   : > { %5816 = vmatprep.subr.bf16.mxu1 %v8873_v26  ;;  %5517 = vmatprep.mubr.bf16.mxu0 %v8874_v27  ;;  %v8966_v24 = vld [vmem:[%s10330_s11 + $0x38c] ss:$72 sps:$4 sm:$0xff]   ;;  %v8961_v26 = vld [vmem:[%s10332_s7 + $0xf80] ss:$16 sps:$4 sm:$0xff]  }
 0x18b   : > { %5630 = vmatprep.mubr.bf16.mxu1 %v8876_v28  ;;  %v8972_v27 = vld [vmem:[%s10332_s7 + $0xd64] ss:$16 sps:$4 sm:$0xff]  }
 0x18c   : > { %5704 = vmatpush1.bf16.msra.mxu0 %v8868_v29  ;;  %v8975_v28 = vld [vmem:[%s10332_s7 + $0xf64] ss:$16 sps:$4 sm:$0xff]   ;;  %v8968_v29 = vld [vmem:[%s10330_s11 + $0x380] ss:$72 sps:$4 sm:$0xff]  }
 0x18d   : > { %5817 = vmatpush1.bf16.msra.mxu1 %v8871_v30  ;;  %5705 = vmatprep.subr.bf16.mxu0 %v8882_v31  ;;  %v8969_v30 = vld [vmem:[%s10330_s11 + $0x388] ss:$72 sps:$4 sm:$0xff]  }
 0x18e   : > { %5818 = vmatprep.subr.bf16.mxu1 %v8885_v32  ;;  %v8970_v31 = vld [vmem:[%s10332_s7 + $0xd60] ss:$16 sps:$4 sm:$0xff]  }
 0x18f   : > { %5518 = vmatmul.mubr.bf16.gmra.mxu0 %v8878_v33  ;;  %v8973_v32 = vld [vmem:[%s10332_s7 + $0xf60] ss:$16 sps:$4 sm:$0xff]   ;;  %v8978_v33 = vld [vmem:[%s10332_s7 + $0xd44] ss:$16 sps:$4 sm:$0xff]  }
 0x190   : > { %5631 = vmatmul.mubr.bf16.gmra.mxu1 %v8879_v34  ;;  %5706 = vmatpush1.bf16.msra.mxu0 %v8880_v35  ;;  %v8981_v34 = vld [vmem:[%s10332_s7 + $0xf44] ss:$16 sps:$4 sm:$0xff]  }
 0x191   : > { %5819 = vmatpush1.bf16.msra.mxu1 %v8883_v36  ;;  %5707 = vmatprep.subr.bf16.mxu0 %v8888_v37  ;;  %v8982_v35 = vld [vmem:[%s10330_s11 + $0x414] ss:$72 sps:$4 sm:$0xff]   ;;  %v8976_v37 = vld [vmem:[%s10332_s7 + $0xd40] ss:$16 sps:$4 sm:$0xff]  }
 0x192   : > { %5820 = vmatprep.subr.bf16.mxu1 %v8891_v38  ;;  %5527 = vmatprep.mubr.bf16.mxu0 %v8892_v39  ;;  %v8984_v36 = vld [vmem:[%s10330_s11 + $0x41c] ss:$72 sps:$4 sm:$0xff]   ;;  %v8979_v38 = vld [vmem:[%s10332_s7 + $0xf40] ss:$16 sps:$4 sm:$0xff]  }
 0x193   : > { %5640 = vmatprep.mubr.bf16.mxu1 %v8894_v40  ;;  %v8990_v39 = vld [vmem:[%s10332_s7 + $0xd24] ss:$16 sps:$4 sm:$0xff]  }
 0x194   : > { %5708 = vmatpush1.bf16.msra.mxu0 %v8886_v41  ;;  %v8993_v40 = vld [vmem:[%s10332_s7 + $0xf24] ss:$16 sps:$4 sm:$0xff]   ;;  %v8986_v41 = vld [vmem:[%s10330_s11 + $0x410] ss:$72 sps:$4 sm:$0xff]  }
 0x195   : > { %5821 = vmatpush1.bf16.msra.mxu1 %v8889_v42  ;;  %5709 = vmatprep.subr.bf16.mxu0 %v8900_v43  ;;  %v8987_v42 = vld [vmem:[%s10330_s11 + $0x418] ss:$72 sps:$4 sm:$0xff]  }
 0x196   : > { %5822 = vmatprep.subr.bf16.mxu1 %v8903_v44  ;;  %v8988_v43 = vld [vmem:[%s10332_s7 + $0xd20] ss:$16 sps:$4 sm:$0xff]  }
 0x197   : > { %5528 = vmatmul.mubr.bf16.gmra.mxu0 %v8896_v45  ;;  %v8991_v44 = vld [vmem:[%s10332_s7 + $0xf20] ss:$16 sps:$4 sm:$0xff]   ;;  %v8996_v45 = vld [vmem:[%s10332_s7 + $0xd04] ss:$16 sps:$4 sm:$0xff]  }
 0x198   : > { %5641 = vmatmul.mubr.bf16.gmra.mxu1 %v8897_v46  ;;  %5710 = vmatpush1.bf16.msra.mxu0 %v8898_v47  ;;  %v8999_v46 = vld [vmem:[%s10332_s7 + $0xf04] ss:$16 sps:$4 sm:$0xff]  }
 0x199   : > { %5823 = vmatpush1.bf16.msra.mxu1 %v8901_v48  ;;  %5711 = vmatprep.subr.bf16.mxu0 %v8906_v49  ;;  %v9002_v47 = vld [vmem:[%s10330_s11 + $0x34] ss:$72 sps:$4 sm:$0xff]   ;;  %v8994_v49 = vld [vmem:[%s10332_s7 + $0xd00] ss:$16 sps:$4 sm:$0xff]  }
 0x19a   : > { %5824 = vmatprep.subr.bf16.mxu1 %v8909_v50  ;;  %5537 = vmatprep.mubr.bf16.mxu0 %v8910_v51  ;;  %v9005_v48 = vld [vmem:[%s10330_s11 + $0x3c] ss:$72 sps:$4 sm:$0xff]   ;;  %v8997_v50 = vld [vmem:[%s10332_s7 + $0xf00] ss:$16 sps:$4 sm:$0xff]  }
 0x19b   : > { %5650 = vmatprep.mubr.bf16.mxu1 %v8912_v52  ;;  %v9008_v51 = vld [vmem:[%s10332_s7 + $0x10e4] ss:$16 sps:$4 sm:$0xff]   ;;  %v9011_v52 = vld [vmem:[%s10332_s7 + $0xec] ss:$16 sps:$4 sm:$0xff]  }
 0x19c   : > { %5712 = vmatpush1.bf16.msra.mxu0 %v8904_v53  ;;  %v9000_v53 = vld [vmem:[%s10330_s11 + $0x30] ss:$72 sps:$4 sm:$0xff]  }
 0x19d   : > { %5825 = vmatpush1.bf16.msra.mxu1 %v8907_v54  ;;  %5713 = vmatprep.subr.bf16.mxu0 %v8918_v55  ;;  %v9003_v54 = vld [vmem:[%s10330_s11 + $0x38] ss:$72 sps:$4 sm:$0xff]  }
 0x19e   : > { %5826 = vmatprep.subr.bf16.mxu1 %v8921_v56  ;;  %v9006_v55 = vld [vmem:[%s10332_s7 + $0x10e0] ss:$16 sps:$4 sm:$0xff]   ;;  %v9009_v56 = vld [vmem:[%s10332_s7 + $0xe8] ss:$16 sps:$4 sm:$0xff]  }
 0x19f   : > { %5538 = vmatmul.mubr.bf16.gmra.mxu0 %v8914_v57  ;;  %v9014_v57 = vld [vmem:[%s10332_s7 + $0x10c4] ss:$16 sps:$4 sm:$0xff]  }
 0x1a0   : > { %5651 = vmatmul.mubr.bf16.gmra.mxu1 %v8915_v58  ;;  %5714 = vmatpush1.bf16.msra.mxu0 %v8916_v59  ;;  %v9017_v58 = vld [vmem:[%s10332_s7 + $0xcc] ss:$16 sps:$4 sm:$0xff]  }
 0x1a1   : > { %5827 = vmatpush1.bf16.msra.mxu1 %v8919_v60  ;;  %5715 = vmatprep.subr.bf16.mxu0 %v8924_v61  ;;  %v9018_v59 = vld [vmem:[%s10330_s11 + $0xc4] ss:$72 sps:$4 sm:$0xff]  }
 0x1a2   : > { %5828 = vmatprep.subr.bf16.mxu1 %v8927_v62  ;;  %5547 = vmatprep.mubr.bf16.mxu0 %v8928_v63  ;;  %v9020_v60 = vld [vmem:[%s10330_s11 + $0xcc] ss:$72 sps:$4 sm:$0xff]   ;;  %v9012_v63 = vld [vmem:[%s10332_s7 + $0x10c0] ss:$16 sps:$4 sm:$0xff]  }
 0x1a3   : > { %5660 = vmatprep.mubr.bf16.mxu1 %v8930_v0 }
 0x1a4   : > { %5716 = vmatpush1.bf16.msra.mxu0 %v8922_v1  ;;  %v9015_v1 = vld [vmem:[%s10332_s7 + $0xc8] ss:$16 sps:$4 sm:$0xff]  }
 0x1a5   : > { %5829 = vmatpush1.bf16.msra.mxu1 %v8925_v2  ;;  %5717 = vmatprep.subr.bf16.mxu0 %v8936_v3  ;;  %v9026_v2 = vld [vmem:[%s10332_s7 + $0x10a4] ss:$16 sps:$4 sm:$0xff]  }
 0x1a6   : > { %5830 = vmatprep.subr.bf16.mxu1 %v8939_v4 }
 0x1a7   : > { %5548 = vmatmul.mubr.bf16.gmra.mxu0 %v8932_v5  ;;  %v9029_v5 = vld [vmem:[%s10332_s7 + $0xac] ss:$16 sps:$4 sm:$0xff]  }
 0x1a8   : > { %5661 = vmatmul.mubr.bf16.gmra.mxu1 %v8933_v6  ;;  %5718 = vmatpush2.bf16.msra.mxu0 %v8934_v7  ;;  %v9022_v7 = vld [vmem:[%s10330_s11 + $0xc0] ss:$72 sps:$4 sm:$0xff]  }
 0x1a9   : > { %5831 = vmatpush2.bf16.msra.mxu1 %v8937_v8  ;;  %5719 = vmatprep.subr.bf16.mxu0 %v8942_v9  ;;  %v9023_v8 = vld [vmem:[%s10330_s11 + $0xc8] ss:$72 sps:$4 sm:$0xff]  }
 0x1aa   : > { %5832 = vmatprep.subr.bf16.mxu1 %v8945_v10  ;;  %5557 = vmatprep.mubr.bf16.mxu0 %v8946_v11  ;;  %v9024_v11 = vld [vmem:[%s10332_s7 + $0x10a0] ss:$16 sps:$4 sm:$0xff]  }
 0x1ab   : > { %5670 = vmatprep.mubr.bf16.mxu1 %v8948_v12  ;;  %v9027_v12 = vld [vmem:[%s10332_s7 + $0xa8] ss:$16 sps:$4 sm:$0xff]  }
 0x1ac   : > { %5720 = vmatpush2.bf16.msra.mxu0 %v8940_v13 }
 0x1ad   : > { %5833 = vmatpush2.bf16.msra.mxu1 %v8943_v14  ;;  %5721 = vmatprep.subr.bf16.mxu0 %v8954_v15  ;;  %v9032_v14 = vld [vmem:[%s10332_s7 + $0x1084] ss:$16 sps:$4 sm:$0xff]  }
 0x1ae   : > { %5834 = vmatprep.subr.bf16.mxu1 %v8957_v16 }
 0x1af   : > { %5558 = vmatmul.mubr.bf16.gmra.mxu0 %v8950_v17  ;;  %v9035_v17 = vld [vmem:[%s10332_s7 + $0x8c] ss:$16 sps:$4 sm:$0xff]  }
 0x1b0   : > { %5671 = vmatmul.mubr.bf16.gmra.mxu1 %v8951_v18  ;;  %5722 = vmatpush2.bf16.msra.mxu0 %v8952_v19  ;;  %v9036_v19 = vld [vmem:[%s10330_s11 + $0x154] ss:$72 sps:$4 sm:$0xff]  }
 0x1b1   : > { %5835 = vmatpush2.bf16.msra.mxu1 %v8955_v20  ;;  %5723 = vmatprep.subr.bf16.mxu0 %v8960_v21  ;;  %v9038_v20 = vld [vmem:[%s10330_s11 + $0x15c] ss:$72 sps:$4 sm:$0xff]  }
 0x1b2   : > { %5836 = vmatprep.subr.bf16.mxu1 %v8963_v22  ;;  %5567 = vmatprep.mubr.bf16.mxu0 %v8964_v23  ;;  %v9030_v23 = vld [vmem:[%s10332_s7 + $0x1080] ss:$16 sps:$4 sm:$0xff]  }
 0x1b3   : > { %5680 = vmatprep.mubr.bf16.mxu1 %v8966_v24  ;;  %v9033_v24 = vld [vmem:[%s10332_s7 + $0x88] ss:$16 sps:$4 sm:$0xff]  }
 0x1b4   : > { %5724 = vmatpush2.bf16.msra.mxu0 %v8958_v25 }
 0x1b5   : > { %5837 = vmatpush2.bf16.msra.mxu1 %v8961_v26  ;;  %5725 = vmatprep.subr.bf16.mxu0 %v8972_v27  ;;  %v9044_v26 = vld [vmem:[%s10332_s7 + $0x1064] ss:$16 sps:$4 sm:$0xff]  }
 0x1b6   : > { %5838 = vmatprep.subr.bf16.mxu1 %v8975_v28 }
 0x1b7   : > { %5568 = vmatmul.mubr.bf16.gmra.mxu0 %v8968_v29  ;;  %v9047_v29 = vld [vmem:[%s10332_s7 + $0x6c] ss:$16 sps:$4 sm:$0xff]  }
 0x1b8   : > { %5681 = vmatmul.mubr.bf16.gmra.mxu1 %v8969_v30  ;;  %5726 = vmatpush2.bf16.msra.mxu0 %v8970_v31  ;;  %v9040_v31 = vld [vmem:[%s10330_s11 + $0x150] ss:$72 sps:$4 sm:$0xff]  }
 0x1b9   : > { %5839 = vmatpush2.bf16.msra.mxu1 %v8973_v32  ;;  %5727 = vmatprep.subr.bf16.mxu0 %v8978_v33  ;;  %v9041_v32 = vld [vmem:[%s10330_s11 + $0x158] ss:$72 sps:$4 sm:$0xff]  }
 0x1ba   : > { %5840 = vmatprep.subr.bf16.mxu1 %v8981_v34  ;;  %5577 = vmatprep.mubr.bf16.mxu0 %v8982_v35  ;;  %v9042_v35 = vld [vmem:[%s10332_s7 + $0x1060] ss:$16 sps:$4 sm:$0xff]  }
 0x1bb   : > { %5690 = vmatprep.mubr.bf16.mxu1 %v8984_v36  ;;  %v9045_v36 = vld [vmem:[%s10332_s7 + $0x68] ss:$16 sps:$4 sm:$0xff]  }
 0x1bc   : > { %5728 = vmatpush2.bf16.msra.mxu0 %v8976_v37 }
 0x1bd   : > { %5841 = vmatpush2.bf16.msra.mxu1 %v8979_v38  ;;  %5729 = vmatprep.subr.bf16.mxu0 %v8990_v39  ;;  %v9050_v38 = vld [vmem:[%s10332_s7 + $0x1044] ss:$16 sps:$4 sm:$0xff]  }
 0x1be   : > { %5842 = vmatprep.subr.bf16.mxu1 %v8993_v40 }
 0x1bf   : > { %5578 = vmatmul.mubr.bf16.gmra.mxu0 %v8986_v41  ;;  %v9053_v41 = vld [vmem:[%s10332_s7 + $0x4c] ss:$16 sps:$4 sm:$0xff]  }
 0x1c0   : > { %5691 = vmatmul.mubr.bf16.gmra.mxu1 %v8987_v42  ;;  %5730 = vmatpush2.bf16.msra.mxu0 %v8988_v43  ;;  %v9054_v43 = vld [vmem:[%s10330_s11 + $0x1e4] ss:$72 sps:$4 sm:$0xff]  }
 0x1c1   : > { %5843 = vmatpush2.bf16.msra.mxu1 %v8991_v44  ;;  %5731 = vmatprep.subr.bf16.mxu0 %v8996_v45  ;;  %v9056_v44 = vld [vmem:[%s10330_s11 + $0x1ec] ss:$72 sps:$4 sm:$0xff]  }
 0x1c2   : > { %5844 = vmatprep.subr.bf16.mxu1 %v8999_v46  ;;  %5733 = vmatprep.mubr.bf16.mxu0 %v9002_v47  ;;  %v9048_v47 = vld [vmem:[%s10332_s7 + $0x1040] ss:$16 sps:$4 sm:$0xff]  }
 0x1c3   : > { %5846 = vmatprep.mubr.bf16.mxu1 %v9005_v48  ;;  %v9051_v48 = vld [vmem:[%s10332_s7 + $0x48] ss:$16 sps:$4 sm:$0xff]  }
 0x1c4   : > { %5732 = vmatpush2.bf16.msra.mxu0 %v8994_v49 }
 0x1c5   : > { %5845 = vmatpush2.bf16.msra.mxu1 %v8997_v50  ;;  %5927 = vmatprep.subr.bf16.mxu0 %v9008_v51  ;;  %v9062_v50 = vld [vmem:[%s10332_s7 + $0x1024] ss:$16 sps:$4 sm:$0xff]  }
 0x1c6   : > { %6040 = vmatprep.subr.bf16.mxu1 %v9011_v52 }
 0x1c7   : > { %v5057_v61 = vpop.f32.mrf.mxu0  ;;  %5734 = vmatmul.mubr.bf16.vlgmr.msra.gmra.mxu0 %v9000_v53  ;;  %v9065_v53 = vld [vmem:[%s10332_s7 + $0x2c] ss:$16 sps:$4 sm:$0xff]  }
 0x1c8   : > { %v5170_v62 = vpop.f32.mrf.mxu1  ;;  %5847 = vmatmul.mubr.bf16.vlgmr.msra.gmra.mxu1 %v9003_v54  ;;  %5928 = vmatpush1.bf16.msra.mxu0 %v9006_v55  ;;  %v9058_v55 = vld [vmem:[%s10330_s11 + $0x1e0] ss:$72 sps:$4 sm:$0xff]  }
 0x1c9   : > { %v10844_v0 = vadd.f32 %v5170_v62, %v5057_v61  ;;  %6041 = vmatpush1.bf16.msra.mxu1 %v9009_v56  ;;  %v5059_v3 = vpop.f32.mrf.mxu0  ;;  %5929 = vmatprep.subr.bf16.mxu0 %v9014_v57  ;;  %v9059_v56 = vld [vmem:[%s10330_s11 + $0x1e8] ss:$72 sps:$4 sm:$0xff]   ;;  %v9068_v62 = vld [vmem:[%s10332_s7 + $0x1004] ss:$16 sps:$4 sm:$0xff]  }
 0x1ca   : > { %v5172_v4 = vpop.f32.mrf.mxu1  ;;  %6042 = vmatprep.subr.bf16.mxu1 %v9017_v58  ;;  %5743 = vmatprep.mubr.bf16.mxu0 %v9018_v59  ;;  %v9060_v59 = vld [vmem:[%s10332_s7 + $0x1020] ss:$16 sps:$4 sm:$0xff]  }
 0x1cb   : > { %v10849_v6 = vadd.f32 %v5172_v4, %v5059_v3  ;;  %5856 = vmatprep.mubr.bf16.mxu1 %v9020_v60  ;;  %v5061_v9 = vpop.f32.mrf.mxu0  ;;  %v9063_v60 = vld [vmem:[%s10332_s7 + $0x28] ss:$16 sps:$4 sm:$0xff]   ;;  %v9074_v4 = vld [vmem:[%s10330_s11 + $0x274] ss:$72 sps:$4 sm:$0xff]  }
 0x1cc   : > { %v5174_v10 = vpop.f32.mrf.mxu1  ;;  %5930 = vmatpush1.bf16.msra.mxu0 %v9012_v63 }
 0x1cd   : > { %v10855_v13 = vadd.f32 %v5174_v10, %v5061_v9  ;;  %6043 = vmatpush1.bf16.msra.mxu1 %v9015_v1  ;;  %v5063_v15 = vpop.f32.mrf.mxu0  ;;  %5931 = vmatprep.subr.bf16.mxu0 %v9026_v2  ;;  %v9071_v2 = vld [vmem:[%s10332_s7 + $0xc] ss:$16 sps:$4 sm:$0xff]   ;;  %v9066_v9 = vld [vmem:[%s10332_s7 + $0x1000] ss:$16 sps:$4 sm:$0xff]   ;;  %v9069_v10 = vld [vmem:[%s10332_s7 + $0x8] ss:$16 sps:$4 sm:$0xff]  }
 0x1ce   : > { %v5176_v16 = vpop.f32.mrf.mxu1  ;;  %6044 = vmatprep.subr.bf16.mxu1 %v9029_v5  ;;  %v9077_v5 = vld [vmem:[%s10330_s11 + $0x27c] ss:$72 sps:$4 sm:$0xff]  }
 0x1cf   : > { %v10859_v18 = vadd.f32 %v5176_v16, %v5063_v15  ;;  %v5067_v21 = vpop.f32.mrf.mxu0  ;;  %5744 = vmatmul.mubr.bf16.gmra.mxu0 %v9022_v7  ;;  %v9083_v16 = vld [vmem:[%s10332_s7 + $0x1ec] ss:$16 sps:$4 sm:$0xff]  }
 0x1d0   : > { %v5180_v22 = vpop.f32.mrf.mxu1  ;;  %5857 = vmatmul.mubr.bf16.gmra.mxu1 %v9023_v8  ;;  %5932 = vmatpush1.bf16.msra.mxu0 %v9024_v11 }
 0x1d1   : > { %v10865_v25 = vadd.f32 %v5180_v22, %v5067_v21  ;;  %6045 = vmatpush1.bf16.msra.mxu1 %v9027_v12  ;;  %v5069_v27 = vpop.f32.mrf.mxu0  ;;  %5933 = vmatprep.subr.bf16.mxu0 %v9032_v14  ;;  %v9080_v12 = vld [vmem:[%s10332_s7 + $0x11e4] ss:$16 sps:$4 sm:$0xff]  }
 0x1d2   : > { %v5182_v28 = vpop.f32.mrf.mxu1  ;;  %6046 = vmatprep.subr.bf16.mxu1 %v9035_v17  ;;  %5753 = vmatprep.mubr.bf16.mxu0 %v9036_v19  ;;  %v9072_v19 = vld [vmem:[%s10330_s11 + $0x270] ss:$72 sps:$4 sm:$0xff]  }
 0x1d3   : > { %v10869_v30 = vadd.f32 %v5182_v28, %v5069_v27  ;;  %5866 = vmatprep.mubr.bf16.mxu1 %v9038_v20  ;;  %v5071_v33 = vpop.f32.mrf.mxu0  ;;  %v9075_v20 = vld [vmem:[%s10330_s11 + $0x278] ss:$72 sps:$4 sm:$0xff]   ;;  %v9086_v27 = vld [vmem:[%s10332_s7 + $0x11c4] ss:$16 sps:$4 sm:$0xff]  }
 0x1d4   : > { %v5184_v34 = vpop.f32.mrf.mxu1  ;;  %5934 = vmatpush1.bf16.msra.mxu0 %v9030_v23  ;;  %v9078_v23 = vld [vmem:[%s10332_s7 + $0x11e0] ss:$16 sps:$4 sm:$0xff]  }
 0x1d5   : > { %v10875_v37 = vadd.f32 %v5184_v34, %v5071_v33  ;;  %6047 = vmatpush1.bf16.msra.mxu1 %v9033_v24  ;;  %v5073_v39 = vpop.f32.mrf.mxu0  ;;  %5935 = vmatprep.subr.bf16.mxu0 %v9044_v26  ;;  %v9081_v24 = vld [vmem:[%s10332_s7 + $0x1e8] ss:$16 sps:$4 sm:$0xff]   ;;  %v9092_v33 = vld [vmem:[%s10330_s11 + $0x304] ss:$72 sps:$4 sm:$0xff]  }
 0x1d6   : > { %v5186_v40 = vpop.f32.mrf.mxu1  ;;  %6048 = vmatprep.subr.bf16.mxu1 %v9047_v29  ;;  %v9095_v34 = vld [vmem:[%s10330_s11 + $0x30c] ss:$72 sps:$4 sm:$0xff]  }
 0x1d7   : > { %v10879_v42 = vadd.f32 %v5186_v40, %v5073_v39  ;;  %v5077_v45 = vpop.f32.mrf.mxu0  ;;  %5754 = vmatmul.mubr.bf16.gmra.mxu0 %v9040_v31  ;;  %v9089_v31 = vld [vmem:[%s10332_s7 + $0x1cc] ss:$16 sps:$4 sm:$0xff]   ;;  %v9087_v39 = vld [vmem:[%s10332_s7 + $0x1c8] ss:$16 sps:$4 sm:$0xff]  }
 0x1d8   : > { %v5190_v46 = vpop.f32.mrf.mxu1  ;;  %5867 = vmatmul.mubr.bf16.gmra.mxu1 %v9041_v32  ;;  %5936 = vmatpush1.bf16.msra.mxu0 %v9042_v35 }
 0x1d9   : > { %v10885_v49 = vadd.f32 %v5190_v46, %v5077_v45  ;;  %6049 = vmatpush1.bf16.msra.mxu1 %v9045_v36  ;;  %v5079_v51 = vpop.f32.mrf.mxu0  ;;  %5937 = vmatprep.subr.bf16.mxu0 %v9050_v38  ;;  %v9084_v38 = vld [vmem:[%s10332_s7 + $0x11c0] ss:$16 sps:$4 sm:$0xff]   ;;  %v9101_v45 = vld [vmem:[%s10332_s7 + $0x1ac] ss:$16 sps:$4 sm:$0xff]  }
 0x1da   : > { %v5192_v52 = vpop.f32.mrf.mxu1  ;;  %6050 = vmatprep.subr.bf16.mxu1 %v9053_v41  ;;  %5763 = vmatprep.mubr.bf16.mxu0 %v9054_v43  ;;  %v9098_v41 = vld [vmem:[%s10332_s7 + $0x11a4] ss:$16 sps:$4 sm:$0xff]  }
 0x1db   : > { %v10889_v54 = vadd.f32 %v5192_v52, %v5079_v51  ;;  %5876 = vmatprep.mubr.bf16.mxu1 %v9056_v44  ;;  %v5081_v57 = vpop.f32.mrf.mxu0  ;;  %v9096_v52 = vld [vmem:[%s10332_s7 + $0x11a0] ss:$16 sps:$4 sm:$0xff]  }
 0x1dc   : > { %v5194_v58 = vpop.f32.mrf.mxu1  ;;  %5938 = vmatpush1.bf16.msra.mxu0 %v9048_v47  ;;  %v9090_v47 = vld [vmem:[%s10330_s11 + $0x300] ss:$72 sps:$4 sm:$0xff]  }
 0x1dd   : > { %v10895_v61 = vadd.f32 %v5194_v58, %v5081_v57  ;;  %6051 = vmatpush1.bf16.msra.mxu1 %v9051_v48  ;;  %v5083_v63 = vpop.f32.mrf.mxu0  ;;  %5939 = vmatprep.subr.bf16.mxu0 %v9062_v50  ;;  %v9093_v48 = vld [vmem:[%s10330_s11 + $0x308] ss:$72 sps:$4 sm:$0xff]  }
 0x1de   : > { %v5196_v1 = vpop.f32.mrf.mxu1  ;;  %6052 = vmatprep.subr.bf16.mxu1 %v9065_v53  ;;  %v9099_v53 = vld [vmem:[%s10332_s7 + $0x1a8] ss:$16 sps:$4 sm:$0xff]  }
 0x1df   : > { %v10899_v3 = vadd.f32 %v5196_v1, %v5083_v63  ;;  %v5087_v7 = vpop.f32.mrf.mxu0  ;;  %5764 = vmatmul.mubr.bf16.gmra.mxu0 %v9058_v55  ;;  %v9113_v63 = vld [vmem:[%s10330_s11 + $0x39c] ss:$72 sps:$4 sm:$0xff]  }
 0x1e0   : > { %v5200_v8 = vpop.f32.mrf.mxu1  ;;  %5877 = vmatmul.mubr.bf16.gmra.mxu1 %v9059_v56  ;;  %5940 = vmatpush1.bf16.msra.mxu0 %v9060_v59  ;;  %v9104_v56 = vld [vmem:[%s10332_s7 + $0x1184] ss:$16 sps:$4 sm:$0xff]   ;;  %v9107_v59 = vld [vmem:[%s10332_s7 + $0x18c] ss:$16 sps:$4 sm:$0xff]  }
 0x1e1   : > { %v10905_v11 = vadd.f32 %v5200_v8, %v5087_v7  ;;  %6053 = vmatpush1.bf16.msra.mxu1 %v9063_v60  ;;  %v5089_v14 = vpop.f32.mrf.mxu0  ;;  %5941 = vmatprep.subr.bf16.mxu0 %v9068_v62  ;;  %v9110_v62 = vld [vmem:[%s10330_s11 + $0x394] ss:$72 sps:$4 sm:$0xff]  }
 0x1e2   : > { %v5202_v15 = vpop.f32.mrf.mxu1  ;;  %6054 = vmatprep.subr.bf16.mxu1 %v9071_v2  ;;  %5773 = vmatprep.mubr.bf16.mxu0 %v9074_v4  ;;  %v9102_v4 = vld [vmem:[%s10332_s7 + $0x1180] ss:$16 sps:$4 sm:$0xff]   ;;  %v9116_v8 = vld [vmem:[%s10332_s7 + $0x1164] ss:$16 sps:$4 sm:$0xff]  }
 0x1e3   : > { %v10909_v17 = vadd.f32 %v5202_v15, %v5089_v14  ;;  %5886 = vmatprep.mubr.bf16.mxu1 %v9077_v5  ;;  %v5091_v21 = vpop.f32.mrf.mxu0  ;;  %v9105_v5 = vld [vmem:[%s10332_s7 + $0x188] ss:$16 sps:$4 sm:$0xff]  }
 0x1e4   : > { %v5204_v22 = vpop.f32.mrf.mxu1  ;;  %5942 = vmatpush1.bf16.msra.mxu0 %v9066_v9  ;;  %v9108_v15 = vld [vmem:[%s10330_s11 + $0x390] ss:$72 sps:$4 sm:$0xff]  }
 0x1e5   : > { %v10915_v26 = vadd.f32 %v5204_v22, %v5091_v21  ;;  %6055 = vmatpush1.bf16.msra.mxu1 %v9069_v10  ;;  %v5093_v28 = vpop.f32.mrf.mxu0  ;;  %5943 = vmatprep.subr.bf16.mxu0 %v9080_v12  ;;  %v9119_v12 = vld [vmem:[%s10332_s7 + $0x16c] ss:$16 sps:$4 sm:$0xff]   ;;  %v9114_v21 = vld [vmem:[%s10332_s7 + $0x1160] ss:$16 sps:$4 sm:$0xff]   ;;  %v9117_v22 = vld [vmem:[%s10332_s7 + $0x168] ss:$16 sps:$4 sm:$0xff]  }
 0x1e6   : > { %v5206_v29 = vpop.f32.mrf.mxu1  ;;  %6056 = vmatprep.subr.bf16.mxu1 %v9083_v16  ;;  %v9111_v16 = vld [vmem:[%s10330_s11 + $0x398] ss:$72 sps:$4 sm:$0xff]  }
 0x1e7   : > { %v10919_v32 = vadd.f32 %v5206_v29, %v5093_v28  ;;  %v5097_v35 = vpop.f32.mrf.mxu0  ;;  %5774 = vmatmul.mubr.bf16.gmra.mxu0 %v9072_v19  ;;  %v9125_v29 = vld [vmem:[%s10332_s7 + $0x14c] ss:$16 sps:$4 sm:$0xff]  }
 0x1e8   : > { %v5210_v36 = vpop.f32.mrf.mxu1  ;;  %5887 = vmatmul.mubr.bf16.gmra.mxu1 %v9075_v20  ;;  %5944 = vmatpush2.bf16.msra.mxu0 %v9078_v23 }
 0x1e9   : > { %v10925_v40 = vadd.f32 %v5210_v36, %v5097_v35  ;;  %6057 = vmatpush2.bf16.msra.mxu1 %v9081_v24  ;;  %v5099_v43 = vpop.f32.mrf.mxu0  ;;  %5945 = vmatprep.subr.bf16.mxu0 %v9086_v27  ;;  %v9122_v24 = vld [vmem:[%s10332_s7 + $0x1144] ss:$16 sps:$4 sm:$0xff]  }
 0x1ea   : > { %v5212_v44 = vpop.f32.mrf.mxu1  ;;  %6058 = vmatprep.subr.bf16.mxu1 %v9089_v31  ;;  %5783 = vmatprep.mubr.bf16.mxu0 %v9092_v33  ;;  %v9128_v33 = vld [vmem:[%s10330_s11 + $0x424] ss:$72 sps:$4 sm:$0xff]  }
 0x1eb   : > { %v10929_v46 = vadd.f32 %v5212_v44, %v5099_v43  ;;  %5896 = vmatprep.mubr.bf16.mxu1 %v9095_v34  ;;  %v5101_v50 = vpop.f32.mrf.mxu0  ;;  %v9131_v34 = vld [vmem:[%s10330_s11 + $0x42c] ss:$72 sps:$4 sm:$0xff]  }
 0x1ec   : > { %v5214_v51 = vpop.f32.mrf.mxu1  ;;  %5946 = vmatpush2.bf16.msra.mxu0 %v9084_v38  ;;  %v9120_v38 = vld [vmem:[%s10332_s7 + $0x1140] ss:$16 sps:$4 sm:$0xff]   ;;  %v9134_v43 = vld [vmem:[%s10332_s7 + $0x1124] ss:$16 sps:$4 sm:$0xff]  }
 0x1ed   : > { %v10935_v55 = vadd.f32 %v5214_v51, %v5101_v50  ;;  %6059 = vmatpush2.bf16.msra.mxu1 %v9087_v39  ;;  %v5103_v57 = vpop.f32.mrf.mxu0  ;;  %5947 = vmatprep.subr.bf16.mxu0 %v9098_v41  ;;  %v9123_v39 = vld [vmem:[%s10332_s7 + $0x148] ss:$16 sps:$4 sm:$0xff]  }
 0x1ee   : > { %v5216_v58 = vpop.f32.mrf.mxu1  ;;  %6060 = vmatprep.subr.bf16.mxu1 %v9101_v45  ;;  %v9126_v50 = vld [vmem:[%s10330_s11 + $0x420] ss:$72 sps:$4 sm:$0xff]  }
 0x1ef   : > { %v10939_v60 = vadd.f32 %v5216_v58, %v5103_v57  ;;  %v5107_v1 = vpop.f32.mrf.mxu0  ;;  %5784 = vmatmul.mubr.bf16.gmra.mxu0 %v9090_v47  ;;  %v9137_v47 = vld [vmem:[%s10332_s7 + $0x12c] ss:$16 sps:$4 sm:$0xff]   ;;  %v9129_v51 = vld [vmem:[%s10330_s11 + $0x428] ss:$72 sps:$4 sm:$0xff]  }
 0x1f0   : > { %v5220_v2 = vpop.f32.mrf.mxu1  ;;  %5897 = vmatmul.mubr.bf16.gmra.mxu1 %v9093_v48  ;;  %5948 = vmatpush2.bf16.msra.mxu0 %v9096_v52  ;;  %v9135_v57 = vld [vmem:[%s10332_s7 + $0x128] ss:$16 sps:$4 sm:$0xff]  }
 0x1f1   : > { %v10945_v7 = vadd.f32 %v5220_v2, %v5107_v1  ;;  %6061 = vmatpush2.bf16.msra.mxu1 %v9099_v53  ;;  %v5109_v9 = vpop.f32.mrf.mxu0  ;;  %5949 = vmatprep.subr.bf16.mxu0 %v9104_v56  ;;  %v9132_v56 = vld [vmem:[%s10332_s7 + $0x1120] ss:$16 sps:$4 sm:$0xff]   ;;  %v9143_v1 = vld [vmem:[%s10332_s7 + $0x10c] ss:$16 sps:$4 sm:$0xff]  }
 0x1f2   : > { %v5222_v10 = vpop.f32.mrf.mxu1  ;;  %6062 = vmatprep.subr.bf16.mxu1 %v9107_v59  ;;  %5793 = vmatprep.mubr.bf16.mxu0 %v9110_v62  ;;  %v9140_v59 = vld [vmem:[%s10332_s7 + $0x1104] ss:$16 sps:$4 sm:$0xff]  }
 0x1f3   : > { %v10949_v14 = vadd.f32 %v5222_v10, %v5109_v9  ;;  %5906 = vmatprep.mubr.bf16.mxu1 %v9113_v63  ;;  %v5111_v19 = vpop.f32.mrf.mxu0  ;;  %v9138_v9 = vld [vmem:[%s10332_s7 + $0x1100] ss:$16 sps:$4 sm:$0xff]   ;;  %v9141_v10 = vld [vmem:[%s10332_s7 + $0x108] ss:$16 sps:$4 sm:$0xff]  }
 0x1f4   : > { %v5224_v20 = vpop.f32.mrf.mxu1  ;;  %5950 = vmatpush2.bf16.msra.mxu0 %v9102_v4  ;;  %v9146_v4 = vld [vmem:[%s10330_s11 + $0x44] ss:$72 sps:$4 sm:$0xff]  }
 0x1f5   : > { %v10955_v23 = vadd.f32 %v5224_v20, %v5111_v19  ;;  %6063 = vmatpush2.bf16.msra.mxu1 %v9105_v5  ;;  %v5113_v27 = vpop.f32.mrf.mxu0  ;;  %5951 = vmatprep.subr.bf16.mxu0 %v9116_v8  ;;  %v9152_v20 = vld [vmem:[%s10332_s7 + $0x4ec] ss:$16 sps:$4 sm:$0xff]  }
 0x1f6   : > { %v5226_v28 = vpop.f32.mrf.mxu1  ;;  %6064 = vmatprep.subr.bf16.mxu1 %v9119_v12 }
 0x1f7   : > { %v10959_v31 = vadd.f32 %v5226_v28, %v5113_v27  ;;  %v5117_v35 = vpop.f32.mrf.mxu0  ;;  %5794 = vmatmul.mubr.bf16.gmra.mxu0 %v9108_v15  ;;  %v9149_v15 = vld [vmem:[%s10332_s7 + $0x2ec] ss:$16 sps:$4 sm:$0xff]  }
 0x1f8   : > { %v5230_v36 = vpop.f32.mrf.mxu1  ;;  %5907 = vmatmul.mubr.bf16.gmra.mxu1 %v9111_v16  ;;  %5952 = vmatpush2.bf16.msra.mxu0 %v9114_v21 }
 0x1f9   : > { %v10965_v41 = vadd.f32 %v5230_v36, %v5117_v35  ;;  %6065 = vmatpush2.bf16.msra.mxu1 %v9117_v22  ;;  %v5119_v44 = vpop.f32.mrf.mxu0  ;;  %5953 = vmatprep.subr.bf16.mxu0 %v9122_v24  ;;  %v9144_v22 = vld [vmem:[%s10330_s11 + $0x40] ss:$72 sps:$4 sm:$0xff]   ;;  %v9552_v24 = vld [vmem:[%s10330_s11 + $0x4] ss:$72 sps:$4 sm:$0xff]  }
 0x1fa   : > { %v5232_v45 = vpop.f32.mrf.mxu1  ;;  %6066 = vmatprep.subr.bf16.mxu1 %v9125_v29  ;;  %5803 = vmatprep.mubr.bf16.mxu0 %v9128_v33  ;;  %v9147_v29 = vld [vmem:[%s10332_s7 + $0x2e8] ss:$16 sps:$4 sm:$0xff]   ;;  %v9155_v35 = vld [vmem:[%s10332_s7 + $0x2cc] ss:$16 sps:$4 sm:$0xff]  }
 0x1fb   : > { %v10969_v48 = vadd.f32 %v5232_v45, %v5119_v44  ;;  %5916 = vmatprep.mubr.bf16.mxu1 %v9131_v34  ;;  %v5121_v52 = vpop.f32.mrf.mxu0  ;;  %v9150_v33 = vld [vmem:[%s10332_s7 + $0x4e8] ss:$16 sps:$4 sm:$0xff]   ;;  %v9161_v44 = vld [vmem:[%s10330_s11 + $0xd4] ss:$72 sps:$4 sm:$0xff]  }
 0x1fc   : > { %v5234_v53 = vpop.f32.mrf.mxu1  ;;  %5954 = vmatpush2.bf16.msra.mxu0 %v9120_v38 }
 0x1fd   : > { %v10975_v58 = vadd.f32 %v5234_v53, %v5121_v52  ;;  %6067 = vmatpush2.bf16.msra.mxu1 %v9123_v39  ;;  %v5123_v62 = vpop.f32.mrf.mxu0  ;;  %5955 = vmatprep.subr.bf16.mxu0 %v9134_v43  ;;  %v9158_v39 = vld [vmem:[%s10332_s7 + $0x4cc] ss:$16 sps:$4 sm:$0xff]   ;;  %v9156_v52 = vld [vmem:[%s10332_s7 + $0x4c8] ss:$16 sps:$4 sm:$0xff]  }
 0x1fe   : > { %v5236_v63 = vpop.f32.mrf.mxu1  ;;  %6068 = vmatprep.subr.bf16.mxu1 %v9137_v47 }
 0x1ff   : > { %v10979_v2 = vadd.f32 %v5236_v63, %v5123_v62  ;;  %v5127_v5 = vpop.f32.mrf.mxu0  ;;  %5804 = vmatmul.mubr.bf16.gmra.mxu0 %v9126_v50  ;;  %v9553_v50 = vld [vmem:[%s10330_s11] ss:$72 sps:$4 sm:$0xff]   ;;  %v9167_v62 = vld [vmem:[%s10332_s7 + $0x4ac] ss:$16 sps:$4 sm:$0xff]  }
 0x200   : > { %v5240_v8 = vpop.f32.mrf.mxu1  ;;  %5917 = vmatmul.mubr.bf16.gmra.mxu1 %v9129_v51  ;;  %5956 = vmatpush2.bf16.msra.mxu0 %v9132_v56  ;;  %v9153_v51 = vld [vmem:[%s10332_s7 + $0x2c8] ss:$16 sps:$4 sm:$0xff]   ;;  %v9164_v56 = vld [vmem:[%s10332_s7 + $0x2ac] ss:$16 sps:$4 sm:$0xff]  }
 0x201   : > { %v10984_v12 = vadd.f32 %v5240_v8, %v5127_v5  ;;  %6069 = vmatpush2.bf16.msra.mxu1 %v9135_v57  ;;  %v5129_v16 = vpop.f32.mrf.mxu0  ;;  %5957 = vmatprep.subr.bf16.mxu0 %v9140_v59  ;;  %v9554_v5 = vld [vmem:[%s10330_s11 + $0x94] ss:$72 sps:$4 sm:$0xff]  }
 0x202   : > { %v5242_v19 = vpop.f32.mrf.mxu1  ;;  %6070 = vmatprep.subr.bf16.mxu1 %v9143_v1  ;;  %5959 = vmatprep.mubr.bf16.mxu0 %v9146_v4  ;;  %v9159_v4 = vld [vmem:[%s10330_s11 + $0xd0] ss:$72 sps:$4 sm:$0xff]  }
 0x203   : > { %v10988_v21 = vadd.f32 %v5242_v19, %v5129_v16  ;;  %6072 = vmatprep.mubr.bf16.mxu1 %v9552_v24  ;;  %v5131_v27 = vpop.f32.mrf.mxu0 }
 0x204   : > { %v5244_v28 = vpop.f32.mrf.mxu1  ;;  %5958 = vmatpush2.bf16.msra.mxu0 %v9138_v9  ;;  %v9162_v9 = vld [vmem:[%s10332_s7 + $0x2a8] ss:$16 sps:$4 sm:$0xff]  }
 0x205   : > { %v10994_v34 = vadd.f32 %v5244_v28, %v5131_v27  ;;  %6071 = vmatpush2.bf16.msra.mxu1 %v9141_v10  ;;  %v5133_v36 = vpop.f32.mrf.mxu0  ;;  %6153 = vmatprep.subr.bf16.mxu0 %v9149_v15  ;;  %v9165_v10 = vld [vmem:[%s10332_s7 + $0x4a8] ss:$16 sps:$4 sm:$0xff]   ;;  %v9176_v28 = vld [vmem:[%s10330_s11 + $0x164] ss:$72 sps:$4 sm:$0xff]  }
 0x206   : > { %v5246_v38 = vpop.f32.mrf.mxu1  ;;  %6266 = vmatprep.subr.bf16.mxu1 %v9152_v20 }
 0x207   : > { %v10998_v43 = vadd.f32 %v5246_v38, %v5133_v36  ;;  %v5283_v45 = vpop.f32.mrf.mxu0  ;;  %5960 = vmatmul.mubr.bf16.vlgmr.msra.gmra.mxu0 %v9144_v22  ;;  %v9173_v22 = vld [vmem:[%s10332_s7 + $0x48c] ss:$16 sps:$4 sm:$0xff]   ;;  %v9171_v36 = vld [vmem:[%s10332_s7 + $0x488] ss:$16 sps:$4 sm:$0xff]  }
 0x208   : > { %v5396_v47 = vpop.f32.mrf.mxu1  ;;  %6073 = vmatmul.mubr.bf16.vlgmr.msra.gmra.mxu1 %v9553_v50  ;;  %v5284_v53 = vadd.f32 %v5283_v45, %v10844_v0  ;;  %6154 = vmatpush1.bf16.msra.mxu0 %v9147_v29 }
 0x209   : > { %6267 = vmatpush1.bf16.msra.mxu1 %v9150_v33  ;;  %v5285_v57 = vpop.f32.mrf.mxu0  ;;  %6155 = vmatprep.subr.bf16.mxu0 %v9155_v35  ;;  %v9168_v35 = vld [vmem:[%s10332_s7 + $0x288] ss:$16 sps:$4 sm:$0xff]  }
 0x20a   : > { %v5398_v59 = vpop.f32.mrf.mxu1  ;;  %6268 = vmatprep.subr.bf16.mxu1 %v9158_v39  ;;  %v11007_v63 = vadd.f32 %v5396_v47, %v5284_v53  ;;  %v5286_v1 = vadd.f32 %v5285_v57, %v10849_v6  ;;  %5969 = vmatprep.mubr.bf16.mxu0 %v9161_v44  ;;  %v9170_v6 = vld [vmem:[%s10332_s7 + $0x28c] ss:$16 sps:$4 sm:$0xff]   ;;  %v9177_v57 = vld [vmem:[%s10332_s7 + $0x268] ss:$16 sps:$4 sm:$0xff]  }
 0x20b   : > { %6082 = vmatprep.mubr.bf16.mxu1 %v9554_v5  ;;  %v5287_v0 = vpop.f32.mrf.mxu0  ;;  %v9182_v47 = vld [vmem:[%s10332_s7 + $0x46c] ss:$16 sps:$4 sm:$0xff]  }
 0x20c   : > { %v5400_v8 = vpop.f32.mrf.mxu1  ;;  %v11014_v15 = vadd.f32 %v5398_v59, %v5286_v1  ;;  %v5288_v16 = vadd.f32 %v5287_v0, %v10855_v13  ;;  %6156 = vmatpush1.bf16.msra.mxu0 %v9153_v51  ;;  %v9555_v13 = vld [vmem:[%s10330_s11 + $0x90] ss:$72 sps:$4 sm:$0xff]   ;;  %v9556_v53 = vld [vmem:[%s10330_s11 + $0x124] ss:$72 sps:$4 sm:$0xff]  }
 0x20d   : > { %6269 = vmatpush1.bf16.msra.mxu1 %v9156_v52  ;;  %v5289_v19 = vpop.f32.mrf.mxu0  ;;  %6157 = vmatprep.subr.bf16.mxu0 %v9164_v56  ;;  %v9174_v52 = vld [vmem:[%s10330_s11 + $0x160] ss:$72 sps:$4 sm:$0xff]   ;;  %v9188_v0 = vld [vmem:[%s10332_s7 + $0x44c] ss:$16 sps:$4 sm:$0xff]  }
 0x20e   : > { %v5402_v20 = vpop.f32.mrf.mxu1  ;;  %6270 = vmatprep.subr.bf16.mxu1 %v9167_v62  ;;  %v11019_v24 = vadd.f32 %v5400_v8, %v5288_v16  ;;  %v5290_v27 = vadd.f32 %v5289_v19, %v10859_v18  ;;  %v9179_v18 = vld [vmem:[%s10332_s7 + $0x26c] ss:$16 sps:$4 sm:$0xff]   ;;  %v9180_v59 = vld [vmem:[%s10332_s7 + $0x468] ss:$16 sps:$4 sm:$0xff]  }
 0x20f   : > { %v5293_v29 = vpop.f32.mrf.mxu0  ;;  %5970 = vmatmul.mubr.bf16.gmra.mxu0 %v9159_v4  ;;  %v9183_v19 = vld [vmem:[%s10332_s7 + $0x248] ss:$16 sps:$4 sm:$0xff]  }
 0x210   : > { %v5406_v33 = vpop.f32.mrf.mxu1  ;;  %6083 = vmatmul.mubr.bf16.gmra.mxu1 %v9555_v13  ;;  %v11026_v38 = vadd.f32 %v5402_v20, %v5290_v27  ;;  %v5294_v39 = vadd.f32 %v5293_v29, %v10865_v25  ;;  %6158 = vmatpush1.bf16.msra.mxu0 %v9162_v9  ;;  %v9186_v20 = vld [vmem:[%s10332_s7 + $0x448] ss:$16 sps:$4 sm:$0xff]  }
 0x211   : > { %6271 = vmatpush1.bf16.msra.mxu1 %v9165_v10  ;;  %v5295_v44 = vpop.f32.mrf.mxu0  ;;  %6159 = vmatprep.subr.bf16.mxu0 %v9170_v6  ;;  %v9191_v10 = vld [vmem:[%s10330_s11 + $0x1f4] ss:$72 sps:$4 sm:$0xff]  }
 0x212   : > { %v5408_v45 = vpop.f32.mrf.mxu1  ;;  %6272 = vmatprep.subr.bf16.mxu1 %v9173_v22  ;;  %v11031_v50 = vadd.f32 %v5406_v33, %v5294_v39  ;;  %v5296_v51 = vadd.f32 %v5295_v44, %v10869_v30  ;;  %5979 = vmatprep.mubr.bf16.mxu0 %v9176_v28  ;;  %v9185_v30 = vld [vmem:[%s10332_s7 + $0x24c] ss:$16 sps:$4 sm:$0xff]   ;;  %v9192_v44 = vld [vmem:[%s10332_s7 + $0x228] ss:$16 sps:$4 sm:$0xff]  }
 0x213   : > { %6092 = vmatprep.mubr.bf16.mxu1 %v9556_v53  ;;  %v5297_v25 = vpop.f32.mrf.mxu0  ;;  %v9197_v33 = vld [vmem:[%s10332_s7 + $0x42c] ss:$16 sps:$4 sm:$0xff]  }
 0x214   : > { %v5410_v56 = vpop.f32.mrf.mxu1  ;;  %v11038_v62 = vadd.f32 %v5408_v45, %v5296_v51  ;;  %v5298_v1 = vadd.f32 %v5297_v25, %v10875_v37  ;;  %6160 = vmatpush1.bf16.msra.mxu0 %v9168_v35  ;;  %v9557_v37 = vld [vmem:[%s10330_s11 + $0x120] ss:$72 sps:$4 sm:$0xff]   ;;  %v9558_v39 = vld [vmem:[%s10330_s11 + $0x1b4] ss:$72 sps:$4 sm:$0xff]  }
 0x215   : > { %6273 = vmatpush1.bf16.msra.mxu1 %v9171_v36  ;;  %v5299_v4 = vpop.f32.mrf.mxu0  ;;  %6161 = vmatprep.subr.bf16.mxu0 %v9179_v18  ;;  %v9189_v36 = vld [vmem:[%s10330_s11 + $0x1f0] ss:$72 sps:$4 sm:$0xff]   ;;  %v9203_v25 = vld [vmem:[%s10332_s7 + $0x40c] ss:$16 sps:$4 sm:$0xff]  }
 0x216   : > { %v5412_v5 = vpop.f32.mrf.mxu1  ;;  %6274 = vmatprep.subr.bf16.mxu1 %v9182_v47  ;;  %v11043_v8 = vadd.f32 %v5410_v56, %v5298_v1  ;;  %v5300_v9 = vadd.f32 %v5299_v4, %v10879_v42  ;;  %v9194_v42 = vld [vmem:[%s10332_s7 + $0x22c] ss:$16 sps:$4 sm:$0xff]   ;;  %v9195_v45 = vld [vmem:[%s10332_s7 + $0x428] ss:$16 sps:$4 sm:$0xff]  }
 0x217   : > { %v5303_v16 = vpop.f32.mrf.mxu0  ;;  %5980 = vmatmul.mubr.bf16.gmra.mxu0 %v9174_v52  ;;  %v9198_v4 = vld [vmem:[%s10332_s7 + $0x208] ss:$16 sps:$4 sm:$0xff]  }
 0x218   : > { %v5416_v6 = vpop.f32.mrf.mxu1  ;;  %6093 = vmatmul.mubr.bf16.gmra.mxu1 %v9557_v37  ;;  %v11050_v22 = vadd.f32 %v5412_v5, %v5300_v9  ;;  %v5304_v27 = vadd.f32 %v5303_v16, %v10885_v49  ;;  %6162 = vmatpush1.bf16.msra.mxu0 %v9177_v57  ;;  %v9201_v5 = vld [vmem:[%s10332_s7 + $0x408] ss:$16 sps:$4 sm:$0xff]  }
 0x219   : > { %6275 = vmatpush1.bf16.msra.mxu1 %v9180_v59  ;;  %v5305_v28 = vpop.f32.mrf.mxu0  ;;  %6163 = vmatprep.subr.bf16.mxu0 %v9185_v30  ;;  %v9206_v59 = vld [vmem:[%s10330_s11 + $0x284] ss:$72 sps:$4 sm:$0xff]  }
 0x21a   : > { %v5418_v29 = vpop.f32.mrf.mxu1  ;;  %6276 = vmatprep.subr.bf16.mxu1 %v9188_v0  ;;  %v11055_v13 = vadd.f32 %v5416_v6, %v5304_v27  ;;  %v5306_v35 = vadd.f32 %v5305_v28, %v10889_v54  ;;  %5989 = vmatprep.mubr.bf16.mxu0 %v9191_v10  ;;  %v9200_v54 = vld [vmem:[%s10332_s7 + $0x20c] ss:$16 sps:$4 sm:$0xff]   ;;  %v9207_v28 = vld [vmem:[%s10332_s7 + $0x3e8] ss:$16 sps:$4 sm:$0xff]  }
 0x21b   : > { %6102 = vmatprep.mubr.bf16.mxu1 %v9558_v39  ;;  %v5307_v49 = vpop.f32.mrf.mxu0  ;;  %v9212_v6 = vld [vmem:[%s10332_s7 + $0x5ec] ss:$16 sps:$4 sm:$0xff]  }
 0x21c   : > { %v5420_v18 = vpop.f32.mrf.mxu1  ;;  %v11062_v47 = vadd.f32 %v5418_v29, %v5306_v35  ;;  %v5308_v51 = vadd.f32 %v5307_v49, %v10895_v61  ;;  %6164 = vmatpush1.bf16.msra.mxu0 %v9183_v19  ;;  %v9559_v61 = vld [vmem:[%s10330_s11 + $0x1b0] ss:$72 sps:$4 sm:$0xff]   ;;  %v9560_v27 = vld [vmem:[%s10330_s11 + $0x244] ss:$72 sps:$4 sm:$0xff]  }
 0x21d   : > { %6277 = vmatpush1.bf16.msra.mxu1 %v9186_v20  ;;  %v5309_v52 = vpop.f32.mrf.mxu0  ;;  %6165 = vmatprep.subr.bf16.mxu0 %v9194_v42  ;;  %v9204_v20 = vld [vmem:[%s10330_s11 + $0x280] ss:$72 sps:$4 sm:$0xff]   ;;  %v9218_v49 = vld [vmem:[%s10332_s7 + $0x5cc] ss:$16 sps:$4 sm:$0xff]  }
 0x21e   : > { %v5422_v53 = vpop.f32.mrf.mxu1  ;;  %6278 = vmatprep.subr.bf16.mxu1 %v9197_v33  ;;  %v11067_v56 = vadd.f32 %v5420_v18, %v5308_v51  ;;  %v5310_v57 = vadd.f32 %v5309_v52, %v10899_v3  ;;  %v9209_v3 = vld [vmem:[%s10332_s7 + $0x3ec] ss:$16 sps:$4 sm:$0xff]   ;;  %v9210_v29 = vld [vmem:[%s10332_s7 + $0x5e8] ss:$16 sps:$4 sm:$0xff]  }
 0x21f   : > { %v5313_v1 = vpop.f32.mrf.mxu0  ;;  %5990 = vmatmul.mubr.bf16.gmra.mxu0 %v9189_v36  ;;  %v9213_v52 = vld [vmem:[%s10332_s7 + $0x3c8] ss:$16 sps:$4 sm:$0xff]  }
 0x220   : > { %v5426_v30 = vpop.f32.mrf.mxu1  ;;  %6103 = vmatmul.mubr.bf16.gmra.mxu1 %v9559_v61  ;;  %v11074_v0 = vadd.f32 %v5422_v53, %v5310_v57  ;;  %v5314_v9 = vadd.f32 %v5313_v1, %v10905_v11  ;;  %6166 = vmatpush1.bf16.msra.mxu0 %v9192_v44  ;;  %v9216_v53 = vld [vmem:[%s10332_s7 + $0x5c8] ss:$16 sps:$4 sm:$0xff]  }
 0x221   : > { %6279 = vmatpush1.bf16.msra.mxu1 %v9195_v45  ;;  %v5315_v10 = vpop.f32.mrf.mxu0  ;;  %6167 = vmatprep.subr.bf16.mxu0 %v9200_v54  ;;  %v9221_v45 = vld [vmem:[%s10330_s11 + $0x314] ss:$72 sps:$4 sm:$0xff]  }
 0x222   : > { %v5428_v16 = vpop.f32.mrf.mxu1  ;;  %6280 = vmatprep.subr.bf16.mxu1 %v9203_v25  ;;  %v11079_v37 = vadd.f32 %v5426_v30, %v5314_v9  ;;  %v5316_v19 = vadd.f32 %v5315_v10, %v10909_v17  ;;  %5999 = vmatprep.mubr.bf16.mxu0 %v9206_v59  ;;  %v9215_v17 = vld [vmem:[%s10332_s7 + $0x3cc] ss:$16 sps:$4 sm:$0xff]   ;;  %v9222_v10 = vld [vmem:[%s10332_s7 + $0x3a8] ss:$16 sps:$4 sm:$0xff]  }
 0x223   : > { %6112 = vmatprep.mubr.bf16.mxu1 %v9560_v27  ;;  %v5317_v11 = vpop.f32.mrf.mxu0  ;;  %v9227_v30 = vld [vmem:[%s10332_s7 + $0x5ac] ss:$16 sps:$4 sm:$0xff]  }
 0x224   : > { %v5430_v42 = vpop.f32.mrf.mxu1  ;;  %v11086_v33 = vadd.f32 %v5428_v16, %v5316_v19  ;;  %v5318_v35 = vadd.f32 %v5317_v11, %v10915_v26  ;;  %6168 = vmatpush1.bf16.msra.mxu0 %v9198_v4  ;;  %v9561_v26 = vld [vmem:[%s10330_s11 + $0x240] ss:$72 sps:$4 sm:$0xff]   ;;  %v9562_v9 = vld [vmem:[%s10330_s11 + $0x2d4] ss:$72 sps:$4 sm:$0xff]  }
 0x225   : > { %6281 = vmatpush1.bf16.msra.mxu1 %v9201_v5  ;;  %v5319_v36 = vpop.f32.mrf.mxu0  ;;  %6169 = vmatprep.subr.bf16.mxu0 %v9209_v3  ;;  %v9219_v5 = vld [vmem:[%s10330_s11 + $0x310] ss:$72 sps:$4 sm:$0xff]   ;;  %v9233_v11 = vld [vmem:[%s10332_s7 + $0x58c] ss:$16 sps:$4 sm:$0xff]  }
 0x226   : > { %v5432_v39 = vpop.f32.mrf.mxu1  ;;  %6282 = vmatprep.subr.bf16.mxu1 %v9212_v6  ;;  %v11091_v18 = vadd.f32 %v5430_v42, %v5318_v35  ;;  %v5320_v44 = vadd.f32 %v5319_v36, %v10919_v32  ;;  %v9224_v32 = vld [vmem:[%s10332_s7 + $0x3ac] ss:$16 sps:$4 sm:$0xff]   ;;  %v9225_v16 = vld [vmem:[%s10332_s7 + $0x5a8] ss:$16 sps:$4 sm:$0xff]  }
 0x227   : > { %v5323_v51 = vpop.f32.mrf.mxu0  ;;  %6000 = vmatmul.mubr.bf16.gmra.mxu0 %v9204_v20  ;;  %v9228_v36 = vld [vmem:[%s10332_s7 + $0x388] ss:$16 sps:$4 sm:$0xff]  }
 0x228   : > { %v5436_v54 = vpop.f32.mrf.mxu1  ;;  %6113 = vmatmul.mubr.bf16.gmra.mxu1 %v9561_v26  ;;  %v11098_v25 = vadd.f32 %v5432_v39, %v5320_v44  ;;  %v5324_v57 = vadd.f32 %v5323_v51, %v10925_v40  ;;  %6170 = vmatpush2.bf16.msra.mxu0 %v9207_v28  ;;  %v9231_v39 = vld [vmem:[%s10332_s7 + $0x588] ss:$16 sps:$4 sm:$0xff]  }
 0x229   : > { %6283 = vmatpush2.bf16.msra.mxu1 %v9210_v29  ;;  %v5325_v59 = vpop.f32.mrf.mxu0  ;;  %6171 = vmatprep.subr.bf16.mxu0 %v9215_v17  ;;  %v9236_v29 = vld [vmem:[%s10330_s11 + $0x3a4] ss:$72 sps:$4 sm:$0xff]  }
 0x22a   : > { %v5438_v1 = vpop.f32.mrf.mxu1  ;;  %6284 = vmatprep.subr.bf16.mxu1 %v9218_v49  ;;  %v11103_v61 = vadd.f32 %v5436_v54, %v5324_v57  ;;  %v5326_v4 = vadd.f32 %v5325_v59, %v10929_v46  ;;  %6009 = vmatprep.mubr.bf16.mxu0 %v9221_v45  ;;  %v9230_v46 = vld [vmem:[%s10332_s7 + $0x38c] ss:$16 sps:$4 sm:$0xff]   ;;  %v9237_v59 = vld [vmem:[%s10332_s7 + $0x368] ss:$16 sps:$4 sm:$0xff]  }
 0x22b   : > { %6122 = vmatprep.mubr.bf16.mxu1 %v9562_v9  ;;  %v5327_v40 = vpop.f32.mrf.mxu0  ;;  %v9242_v54 = vld [vmem:[%s10332_s7 + $0x56c] ss:$16 sps:$4 sm:$0xff]  }
 0x22c   : > { %v5440_v3 = vpop.f32.mrf.mxu1  ;;  %v11110_v6 = vadd.f32 %v5438_v1, %v5326_v4  ;;  %v5328_v19 = vadd.f32 %v5327_v40, %v10935_v55  ;;  %6172 = vmatpush2.bf16.msra.mxu0 %v9213_v52  ;;  %v9563_v55 = vld [vmem:[%s10330_s11 + $0x2d0] ss:$72 sps:$4 sm:$0xff]   ;;  %v9564_v57 = vld [vmem:[%s10330_s11 + $0x364] ss:$72 sps:$4 sm:$0xff]  }
 0x22d   : > { %6285 = vmatpush2.bf16.msra.mxu1 %v9216_v53  ;;  %v5329_v20 = vpop.f32.mrf.mxu0  ;;  %6173 = vmatprep.subr.bf16.mxu0 %v9224_v32  ;;  %v9234_v53 = vld [vmem:[%s10330_s11 + $0x3a0] ss:$72 sps:$4 sm:$0xff]   ;;  %v9248_v40 = vld [vmem:[%s10332_s7 + $0x54c] ss:$16 sps:$4 sm:$0xff]  }
 0x22e   : > { %v5442_v27 = vpop.f32.mrf.mxu1  ;;  %6286 = vmatprep.subr.bf16.mxu1 %v9227_v30  ;;  %v11115_v42 = vadd.f32 %v5440_v3, %v5328_v19  ;;  %v5330_v28 = vadd.f32 %v5329_v20, %v10939_v60  ;;  %v9239_v60 = vld [vmem:[%s10332_s7 + $0x36c] ss:$16 sps:$4 sm:$0xff]   ;;  %v9240_v1 = vld [vmem:[%s10332_s7 + $0x568] ss:$16 sps:$4 sm:$0xff]  }
 0x22f   : > { %v5333_v35 = vpop.f32.mrf.mxu0  ;;  %6010 = vmatmul.mubr.bf16.gmra.mxu0 %v9219_v5  ;;  %v9243_v20 = vld [vmem:[%s10332_s7 + $0x348] ss:$16 sps:$4 sm:$0xff]  }
 0x230   : > { %v5446_v17 = vpop.f32.mrf.mxu1  ;;  %6123 = vmatmul.mubr.bf16.gmra.mxu1 %v9563_v55  ;;  %v11122_v49 = vadd.f32 %v5442_v27, %v5330_v28  ;;  %v5334_v44 = vadd.f32 %v5333_v35, %v10945_v7  ;;  %6174 = vmatpush2.bf16.msra.mxu0 %v9222_v10  ;;  %v9246_v27 = vld [vmem:[%s10332_s7 + $0x548] ss:$16 sps:$4 sm:$0xff]  }
 0x231   : > { %6287 = vmatpush2.bf16.msra.mxu1 %v9225_v16  ;;  %v5335_v45 = vpop.f32.mrf.mxu0  ;;  %6175 = vmatprep.subr.bf16.mxu0 %v9230_v46  ;;  %v9251_v16 = vld [vmem:[%s10330_s11 + $0x434] ss:$72 sps:$4 sm:$0xff]  }
 0x232   : > { %v5448_v51 = vpop.f32.mrf.mxu1  ;;  %6288 = vmatprep.subr.bf16.mxu1 %v9233_v11  ;;  %v11127_v26 = vadd.f32 %v5446_v17, %v5334_v44  ;;  %v5336_v52 = vadd.f32 %v5335_v45, %v10949_v14  ;;  %6019 = vmatprep.mubr.bf16.mxu0 %v9236_v29  ;;  %v9245_v14 = vld [vmem:[%s10332_s7 + $0x34c] ss:$16 sps:$4 sm:$0xff]   ;;  %v9252_v45 = vld [vmem:[%s10332_s7 + $0x328] ss:$16 sps:$4 sm:$0xff]  }
 0x233   : > { %6132 = vmatprep.mubr.bf16.mxu1 %v9564_v57  ;;  %v5337_v7 = vpop.f32.mrf.mxu0  ;;  %v9257_v17 = vld [vmem:[%s10332_s7 + $0x52c] ss:$16 sps:$4 sm:$0xff]  }
 0x234   : > { %v5450_v32 = vpop.f32.mrf.mxu1  ;;  %v11134_v30 = vadd.f32 %v5448_v51, %v5336_v52  ;;  %v5338_v4 = vadd.f32 %v5337_v7, %v10955_v23  ;;  %6176 = vmatpush2.bf16.msra.mxu0 %v9228_v36  ;;  %v9565_v23 = vld [vmem:[%s10330_s11 + $0x360] ss:$72 sps:$4 sm:$0xff]   ;;  %v9566_v44 = vld [vmem:[%s10330_s11 + $0x3f4] ss:$72 sps:$4 sm:$0xff]  }
 0x235   : > { %6289 = vmatpush2.bf16.msra.mxu1 %v9231_v39  ;;  %v5339_v5 = vpop.f32.mrf.mxu0  ;;  %6177 = vmatprep.subr.bf16.mxu0 %v9239_v60  ;;  %v9249_v39 = vld [vmem:[%s10330_s11 + $0x430] ss:$72 sps:$4 sm:$0xff]   ;;  %v9263_v7 = vld [vmem:[%s10332_s7 + $0x50c] ss:$16 sps:$4 sm:$0xff]  }
 0x236   : > { %v5452_v9 = vpop.f32.mrf.mxu1  ;;  %6290 = vmatprep.subr.bf16.mxu1 %v9242_v54  ;;  %v11139_v3 = vadd.f32 %v5450_v32, %v5338_v4  ;;  %v5340_v10 = vadd.f32 %v5339_v5, %v10959_v31  ;;  %v9254_v31 = vld [vmem:[%s10332_s7 + $0x32c] ss:$16 sps:$4 sm:$0xff]   ;;  %v9255_v51 = vld [vmem:[%s10332_s7 + $0x528] ss:$16 sps:$4 sm:$0xff]  }
 0x237   : > { %v5343_v19 = vpop.f32.mrf.mxu0  ;;  %6020 = vmatmul.mubr.bf16.gmra.mxu0 %v9234_v53  ;;  %v9260_v53 = vld [vmem:[%s10332_s7 + $0x30c] ss:$16 sps:$4 sm:$0xff]   ;;  %v9261_v5 = vld [vmem:[%s10332_s7 + $0x508] ss:$16 sps:$4 sm:$0xff]  }
 0x238   : > { %v5456_v46 = vpop.f32.mrf.mxu1  ;;  %6133 = vmatmul.mubr.bf16.gmra.mxu1 %v9565_v23  ;;  %v11146_v11 = vadd.f32 %v5452_v9, %v5340_v10  ;;  %v5344_v28 = vadd.f32 %v5343_v19, %v10965_v41  ;;  %6178 = vmatpush2.bf16.msra.mxu0 %v9237_v59  ;;  %v9266_v10 = vld [vmem:[%s10332_s7 + $0x6ec] ss:$16 sps:$4 sm:$0xff]  }
 0x239   : > { %6291 = vmatpush2.bf16.msra.mxu1 %v9240_v1  ;;  %v5345_v29 = vpop.f32.mrf.mxu0  ;;  %6179 = vmatprep.subr.bf16.mxu0 %v9245_v14  ;;  %v9258_v14 = vld [vmem:[%s10332_s7 + $0x308] ss:$16 sps:$4 sm:$0xff]   ;;  %v9269_v19 = vld [vmem:[%s10332_s7 + $0x8ec] ss:$16 sps:$4 sm:$0xff]  }
 0x23a   : > { %v5458_v35 = vpop.f32.mrf.mxu1  ;;  %6292 = vmatprep.subr.bf16.mxu1 %v9248_v40  ;;  %v11151_v55 = vadd.f32 %v5456_v46, %v5344_v28  ;;  %v5346_v36 = vadd.f32 %v5345_v29, %v10969_v48  ;;  %6029 = vmatprep.mubr.bf16.mxu0 %v9251_v16  ;;  %v9267_v29 = vld [vmem:[%s10332_s7 + $0x8e8] ss:$16 sps:$4 sm:$0xff]  }
 0x23b   : > { %6142 = vmatprep.mubr.bf16.mxu1 %v9566_v44  ;;  %v5347_v41 = vpop.f32.mrf.mxu0  ;;  %v9275_v44 = vld [vmem:[%s10332_s7 + $0x8cc] ss:$16 sps:$4 sm:$0xff]  }
 0x23c   : > { %v5460_v60 = vpop.f32.mrf.mxu1  ;;  %v11158_v54 = vadd.f32 %v5458_v35, %v5346_v36  ;;  %v5348_v52 = vadd.f32 %v5347_v41, %v10975_v58  ;;  %6180 = vmatpush2.bf16.msra.mxu0 %v9243_v20  ;;  %v9567_v58 = vld [vmem:[%s10330_s11 + $0x3f0] ss:$72 sps:$4 sm:$0xff]   ;;  %v9568_v20 = vld [vmem:[%s10330_s11 + $0xc] ss:$72 sps:$4 sm:$0xff]  }
 0x23d   : > { %6293 = vmatpush2.bf16.msra.mxu1 %v9246_v27  ;;  %v5349_v48 = vpop.f32.mrf.mxu0  ;;  %6181 = vmatprep.subr.bf16.mxu0 %v9254_v31  ;;  %v9569_v27 = vld [vmem:[%s10330_s11 + $0x14] ss:$72 sps:$4 sm:$0xff]   ;;  %v9264_v31 = vld [vmem:[%s10332_s7 + $0x6e8] ss:$16 sps:$4 sm:$0xff]  }
 0x23e   : > { %v5462_v57 = vpop.f32.mrf.mxu1  ;;  %6294 = vmatprep.subr.bf16.mxu1 %v9257_v17  ;;  %v11163_v32 = vadd.f32 %v5460_v60, %v5348_v52  ;;  %v5350_v59 = vadd.f32 %v5349_v48, %v10979_v2  ;;  %v9570_v52 = vld [vmem:[%s10330_s11 + $0x8] ss:$72 sps:$4 sm:$0xff]  }
 0x23f   : > { %v5353_v1 = vpop.f32.mrf.mxu0  ;;  %6030 = vmatmul.mubr.bf16.gmra.mxu0 %v9249_v39  ;;  %v9273_v48 = vld [vmem:[%s10332_s7 + $0x8c8] ss:$16 sps:$4 sm:$0xff]  }
 0x240   : > { %v5466_v4 = vpop.f32.mrf.mxu1  ;;  %6143 = vmatmul.mubr.bf16.gmra.mxu1 %v9567_v58  ;;  %v11169_v9 = vadd.f32 %v5462_v57, %v5350_v59  ;;  %v5354_v40 = vadd.f32 %v5353_v1, %v10984_v12  ;;  %6182 = vmatpush2.bf16.msra.mxu0 %v9252_v45 }
 0x241   : > { %6295 = vmatpush2.bf16.msra.mxu1 %v9255_v51  ;;  %v5355_v2 = vpop.f32.mrf.mxu0  ;;  %6183 = vmatprep.subr.bf16.mxu0 %v9260_v53  ;;  %v9270_v53 = vld [vmem:[%s10332_s7 + $0x6c8] ss:$16 sps:$4 sm:$0xff]  }
 0x242   : > { %v5468_v16 = vpop.f32.mrf.mxu1  ;;  %6296 = vmatprep.subr.bf16.mxu1 %v9263_v7  ;;  %v11174_v46 = vadd.f32 %v5466_v4, %v5354_v40  ;;  %v5356_v23 = vadd.f32 %v5355_v2, %v10988_v21  ;;  %6185 = vmatprep.mubr.bf16.mxu0 %v9568_v20  ;;  %v9272_v21 = vld [vmem:[%s10332_s7 + $0x6cc] ss:$16 sps:$4 sm:$0xff]   ;;  %v9276_v2 = vld [vmem:[%s10332_s7 + $0x6a8] ss:$16 sps:$4 sm:$0xff]  }
 0x243   : > { %6298 = vmatprep.mubr.bf16.mxu1 %v9569_v27  ;;  %v5357_v12 = vpop.f32.mrf.mxu0  ;;  %v9281_v4 = vld [vmem:[%s10332_s7 + $0x8ac] ss:$16 sps:$4 sm:$0xff]  }
 0x244   : > { %v5470_v28 = vpop.f32.mrf.mxu1  ;;  %v11181_v35 = vadd.f32 %v5468_v16, %v5356_v23  ;;  %v5358_v17 = vadd.f32 %v5357_v12, %v10994_v34  ;;  %6184 = vmatpush2.bf16.msra.mxu0 %v9258_v14  ;;  %v9571_v34 = vld [vmem:[%s10330_s11 + $0x10] ss:$72 sps:$4 sm:$0xff]   ;;  %v9573_v40 = vld [vmem:[%s10330_s11 + $0xa4] ss:$72 sps:$4 sm:$0xff]  }
 0x245   : > { %6297 = vmatpush2.bf16.msra.mxu1 %v9261_v5  ;;  %v5359_v36 = vpop.f32.mrf.mxu0  ;;  %6379 = vmatprep.subr.bf16.mxu0 %v9266_v10  ;;  %v9572_v5 = vld [vmem:[%s10330_s11 + $0x9c] ss:$72 sps:$4 sm:$0xff]   ;;  %v9279_v16 = vld [vmem:[%s10332_s7 + $0x8a8] ss:$16 sps:$4 sm:$0xff]  }
 0x246   : > { %v5472_v39 = vpop.f32.mrf.mxu1  ;;  %6492 = vmatprep.subr.bf16.mxu1 %v9269_v19  ;;  %v11186_v41 = vadd.f32 %v5470_v28, %v5358_v17  ;;  %v5360_v60 = vadd.f32 %v5359_v36, %v10998_v43  ;;  %v9278_v43 = vld [vmem:[%s10332_s7 + $0x6ac] ss:$16 sps:$4 sm:$0xff]   ;;  %v9282_v36 = vld [vmem:[%s10332_s7 + $0x688] ss:$16 sps:$4 sm:$0xff]  }
 0x247   : > { %v5509_v45 = vpop.f32.mrf.mxu0  ;;  %6186 = vmatmul.mubr.bf16.vlgmr.msra.gmra.mxu0 %v9570_v52  ;;  %v9287_v12 = vld [vmem:[%s10332_s7 + $0x88c] ss:$16 sps:$4 sm:$0xff]  }
 0x248   : > { %v5622_v51 = vpop.f32.mrf.mxu1  ;;  %6299 = vmatmul.mubr.bf16.vlgmr.msra.gmra.mxu1 %v9571_v34  ;;  %v11193_v57 = vadd.f32 %v5472_v39, %v5360_v60  ;;  %v5510_v7 = vadd.f32 %v5509_v45, %v11007_v63  ;;  %6380 = vmatpush1.bf16.msra.mxu0 %v9264_v31  ;;  %v9285_v39 = vld [vmem:[%s10332_s7 + $0x888] ss:$16 sps:$4 sm:$0xff]   ;;  %v9293_v52 = vld [vmem:[%s10332_s7 + $0x86c] ss:$16 sps:$4 sm:$0xff]  }
 0x249   : > { %6493 = vmatpush1.bf16.msra.mxu1 %v9267_v29  ;;  %v5511_v59 = vpop.f32.mrf.mxu0  ;;  %6381 = vmatprep.subr.bf16.mxu0 %v9272_v21  ;;  %v9574_v21 = vld [vmem:[%s10330_s11 + $0x98] ss:$72 sps:$4 sm:$0xff]  }
 0x24a   : > { %v5624_v1 = vpop.f32.mrf.mxu1  ;;  %6494 = vmatprep.subr.bf16.mxu1 %v9275_v44  ;;  %v11198_v58 = vadd.f32 %v5622_v51, %v5510_v7  ;;  %v5512_v14 = vadd.f32 %v5511_v59, %v11014_v15  ;;  %6195 = vmatprep.mubr.bf16.mxu0 %v9572_v5  ;;  %v9284_v15 = vld [vmem:[%s10332_s7 + $0x68c] ss:$16 sps:$4 sm:$0xff]   ;;  %v9288_v59 = vld [vmem:[%s10332_s7 + $0x668] ss:$16 sps:$4 sm:$0xff]  }
 0x24b   : > { %6308 = vmatprep.mubr.bf16.mxu1 %v9573_v40  ;;  %v5513_v63 = vpop.f32.mrf.mxu0  ;;  %v9577_v7 = vld [vmem:[%s10330_s11 + $0x134] ss:$72 sps:$4 sm:$0xff]  }
 0x24c   : > { %v5626_v10 = vpop.f32.mrf.mxu1  ;;  %v11205_v19 = vadd.f32 %v5624_v1, %v5512_v14  ;;  %v5514_v23 = vadd.f32 %v5513_v63, %v11019_v24  ;;  %6382 = vmatpush1.bf16.msra.mxu0 %v9270_v53  ;;  %v9575_v24 = vld [vmem:[%s10330_s11 + $0xa0] ss:$72 sps:$4 sm:$0xff]   ;;  %v9299_v63 = vld [vmem:[%s10332_s7 + $0x84c] ss:$16 sps:$4 sm:$0xff]  }
 0x24d   : > { %6495 = vmatpush1.bf16.msra.mxu1 %v9273_v48  ;;  %v5515_v20 = vpop.f32.mrf.mxu0  ;;  %6383 = vmatprep.subr.bf16.mxu0 %v9278_v43  ;;  %v9576_v48 = vld [vmem:[%s10330_s11 + $0x12c] ss:$72 sps:$4 sm:$0xff]   ;;  %v9291_v1 = vld [vmem:[%s10332_s7 + $0x868] ss:$16 sps:$4 sm:$0xff]  }
 0x24e   : > { %v5628_v27 = vpop.f32.mrf.mxu1  ;;  %6496 = vmatprep.subr.bf16.mxu1 %v9281_v4  ;;  %v11210_v28 = vadd.f32 %v5626_v10, %v5514_v23  ;;  %v5516_v31 = vadd.f32 %v5515_v20, %v11026_v38  ;;  %v9290_v38 = vld [vmem:[%s10332_s7 + $0x66c] ss:$16 sps:$4 sm:$0xff]   ;;  %v9294_v20 = vld [vmem:[%s10332_s7 + $0x648] ss:$16 sps:$4 sm:$0xff]  }
 0x24f   : > { %v5519_v29 = vpop.f32.mrf.mxu0  ;;  %6196 = vmatmul.mubr.bf16.gmra.mxu0 %v9574_v21  ;;  %v9305_v21 = vld [vmem:[%s10332_s7 + $0x82c] ss:$16 sps:$4 sm:$0xff]  }
 0x250   : > { %v5632_v17 = vpop.f32.mrf.mxu1  ;;  %6309 = vmatmul.mubr.bf16.gmra.mxu1 %v9575_v24  ;;  %v11217_v44 = vadd.f32 %v5628_v27, %v5516_v31  ;;  %v5520_v60 = vadd.f32 %v5519_v29, %v11031_v50  ;;  %6384 = vmatpush1.bf16.msra.mxu0 %v9276_v2  ;;  %v9297_v27 = vld [vmem:[%s10332_s7 + $0x848] ss:$16 sps:$4 sm:$0xff]  }
 0x251   : > { %6497 = vmatpush1.bf16.msra.mxu1 %v9279_v16  ;;  %v5521_v45 = vpop.f32.mrf.mxu0  ;;  %6385 = vmatprep.subr.bf16.mxu0 %v9284_v15  ;;  %v9578_v15 = vld [vmem:[%s10330_s11 + $0x128] ss:$72 sps:$4 sm:$0xff]  }
 0x252   : > { %v5634_v51 = vpop.f32.mrf.mxu1  ;;  %6498 = vmatprep.subr.bf16.mxu1 %v9287_v12  ;;  %v11222_v34 = vadd.f32 %v5632_v17, %v5520_v60  ;;  %v5522_v53 = vadd.f32 %v5521_v45, %v11038_v62  ;;  %6205 = vmatprep.mubr.bf16.mxu0 %v9576_v48  ;;  %v9296_v62 = vld [vmem:[%s10332_s7 + $0x64c] ss:$16 sps:$4 sm:$0xff]   ;;  %v9300_v45 = vld [vmem:[%s10332_s7 + $0x628] ss:$16 sps:$4 sm:$0xff]  }
 0x253   : > { %6318 = vmatprep.mubr.bf16.mxu1 %v9577_v7  ;;  %v5523_v50 = vpop.f32.mrf.mxu0  ;;  %v9581_v60 = vld [vmem:[%s10330_s11 + $0x1c4] ss:$72 sps:$4 sm:$0xff]  }
 0x254   : > { %v5636_v43 = vpop.f32.mrf.mxu1  ;;  %v11229_v4 = vadd.f32 %v5634_v51, %v5522_v53  ;;  %v5524_v14 = vadd.f32 %v5523_v50, %v11043_v8  ;;  %6386 = vmatpush1.bf16.msra.mxu0 %v9282_v36  ;;  %v9579_v8 = vld [vmem:[%s10330_s11 + $0x130] ss:$72 sps:$4 sm:$0xff]   ;;  %v9311_v50 = vld [vmem:[%s10332_s7 + $0x80c] ss:$16 sps:$4 sm:$0xff]  }
 0x255   : > { %6499 = vmatpush1.bf16.msra.mxu1 %v9285_v39  ;;  %v5525_v5 = vpop.f32.mrf.mxu0  ;;  %6387 = vmatprep.subr.bf16.mxu0 %v9290_v38  ;;  %v9580_v39 = vld [vmem:[%s10330_s11 + $0x1bc] ss:$72 sps:$4 sm:$0xff]   ;;  %v9303_v51 = vld [vmem:[%s10332_s7 + $0x828] ss:$16 sps:$4 sm:$0xff]  }
 0x256   : > { %v5638_v40 = vpop.f32.mrf.mxu1  ;;  %6500 = vmatprep.subr.bf16.mxu1 %v9293_v52  ;;  %v11234_v10 = vadd.f32 %v5636_v43, %v5524_v14  ;;  %v5526_v2 = vadd.f32 %v5525_v5, %v11050_v22  ;;  %v9302_v22 = vld [vmem:[%s10332_s7 + $0x62c] ss:$16 sps:$4 sm:$0xff]   ;;  %v9306_v5 = vld [vmem:[%s10332_s7 + $0x608] ss:$16 sps:$4 sm:$0xff]  }
 0x257   : > { %v5529_v16 = vpop.f32.mrf.mxu0  ;;  %6206 = vmatmul.mubr.bf16.gmra.mxu0 %v9578_v15  ;;  %v9317_v15 = vld [vmem:[%s10332_s7 + $0x9ec] ss:$16 sps:$4 sm:$0xff]  }
 0x258   : > { %v5642_v23 = vpop.f32.mrf.mxu1  ;;  %6319 = vmatmul.mubr.bf16.gmra.mxu1 %v9579_v8  ;;  %v11241_v12 = vadd.f32 %v5638_v40, %v5526_v2  ;;  %v5530_v31 = vadd.f32 %v5529_v16, %v11055_v13  ;;  %6388 = vmatpush1.bf16.msra.mxu0 %v9288_v59  ;;  %v9309_v40 = vld [vmem:[%s10332_s7 + $0x808] ss:$16 sps:$4 sm:$0xff]  }
 0x259   : > { %6501 = vmatpush1.bf16.msra.mxu1 %v9291_v1  ;;  %v5531_v29 = vpop.f32.mrf.mxu0  ;;  %6389 = vmatprep.subr.bf16.mxu0 %v9296_v62  ;;  %v9582_v62 = vld [vmem:[%s10330_s11 + $0x1b8] ss:$72 sps:$4 sm:$0xff]  }
 0x25a   : > { %v5644_v17 = vpop.f32.mrf.mxu1  ;;  %6502 = vmatprep.subr.bf16.mxu1 %v9299_v63  ;;  %v11246_v24 = vadd.f32 %v5642_v23, %v5530_v31  ;;  %v5532_v36 = vadd.f32 %v5531_v29, %v11062_v47  ;;  %6215 = vmatprep.mubr.bf16.mxu0 %v9580_v39  ;;  %v9308_v47 = vld [vmem:[%s10332_s7 + $0x60c] ss:$16 sps:$4 sm:$0xff]   ;;  %v9312_v29 = vld [vmem:[%s10332_s7 + $0x7e8] ss:$16 sps:$4 sm:$0xff]  }
 0x25b   : > { %6328 = vmatprep.mubr.bf16.mxu1 %v9581_v60  ;;  %v5533_v13 = vpop.f32.mrf.mxu0  ;;  %v9585_v31 = vld [vmem:[%s10330_s11 + $0x254] ss:$72 sps:$4 sm:$0xff]  }
 0x25c   : > { %v5646_v38 = vpop.f32.mrf.mxu1  ;;  %v11253_v52 = vadd.f32 %v5644_v17, %v5532_v36  ;;  %v5534_v53 = vadd.f32 %v5533_v13, %v11067_v56  ;;  %6390 = vmatpush1.bf16.msra.mxu0 %v9294_v20  ;;  %v9583_v56 = vld [vmem:[%s10330_s11 + $0x1c0] ss:$72 sps:$4 sm:$0xff]   ;;  %v9323_v13 = vld [vmem:[%s10332_s7 + $0x9cc] ss:$16 sps:$4 sm:$0xff]  }
 0x25d   : > { %6503 = vmatpush1.bf16.msra.mxu1 %v9297_v27  ;;  %v5535_v48 = vpop.f32.mrf.mxu0  ;;  %6391 = vmatprep.subr.bf16.mxu0 %v9302_v22  ;;  %v9584_v27 = vld [vmem:[%s10330_s11 + $0x24c] ss:$72 sps:$4 sm:$0xff]   ;;  %v9315_v17 = vld [vmem:[%s10332_s7 + $0x9e8] ss:$16 sps:$4 sm:$0xff]  }
 0x25e   : > { %v5648_v7 = vpop.f32.mrf.mxu1  ;;  %6504 = vmatprep.subr.bf16.mxu1 %v9305_v21  ;;  %v11258_v43 = vadd.f32 %v5646_v38, %v5534_v53  ;;  %v5536_v59 = vadd.f32 %v5535_v48, %v11074_v0  ;;  %v9314_v0 = vld [vmem:[%s10332_s7 + $0x7ec] ss:$16 sps:$4 sm:$0xff]   ;;  %v9318_v48 = vld [vmem:[%s10332_s7 + $0x7c8] ss:$16 sps:$4 sm:$0xff]  }
 0x25f   : > { %v5539_v1 = vpop.f32.mrf.mxu0  ;;  %6216 = vmatmul.mubr.bf16.gmra.mxu0 %v9582_v62  ;;  %v9329_v62 = vld [vmem:[%s10332_s7 + $0x9ac] ss:$16 sps:$4 sm:$0xff]  }
 0x260   : > { %v5652_v14 = vpop.f32.mrf.mxu1  ;;  %6329 = vmatmul.mubr.bf16.gmra.mxu1 %v9583_v56  ;;  %v11265_v63 = vadd.f32 %v5648_v7, %v5536_v59  ;;  %v5540_v2 = vadd.f32 %v5539_v1, %v11079_v37  ;;  %6392 = vmatpush1.bf16.msra.mxu0 %v9300_v45  ;;  %v9321_v7 = vld [vmem:[%s10332_s7 + $0x9c8] ss:$16 sps:$4 sm:$0xff]  }
 0x261   : > { %6505 = vmatpush1.bf16.msra.mxu1 %v9303_v51  ;;  %v5541_v16 = vpop.f32.mrf.mxu0  ;;  %6393 = vmatprep.subr.bf16.mxu0 %v9308_v47  ;;  %v9586_v47 = vld [vmem:[%s10330_s11 + $0x248] ss:$72 sps:$4 sm:$0xff]  }
 0x262   : > { %v5654_v23 = vpop.f32.mrf.mxu1  ;;  %6506 = vmatprep.subr.bf16.mxu1 %v9311_v50  ;;  %v11270_v8 = vadd.f32 %v5652_v14, %v5540_v2  ;;  %v5542_v20 = vadd.f32 %v5541_v16, %v11086_v33  ;;  %6225 = vmatprep.mubr.bf16.mxu0 %v9584_v27  ;;  %v9320_v33 = vld [vmem:[%s10332_s7 + $0x7cc] ss:$16 sps:$4 sm:$0xff]   ;;  %v9324_v16 = vld [vmem:[%s10332_s7 + $0x7a8] ss:$16 sps:$4 sm:$0xff]  }
 0x263   : > { %6338 = vmatprep.mubr.bf16.mxu1 %v9585_v31  ;;  %v5543_v37 = vpop.f32.mrf.mxu0  ;;  %v9589_v2 = vld [vmem:[%s10330_s11 + $0x2e4] ss:$72 sps:$4 sm:$0xff]  }
 0x264   : > { %v5656_v22 = vpop.f32.mrf.mxu1  ;;  %v11277_v21 = vadd.f32 %v5654_v23, %v5542_v20  ;;  %v5544_v36 = vadd.f32 %v5543_v37, %v11091_v18  ;;  %6394 = vmatpush1.bf16.msra.mxu0 %v9306_v5  ;;  %v9587_v18 = vld [vmem:[%s10330_s11 + $0x250] ss:$72 sps:$4 sm:$0xff]   ;;  %v9335_v37 = vld [vmem:[%s10332_s7 + $0x98c] ss:$16 sps:$4 sm:$0xff]  }
 0x265   : > { %6507 = vmatpush1.bf16.msra.mxu1 %v9309_v40  ;;  %v5545_v39 = vpop.f32.mrf.mxu0  ;;  %6395 = vmatprep.subr.bf16.mxu0 %v9314_v0  ;;  %v9588_v40 = vld [vmem:[%s10330_s11 + $0x2dc] ss:$72 sps:$4 sm:$0xff]   ;;  %v9327_v23 = vld [vmem:[%s10332_s7 + $0x9a8] ss:$16 sps:$4 sm:$0xff]  }
 0x266   : > { %v5658_v60 = vpop.f32.mrf.mxu1  ;;  %6508 = vmatprep.subr.bf16.mxu1 %v9317_v15  ;;  %v11282_v38 = vadd.f32 %v5656_v22, %v5544_v36  ;;  %v5546_v45 = vadd.f32 %v5545_v39, %v11098_v25  ;;  %v9326_v25 = vld [vmem:[%s10332_s7 + $0x7ac] ss:$16 sps:$4 sm:$0xff]   ;;  %v9330_v39 = vld [vmem:[%s10332_s7 + $0x788] ss:$16 sps:$4 sm:$0xff]  }
 0x267   : > { %v5549_v51 = vpop.f32.mrf.mxu0  ;;  %6226 = vmatmul.mubr.bf16.gmra.mxu0 %v9586_v47  ;;  %v9341_v47 = vld [vmem:[%s10332_s7 + $0x96c] ss:$16 sps:$4 sm:$0xff]  }
 0x268   : > { %v5662_v53 = vpop.f32.mrf.mxu1  ;;  %6339 = vmatmul.mubr.bf16.gmra.mxu1 %v9587_v18  ;;  %v11289_v50 = vadd.f32 %v5658_v60, %v5546_v45  ;;  %v5550_v59 = vadd.f32 %v5549_v51, %v11103_v61  ;;  %6396 = vmatpush2.bf16.msra.mxu0 %v9312_v29  ;;  %v9333_v60 = vld [vmem:[%s10332_s7 + $0x988] ss:$16 sps:$4 sm:$0xff]  }
 0x269   : > { %6509 = vmatpush2.bf16.msra.mxu1 %v9315_v17  ;;  %v5551_v1 = vpop.f32.mrf.mxu0  ;;  %6397 = vmatprep.subr.bf16.mxu0 %v9320_v33  ;;  %v9590_v33 = vld [vmem:[%s10330_s11 + $0x2d8] ss:$72 sps:$4 sm:$0xff]  }
 0x26a   : > { %v5664_v14 = vpop.f32.mrf.mxu1  ;;  %6510 = vmatprep.subr.bf16.mxu1 %v9323_v13  ;;  %v11294_v56 = vadd.f32 %v5662_v53, %v5550_v59  ;;  %v5552_v5 = vadd.f32 %v5551_v1, %v11110_v6  ;;  %6235 = vmatprep.mubr.bf16.mxu0 %v9588_v40  ;;  %v9332_v6 = vld [vmem:[%s10332_s7 + $0x78c] ss:$16 sps:$4 sm:$0xff]   ;;  %v9336_v1 = vld [vmem:[%s10332_s7 + $0x768] ss:$16 sps:$4 sm:$0xff]  }
 0x26b   : > { %6348 = vmatprep.mubr.bf16.mxu1 %v9589_v2  ;;  %v5553_v61 = vpop.f32.mrf.mxu0  ;;  %v9593_v59 = vld [vmem:[%s10330_s11 + $0x374] ss:$72 sps:$4 sm:$0xff]  }
 0x26c   : > { %v5666_v0 = vpop.f32.mrf.mxu1  ;;  %v11301_v15 = vadd.f32 %v5664_v14, %v5552_v5  ;;  %v5554_v20 = vadd.f32 %v5553_v61, %v11115_v42  ;;  %6398 = vmatpush2.bf16.msra.mxu0 %v9318_v48  ;;  %v9591_v42 = vld [vmem:[%s10330_s11 + $0x2e0] ss:$72 sps:$4 sm:$0xff]   ;;  %v9344_v40 = vld [vmem:[%s10332_s7 + $0x74c] ss:$16 sps:$4 sm:$0xff]  }
 0x26d   : > { %6511 = vmatpush2.bf16.msra.mxu1 %v9321_v7  ;;  %v5555_v27 = vpop.f32.mrf.mxu0  ;;  %6399 = vmatprep.subr.bf16.mxu0 %v9326_v25  ;;  %v9592_v7 = vld [vmem:[%s10330_s11 + $0x36c] ss:$72 sps:$4 sm:$0xff]   ;;  %v9339_v14 = vld [vmem:[%s10332_s7 + $0x968] ss:$16 sps:$4 sm:$0xff]  }
 0x26e   : > { %v5668_v31 = vpop.f32.mrf.mxu1  ;;  %6512 = vmatprep.subr.bf16.mxu1 %v9329_v62  ;;  %v11306_v22 = vadd.f32 %v5666_v0, %v5554_v20  ;;  %v5556_v29 = vadd.f32 %v5555_v27, %v11122_v49  ;;  %v9338_v49 = vld [vmem:[%s10332_s7 + $0x76c] ss:$16 sps:$4 sm:$0xff]   ;;  %v9342_v27 = vld [vmem:[%s10332_s7 + $0x748] ss:$16 sps:$4 sm:$0xff]  }
 0x26f   : > { %v5559_v17 = vpop.f32.mrf.mxu0  ;;  %6236 = vmatmul.mubr.bf16.gmra.mxu0 %v9590_v33  ;;  %v9347_v61 = vld [vmem:[%s10332_s7 + $0x94c] ss:$16 sps:$4 sm:$0xff]  }
 0x270   : > { %12741 = vst [vmem:[#allocation18_spill] sm:$0xff] %v11306_v22  ;;  %v5672_v36 = vpop.f32.mrf.mxu1  ;;  %6349 = vmatmul.mubr.bf16.gmra.mxu1 %v9591_v42  ;;  %v11313_v13 = vadd.f32 %v5668_v31, %v5556_v29  ;;  %v5560_v45 = vadd.f32 %v5559_v17, %v11127_v26  ;;  %6400 = vmatpush2.bf16.msra.mxu0 %v9324_v16  ;;  %v9345_v29 = vld [vmem:[%s10332_s7 + $0x948] ss:$16 sps:$4 sm:$0xff]   ;;  %v9353_v33 = vld [vmem:[%s10332_s7 + $0x92c] ss:$16 sps:$4 sm:$0xff]  }
 0x271   : > { %6513 = vmatpush2.bf16.msra.mxu1 %v9327_v23  ;;  %v5561_v51 = vpop.f32.mrf.mxu0  ;;  %6401 = vmatprep.subr.bf16.mxu0 %v9332_v6  ;;  %v9594_v6 = vld [vmem:[%s10330_s11 + $0x368] ss:$72 sps:$4 sm:$0xff]   ;;  %v9620_v22 = vld [vmem:[%s10330_s11 + $0x2ec] ss:$72 sps:$4 sm:$0xff]  }
 0x272   : > { %12742 = vst [vmem:[#allocation19_spill] sm:$0xff] %v11313_v13  ;;  %v5674_v53 = vpop.f32.mrf.mxu1  ;;  %6514 = vmatprep.subr.bf16.mxu1 %v9335_v37  ;;  %v11318_v18 = vadd.f32 %v5672_v36, %v5560_v45  ;;  %v5562_v48 = vadd.f32 %v5561_v51, %v11134_v30  ;;  %6245 = vmatprep.mubr.bf16.mxu0 %v9592_v7  ;;  %v9350_v36 = vld [vmem:[%s10332_s7 + $0x72c] ss:$16 sps:$4 sm:$0xff]  }
 0x273   : > { %6358 = vmatprep.mubr.bf16.mxu1 %v9593_v59  ;;  %v5563_v26 = vpop.f32.mrf.mxu0  ;;  %v9356_v7 = vld [vmem:[%s10332_s7 + $0x70c] ss:$16 sps:$4 sm:$0xff]  }
 0x274   : > { %12743 = vst [vmem:[#allocation20_spill] sm:$0xff] %v11318_v18  ;;  %v5676_v25 = vpop.f32.mrf.mxu1  ;;  %v11325_v62 = vadd.f32 %v5674_v53, %v5562_v48  ;;  %v5564_v5 = vadd.f32 %v5563_v26, %v11139_v3  ;;  %6402 = vmatpush2.bf16.msra.mxu0 %v9330_v39  ;;  %v9595_v3 = vld [vmem:[%s10330_s11 + $0x370] ss:$72 sps:$4 sm:$0xff]   ;;  %v9359_v26 = vld [vmem:[%s10332_s7 + $0x90c] ss:$16 sps:$4 sm:$0xff]  }
 0x275   : > { %6515 = vmatpush2.bf16.msra.mxu1 %v9333_v60  ;;  %v5565_v30 = vpop.f32.mrf.mxu0  ;;  %6403 = vmatprep.subr.bf16.mxu0 %v9338_v49  ;;  %v9596_v60 = vld [vmem:[%s10330_s11 + $0x3fc] ss:$72 sps:$4 sm:$0xff]   ;;  %v9351_v48 = vld [vmem:[%s10332_s7 + $0x928] ss:$16 sps:$4 sm:$0xff]  }
 0x276   : > { %12744 = vst [vmem:[#allocation21_spill] sm:$0xff] %v11325_v62  ;;  %v5678_v2 = vpop.f32.mrf.mxu1  ;;  %6516 = vmatprep.subr.bf16.mxu1 %v9341_v47  ;;  %v11330_v0 = vadd.f32 %v5676_v25, %v5564_v5  ;;  %v5566_v16 = vadd.f32 %v5565_v30, %v11146_v11  ;;  %v9348_v47 = vld [vmem:[%s10332_s7 + $0x728] ss:$16 sps:$4 sm:$0xff]   ;;  %v9422_v13 = vld [vmem:[%s10332_s7 + $0xbac] ss:$16 sps:$4 sm:$0xff]  }
 0x277   : > { %v5569_v23 = vpop.f32.mrf.mxu0  ;;  %6246 = vmatmul.mubr.bf16.gmra.mxu0 %v9594_v6  ;;  %v9598_v5 = vld [vmem:[%s10330_s11 + $0x3f8] ss:$72 sps:$4 sm:$0xff]   ;;  %v9365_v6 = vld [vmem:[%s10332_s7 + $0xcec] ss:$16 sps:$4 sm:$0xff]  }
 0x278   : > { %12745 = vst [vmem:[#allocation22_spill] sm:$0xff] %v11330_v0  ;;  %v5682_v20 = vpop.f32.mrf.mxu1  ;;  %6359 = vmatmul.mubr.bf16.gmra.mxu1 %v9595_v3  ;;  %v11336_v31 = vadd.f32 %v5678_v2, %v5566_v16  ;;  %v5570_v37 = vadd.f32 %v5569_v23, %v11151_v55  ;;  %6404 = vmatpush2.bf16.msra.mxu0 %v9336_v1  ;;  %v9597_v55 = vld [vmem:[%s10330_s11 + $0x404] ss:$72 sps:$4 sm:$0xff]   ;;  %v9354_v30 = vld [vmem:[%s10332_s7 + $0x708] ss:$16 sps:$4 sm:$0xff]  }
 0x279   : > { %6517 = vmatpush2.bf16.msra.mxu1 %v9339_v14  ;;  %v5571_v17 = vpop.f32.mrf.mxu0  ;;  %6405 = vmatprep.subr.bf16.mxu0 %v9344_v40  ;;  %v9599_v40 = vld [vmem:[%s10330_s11 + $0x400] ss:$72 sps:$4 sm:$0xff]  }
 0x27a   : > { %12746 = vst [vmem:[#allocation23_spill] sm:$0xff] %v11336_v31  ;;  %v5684_v11 = vpop.f32.mrf.mxu1  ;;  %6518 = vmatprep.subr.bf16.mxu1 %v9347_v61  ;;  %v11342_v42 = vadd.f32 %v5682_v20, %v5570_v37  ;;  %v5572_v39 = vadd.f32 %v5571_v17, %v11158_v54  ;;  %6255 = vmatprep.mubr.bf16.mxu0 %v9596_v60  ;;  %v9357_v16 = vld [vmem:[%s10332_s7 + $0x908] ss:$16 sps:$4 sm:$0xff]   ;;  %v9362_v20 = vld [vmem:[%s10332_s7 + $0xaec] ss:$16 sps:$4 sm:$0xff]  }
 0x27b   : > { %6368 = vmatprep.mubr.bf16.mxu1 %v9597_v55  ;;  %v5573_v45 = vpop.f32.mrf.mxu0  ;;  %v9600_v37 = vld [vmem:[%s10330_s11 + $0x1c] ss:$72 sps:$4 sm:$0xff]   ;;  %v9414_v62 = vld [vmem:[%s10332_s7 + $0xbc8] ss:$16 sps:$4 sm:$0xff]  }
 0x27c   : > { %12747 = vst [vmem:[#allocation24_spill] sm:$0xff] %v11342_v42  ;;  %v5686_v49 = vpop.f32.mrf.mxu1  ;;  %v11347_v51 = vadd.f32 %v5684_v11, %v5572_v39  ;;  %v5574_v53 = vadd.f32 %v5573_v45, %v11163_v32  ;;  %6406 = vmatpush2.bf16.msra.mxu0 %v9342_v27  ;;  %v9360_v11 = vld [vmem:[%s10332_s7 + $0xae8] ss:$16 sps:$4 sm:$0xff]   ;;  %v9368_v60 = vld [vmem:[%s10332_s7 + $0xacc] ss:$16 sps:$4 sm:$0xff]  }
 0x27d   : > { %6519 = vmatpush2.bf16.msra.mxu1 %v9345_v29  ;;  %v5575_v54 = vpop.f32.mrf.mxu0  ;;  %6407 = vmatprep.subr.bf16.mxu0 %v9350_v36  ;;  %v9363_v39 = vld [vmem:[%s10332_s7 + $0xce8] ss:$16 sps:$4 sm:$0xff]   ;;  %v9371_v45 = vld [vmem:[%s10332_s7 + $0xccc] ss:$16 sps:$4 sm:$0xff]  }
 0x27e   : > { %12748 = vst [vmem:[#allocation25_spill] sm:$0xff] %v11347_v51  ;;  %v5688_v59 = vpop.f32.mrf.mxu1  ;;  %6520 = vmatprep.subr.bf16.mxu1 %v9353_v33  ;;  %v11354_v25 = vadd.f32 %v5686_v49, %v5574_v53  ;;  %v5576_v1 = vadd.f32 %v5575_v54, %v11169_v9  ;;  %v9366_v54 = vld [vmem:[%s10332_s7 + $0xac8] ss:$16 sps:$4 sm:$0xff]   ;;  %v9616_v51 = vld [vmem:[%s10330_s11 + $0x25c] ss:$72 sps:$4 sm:$0xff]  }
 0x27f   : > { %v5579_v14 = vpop.f32.mrf.mxu0  ;;  %6256 = vmatmul.mubr.bf16.gmra.mxu0 %v9598_v5  ;;  %v9604_v5 = vld [vmem:[%s10330_s11 + $0xac] ss:$72 sps:$4 sm:$0xff]   ;;  %v9411_v42 = vld [vmem:[%s10332_s7 + $0xde8] ss:$16 sps:$4 sm:$0xff]  }
 0x280   : > { %12749 = vst [vmem:[#allocation26_spill] sm:$0xff] %v11354_v25  ;;  %v5692_v32 = vpop.f32.mrf.mxu1  ;;  %6369 = vmatmul.mubr.bf16.gmra.mxu1 %v9599_v40  ;;  %v11360_v2 = vadd.f32 %v5688_v59, %v5576_v1  ;;  %v5580_v61 = vadd.f32 %v5579_v14, %v11174_v46  ;;  %6408 = vmatpush2.bf16.msra.mxu0 %v9348_v47  ;;  %v9601_v46 = vld [vmem:[%s10330_s11 + $0x24] ss:$72 sps:$4 sm:$0xff]   ;;  %v9605_v40 = vld [vmem:[%s10330_s11 + $0xb4] ss:$72 sps:$4 sm:$0xff]  }
 0x281   : > { %6521 = vmatpush2.bf16.msra.mxu1 %v9351_v48  ;;  %v5581_v9 = vpop.f32.mrf.mxu0  ;;  %6409 = vmatprep.subr.bf16.mxu0 %v9356_v7  ;;  %v9602_v48 = vld [vmem:[%s10330_s11 + $0x18] ss:$72 sps:$4 sm:$0xff]   ;;  %v9374_v14 = vld [vmem:[%s10332_s7 + $0xaac] ss:$16 sps:$4 sm:$0xff]  }
 0x282   : > { %12750 = vst [vmem:[#allocation27_spill] sm:$0xff] %v11360_v2  ;;  %v5694_v23 = vpop.f32.mrf.mxu1  ;;  %6522 = vmatprep.subr.bf16.mxu1 %v9359_v26  ;;  %v11366_v3 = vadd.f32 %v5692_v32, %v5580_v61  ;;  %v5582_v27 = vadd.f32 %v5581_v9, %v11181_v35  ;;  %6411 = vmatprep.mubr.bf16.mxu0 %v9600_v37  ;;  %v9603_v7 = vld [vmem:[%s10330_s11 + $0x20] ss:$72 sps:$4 sm:$0xff]   ;;  %v9377_v32 = vld [vmem:[%s10332_s7 + $0xcac] ss:$16 sps:$4 sm:$0xff]  }
 0x283   : > { %6524 = vmatprep.mubr.bf16.mxu1 %v9601_v46  ;;  %v5583_v29 = vpop.f32.mrf.mxu0  ;;  %v9369_v26 = vld [vmem:[%s10332_s7 + $0xcc8] ss:$16 sps:$4 sm:$0xff]   ;;  %v9410_v2 = vld [vmem:[%s10332_s7 + $0xbec] ss:$16 sps:$4 sm:$0xff]  }
 0x284   : > { %12751 = vst [vmem:[#allocation28_spill] sm:$0xff] %v11366_v3  ;;  %v5696_v17 = vpop.f32.mrf.mxu1  ;;  %v11372_v36 = vadd.f32 %v5694_v23, %v5582_v27  ;;  %v5584_v33 = vadd.f32 %v5583_v29, %v11186_v41  ;;  %6410 = vmatpush2.bf16.msra.mxu0 %v9354_v30  ;;  %v9375_v9 = vld [vmem:[%s10332_s7 + $0xca8] ss:$16 sps:$4 sm:$0xff]   ;;  %v9383_v27 = vld [vmem:[%s10332_s7 + $0xc8c] ss:$16 sps:$4 sm:$0xff]  }
 0x285   : > { %6523 = vmatpush2.bf16.msra.mxu1 %v9357_v16  ;;  %v5585_v35 = vpop.f32.mrf.mxu0  ;;  %6605 = vmatprep.subr.bf16.mxu0 %v9362_v20  ;;  %v9372_v16 = vld [vmem:[%s10332_s7 + $0xaa8] ss:$16 sps:$4 sm:$0xff]   ;;  %v9413_v25 = vld [vmem:[%s10332_s7 + $0xdec] ss:$16 sps:$4 sm:$0xff]  }
 0x286   : > { %12752 = vst [vmem:[#allocation29_spill] sm:$0xff] %v11372_v36  ;;  %v5698_v55 = vpop.f32.mrf.mxu1  ;;  %6718 = vmatprep.subr.bf16.mxu1 %v9365_v6  ;;  %v11378_v49 = vadd.f32 %v5696_v17, %v5584_v33  ;;  %v5586_v53 = vadd.f32 %v5585_v35, %v11193_v57  ;;  %v9380_v6 = vld [vmem:[%s10332_s7 + $0xa8c] ss:$16 sps:$4 sm:$0xff]   ;;  %v9606_v29 = vld [vmem:[%s10330_s11 + $0xa8] ss:$72 sps:$4 sm:$0xff]  }
 0x287   : > { %v11381_v47 = vpop.f32.mrf.mxu0  ;;  %6412 = vmatmul.mubr.bf16.vlgmr.msra.gmra.mxu0 %v9602_v48  ;;  %v9607_v17 = vld [vmem:[%s10330_s11 + $0xb0] ss:$72 sps:$4 sm:$0xff]  }
 0x288   : > { %12753 = vst [vmem:[#allocation30_spill] sm:$0xff] %v11378_v49  ;;  %v11383_v41 = vpop.f32.mrf.mxu1  ;;  %6525 = vmatmul.mubr.bf16.vlgmr.msra.gmra.mxu1 %v9603_v7  ;;  %v11388_v59 = vadd.f32 %v5698_v55, %v5586_v53  ;;  %6606 = vmatpush1.bf16.msra.mxu0 %v9360_v11  ;;  %v9378_v11 = vld [vmem:[%s10332_s7 + $0xa88] ss:$16 sps:$4 sm:$0xff]   ;;  %v9389_v55 = vld [vmem:[%s10332_s7 + $0xc6c] ss:$16 sps:$4 sm:$0xff]  }
 0x289   : > { %6719 = vmatpush1.bf16.msra.mxu1 %v9363_v39  ;;  %v11391_v57 = vpop.f32.mrf.mxu0  ;;  %6607 = vmatprep.subr.bf16.mxu0 %v9368_v60  ;;  %v9381_v33 = vld [vmem:[%s10332_s7 + $0xc88] ss:$16 sps:$4 sm:$0xff]   ;;  %v9386_v39 = vld [vmem:[%s10332_s7 + $0xa6c] ss:$16 sps:$4 sm:$0xff]  }
 0x28a   : > { %12754 = vst [vmem:[#allocation31_spill] sm:$0xff] %v11388_v59  ;;  %v11393_v1 = vpop.f32.mrf.mxu1  ;;  %6720 = vmatprep.subr.bf16.mxu1 %v9371_v45  ;;  %6421 = vmatprep.mubr.bf16.mxu0 %v9604_v5  ;;  %v9608_v45 = vld [vmem:[%s10330_s11 + $0x13c] ss:$72 sps:$4 sm:$0xff]   ;;  %v9402_v36 = vld [vmem:[%s10332_s7 + $0xa08] ss:$16 sps:$4 sm:$0xff]  }
 0x28b   : > { %6534 = vmatprep.mubr.bf16.mxu1 %v9605_v40  ;;  %v11399_v30 = vpop.f32.mrf.mxu0  ;;  %v9609_v53 = vld [vmem:[%s10330_s11 + $0x144] ss:$72 sps:$4 sm:$0xff]   ;;  %v9417_v18 = vld [vmem:[%s10332_s7 + $0xdc8] ss:$16 sps:$4 sm:$0xff]  }
 0x28c   : > { %v11401_v61 = vpop.f32.mrf.mxu1  ;;  %6608 = vmatpush1.bf16.msra.mxu0 %v9366_v54  ;;  %v9384_v54 = vld [vmem:[%s10332_s7 + $0xa68] ss:$16 sps:$4 sm:$0xff]   ;;  %v9392_v5 = vld [vmem:[%s10332_s7 + $0xa4c] ss:$16 sps:$4 sm:$0xff]  }
 0x28d   : > { %6721 = vmatpush1.bf16.msra.mxu1 %v9369_v26  ;;  %v11405_v23 = vpop.f32.mrf.mxu0  ;;  %6609 = vmatprep.subr.bf16.mxu0 %v9374_v14  ;;  %v9387_v26 = vld [vmem:[%s10332_s7 + $0xc68] ss:$16 sps:$4 sm:$0xff]   ;;  %v9395_v40 = vld [vmem:[%s10332_s7 + $0xc4c] ss:$16 sps:$4 sm:$0xff]  }
 0x28e   : > { %v11407_v20 = vpop.f32.mrf.mxu1  ;;  %6722 = vmatprep.subr.bf16.mxu1 %v9377_v32 }
 0x28f   : > { %v11411_v37 = vpop.f32.mrf.mxu0  ;;  %6422 = vmatmul.mubr.bf16.gmra.mxu0 %v9606_v29  ;;  %v9390_v29 = vld [vmem:[%s10332_s7 + $0xa48] ss:$16 sps:$4 sm:$0xff]  }
 0x290   : > { %v11413_v46 = vpop.f32.mrf.mxu1  ;;  %6535 = vmatmul.mubr.bf16.gmra.mxu1 %v9607_v17  ;;  %6610 = vmatpush1.bf16.msra.mxu0 %v9372_v16  ;;  %v9393_v17 = vld [vmem:[%s10332_s7 + $0xc48] ss:$16 sps:$4 sm:$0xff]  }
 0x291   : > { %6723 = vmatpush1.bf16.msra.mxu1 %v9375_v9  ;;  %v11420_v60 = vpop.f32.mrf.mxu0  ;;  %6611 = vmatprep.subr.bf16.mxu0 %v9380_v6  ;;  %v9610_v6 = vld [vmem:[%s10330_s11 + $0x138] ss:$72 sps:$4 sm:$0xff]  }
 0x292   : > { %v11422_v35 = vpop.f32.mrf.mxu1  ;;  %6724 = vmatprep.subr.bf16.mxu1 %v9383_v27  ;;  %6431 = vmatprep.mubr.bf16.mxu0 %v9608_v45  ;;  %v9611_v27 = vld [vmem:[%s10330_s11 + $0x140] ss:$72 sps:$4 sm:$0xff]   ;;  %v9612_v45 = vld [vmem:[%s10330_s11 + $0x1cc] ss:$72 sps:$4 sm:$0xff]  }
 0x293   : > { %6544 = vmatprep.mubr.bf16.mxu1 %v9609_v53  ;;  %v11427_v48 = vpop.f32.mrf.mxu0  ;;  %v9613_v53 = vld [vmem:[%s10330_s11 + $0x1d4] ss:$72 sps:$4 sm:$0xff]  }
 0x294   : > { %v11429_v7 = vpop.f32.mrf.mxu1  ;;  %6612 = vmatpush1.bf16.msra.mxu0 %v9378_v11  ;;  %v9398_v11 = vld [vmem:[%s10332_s7 + $0xa2c] ss:$16 sps:$4 sm:$0xff]  }
 0x295   : > { %6725 = vmatpush1.bf16.msra.mxu1 %v9381_v33  ;;  %v11433_v14 = vpop.f32.mrf.mxu0  ;;  %6613 = vmatprep.subr.bf16.mxu0 %v9386_v39 }
 0x296   : > { %v11435_v32 = vpop.f32.mrf.mxu1  ;;  %6726 = vmatprep.subr.bf16.mxu1 %v9389_v55  ;;  %v9401_v55 = vld [vmem:[%s10332_s7 + $0xc2c] ss:$16 sps:$4 sm:$0xff]  }
 0x297   : > { %v11439_v16 = vpop.f32.mrf.mxu0  ;;  %6432 = vmatmul.mubr.bf16.gmra.mxu0 %v9610_v6 }
 0x298   : > { %v11441_v9 = vpop.f32.mrf.mxu1  ;;  %6545 = vmatmul.mubr.bf16.gmra.mxu1 %v9611_v27  ;;  %6614 = vmatpush1.bf16.msra.mxu0 %v9384_v54  ;;  %v9399_v27 = vld [vmem:[%s10332_s7 + $0xc28] ss:$16 sps:$4 sm:$0xff]  }
 0x299   : > { %6727 = vmatpush1.bf16.msra.mxu1 %v9387_v26  ;;  %v11448_v33 = vpop.f32.mrf.mxu0  ;;  %6615 = vmatprep.subr.bf16.mxu0 %v9392_v5  ;;  %v9396_v26 = vld [vmem:[%s10332_s7 + $0xa28] ss:$16 sps:$4 sm:$0xff]  }
 0x29a   : > { %v11450_v39 = vpop.f32.mrf.mxu1  ;;  %6728 = vmatprep.subr.bf16.mxu1 %v9395_v40  ;;  %6441 = vmatprep.mubr.bf16.mxu0 %v9612_v45  ;;  %v9404_v45 = vld [vmem:[%s10332_s7 + $0xa0c] ss:$16 sps:$4 sm:$0xff]  }
 0x29b   : > { %6554 = vmatprep.mubr.bf16.mxu1 %v9613_v53  ;;  %v11455_v6 = vpop.f32.mrf.mxu0  ;;  %v9407_v53 = vld [vmem:[%s10332_s7 + $0xc0c] ss:$16 sps:$4 sm:$0xff]  }
 0x29c   : > { %v11457_v54 = vpop.f32.mrf.mxu1  ;;  %6616 = vmatpush1.bf16.msra.mxu0 %v9390_v29  ;;  %v9614_v29 = vld [vmem:[%s10330_s11 + $0x1c8] ss:$72 sps:$4 sm:$0xff]  }
 0x29d   : > { %6729 = vmatpush1.bf16.msra.mxu1 %v9393_v17  ;;  %v11461_v5 = vpop.f32.mrf.mxu0  ;;  %6617 = vmatprep.subr.bf16.mxu0 %v9398_v11  ;;  %v9615_v17 = vld [vmem:[%s10330_s11 + $0x1d0] ss:$72 sps:$4 sm:$0xff]  }
 0x29e   : > { %v11463_v40 = vpop.f32.mrf.mxu1  ;;  %6730 = vmatprep.subr.bf16.mxu1 %v9401_v55  ;;  %v9405_v11 = vld [vmem:[%s10332_s7 + $0xc08] ss:$16 sps:$4 sm:$0xff]  }
 0x29f   : > { %v11467_v59 = vpop.f32.mrf.mxu0  ;;  %6442 = vmatmul.mubr.bf16.gmra.mxu0 %v9614_v29  ;;  %v9617_v29 = vld [vmem:[%s10330_s11 + $0x264] ss:$72 sps:$4 sm:$0xff]  }
 0x2a0   : > { %v11469_v49 = vpop.f32.mrf.mxu1  ;;  %6555 = vmatmul.mubr.bf16.gmra.mxu1 %v9615_v17  ;;  %6618 = vmatpush1.bf16.msra.mxu0 %v9396_v26  ;;  %v9408_v17 = vld [vmem:[%s10332_s7 + $0xbe8] ss:$16 sps:$4 sm:$0xff]  }
 0x2a1   : > { %6731 = vmatpush1.bf16.msra.mxu1 %v9399_v27  ;;  %v11475_v55 = vpop.f32.mrf.mxu0  ;;  %6619 = vmatprep.subr.bf16.mxu0 %v9404_v45  ;;  %v9416_v45 = vld [vmem:[%s10332_s7 + $0xbcc] ss:$16 sps:$4 sm:$0xff]  }
 0x2a2   : > { %v11477_v3 = vpop.f32.mrf.mxu1  ;;  %6732 = vmatprep.subr.bf16.mxu1 %v9407_v53  ;;  %6451 = vmatprep.mubr.bf16.mxu0 %v9616_v51  ;;  %v9419_v51 = vld [vmem:[%s10332_s7 + $0xdcc] ss:$16 sps:$4 sm:$0xff]  }
 0x2a3   : > { %6564 = vmatprep.mubr.bf16.mxu1 %v9617_v29  ;;  %v11483_v26 = vpop.f32.mrf.mxu0 }
 0x2a4   : > { %v11485_v27 = vpop.f32.mrf.mxu1  ;;  %6620 = vmatpush1.bf16.msra.mxu0 %v9402_v36  ;;  %v9618_v36 = vld [vmem:[%s10330_s11 + $0x258] ss:$72 sps:$4 sm:$0xff]  }
 0x2a5   : > { %6733 = vmatpush1.bf16.msra.mxu1 %v9405_v11  ;;  %v11490_v53 = vpop.f32.mrf.mxu0  ;;  %6621 = vmatprep.subr.bf16.mxu0 %v9410_v2  ;;  %v9619_v11 = vld [vmem:[%s10330_s11 + $0x260] ss:$72 sps:$4 sm:$0xff]  }
 0x2a6   : > { %v11492_v31 = vpop.f32.mrf.mxu1  ;;  %6734 = vmatprep.subr.bf16.mxu1 %v9413_v25 }
 0x2a7   : > { %12755 = vst [vmem:[#allocation32_spill] sm:$0xff] %v11492_v31  ;;  %v11495_v29 = vpop.f32.mrf.mxu0  ;;  %6452 = vmatmul.mubr.bf16.gmra.mxu0 %v9618_v36  ;;  %v9621_v36 = vld [vmem:[%s10330_s11 + $0x2f4] ss:$72 sps:$4 sm:$0xff]  }
 0x2a8   : > { %v11497_v0 = vpop.f32.mrf.mxu1  ;;  %6565 = vmatmul.mubr.bf16.gmra.mxu1 %v9619_v11  ;;  %6622 = vmatpush2.bf16.msra.mxu0 %v9408_v17  ;;  %v9420_v17 = vld [vmem:[%s10332_s7 + $0xba8] ss:$16 sps:$4 sm:$0xff]  }
 0x2a9   : > { %12756 = vst [vmem:[#allocation33_spill] sm:$0xff] %v11497_v0  ;;  %6735 = vmatpush2.bf16.msra.mxu1 %v9411_v42  ;;  %v11503_v25 = vpop.f32.mrf.mxu0  ;;  %6623 = vmatprep.subr.bf16.mxu0 %v9416_v45  ;;  %v9425_v0 = vld [vmem:[%s10332_s7 + $0xdac] ss:$16 sps:$4 sm:$0xff]  }
 0x2aa   : > { %v11505_v2 = vpop.f32.mrf.mxu1  ;;  %6736 = vmatprep.subr.bf16.mxu1 %v9419_v51  ;;  %6461 = vmatprep.mubr.bf16.mxu0 %v9620_v22  ;;  %v9428_v45 = vld [vmem:[%s10332_s7 + $0xb8c] ss:$16 sps:$4 sm:$0xff]  }
 0x2ab   : > { %12757 = vst [vmem:[#allocation34_spill] sm:$0xff] %v11505_v2  ;;  %6574 = vmatprep.mubr.bf16.mxu1 %v9621_v36  ;;  %v11511_v11 = vpop.f32.mrf.mxu0  ;;  %v9423_v2 = vld [vmem:[%s10332_s7 + $0xda8] ss:$16 sps:$4 sm:$0xff]   ;;  %v9431_v22 = vld [vmem:[%s10332_s7 + $0xd8c] ss:$16 sps:$4 sm:$0xff]  }
 0x2ac   : > { %12758 = vst [vmem:[#allocation35_spill] sm:$0xff] %v11511_v11  ;;  %v11513_v42 = vpop.f32.mrf.mxu1  ;;  %6624 = vmatpush2.bf16.msra.mxu0 %v9414_v62  ;;  %v9622_v62 = vld [vmem:[%s10330_s11 + $0x2e8] ss:$72 sps:$4 sm:$0xff]   ;;  %v9624_v11 = vld [vmem:[%s10330_s11 + $0x37c] ss:$72 sps:$4 sm:$0xff]  }
 0x2ad   : > { %12759 = vst [vmem:[#allocation36_spill] sm:$0xff] %v11513_v42  ;;  %6737 = vmatpush2.bf16.msra.mxu1 %v9417_v18  ;;  %v11518_v51 = vpop.f32.mrf.mxu0  ;;  %6625 = vmatprep.subr.bf16.mxu0 %v9422_v13  ;;  %v9623_v18 = vld [vmem:[%s10330_s11 + $0x2f0] ss:$72 sps:$4 sm:$0xff]  }
 0x2ae   : > { %12760 = vst [vmem:[#allocation37_spill] sm:$0xff] %v11518_v51  ;;  %v11520_v31 = vpop.f32.mrf.mxu1  ;;  %6738 = vmatprep.subr.bf16.mxu1 %v9425_v0  ;;  %v9426_v51 = vld [vmem:[%s10332_s7 + $0xb88] ss:$16 sps:$4 sm:$0xff]  }
 0x2af   : > { %12761 = vst [vmem:[#allocation38_spill] sm:$0xff] %v11520_v31  ;;  %v11523_v36 = vpop.f32.mrf.mxu0  ;;  %6462 = vmatmul.mubr.bf16.gmra.mxu0 %v9622_v62  ;;  %v9429_v31 = vld [vmem:[%s10332_s7 + $0xd88] ss:$16 sps:$4 sm:$0xff]   ;;  %v9625_v62 = vld [vmem:[%s10330_s11 + $0x384] ss:$72 sps:$4 sm:$0xff]  }
 0x2b0   : > { %12762 = vst [vmem:[#allocation39_spill] sm:$0xff] %v11523_v36  ;;  %v11525_v42 = vpop.f32.mrf.mxu1  ;;  %6575 = vmatmul.mubr.bf16.gmra.mxu1 %v9623_v18  ;;  %6626 = vmatpush2.bf16.msra.mxu0 %v9420_v17  ;;  %v9434_v36 = vld [vmem:[%s10332_s7 + $0xb6c] ss:$16 sps:$4 sm:$0xff]   ;;  %v9432_v18 = vld [vmem:[%s10332_s7 + $0xb68] ss:$16 sps:$4 sm:$0xff]  }
 0x2b1   : > { %12763 = vst [vmem:[#allocation40_spill] sm:$0xff] %v11525_v42  ;;  %6739 = vmatpush2.bf16.msra.mxu1 %v9423_v2  ;;  %v11531_v13 = vpop.f32.mrf.mxu0  ;;  %6627 = vmatprep.subr.bf16.mxu0 %v9428_v45  ;;  %v9437_v42 = vld [vmem:[%s10332_s7 + $0xd6c] ss:$16 sps:$4 sm:$0xff]   ;;  %v9435_v45 = vld [vmem:[%s10332_s7 + $0xd68] ss:$16 sps:$4 sm:$0xff]  }
 0x2b2   : > { %12764 = vst [vmem:[#allocation41_spill] sm:$0xff] %v11531_v13  ;;  %v11533_v0 = vpop.f32.mrf.mxu1  ;;  %6740 = vmatprep.subr.bf16.mxu1 %v9431_v22  ;;  %6471 = vmatprep.mubr.bf16.mxu0 %v9624_v11  ;;  %v9440_v11 = vld [vmem:[%s10332_s7 + $0xb4c] ss:$16 sps:$4 sm:$0xff]  }
 0x2b3   : > { %12765 = vst [vmem:[#allocation42_spill] sm:$0xff] %v11533_v0  ;;  %6584 = vmatprep.mubr.bf16.mxu1 %v9625_v62  ;;  %v11539_v2 = vpop.f32.mrf.mxu0  ;;  %v9443_v62 = vld [vmem:[%s10332_s7 + $0xd4c] ss:$16 sps:$4 sm:$0xff]  }
 0x2b4   : > { %12766 = vst [vmem:[#allocation43_spill] sm:$0xff] %v11539_v2  ;;  %v11541_v17 = vpop.f32.mrf.mxu1  ;;  %6628 = vmatpush2.bf16.msra.mxu0 %v9426_v51  ;;  %v9627_v51 = vld [vmem:[%s10330_s11 + $0x380] ss:$72 sps:$4 sm:$0xff]   ;;  %v9628_v13 = vld [vmem:[%s10330_s11 + $0x40c] ss:$72 sps:$4 sm:$0xff]  }
 0x2b5   : > { %12767 = vst [vmem:[#allocation44_spill] sm:$0xff] %v11541_v17  ;;  %6741 = vmatpush2.bf16.msra.mxu1 %v9429_v31  ;;  %v11545_v22 = vpop.f32.mrf.mxu0  ;;  %6629 = vmatprep.subr.bf16.mxu0 %v9434_v36  ;;  %v9626_v31 = vld [vmem:[%s10330_s11 + $0x378] ss:$72 sps:$4 sm:$0xff]  }
 0x2b6   : > { %12768 = vst [vmem:[#allocation45_spill] sm:$0xff] %v11545_v22  ;;  %v11547_v0 = vpop.f32.mrf.mxu1  ;;  %6742 = vmatprep.subr.bf16.mxu1 %v9437_v42  ;;  %v9438_v22 = vld [vmem:[%s10332_s7 + $0xb48] ss:$16 sps:$4 sm:$0xff]  }
 0x2b7   : > { %12769 = vst [vmem:[#allocation46_spill] sm:$0xff] %v11547_v0  ;;  %v11551_v2 = vpop.f32.mrf.mxu0  ;;  %6472 = vmatmul.mubr.bf16.gmra.mxu0 %v9626_v31  ;;  %v9441_v36 = vld [vmem:[%s10332_s7 + $0xd48] ss:$16 sps:$4 sm:$0xff]   ;;  %v9629_v31 = vld [vmem:[%s10330_s11 + $0x414] ss:$72 sps:$4 sm:$0xff]  }
 0x2b8   : > { %12770 = vst [vmem:[#allocation47_spill] sm:$0xff] %v11551_v2  ;;  %v11553_v17 = vpop.f32.mrf.mxu1  ;;  %6585 = vmatmul.mubr.bf16.gmra.mxu1 %v9627_v51  ;;  %6630 = vmatpush2.bf16.msra.mxu0 %v9432_v18  ;;  %v9446_v2 = vld [vmem:[%s10332_s7 + $0xb2c] ss:$16 sps:$4 sm:$0xff]   ;;  %v9444_v51 = vld [vmem:[%s10332_s7 + $0xb28] ss:$16 sps:$4 sm:$0xff]  }
 0x2b9   : > { %12771 = vst [vmem:[#allocation48_spill] sm:$0xff] %v11553_v17  ;;  %6743 = vmatpush2.bf16.msra.mxu1 %v9435_v45  ;;  %v11559_v42 = vpop.f32.mrf.mxu0  ;;  %6631 = vmatprep.subr.bf16.mxu0 %v9440_v11  ;;  %v9449_v17 = vld [vmem:[%s10332_s7 + $0xd2c] ss:$16 sps:$4 sm:$0xff]   ;;  %v9447_v11 = vld [vmem:[%s10332_s7 + $0xd28] ss:$16 sps:$4 sm:$0xff]  }
 0x2ba   : > { %12772 = vst [vmem:[#allocation49_spill] sm:$0xff] %v11559_v42  ;;  %v11561_v0 = vpop.f32.mrf.mxu1  ;;  %6744 = vmatprep.subr.bf16.mxu1 %v9443_v62  ;;  %6481 = vmatprep.mubr.bf16.mxu0 %v9628_v13  ;;  %v9452_v13 = vld [vmem:[%s10332_s7 + $0xb0c] ss:$16 sps:$4 sm:$0xff]  }
 0x2bb   : > { %12773 = vst [vmem:[#allocation50_spill] sm:$0xff] %v11561_v0  ;;  %6594 = vmatprep.mubr.bf16.mxu1 %v9629_v31  ;;  %v11567_v18 = vpop.f32.mrf.mxu0  ;;  %v9455_v31 = vld [vmem:[%s10332_s7 + $0xd0c] ss:$16 sps:$4 sm:$0xff]  }
 0x2bc   : > { %12774 = vst [vmem:[#allocation51_spill] sm:$0xff] %v11567_v18  ;;  %v11569_v45 = vpop.f32.mrf.mxu1  ;;  %6632 = vmatpush2.bf16.msra.mxu0 %v9438_v22  ;;  %v9630_v22 = vld [vmem:[%s10330_s11 + $0x408] ss:$72 sps:$4 sm:$0xff]  }
 0x2bd   : > { %12775 = vst [vmem:[#allocation52_spill] sm:$0xff] %v11569_v45  ;;  %6745 = vmatpush2.bf16.msra.mxu1 %v9441_v36  ;;  %v11573_v62 = vpop.f32.mrf.mxu0  ;;  %6633 = vmatprep.subr.bf16.mxu0 %v9446_v2  ;;  %v9631_v36 = vld [vmem:[%s10330_s11 + $0x410] ss:$72 sps:$4 sm:$0xff]  }
 0x2be   : > { %12776 = vst [vmem:[#allocation53_spill] sm:$0xff] %v11573_v62  ;;  %v11575_v0 = vpop.f32.mrf.mxu1  ;;  %6746 = vmatprep.subr.bf16.mxu1 %v9449_v17  ;;  %v9450_v45 = vld [vmem:[%s10332_s7 + $0xb08] ss:$16 sps:$4 sm:$0xff]   ;;  %v9632_v62 = vld [vmem:[%s10330_s11 + $0x2c] ss:$72 sps:$4 sm:$0xff]  }
 0x2bf   : > { %12777 = vst [vmem:[#allocation54_spill] sm:$0xff] %v11575_v0  ;;  %v11579_v18 = vpop.f32.mrf.mxu0  ;;  %6482 = vmatmul.mubr.bf16.gmra.mxu0 %v9630_v22  ;;  %v9453_v0 = vld [vmem:[%s10332_s7 + $0xd08] ss:$16 sps:$4 sm:$0xff]   ;;  %v5736_v22 = vadd.f32 %v11381_v47, %v11198_v58  ;;  %v5740_v47 = vadd.f32 %v11399_v30, %v11210_v28 }
 0x2c0   : > { %12778 = vst [vmem:[#allocation55_spill] sm:$0xff] %v11579_v18  ;;  %v11581_v42 = vpop.f32.mrf.mxu1  ;;  %6595 = vmatmul.mubr.bf16.gmra.mxu1 %v9631_v36  ;;  %6634 = vmatpush2.bf16.msra.mxu0 %v9444_v51  ;;  %v9458_v18 = vld [vmem:[%s10332_s7 + $0xeec] ss:$16 sps:$4 sm:$0xff]   ;;  %v9459_v58 = vld [vmem:[%s10332_s7 + $0x10e8] ss:$16 sps:$4 sm:$0xff]  }
 0x2c1   : > { %12779 = vst [vmem:[#allocation56_spill] sm:$0xff] %v11581_v42  ;;  %6747 = vmatpush2.bf16.msra.mxu1 %v9447_v11  ;;  %v11587_v2 = vpop.f32.mrf.mxu0  ;;  %6635 = vmatprep.subr.bf16.mxu0 %v9452_v13  ;;  %v9461_v42 = vld [vmem:[%s10332_s7 + $0x10ec] ss:$16 sps:$4 sm:$0xff]   ;;  %v5738_v13 = vadd.f32 %v11391_v57, %v11205_v19  ;;  %v5849_v19 = vadd.f32 %v11383_v41, %v5736_v22  ;;  %v639_v57 = vld [vmem:[%s10348_s10] sm:$0xff]  ;;  %v9635_v28 = vld [vmem:[%s10330_s11 + $0x30] ss:$72 sps:$4 sm:$0xff]  }
 0x2c2   : > { %v11589_v17 = vpop.f32.mrf.mxu1  ;;  %6748 = vmatprep.subr.bf16.mxu1 %v9455_v31  ;;  %6637 = vmatprep.mubr.bf16.mxu0 %v9632_v62  ;;  %v9633_v51 = vld [vmem:[%s10330_s11 + $0x34] ss:$72 sps:$4 sm:$0xff]   ;;  %v9456_v31 = vld [vmem:[%s10332_s7 + $0xee8] ss:$16 sps:$4 sm:$0xff]  }
 0x2c3   : > { %12780 = vst [vmem:[#allocation57_spill] sm:$0xff] %v11589_v17  ;;  %6750 = vmatprep.mubr.bf16.mxu1 %v9633_v51  ;;  %v11597_v11 = vpop.f32.mrf.mxu0  ;;  %v9467_v17 = vld [vmem:[%s10332_s7 + $0x10cc] ss:$16 sps:$4 sm:$0xff]   ;;  %v5851_v30 = vadd.f32 %v11393_v1, %v5738_v13  ;;  %v9462_v41 = vld [vmem:[%s10332_s7 + $0xec8] ss:$16 sps:$4 sm:$0xff]  }
 0x2c4   : > { %12781 = vst [vmem:[#allocation58_spill] sm:$0xff] %v11597_v11  ;;  %v11599_v36 = vpop.f32.mrf.mxu1  ;;  %6636 = vmatpush2.bf16.msra.mxu0 %v9450_v45  ;;  %v9634_v11 = vld [vmem:[%s10330_s11 + $0x28] ss:$72 sps:$4 sm:$0xff]   ;;  %v9470_v1 = vld [vmem:[%s10332_s7 + $0xeac] ss:$16 sps:$4 sm:$0xff]  }
 0x2c5   : > { %12782 = vst [vmem:[#allocation59_spill] sm:$0xff] %v11599_v36  ;;  %6749 = vmatpush2.bf16.msra.mxu1 %v9453_v0  ;;  %v11607_v62 = vpop.f32.mrf.mxu0  ;;  %6831 = vmatprep.subr.bf16.mxu0 %v9458_v18  ;;  %v9464_v36 = vld [vmem:[%s10332_s7 + $0xecc] ss:$16 sps:$4 sm:$0xff]   ;;  %v9465_v22 = vld [vmem:[%s10332_s7 + $0x10c8] ss:$16 sps:$4 sm:$0xff]  }
 0x2c6   : > { %12783 = vst [vmem:[#allocation60_spill] sm:$0xff] %v11607_v62  ;;  %v11609_v51 = vpop.f32.mrf.mxu1  ;;  %6944 = vmatprep.subr.bf16.mxu1 %v9461_v42  ;;  %v5742_v42 = vadd.f32 %v11405_v23, %v11217_v44  ;;  %v9473_v13 = vld [vmem:[%s10332_s7 + $0x10ac] ss:$16 sps:$4 sm:$0xff]   ;;  %v5746_v44 = vadd.f32 %v11411_v37, %v11222_v34 }
 0x2c7   : > { %12784 = vst [vmem:[#allocation61_spill] sm:$0xff] %v11609_v51  ;;  %v5961_v0 = vpop.f32.mrf.mxu0  ;;  %6638 = vmatmul.mubr.bf16.vlgmr.msra.gmra.mxu0 %v9634_v11  ;;  %v640_v11 = vld [vmem:[%s10348_s10 + $0x8] sm:$0xff] }
 0x2c8   : > { %v11615_v45 = vpop.f32.mrf.mxu1  ;;  %6751 = vmatmul.mubr.bf16.vlgmr.msra.gmra.mxu1 %v9635_v28  ;;  %v5962_v18 = vadd.f32 %v5961_v0, %v5849_v19  ;;  %6832 = vmatpush1.bf16.msra.mxu0 %v9456_v31  ;;  %v5855_v34 = vadd.f32 %v11407_v20, %v5742_v42  ;;  %v9471_v0 = vld [vmem:[%s10332_s7 + $0x10a8] ss:$16 sps:$4 sm:$0xff]   ;;  %v9476_v20 = vld [vmem:[%s10332_s7 + $0xe8c] ss:$16 sps:$4 sm:$0xff]  }
 0x2c9   : > { %12785 = vst [vmem:[#allocation62_spill] sm:$0xff] %v11615_v45  ;;  %6945 = vmatpush1.bf16.msra.mxu1 %v9459_v58  ;;  %v5853_v45 = vadd.f32 %v11401_v61, %v5740_v47  ;;  %v5963_v51 = vpop.f32.mrf.mxu0  ;;  %6833 = vmatprep.subr.bf16.mxu0 %v9464_v36  ;;  %v9636_v58 = vld [vmem:[%s10330_s11 + $0xbc] ss:$72 sps:$4 sm:$0xff]   ;;  %v5748_v47 = vadd.f32 %v11420_v60, %v11229_v4  ;;  %v644_v60 = vld [vmem:[%s10348_s10 + $0x28] sm:$0xff] }
 0x2ca   : > { %v11626_v62 = vpop.f32.mrf.mxu1  ;;  %6946 = vmatprep.subr.bf16.mxu1 %v9467_v17  ;;  %v7057_v23 = vadd.f32 %v5962_v18, %v639_v57  ;;  %v5964_v31 = vadd.f32 %v5963_v51, %v5851_v30  ;;  %6647 = vmatprep.mubr.bf16.mxu0 %v9636_v58  ;;  %v9637_v61 = vld [vmem:[%s10330_s11 + $0xc4] ss:$72 sps:$4 sm:$0xff]   ;;  %v9468_v57 = vld [vmem:[%s10332_s7 + $0xea8] ss:$16 sps:$4 sm:$0xff]   ;;  %v5750_v4 = vadd.f32 %v11427_v48, %v11234_v10 }
 0x2cb   : > { %6760 = vmatprep.mubr.bf16.mxu1 %v9637_v61  ;;  %v643_v36 = vld [vmem:[%s10348_s10 + $0x20] sm:$0xff]  ;;  %v5965_v19 = vpop.f32.mrf.mxu0  ;;  %v9479_v42 = vld [vmem:[%s10332_s7 + $0x108c] ss:$16 sps:$4 sm:$0xff]   ;;  %v5861_v10 = vadd.f32 %v11422_v35, %v5748_v47  ;;  %v9474_v35 = vld [vmem:[%s10332_s7 + $0xe88] ss:$16 sps:$4 sm:$0xff]  }
 0x2cc   : > { %v11637_v17 = vpop.f32.mrf.mxu1  ;;  %7121 = vst [vmem:[%s10348_s10] sm:$0xff] %v7057_v23  ;;  %v7058_v37 = vadd.f32 %v5964_v31, %v640_v11  ;;  %v5966_v51 = vadd.f32 %v5965_v19, %v5853_v45  ;;  %6834 = vmatpush1.bf16.msra.mxu0 %v9462_v41  ;;  %v5859_v45 = vadd.f32 %v11413_v46, %v5746_v44  ;;  %v647_v48 = vld [vmem:[%s10348_s10 + $0x40] sm:$0xff]  ;;  %v9477_v31 = vld [vmem:[%s10332_s7 + $0x1088] ss:$16 sps:$4 sm:$0xff]  }
 0x2cd   : > { %6947 = vmatpush1.bf16.msra.mxu1 %v9465_v22  ;;  %v5967_v28 = vpop.f32.mrf.mxu0  ;;  %6835 = vmatprep.subr.bf16.mxu0 %v9470_v1  ;;  %v9638_v23 = vld [vmem:[%s10330_s11 + $0xb8] ss:$72 sps:$4 sm:$0xff]   ;;  %v5752_v46 = vadd.f32 %v11433_v14, %v11241_v12  ;;  %v5863_v58 = vadd.f32 %v11429_v7, %v5750_v4  ;;  %v648_v61 = vld [vmem:[%s10348_s10 + $0x48] sm:$0xff]  ;;  %v5756_v19 = vadd.f32 %v11439_v16, %v11246_v24  ;;  %v9641_v7 = vld [vmem:[%s10330_s11 + $0x154] ss:$72 sps:$4 sm:$0xff]  }
 0x2ce   : > { %v11646_v30 = vpop.f32.mrf.mxu1  ;;  %6948 = vmatprep.subr.bf16.mxu1 %v9473_v13  ;;  %7122 = vst [vmem:[%s10348_s10 + $0x8] sm:$0xff] %v7058_v37  ;;  %v7061_v18 = vadd.f32 %v5966_v51, %v643_v36  ;;  %v5968_v41 = vadd.f32 %v5967_v28, %v5855_v34  ;;  %v9639_v1 = vld [vmem:[%s10330_s11 + $0xc0] ss:$72 sps:$4 sm:$0xff]   ;;  %v9482_v12 = vld [vmem:[%s10332_s7 + $0xe6c] ss:$16 sps:$4 sm:$0xff]  }
 0x2cf   : > { %v5971_v22 = vpop.f32.mrf.mxu0  ;;  %6648 = vmatmul.mubr.bf16.gmra.mxu0 %v9638_v23  ;;  %v9485_v14 = vld [vmem:[%s10332_s7 + $0x106c] ss:$16 sps:$4 sm:$0xff]   ;;  %v5865_v24 = vadd.f32 %v11435_v32, %v5752_v46  ;;  %v9642_v46 = vld [vmem:[%s10330_s11 + $0x148] ss:$72 sps:$4 sm:$0xff]  }
 0x2d0   : > { %v11654_v11 = vpop.f32.mrf.mxu1  ;;  %6761 = vmatmul.mubr.bf16.gmra.mxu1 %v9639_v1  ;;  %7125 = vst [vmem:[%s10348_s10 + $0x20] sm:$0xff] %v7061_v18  ;;  %v7062_v13 = vadd.f32 %v5968_v41, %v644_v60  ;;  %v5972_v44 = vadd.f32 %v5971_v22, %v5859_v45  ;;  %6836 = vmatpush1.bf16.msra.mxu0 %v9468_v57  ;;  %v9640_v51 = vld [vmem:[%s10330_s11 + $0x14c] ss:$72 sps:$4 sm:$0xff]  }
 0x2d1   : > { %6949 = vmatpush1.bf16.msra.mxu1 %v9471_v0  ;;  %v5973_v47 = vpop.f32.mrf.mxu0  ;;  %6837 = vmatprep.subr.bf16.mxu0 %v9476_v20  ;;  %v5758_v57 = vadd.f32 %v11448_v33, %v11253_v52  ;;  %v651_v0 = vld [vmem:[%s10348_s10 + $0x60] sm:$0xff]  ;;  %v9480_v20 = vld [vmem:[%s10332_s7 + $0xe68] ss:$16 sps:$4 sm:$0xff]   ;;  %v5760_v52 = vadd.f32 %v11455_v6, %v11258_v43  ;;  %v9488_v32 = vld [vmem:[%s10332_s7 + $0xe4c] ss:$16 sps:$4 sm:$0xff]  }
 0x2d2   : > { %v11665_v36 = vpop.f32.mrf.mxu1  ;;  %6950 = vmatprep.subr.bf16.mxu1 %v9479_v42  ;;  %7126 = vst [vmem:[%s10348_s10 + $0x28] sm:$0xff] %v7062_v13  ;;  %v7065_v34 = vadd.f32 %v5972_v44, %v647_v48  ;;  %v5974_v37 = vadd.f32 %v5973_v47, %v5861_v10  ;;  %6657 = vmatprep.mubr.bf16.mxu0 %v9640_v51  ;;  %v9483_v42 = vld [vmem:[%s10332_s7 + $0x1068] ss:$16 sps:$4 sm:$0xff]   ;;  %v9491_v41 = vld [vmem:[%s10332_s7 + $0x104c] ss:$16 sps:$4 sm:$0xff]   ;;  %v655_v6 = vld [vmem:[%s10348_s10 + $0x80] sm:$0xff] }
 0x2d3   : > { %6770 = vmatprep.mubr.bf16.mxu1 %v9641_v7  ;;  %v5975_v4 = vpop.f32.mrf.mxu0  ;;  %v652_v33 = vld [vmem:[%s10348_s10 + $0x68] sm:$0xff]  ;;  %v5869_v10 = vadd.f32 %v11441_v9, %v5756_v19  ;;  %v5871_v43 = vadd.f32 %v11450_v39, %v5758_v57  ;;  %v9643_v13 = vld [vmem:[%s10330_s11 + $0x150] ss:$72 sps:$4 sm:$0xff]   ;;  %v5762_v9 = vadd.f32 %v11461_v5, %v11265_v63  ;;  %v5768_v51 = vadd.f32 %v11475_v55, %v11277_v21  ;;  %v659_v7 = vld [vmem:[%s10348_s10 + $0xa0] sm:$0xff] }
 0x2d4   : > { %v11677_v60 = vpop.f32.mrf.mxu1  ;;  %7129 = vst [vmem:[%s10348_s10 + $0x40] sm:$0xff] %v7065_v34  ;;  %v7066_v16 = vadd.f32 %v5974_v37, %v648_v61  ;;  %v5976_v28 = vadd.f32 %v5975_v4, %v5863_v58  ;;  %6838 = vmatpush1.bf16.msra.mxu0 %v9474_v35  ;;  %v9486_v39 = vld [vmem:[%s10332_s7 + $0xe48] ss:$16 sps:$4 sm:$0xff]   ;;  %v5873_v58 = vadd.f32 %v11457_v54, %v5760_v52  ;;  %v9494_v63 = vld [vmem:[%s10332_s7 + $0xe2c] ss:$16 sps:$4 sm:$0xff]  }
 0x2d5   : > { %6951 = vmatpush1.bf16.msra.mxu1 %v9477_v31  ;;  %v5977_v45 = vpop.f32.mrf.mxu0  ;;  %6839 = vmatprep.subr.bf16.mxu0 %v9482_v12  ;;  %v9489_v31 = vld [vmem:[%s10332_s7 + $0x1048] ss:$16 sps:$4 sm:$0xff]   ;;  %v9497_v5 = vld [vmem:[%s10332_s7 + $0x102c] ss:$16 sps:$4 sm:$0xff]   ;;  %v5770_v21 = vadd.f32 %v11483_v26, %v11282_v38  ;;  %v5881_v38 = vadd.f32 %v11477_v3, %v5768_v51  ;;  %v663_v26 = vld [vmem:[%s10348_s10 + $0xc0] sm:$0xff] }
 0x2d6   : > { %v11686_v18 = vpop.f32.mrf.mxu1  ;;  %6952 = vmatprep.subr.bf16.mxu1 %v9485_v14  ;;  %7130 = vst [vmem:[%s10348_s10 + $0x48] sm:$0xff] %v7066_v16  ;;  %v7069_v48 = vadd.f32 %v5976_v28, %v651_v0  ;;  %v5978_v22 = vadd.f32 %v5977_v45, %v5865_v24  ;;  %v656_v61 = vld [vmem:[%s10348_s10 + $0x88] sm:$0xff]  ;;  %v5766_v14 = vadd.f32 %v11467_v59, %v11270_v8  ;;  %v9644_v37 = vld [vmem:[%s10330_s11 + $0x1dc] ss:$72 sps:$4 sm:$0xff]  }
 0x2d7   : > { %v5981_v23 = vpop.f32.mrf.mxu0  ;;  %6658 = vmatmul.mubr.bf16.gmra.mxu0 %v9642_v46  ;;  %v9645_v54 = vld [vmem:[%s10330_s11 + $0x1e4] ss:$72 sps:$4 sm:$0xff]   ;;  %v5875_v8 = vadd.f32 %v11463_v40, %v5762_v9  ;;  %v9492_v24 = vld [vmem:[%s10332_s7 + $0xe28] ss:$16 sps:$4 sm:$0xff]  }
 0x2d8   : > { %v11694_v1 = vpop.f32.mrf.mxu1  ;;  %6771 = vmatmul.mubr.bf16.gmra.mxu1 %v9643_v13  ;;  %7133 = vst [vmem:[%s10348_s10 + $0x60] sm:$0xff] %v7069_v48  ;;  %v7070_v44 = vadd.f32 %v5978_v22, %v652_v33  ;;  %v5982_v35 = vadd.f32 %v5981_v23, %v5869_v10  ;;  %6840 = vmatpush1.bf16.msra.mxu0 %v9480_v20  ;;  %v9495_v16 = vld [vmem:[%s10332_s7 + $0x1028] ss:$16 sps:$4 sm:$0xff]   ;;  %v9500_v40 = vld [vmem:[%s10332_s7 + $0xe0c] ss:$16 sps:$4 sm:$0xff]  }
 0x2d9   : > { %6953 = vmatpush1.bf16.msra.mxu1 %v9483_v42  ;;  %v5983_v47 = vpop.f32.mrf.mxu0  ;;  %6841 = vmatprep.subr.bf16.mxu0 %v9488_v32  ;;  %v660_v55 = vld [vmem:[%s10348_s10 + $0xa8] sm:$0xff]  ;;  %v5879_v52 = vadd.f32 %v11469_v49, %v5766_v14  ;;  %v9646_v10 = vld [vmem:[%s10330_s11 + $0x1d8] ss:$72 sps:$4 sm:$0xff]   ;;  %v5772_v49 = vadd.f32 %v11490_v53, %v11289_v50  ;;  %v5883_v23 = vadd.f32 %v11485_v27, %v5770_v21  ;;  %v9649_v27 = vld [vmem:[%s10330_s11 + $0x274] ss:$72 sps:$4 sm:$0xff]  }
 0x2da   : > { %v11705_v12 = vpop.f32.mrf.mxu1  ;;  %6954 = vmatprep.subr.bf16.mxu1 %v9491_v41  ;;  %7134 = vst [vmem:[%s10348_s10 + $0x68] sm:$0xff] %v7070_v44  ;;  %v7073_v19 = vadd.f32 %v5982_v35, %v655_v6  ;;  %v5984_v34 = vadd.f32 %v5983_v47, %v5871_v43  ;;  %6667 = vmatprep.mubr.bf16.mxu0 %v9644_v37  ;;  %v9503_v42 = vld [vmem:[%s10332_s7 + $0x100c] ss:$16 sps:$4 sm:$0xff]   ;;  %v9647_v48 = vld [vmem:[%s10330_s11 + $0x1e0] ss:$72 sps:$4 sm:$0xff]  }
 0x2db   : > { %6780 = vmatprep.mubr.bf16.mxu1 %v9645_v54  ;;  %v5985_v57 = vpop.f32.mrf.mxu0  ;;  %v9498_v3 = vld [vmem:[%s10332_s7 + $0xe08] ss:$16 sps:$4 sm:$0xff]   ;;  %v9506_v50 = vld [vmem:[%s10332_s7 + $0xfec] ss:$16 sps:$4 sm:$0xff]   ;;  %v5776_v44 = vadd.f32 %v11495_v29, %v11294_v56  ;;  %v12787_v37 = vld [vmem:[#allocation18_spill] sm:$0xff] }
 0x2dc   : > { %v11717_v0 = vpop.f32.mrf.mxu1  ;;  %7137 = vst [vmem:[%s10348_s10 + $0x80] sm:$0xff] %v7073_v19  ;;  %v7074_v59 = vadd.f32 %v5984_v34, %v656_v61  ;;  %v5986_v4 = vadd.f32 %v5985_v57, %v5873_v58  ;;  %6842 = vmatpush1.bf16.msra.mxu0 %v9486_v39  ;;  %v9501_v6 = vld [vmem:[%s10332_s7 + $0x1008] ss:$16 sps:$4 sm:$0xff]   ;;  %v9509_v53 = vld [vmem:[%s10332_s7 + $0x11ec] ss:$16 sps:$4 sm:$0xff]   ;;  %v5778_v58 = vadd.f32 %v11503_v25, %v11301_v15  ;;  %v667_v61 = vld [vmem:[%s10348_s10 + $0xe0] sm:$0xff] }
 0x2dd   : > { %6955 = vmatpush1.bf16.msra.mxu1 %v9489_v31  ;;  %v5987_v28 = vpop.f32.mrf.mxu0  ;;  %6843 = vmatprep.subr.bf16.mxu0 %v9494_v63  ;;  %v664_v46 = vld [vmem:[%s10348_s10 + $0xc8] sm:$0xff]  ;;  %v12790_v21 = vld [vmem:[#allocation34_spill] sm:$0xff] }
 0x2de   : > { %v11726_v20 = vpop.f32.mrf.mxu1  ;;  %6956 = vmatprep.subr.bf16.mxu1 %v9497_v5  ;;  %7138 = vst [vmem:[%s10348_s10 + $0x88] sm:$0xff] %v7074_v59  ;;  %v7077_v33 = vadd.f32 %v5986_v4, %v659_v7  ;;  %v5988_v45 = vadd.f32 %v5987_v28, %v5875_v8  ;;  %v9648_v31 = vld [vmem:[%s10330_s11 + $0x26c] ss:$72 sps:$4 sm:$0xff]   ;;  %v9504_v19 = vld [vmem:[%s10332_s7 + $0xfe8] ss:$16 sps:$4 sm:$0xff]   ;;  %v671_v28 = vld [vmem:[%s10348_s10 + $0x100] sm:$0xff] }
 0x2df   : > { %v5991_v32 = vpop.f32.mrf.mxu0  ;;  %6668 = vmatmul.mubr.bf16.gmra.mxu0 %v9646_v10  ;;  %v12786_v5 = vld [vmem:[#allocation32_spill] sm:$0xff]  ;;  %v9507_v34 = vld [vmem:[%s10332_s7 + $0x11e8] ss:$16 sps:$4 sm:$0xff]   ;;  %v9512_v57 = vld [vmem:[%s10332_s7 + $0xfcc] ss:$16 sps:$4 sm:$0xff]  }
 0x2e0   : > { %v11734_v41 = vpop.f32.mrf.mxu1  ;;  %6781 = vmatmul.mubr.bf16.gmra.mxu1 %v9647_v48  ;;  %7141 = vst [vmem:[%s10348_s10 + $0xa0] sm:$0xff] %v7077_v33  ;;  %v7078_v22 = vadd.f32 %v5988_v45, %v660_v55  ;;  %v5992_v43 = vadd.f32 %v5991_v32, %v5879_v52  ;;  %6844 = vmatpush1.bf16.msra.mxu0 %v9492_v24  ;;  %v12788_v54 = vld [vmem:[#allocation35_spill] sm:$0xff]  ;;  %v12789_v59 = vld [vmem:[#allocation33_spill] sm:$0xff] }
 0x2e1   : > { %6957 = vmatpush1.bf16.msra.mxu1 %v9495_v16  ;;  %v5993_v13 = vpop.f32.mrf.mxu0  ;;  %6845 = vmatprep.subr.bf16.mxu0 %v9500_v40  ;;  %v5885_v56 = vadd.f32 %v12786_v5, %v5772_v49  ;;  %v5780_v15 = vadd.f32 %v12788_v54, %v12787_v37  ;;  %v668_v25 = vld [vmem:[%s10348_s10 + $0xe8] sm:$0xff]  ;;  %v5889_v4 = vadd.f32 %v12789_v59, %v5776_v44  ;;  %v9651_v33 = vld [vmem:[%s10330_s11 + $0x270] ss:$72 sps:$4 sm:$0xff]   ;;  %v675_v5 = vld [vmem:[%s10348_s10 + $0x120] sm:$0xff] }
 0x2e2   : > { %v11745_v9 = vpop.f32.mrf.mxu1  ;;  %6958 = vmatprep.subr.bf16.mxu1 %v9503_v42  ;;  %7142 = vst [vmem:[%s10348_s10 + $0xa8] sm:$0xff] %v7078_v22  ;;  %v7081_v35 = vadd.f32 %v5992_v43, %v663_v26  ;;  %v5994_v39 = vadd.f32 %v5993_v13, %v5881_v38  ;;  %6677 = vmatprep.mubr.bf16.mxu0 %v9648_v31  ;;  %v9515_v8 = vld [vmem:[%s10332_s7 + $0x11cc] ss:$16 sps:$4 sm:$0xff]   ;;  %v9650_v52 = vld [vmem:[%s10330_s11 + $0x268] ss:$72 sps:$4 sm:$0xff]  }
 0x2e3   : > { %6790 = vmatprep.mubr.bf16.mxu1 %v9649_v27  ;;  %v5995_v47 = vpop.f32.mrf.mxu0  ;;  %v5891_v55 = vadd.f32 %v12790_v21, %v5778_v58  ;;  %v12791_v45 = vld [vmem:[#allocation19_spill] sm:$0xff]  ;;  %v12792_v38 = vld [vmem:[#allocation37_spill] sm:$0xff]  ;;  %v12793_v22 = vld [vmem:[#allocation36_spill] sm:$0xff] }
 0x2e4   : > { %v11757_v63 = vpop.f32.mrf.mxu1  ;;  %7145 = vst [vmem:[%s10348_s10 + $0xc0] sm:$0xff] %v7081_v35  ;;  %v7082_v29 = vadd.f32 %v5994_v39, %v664_v46  ;;  %v5996_v14 = vadd.f32 %v5995_v47, %v5883_v23  ;;  %6846 = vmatpush1.bf16.msra.mxu0 %v9498_v3  ;;  %v5782_v26 = vadd.f32 %v12792_v38, %v12791_v45  ;;  %v9510_v48 = vld [vmem:[%s10332_s7 + $0xfc8] ss:$16 sps:$4 sm:$0xff]   ;;  %v9518_v46 = vld [vmem:[%s10332_s7 + $0xfac] ss:$16 sps:$4 sm:$0xff]   ;;  %v12801_v21 = vld [vmem:[#allocation40_spill] sm:$0xff] }
 0x2e5   : > { %6959 = vmatpush1.bf16.msra.mxu1 %v9501_v6  ;;  %v5997_v51 = vpop.f32.mrf.mxu0  ;;  %6847 = vmatprep.subr.bf16.mxu0 %v9506_v50  ;;  %v9513_v49 = vld [vmem:[%s10332_s7 + $0x11c8] ss:$16 sps:$4 sm:$0xff]   ;;  %v5893_v43 = vadd.f32 %v12793_v22, %v5780_v15  ;;  %v9521_v13 = vld [vmem:[%s10332_s7 + $0x11ac] ss:$16 sps:$4 sm:$0xff]   ;;  %v12794_v50 = vld [vmem:[#allocation20_spill] sm:$0xff] }
 0x2e6   : > { %v11766_v7 = vpop.f32.mrf.mxu1  ;;  %6960 = vmatprep.subr.bf16.mxu1 %v9509_v53  ;;  %7146 = vst [vmem:[%s10348_s10 + $0xc8] sm:$0xff] %v7082_v29  ;;  %v7085_v24 = vadd.f32 %v5996_v14, %v667_v61  ;;  %v5998_v16 = vadd.f32 %v5997_v51, %v5885_v56  ;;  %v672_v3 = vld [vmem:[%s10348_s10 + $0x108] sm:$0xff]  ;;  %v9652_v31 = vld [vmem:[%s10330_s11 + $0x2fc] ss:$72 sps:$4 sm:$0xff]  }
 0x2e7   : > { %v6001_v40 = vpop.f32.mrf.mxu0  ;;  %6678 = vmatmul.mubr.bf16.gmra.mxu0 %v9650_v52  ;;  %v12795_v53 = vld [vmem:[#allocation39_spill] sm:$0xff]  ;;  %v12796_v58 = vld [vmem:[#allocation21_spill] sm:$0xff]  ;;  %v12798_v14 = vld [vmem:[#allocation38_spill] sm:$0xff] }
 0x2e8   : > { %v11774_v42 = vpop.f32.mrf.mxu1  ;;  %6791 = vmatmul.mubr.bf16.gmra.mxu1 %v9651_v33  ;;  %7149 = vst [vmem:[%s10348_s10 + $0xe0] sm:$0xff] %v7085_v24  ;;  %v7086_v32 = vadd.f32 %v5998_v16, %v668_v25  ;;  %v6002_v10 = vadd.f32 %v6001_v40, %v5889_v4  ;;  %6848 = vmatpush2.bf16.msra.mxu0 %v9504_v19  ;;  %v9653_v27 = vld [vmem:[%s10330_s11 + $0x304] ss:$72 sps:$4 sm:$0xff]   ;;  %v12797_v61 = vld [vmem:[#allocation41_spill] sm:$0xff] }
 0x2e9   : > { %6961 = vmatpush2.bf16.msra.mxu1 %v9507_v34  ;;  %v6003_v6 = vpop.f32.mrf.mxu0  ;;  %6849 = vmatprep.subr.bf16.mxu0 %v9512_v57  ;;  %v5786_v44 = vadd.f32 %v12795_v53, %v12794_v50  ;;  %v5788_v47 = vadd.f32 %v12797_v61, %v12796_v58  ;;  %v5895_v19 = vadd.f32 %v12798_v14, %v5782_v26  ;;  %v9516_v54 = vld [vmem:[%s10332_s7 + $0xfa8] ss:$16 sps:$4 sm:$0xff]   ;;  %v12799_v25 = vld [vmem:[#allocation22_spill] sm:$0xff]  ;;  %v9524_v24 = vld [vmem:[%s10332_s7 + $0xf8c] ss:$16 sps:$4 sm:$0xff]  }
 0x2ea   : > { %v11785_v23 = vpop.f32.mrf.mxu1  ;;  %6962 = vmatprep.subr.bf16.mxu1 %v9515_v8  ;;  %7150 = vst [vmem:[%s10348_s10 + $0xe8] sm:$0xff] %v7086_v32  ;;  %v7089_v35 = vadd.f32 %v6002_v10, %v671_v28  ;;  %v6004_v39 = vadd.f32 %v6003_v6, %v5891_v55  ;;  %6687 = vmatprep.mubr.bf16.mxu0 %v9652_v31  ;;  %v9519_v15 = vld [vmem:[%s10332_s7 + $0x11a8] ss:$16 sps:$4 sm:$0xff]   ;;  %v9527_v16 = vld [vmem:[%s10332_s7 + $0x118c] ss:$16 sps:$4 sm:$0xff]   ;;  %v12802_v52 = vld [vmem:[#allocation42_spill] sm:$0xff] }
 0x2eb   : > { %6800 = vmatprep.mubr.bf16.mxu1 %v9653_v27  ;;  %v6005_v56 = vpop.f32.mrf.mxu0  ;;  %v12800_v51 = vld [vmem:[#allocation43_spill] sm:$0xff]  ;;  %v5899_v55 = vadd.f32 %v12801_v21, %v5786_v44  ;;  %v5901_v33 = vadd.f32 %v12802_v52, %v5788_v47  ;;  %v679_v45 = vld [vmem:[%s10348_s10 + $0x140] sm:$0xff]  ;;  %v12806_v27 = vld [vmem:[#allocation24_spill] sm:$0xff] }
 0x2ec   : > { %v11797_v29 = vpop.f32.mrf.mxu1  ;;  %7153 = vst [vmem:[%s10348_s10 + $0x100] sm:$0xff] %v7089_v35  ;;  %v7090_v34 = vadd.f32 %v6004_v39, %v672_v3  ;;  %v6006_v37 = vadd.f32 %v6005_v56, %v5893_v43  ;;  %6850 = vmatpush2.bf16.msra.mxu0 %v9510_v48  ;;  %v5790_v57 = vadd.f32 %v12800_v51, %v12799_v25  ;;  %v676_v8 = vld [vmem:[%s10348_s10 + $0x128] sm:$0xff]  ;;  %v9654_v32 = vld [vmem:[%s10330_s11 + $0x2f8] ss:$72 sps:$4 sm:$0xff]   ;;  %v9657_v14 = vld [vmem:[%s10330_s11 + $0x394] ss:$72 sps:$4 sm:$0xff]  }
 0x2ed   : > { %6963 = vmatpush2.bf16.msra.mxu1 %v9513_v49  ;;  %v6007_v59 = vpop.f32.mrf.mxu0  ;;  %6851 = vmatprep.subr.bf16.mxu0 %v9518_v46  ;;  %v9655_v10 = vld [vmem:[%s10330_s11 + $0x300] ss:$72 sps:$4 sm:$0xff]   ;;  %v12804_v49 = vld [vmem:[#allocation45_spill] sm:$0xff]  ;;  %v9656_v56 = vld [vmem:[%s10330_s11 + $0x38c] ss:$72 sps:$4 sm:$0xff]  }
 0x2ee   : > { %v11806_v4 = vpop.f32.mrf.mxu1  ;;  %6964 = vmatprep.subr.bf16.mxu1 %v9521_v13  ;;  %7154 = vst [vmem:[%s10348_s10 + $0x108] sm:$0xff] %v7090_v34  ;;  %v7093_v28 = vadd.f32 %v6006_v37, %v675_v5  ;;  %v6008_v40 = vadd.f32 %v6007_v59, %v5895_v19  ;;  %v12803_v48 = vld [vmem:[#allocation23_spill] sm:$0xff]  ;;  %v12805_v13 = vld [vmem:[#allocation44_spill] sm:$0xff]  ;;  %v12808_v19 = vld [vmem:[#allocation25_spill] sm:$0xff] }
 0x2ef   : > { %v6011_v38 = vpop.f32.mrf.mxu0  ;;  %6688 = vmatmul.mubr.bf16.gmra.mxu0 %v9654_v32  ;;  %v5792_v22 = vadd.f32 %v12804_v49, %v12803_v48  ;;  %v9522_v6 = vld [vmem:[%s10332_s7 + $0xf88] ss:$16 sps:$4 sm:$0xff]   ;;  %v5903_v50 = vadd.f32 %v12805_v13, %v5790_v57  ;;  %v9530_v39 = vld [vmem:[%s10332_s7 + $0xf6c] ss:$16 sps:$4 sm:$0xff]   ;;  %v12810_v51 = vld [vmem:[#allocation46_spill] sm:$0xff] }
 0x2f0   : > { %v11814_v26 = vpop.f32.mrf.mxu1  ;;  %6801 = vmatmul.mubr.bf16.gmra.mxu1 %v9655_v10  ;;  %7157 = vst [vmem:[%s10348_s10 + $0x120] sm:$0xff] %v7093_v28  ;;  %v7094_v43 = vadd.f32 %v6008_v40, %v676_v8  ;;  %v6012_v3 = vadd.f32 %v6011_v38, %v5899_v55  ;;  %6852 = vmatpush2.bf16.msra.mxu0 %v9516_v54  ;;  %v9525_v46 = vld [vmem:[%s10332_s7 + $0x1188] ss:$16 sps:$4 sm:$0xff]   ;;  %v9533_v31 = vld [vmem:[%s10332_s7 + $0x116c] ss:$16 sps:$4 sm:$0xff]   ;;  %v683_v54 = vld [vmem:[%s10348_s10 + $0x160] sm:$0xff] }
 0x2f1   : > { %6965 = vmatpush2.bf16.msra.mxu1 %v9519_v15  ;;  %v680_v53 = vld [vmem:[%s10348_s10 + $0x148] sm:$0xff]  ;;  %v6013_v44 = vpop.f32.mrf.mxu0  ;;  %6853 = vmatprep.subr.bf16.mxu0 %v9524_v24  ;;  %v12809_v34 = vld [vmem:[#allocation49_spill] sm:$0xff]  ;;  %v5905_v57 = vadd.f32 %v12810_v51, %v5792_v22  ;;  %v12811_v21 = vld [vmem:[#allocation26_spill] sm:$0xff] }
 0x2f2   : > { %v11825_v35 = vpop.f32.mrf.mxu1  ;;  %6966 = vmatprep.subr.bf16.mxu1 %v9527_v16  ;;  %v12807_v58 = vld [vmem:[#allocation47_spill] sm:$0xff]  ;;  %7158 = vst [vmem:[%s10348_s10 + $0x128] sm:$0xff] %v7094_v43  ;;  %v7097_v47 = vadd.f32 %v6012_v3, %v679_v45  ;;  %v6014_v5 = vadd.f32 %v6013_v44, %v5901_v33  ;;  %6697 = vmatprep.mubr.bf16.mxu0 %v9656_v56  ;;  %v12813_v32 = vld [vmem:[#allocation48_spill] sm:$0xff]  ;;  %v12814_v22 = vld [vmem:[#allocation50_spill] sm:$0xff] }
 0x2f3   : > { %v5796_v61 = vadd.f32 %v12807_v58, %v12806_v27  ;;  %6810 = vmatprep.mubr.bf16.mxu1 %v9657_v14  ;;  %v5798_v37 = vadd.f32 %v12809_v34, %v12808_v19  ;;  %v6015_v15 = vpop.f32.mrf.mxu0  ;;  %v9528_v24 = vld [vmem:[%s10332_s7 + $0xf68] ss:$16 sps:$4 sm:$0xff]   ;;  %v9536_v45 = vld [vmem:[%s10332_s7 + $0xf4c] ss:$16 sps:$4 sm:$0xff]   ;;  %v687_v3 = vld [vmem:[%s10348_s10 + $0x180] sm:$0xff] }
 0x2f4   : > { %v11837_v25 = vpop.f32.mrf.mxu1  ;;  %7161 = vst [vmem:[%s10348_s10 + $0x140] sm:$0xff] %v7097_v47  ;;  %v7098_v8 = vadd.f32 %v6014_v5, %v680_v53  ;;  %v6016_v59 = vadd.f32 %v6015_v15, %v5903_v50  ;;  %6854 = vmatpush2.bf16.msra.mxu0 %v9522_v6  ;;  %v9531_v16 = vld [vmem:[%s10332_s7 + $0x1168] ss:$16 sps:$4 sm:$0xff]   ;;  %v9539_v38 = vld [vmem:[%s10332_s7 + $0x114c] ss:$16 sps:$4 sm:$0xff]   ;;  %v12817_v47 = vld [vmem:[#allocation52_spill] sm:$0xff] }
 0x2f5   : > { %6967 = vmatpush2.bf16.msra.mxu1 %v9525_v46  ;;  %v12812_v55 = vld [vmem:[#allocation51_spill] sm:$0xff]  ;;  %v6017_v52 = vpop.f32.mrf.mxu0  ;;  %6855 = vmatprep.subr.bf16.mxu0 %v9530_v39  ;;  %v5909_v10 = vadd.f32 %v12813_v32, %v5796_v61  ;;  %v5911_v43 = vadd.f32 %v12814_v22, %v5798_v37  ;;  %v9659_v50 = vld [vmem:[%s10330_s11 + $0x390] ss:$72 sps:$4 sm:$0xff]  }
 0x2f6   : > { %v5800_v28 = vadd.f32 %v12812_v55, %v12811_v21  ;;  %v684_v40 = vld [vmem:[%s10348_s10 + $0x168] sm:$0xff]  ;;  %v11846_v33 = vpop.f32.mrf.mxu1  ;;  %6968 = vmatprep.subr.bf16.mxu1 %v9533_v31  ;;  %7162 = vst [vmem:[%s10348_s10 + $0x148] sm:$0xff] %v7098_v8  ;;  %v7101_v48 = vadd.f32 %v6016_v59, %v683_v54  ;;  %v6018_v49 = vadd.f32 %v6017_v52, %v5905_v57  ;;  %v12816_v44 = vld [vmem:[#allocation53_spill] sm:$0xff]  ;;  %v12818_v54 = vld [vmem:[#allocation28_spill] sm:$0xff] }
 0x2f7   : > { %v6021_v6 = vpop.f32.mrf.mxu0  ;;  %v9658_v13 = vld [vmem:[%s10330_s11 + $0x388] ss:$72 sps:$4 sm:$0xff]   ;;  %v9542_v34 = vld [vmem:[%s10332_s7 + $0xf2c] ss:$16 sps:$4 sm:$0xff]   ;;  %v691_v55 = vld [vmem:[%s10348_s10 + $0x1a0] sm:$0xff] }
 0x2f8   : > { %v11854_v46 = vpop.f32.mrf.mxu1  ;;  %6698 = vmatmul.mubr.bf16.gmra.mxu0 %v9658_v13  ;;  %6811 = vmatmul.mubr.bf16.gmra.mxu1 %v9659_v50  ;;  %v12815_v53 = vld [vmem:[#allocation27_spill] sm:$0xff]  ;;  %7165 = vst [vmem:[%s10348_s10 + $0x160] sm:$0xff] %v7101_v48  ;;  %v7102_v31 = vadd.f32 %v6018_v49, %v684_v40  ;;  %v6022_v27 = vadd.f32 %v6021_v6, %v5909_v10  ;;  %v9660_v59 = vld [vmem:[%s10330_s11 + $0x41c] ss:$72 sps:$4 sm:$0xff]   ;;  %v12822_v6 = vld [vmem:[#allocation56_spill] sm:$0xff] }
 0x2f9   : > { %v5802_v39 = vadd.f32 %v12816_v44, %v12815_v53  ;;  %6856 = vmatpush2.bf16.msra.mxu0 %v9528_v24  ;;  %6969 = vmatpush2.bf16.msra.mxu1 %v9531_v16  ;;  %v9534_v58 = vld [vmem:[%s10332_s7 + $0xf48] ss:$16 sps:$4 sm:$0xff]   ;;  %v5913_v5 = vadd.f32 %v12817_v47, %v5800_v28  ;;  %v6023_v14 = vpop.f32.mrf.mxu0  ;;  %v9545_v37 = vld [vmem:[%s10332_s7 + $0x112c] ss:$16 sps:$4 sm:$0xff]   ;;  %v12821_v52 = vld [vmem:[#allocation54_spill] sm:$0xff] }
 0x2fa   : > { %v9537_v61 = vld [vmem:[%s10332_s7 + $0x1148] ss:$16 sps:$4 sm:$0xff]   ;;  %v11865_v19 = vpop.f32.mrf.mxu1  ;;  %6857 = vmatprep.subr.bf16.mxu0 %v9536_v45  ;;  %6970 = vmatprep.subr.bf16.mxu1 %v9539_v38  ;;  %7166 = vst [vmem:[%s10348_s10 + $0x168] sm:$0xff] %v7102_v31  ;;  %v7105_v57 = vadd.f32 %v6022_v27, %v687_v3  ;;  %v6024_v8 = vadd.f32 %v6023_v14, %v5911_v43  ;;  %v9661_v24 = vld [vmem:[%s10330_s11 + $0x424] ss:$72 sps:$4 sm:$0xff]  }
 0x2fb   : > { %v688_v56 = vld [vmem:[%s10348_s10 + $0x188] sm:$0xff]  ;;  %6707 = vmatprep.mubr.bf16.mxu0 %v9660_v59  ;;  %6820 = vmatprep.mubr.bf16.mxu1 %v9661_v24  ;;  %v12820_v16 = vld [vmem:[#allocation29_spill] sm:$0xff]  ;;  %v6025_v28 = vpop.f32.mrf.mxu0  ;;  %v5915_v45 = vadd.f32 %v12821_v52, %v5802_v39  ;;  %v12823_v50 = vld [vmem:[#allocation30_spill] sm:$0xff] }
 0x2fc   : > { %v12819_v15 = vld [vmem:[#allocation55_spill] sm:$0xff]  ;;  %v5808_v21 = vadd.f32 %v11587_v2, %v12820_v16  ;;  %v11877_v40 = vpop.f32.mrf.mxu1  ;;  %7169 = vst [vmem:[%s10348_s10 + $0x180] sm:$0xff] %v7105_v57  ;;  %v7106_v38 = vadd.f32 %v6024_v8, %v688_v56  ;;  %v6026_v32 = vadd.f32 %v6025_v28, %v5913_v5  ;;  %v12824_v53 = vld [vmem:[#allocation58_spill] sm:$0xff]  ;;  %v12825_v27 = vld [vmem:[#allocation57_spill] sm:$0xff] }
 0x2fd   : > { %v5806_v51 = vadd.f32 %v12819_v15, %v12818_v54  ;;  %6858 = vmatpush2.bf16.msra.mxu0 %v9534_v58  ;;  %6971 = vmatpush2.bf16.msra.mxu1 %v9537_v61  ;;  %v9540_v10 = vld [vmem:[%s10332_s7 + $0xf28] ss:$16 sps:$4 sm:$0xff]   ;;  %v6027_v2 = vpop.f32.mrf.mxu0  ;;  %v9548_v43 = vld [vmem:[%s10332_s7 + $0xf0c] ss:$16 sps:$4 sm:$0xff]   ;;  %v5810_v44 = vadd.f32 %v12824_v53, %v12823_v50  ;;  %v695_v61 = vld [vmem:[%s10348_s10 + $0x1c0] sm:$0xff] }
 0x2fe   : > { %v9543_v48 = vld [vmem:[%s10332_s7 + $0x1128] ss:$16 sps:$4 sm:$0xff]   ;;  %v11884_v22 = vpop.f32.mrf.mxu1  ;;  %6859 = vmatprep.subr.bf16.mxu0 %v9542_v34  ;;  %6972 = vmatprep.subr.bf16.mxu1 %v9545_v37  ;;  %v9551_v3 = vld [vmem:[%s10332_s7 + $0x110c] ss:$16 sps:$4 sm:$0xff]   ;;  %7170 = vst [vmem:[%s10348_s10 + $0x188] sm:$0xff] %v7106_v38  ;;  %v7109_v39 = vadd.f32 %v6026_v32, %v691_v55  ;;  %v6028_v31 = vadd.f32 %v6027_v2, %v5915_v45  ;;  %v12827_v37 = vld [vmem:[#allocation60_spill] sm:$0xff] }
 0x2ff   : > { %v692_v49 = vld [vmem:[%s10348_s10 + $0x1a8] sm:$0xff]  ;;  %v5919_v13 = vadd.f32 %v12822_v6, %v5806_v51  ;;  %v5921_v58 = vadd.f32 %v12825_v27, %v5808_v21  ;;  %v6031_v47 = vpop.f32.mrf.mxu0  ;;  %v9662_v56 = vld [vmem:[%s10330_s11 + $0x418] ss:$72 sps:$4 sm:$0xff]   ;;  %v9664_v45 = vld [vmem:[%s10330_s11 + $0x3c] ss:$72 sps:$4 sm:$0xff]  }
 0x300   : > { %v11894_v5 = vpop.f32.mrf.mxu1  ;;  %6708 = vmatmul.mubr.bf16.gmra.mxu0 %v9662_v56  ;;  %v9663_v14 = vld [vmem:[%s10330_s11 + $0x420] ss:$72 sps:$4 sm:$0xff]   ;;  %7173 = vst [vmem:[%s10348_s10 + $0x1a0] sm:$0xff] %v7109_v39  ;;  %v7110_v15 = vadd.f32 %v6028_v31, %v692_v49  ;;  %v9665_v38 = vld [vmem:[%s10330_s11 + $0x44] ss:$72 sps:$4 sm:$0xff]   ;;  %v12829_v49 = vld [vmem:[#allocation61_spill] sm:$0xff] }
 0x301   : > { %6821 = vmatmul.mubr.bf16.gmra.mxu1 %v9663_v14  ;;  %v12826_v34 = vld [vmem:[#allocation31_spill] sm:$0xff]  ;;  %v6032_v51 = vadd.f32 %v6031_v47, %v5919_v13  ;;  %6860 = vmatpush2.bf16.msra.mxu0 %v9540_v10  ;;  %v6033_v24 = vpop.f32.mrf.mxu0  ;;  %v699_v32 = vld [vmem:[%s10348_s10 + $0x1e0] sm:$0xff] }
 0x302   : > { %v5812_v54 = vadd.f32 %v12827_v37, %v12826_v34  ;;  %6973 = vmatpush2.bf16.msra.mxu1 %v9543_v48  ;;  %v9546_v57 = vld [vmem:[%s10332_s7 + $0xf08] ss:$16 sps:$4 sm:$0xff]   ;;  %v11904_v16 = vpop.f32.mrf.mxu1  ;;  %6861 = vmatprep.subr.bf16.mxu0 %v9548_v43  ;;  %7174 = vst [vmem:[%s10348_s10 + $0x1a8] sm:$0xff] %v7110_v15  ;;  %v6034_v52 = vadd.f32 %v6033_v24, %v5921_v58  ;;  %v12830_v47 = vld [vmem:[#allocation62_spill] sm:$0xff]  ;;  %v9668_v14 = vld [vmem:[%s10330_s11 + $0xcc] ss:$72 sps:$4 sm:$0xff]  }
 0x303   : > { %v9549_v8 = vld [vmem:[%s10332_s7 + $0x1108] ss:$16 sps:$4 sm:$0xff]   ;;  %6974 = vmatprep.subr.bf16.mxu1 %v9551_v3  ;;  %v7113_v28 = vadd.f32 %v6032_v51, %v695_v61  ;;  %6863 = vmatprep.mubr.bf16.mxu0 %v9664_v45  ;;  %v6035_v10 = vpop.f32.mrf.mxu0  ;;  %v9669_v34 = vld [vmem:[%s10330_s11 + $0xd4] ss:$72 sps:$4 sm:$0xff]  }
 0x304   : > { %v696_v59 = vld [vmem:[%s10348_s10 + $0x1c8] sm:$0xff]  ;;  %6976 = vmatprep.mubr.bf16.mxu1 %v9665_v38  ;;  %v11911_v48 = vpop.f32.mrf.mxu1  ;;  %v5925_v2 = vadd.f32 %v12829_v49, %v5812_v54  ;;  %v9666_v27 = vld [vmem:[%s10330_s11 + $0x38] ss:$72 sps:$4 sm:$0xff]  }
 0x305   : > { %v12828_v21 = vld [vmem:[#allocation59_spill] sm:$0xff]  ;;  %7177 = vst [vmem:[%s10348_s10 + $0x1c0] sm:$0xff] %v7113_v28  ;;  %v7114_v43 = vadd.f32 %v6034_v52, %v696_v59  ;;  %6862 = vmatpush2.bf16.msra.mxu0 %v9546_v57  ;;  %v6037_v13 = vpop.f32.mrf.mxu0 }
 0x306   : > { %v5923_v55 = vadd.f32 %v12828_v21, %v5810_v44  ;;  %6975 = vmatpush2.bf16.msra.mxu1 %v9549_v8  ;;  %v700_v6 = vld [vmem:[%s10348_s10 + $0x1e8] sm:$0xff]  ;;  %v11916_v50 = vpop.f32.mrf.mxu1  ;;  %v6038_v44 = vadd.f32 %v6037_v13, %v5925_v2  ;;  %v9672_v2 = vld [vmem:[%s10330_s11 + $0x15c] ss:$72 sps:$4 sm:$0xff]  }
 0x307   : > { %7178 = vst [vmem:[%s10348_s10 + $0x1c8] sm:$0xff] %v7114_v43  ;;  %v6187_v39 = vpop.f32.mrf.mxu0  ;;  %v9667_v58 = vld [vmem:[%s10330_s11 + $0x40] ss:$72 sps:$4 sm:$0xff]   ;;  %v9673_v43 = vld [vmem:[%s10330_s11 + $0x164] ss:$72 sps:$4 sm:$0xff]  }
 0x308   : > { %v6036_v3 = vadd.f32 %v6035_v10, %v5923_v55  ;;  %v6300_v31 = vpop.f32.mrf.mxu1  ;;  %6864 = vmatmul.mubr.bf16.vlgmr.msra.gmra.mxu0 %v9666_v27  ;;  %v7118_v61 = vadd.f32 %v6038_v44, %v700_v6  ;;  %v6188_v56 = vadd.f32 %v6187_v39, %v12830_v47  ;;  %v9671_v10 = vld [vmem:[%s10330_s11 + $0xd0] ss:$72 sps:$4 sm:$0xff]  }
 0x309   : > { %6977 = vmatmul.mubr.bf16.vlgmr.msra.gmra.mxu1 %v9667_v58  ;;  %6873 = vmatprep.mubr.bf16.mxu0 %v9668_v14  ;;  %v6189_v37 = vpop.f32.mrf.mxu0  ;;  %v9675_v14 = vld [vmem:[%s10330_s11 + $0x160] ss:$72 sps:$4 sm:$0xff]  }
 0x30a   : > { %v7117_v53 = vadd.f32 %v6036_v3, %v699_v32  ;;  %6986 = vmatprep.mubr.bf16.mxu1 %v9669_v34  ;;  %v6302_v54 = vpop.f32.mrf.mxu1  ;;  %7182 = vst [vmem:[%s10348_s10 + $0x1e8] sm:$0xff] %v7118_v61  ;;  %v11926_v15 = vadd.f32 %v6300_v31, %v6188_v56  ;;  %v6190_v51 = vadd.f32 %v6189_v37, %v11626_v62  ;;  %v9670_v32 = vld [vmem:[%s10330_s11 + $0xc8] ss:$72 sps:$4 sm:$0xff]   ;;  %v9674_v56 = vld [vmem:[%s10330_s11 + $0x158] ss:$72 sps:$4 sm:$0xff]  }
 0x30b   : > { %v6191_v57 = vpop.f32.mrf.mxu0  ;;  %v9676_v37 = vld [vmem:[%s10330_s11 + $0x1ec] ss:$72 sps:$4 sm:$0xff]  }
 0x30c   : > { %7181 = vst [vmem:[%s10348_s10 + $0x1e0] sm:$0xff] %v7117_v53  ;;  %v6304_v8 = vpop.f32.mrf.mxu1  ;;  %v11929_v59 = vadd.f32 %v6302_v54, %v6190_v51  ;;  %v6192_v24 = vadd.f32 %v6191_v57, %v11637_v17  ;;  %v9677_v54 = vld [vmem:[%s10330_s11 + $0x1f4] ss:$72 sps:$4 sm:$0xff]  }
 0x30d   : > { %v6193_v21 = vpop.f32.mrf.mxu0 }
 0x30e   : > { %v6306_v55 = vpop.f32.mrf.mxu1  ;;  %v11932_v28 = vadd.f32 %v6304_v8, %v6192_v24  ;;  %v6194_v52 = vadd.f32 %v6193_v21, %v11646_v30 }
 0x30f   : > { %v6197_v45 = vpop.f32.mrf.mxu0 }
 0x310   : > { %v6310_v38 = vpop.f32.mrf.mxu1  ;;  %6874 = vmatmul.mubr.bf16.gmra.mxu0 %v9670_v32  ;;  %v11937_v62 = vadd.f32 %v6306_v55, %v6194_v52  ;;  %v6198_v49 = vadd.f32 %v6197_v45, %v11654_v11 }
 0x311   : > { %6987 = vmatmul.mubr.bf16.gmra.mxu1 %v9671_v10  ;;  %6883 = vmatprep.mubr.bf16.mxu0 %v9672_v2  ;;  %v6199_v17 = vpop.f32.mrf.mxu0  ;;  %v9679_v2 = vld [vmem:[%s10330_s11 + $0x1f0] ss:$72 sps:$4 sm:$0xff]  }
 0x312   : > { %6996 = vmatprep.mubr.bf16.mxu1 %v9673_v43  ;;  %v6312_v3 = vpop.f32.mrf.mxu1  ;;  %v11942_v6 = vadd.f32 %v6310_v38, %v6198_v49  ;;  %v6200_v30 = vadd.f32 %v6199_v17, %v11665_v36  ;;  %v9678_v49 = vld [vmem:[%s10330_s11 + $0x1e8] ss:$72 sps:$4 sm:$0xff]   ;;  %v9680_v17 = vld [vmem:[%s10330_s11 + $0x27c] ss:$72 sps:$4 sm:$0xff]  }
 0x313   : > { %v6201_v13 = vpop.f32.mrf.mxu0 }
 0x314   : > { %v6314_v53 = vpop.f32.mrf.mxu1  ;;  %v11945_v44 = vadd.f32 %v6312_v3, %v6200_v30  ;;  %v6202_v11 = vadd.f32 %v6201_v13, %v11677_v60  ;;  %v9681_v3 = vld [vmem:[%s10330_s11 + $0x284] ss:$72 sps:$4 sm:$0xff]  }
 0x315   : > { %v6203_v39 = vpop.f32.mrf.mxu0 }
 0x316   : > { %v6316_v31 = vpop.f32.mrf.mxu1  ;;  %v11948_v27 = vadd.f32 %v6314_v53, %v6202_v11  ;;  %v6204_v58 = vadd.f32 %v6203_v39, %v11686_v18 }
 0x317   : > { %v6207_v61 = vpop.f32.mrf.mxu0 }
 0x318   : > { %v6320_v47 = vpop.f32.mrf.mxu1  ;;  %6884 = vmatmul.mubr.bf16.gmra.mxu0 %v9674_v56  ;;  %v11953_v36 = vadd.f32 %v6316_v31, %v6204_v58  ;;  %v6208_v34 = vadd.f32 %v6207_v61, %v11694_v1 }
 0x319   : > { %6997 = vmatmul.mubr.bf16.gmra.mxu1 %v9675_v14  ;;  %6893 = vmatprep.mubr.bf16.mxu0 %v9676_v37  ;;  %v6209_v60 = vpop.f32.mrf.mxu0  ;;  %v9683_v37 = vld [vmem:[%s10330_s11 + $0x280] ss:$72 sps:$4 sm:$0xff]  }
 0x31a   : > { %7006 = vmatprep.mubr.bf16.mxu1 %v9677_v54  ;;  %v6322_v51 = vpop.f32.mrf.mxu1  ;;  %v11958_v57 = vadd.f32 %v6320_v47, %v6208_v34  ;;  %v6210_v18 = vadd.f32 %v6209_v60, %v11705_v12  ;;  %v9682_v34 = vld [vmem:[%s10330_s11 + $0x278] ss:$72 sps:$4 sm:$0xff]   ;;  %v9684_v60 = vld [vmem:[%s10330_s11 + $0x30c] ss:$72 sps:$4 sm:$0xff]  }
 0x31b   : > { %v6211_v8 = vpop.f32.mrf.mxu0 }
 0x31c   : > { %v6324_v24 = vpop.f32.mrf.mxu1  ;;  %v11961_v21 = vadd.f32 %v6322_v51, %v6210_v18  ;;  %v6212_v1 = vadd.f32 %v6211_v8, %v11717_v0  ;;  %v9685_v51 = vld [vmem:[%s10330_s11 + $0x314] ss:$72 sps:$4 sm:$0xff]  }
 0x31d   : > { %v6213_v55 = vpop.f32.mrf.mxu0 }
 0x31e   : > { %v6326_v52 = vpop.f32.mrf.mxu1  ;;  %v11964_v45 = vadd.f32 %v6324_v24, %v6212_v1  ;;  %v6214_v38 = vadd.f32 %v6213_v55, %v11726_v20 }
 0x31f   : > { %v6217_v32 = vpop.f32.mrf.mxu0 }
 0x320   : > { %v6330_v10 = vpop.f32.mrf.mxu1  ;;  %6894 = vmatmul.mubr.bf16.gmra.mxu0 %v9678_v49  ;;  %v11969_v12 = vadd.f32 %v6326_v52, %v6214_v38  ;;  %v6218_v43 = vadd.f32 %v6217_v32, %v11734_v41 }
 0x321   : > { %7007 = vmatmul.mubr.bf16.gmra.mxu1 %v9679_v2  ;;  %6903 = vmatprep.mubr.bf16.mxu0 %v9680_v17  ;;  %v6219_v0 = vpop.f32.mrf.mxu0  ;;  %v9687_v17 = vld [vmem:[%s10330_s11 + $0x310] ss:$72 sps:$4 sm:$0xff]  }
 0x322   : > { %7016 = vmatprep.mubr.bf16.mxu1 %v9681_v3  ;;  %v6332_v30 = vpop.f32.mrf.mxu1  ;;  %v11974_v13 = vadd.f32 %v6330_v10, %v6218_v43  ;;  %v6220_v20 = vadd.f32 %v6219_v0, %v11745_v9  ;;  %v9686_v43 = vld [vmem:[%s10330_s11 + $0x308] ss:$72 sps:$4 sm:$0xff]   ;;  %v9688_v0 = vld [vmem:[%s10330_s11 + $0x39c] ss:$72 sps:$4 sm:$0xff]  }
 0x323   : > { %v6221_v53 = vpop.f32.mrf.mxu0 }
 0x324   : > { %v6334_v11 = vpop.f32.mrf.mxu1  ;;  %v11977_v39 = vadd.f32 %v6332_v30, %v6220_v20  ;;  %v6222_v41 = vadd.f32 %v6221_v53, %v11757_v63  ;;  %v9689_v30 = vld [vmem:[%s10330_s11 + $0x3a4] ss:$72 sps:$4 sm:$0xff]  }
 0x325   : > { %v6223_v31 = vpop.f32.mrf.mxu0 }
 0x326   : > { %v6336_v58 = vpop.f32.mrf.mxu1  ;;  %v11980_v61 = vadd.f32 %v6334_v11, %v6222_v41  ;;  %v6224_v47 = vadd.f32 %v6223_v31, %v11766_v7 }
 0x327   : > { %v6227_v56 = vpop.f32.mrf.mxu0 }
 0x328   : > { %v6340_v14 = vpop.f32.mrf.mxu1  ;;  %6904 = vmatmul.mubr.bf16.gmra.mxu0 %v9682_v34  ;;  %v11985_v9 = vadd.f32 %v6336_v58, %v6224_v47  ;;  %v6228_v54 = vadd.f32 %v6227_v56, %v11774_v42 }
 0x329   : > { %7017 = vmatmul.mubr.bf16.gmra.mxu1 %v9683_v37  ;;  %6913 = vmatprep.mubr.bf16.mxu0 %v9684_v60  ;;  %v6229_v63 = vpop.f32.mrf.mxu0  ;;  %v9691_v60 = vld [vmem:[%s10330_s11 + $0x3a0] ss:$72 sps:$4 sm:$0xff]  }
 0x32a   : > { %7026 = vmatprep.mubr.bf16.mxu1 %v9685_v51  ;;  %v6342_v18 = vpop.f32.mrf.mxu1  ;;  %v11990_v8 = vadd.f32 %v6340_v14, %v6228_v54  ;;  %v6230_v7 = vadd.f32 %v6229_v63, %v11785_v23  ;;  %v9690_v54 = vld [vmem:[%s10330_s11 + $0x398] ss:$72 sps:$4 sm:$0xff]   ;;  %v9692_v63 = vld [vmem:[%s10330_s11 + $0x42c] ss:$72 sps:$4 sm:$0xff]  }
 0x32b   : > { %v6231_v24 = vpop.f32.mrf.mxu0 }
 0x32c   : > { %v6344_v1 = vpop.f32.mrf.mxu1  ;;  %v11993_v55 = vadd.f32 %v6342_v18, %v6230_v7  ;;  %v6232_v42 = vadd.f32 %v6231_v24, %v11797_v29  ;;  %v9693_v18 = vld [vmem:[%s10330_s11 + $0x434] ss:$72 sps:$4 sm:$0xff]  }
 0x32d   : > { %v6233_v52 = vpop.f32.mrf.mxu0 }
 0x32e   : > { %v6346_v38 = vpop.f32.mrf.mxu1  ;;  %v11996_v32 = vadd.f32 %v6344_v1, %v6232_v42  ;;  %v6234_v10 = vadd.f32 %v6233_v52, %v11806_v4 }
 0x32f   : > { %v6237_v49 = vpop.f32.mrf.mxu0 }
 0x330   : > { %v6350_v2 = vpop.f32.mrf.mxu1  ;;  %6914 = vmatmul.mubr.bf16.gmra.mxu0 %v9686_v43  ;;  %v12001_v23 = vadd.f32 %v6346_v38, %v6234_v10  ;;  %v6238_v3 = vadd.f32 %v6237_v49, %v11814_v26 }
 0x331   : > { %7027 = vmatmul.mubr.bf16.gmra.mxu1 %v9687_v17  ;;  %6923 = vmatprep.mubr.bf16.mxu0 %v9688_v0  ;;  %v6239_v29 = vpop.f32.mrf.mxu0  ;;  %v9695_v0 = vld [vmem:[%s10330_s11 + $0x430] ss:$72 sps:$4 sm:$0xff]  }
 0x332   : > { %7036 = vmatprep.mubr.bf16.mxu1 %v9689_v30  ;;  %v6352_v20 = vpop.f32.mrf.mxu1  ;;  %v12006_v53 = vadd.f32 %v6350_v2, %v6238_v3  ;;  %v6240_v4 = vadd.f32 %v6239_v29, %v11825_v35  ;;  %v9694_v3 = vld [vmem:[%s10330_s11 + $0x428] ss:$72 sps:$4 sm:$0xff]  }
 0x333   : > { %v6241_v11 = vpop.f32.mrf.mxu0 }
 0x334   : > { %v6354_v41 = vpop.f32.mrf.mxu1  ;;  %v12009_v31 = vadd.f32 %v6352_v20, %v6240_v4  ;;  %v6242_v26 = vadd.f32 %v6241_v11, %v11837_v25 }
 0x335   : > { %v6243_v58 = vpop.f32.mrf.mxu0 }
 0x336   : > { %v6356_v47 = vpop.f32.mrf.mxu1  ;;  %v12012_v56 = vadd.f32 %v6354_v41, %v6242_v26  ;;  %v6244_v14 = vadd.f32 %v6243_v58, %v11846_v33 }
 0x337   : > { %v6247_v34 = vpop.f32.mrf.mxu0 }
 0x338   : > { %v6360_v37 = vpop.f32.mrf.mxu1  ;;  %6924 = vmatmul.mubr.bf16.gmra.mxu0 %v9690_v54  ;;  %v12017_v35 = vadd.f32 %v6356_v47, %v6244_v14  ;;  %v6248_v51 = vadd.f32 %v6247_v34, %v11854_v46 }
 0x339   : > { %7037 = vmatmul.mubr.bf16.gmra.mxu1 %v9691_v60  ;;  %6933 = vmatprep.mubr.bf16.mxu0 %v9692_v63  ;;  %v6249_v25 = vpop.f32.mrf.mxu0 }
 0x33a   : > { %7046 = vmatprep.mubr.bf16.mxu1 %v9693_v18  ;;  %v6362_v7 = vpop.f32.mrf.mxu1  ;;  %v12022_v24 = vadd.f32 %v6360_v37, %v6248_v51  ;;  %v6250_v33 = vadd.f32 %v6249_v25, %v11865_v19 }
 0x33b   : > { %v6251_v1 = vpop.f32.mrf.mxu0 }
 0x33c   : > { %v6364_v42 = vpop.f32.mrf.mxu1  ;;  %v12025_v52 = vadd.f32 %v6362_v7, %v6250_v33  ;;  %v6252_v38 = vadd.f32 %v6251_v1, %v11877_v40 }
 0x33d   : > { %v6253_v10 = vpop.f32.mrf.mxu0 }
 0x33e   : > { %v6366_v46 = vpop.f32.mrf.mxu1  ;;  %v12028_v49 = vadd.f32 %v6364_v42, %v6252_v38  ;;  %v6254_v2 = vadd.f32 %v6253_v10, %v11884_v22 }
 0x33f   : > { %v6257_v43 = vpop.f32.mrf.mxu0 }
 0x340   : > { %v6370_v17 = vpop.f32.mrf.mxu1  ;;  %6934 = vmatmul.mubr.bf16.gmra.mxu0 %v9694_v3  ;;  %v12033_v30 = vadd.f32 %v6366_v46, %v6254_v2  ;;  %v6258_v19 = vadd.f32 %v6257_v43, %v11894_v5 }
 0x341   : > { %7047 = vmatmul.mubr.bf16.gmra.mxu1 %v9695_v0  ;;  %v6259_v29 = vpop.f32.mrf.mxu0 }
 0x342   : > { %v6372_v20 = vpop.f32.mrf.mxu1  ;;  %v12036_v4 = vadd.f32 %v6370_v17, %v6258_v19  ;;  %v6260_v40 = vadd.f32 %v6259_v29, %v11904_v16 }
 0x343   : > { %v6261_v11 = vpop.f32.mrf.mxu0 }
 0x344   : > { %v6374_v41 = vpop.f32.mrf.mxu1  ;;  %v12039_v26 = vadd.f32 %v6372_v20, %v6260_v40  ;;  %v6262_v22 = vadd.f32 %v6261_v11, %v11911_v48 }
 0x345   : > { %v6263_v58 = vpop.f32.mrf.mxu0 }
 0x346   : > { %v6376_v47 = vpop.f32.mrf.mxu1  ;;  %v12042_v14 = vadd.f32 %v6374_v41, %v6262_v22  ;;  %v6264_v34 = vadd.f32 %v6263_v58, %v11916_v50 }
 0x347   : > { %v6413_v37 = vpop.f32.mrf.mxu0 }
 0x348   : > { %v6526_v5 = vpop.f32.mrf.mxu1  ;;  %v12045_v54 = vadd.f32 %v6376_v47, %v6264_v34  ;;  %v6414_v60 = vadd.f32 %v6413_v37, %v11926_v15 }
 0x349   : > { %v6415_v51 = vpop.f32.mrf.mxu0 }
 0x34a   : > { %v6528_v16 = vpop.f32.mrf.mxu1  ;;  %v12048_v63 = vadd.f32 %v6526_v5, %v6414_v60  ;;  %v6416_v18 = vadd.f32 %v6415_v51, %v11929_v59 }
 0x34b   : > { %v6417_v25 = vpop.f32.mrf.mxu0 }
 0x34c   : > { %v6530_v48 = vpop.f32.mrf.mxu1  ;;  %v12051_v7 = vadd.f32 %v6528_v16, %v6416_v18  ;;  %v6418_v33 = vadd.f32 %v6417_v25, %v11932_v28 }
 0x34d   : > { %v6419_v1 = vpop.f32.mrf.mxu0 }
 0x34e   : > { %v6532_v50 = vpop.f32.mrf.mxu1  ;;  %v12054_v42 = vadd.f32 %v6530_v48, %v6418_v33  ;;  %v6420_v38 = vadd.f32 %v6419_v1, %v11937_v62 }
 0x34f   : > { %v6423_v10 = vpop.f32.mrf.mxu0 }
 0x350   : > { %v6536_v15 = vpop.f32.mrf.mxu1  ;;  %v12057_v46 = vadd.f32 %v6532_v50, %v6420_v38  ;;  %v6424_v2 = vadd.f32 %v6423_v10, %v11942_v6 }
 0x351   : > { %v6425_v43 = vpop.f32.mrf.mxu0 }
 0x352   : > { %v6538_v59 = vpop.f32.mrf.mxu1  ;;  %v12060_v17 = vadd.f32 %v6536_v15, %v6424_v2  ;;  %v6426_v3 = vadd.f32 %v6425_v43, %v11945_v44 }
 0x353   : > { %v6427_v0 = vpop.f32.mrf.mxu0 }
 0x354   : > { %v6540_v28 = vpop.f32.mrf.mxu1  ;;  %v12063_v19 = vadd.f32 %v6538_v59, %v6426_v3  ;;  %v6428_v29 = vadd.f32 %v6427_v0, %v11948_v27 }
 0x355   : > { %v6429_v20 = vpop.f32.mrf.mxu0 }
 0x356   : > { %v6542_v62 = vpop.f32.mrf.mxu1  ;;  %v12066_v40 = vadd.f32 %v6540_v28, %v6428_v29  ;;  %v6430_v11 = vadd.f32 %v6429_v20, %v11953_v36 }
 0x357   : > { %v6433_v41 = vpop.f32.mrf.mxu0 }
 0x358   : > { %v6546_v6 = vpop.f32.mrf.mxu1  ;;  %v12069_v22 = vadd.f32 %v6542_v62, %v6430_v11  ;;  %v6434_v58 = vadd.f32 %v6433_v41, %v11958_v57 }
 0x359   : > { %v6435_v47 = vpop.f32.mrf.mxu0 }
 0x35a   : > { %v6548_v44 = vpop.f32.mrf.mxu1  ;;  %v12072_v34 = vadd.f32 %v6546_v6, %v6434_v58  ;;  %v6436_v37 = vadd.f32 %v6435_v47, %v11961_v21 }
 0x35b   : > { %v6437_v5 = vpop.f32.mrf.mxu0 }
 0x35c   : > { %v6550_v27 = vpop.f32.mrf.mxu1  ;;  %v12075_v60 = vadd.f32 %v6548_v44, %v6436_v37  ;;  %v6438_v51 = vadd.f32 %v6437_v5, %v11964_v45 }
 0x35d   : > { %v6439_v16 = vpop.f32.mrf.mxu0 }
 0x35e   : > { %v6552_v36 = vpop.f32.mrf.mxu1  ;;  %v12078_v18 = vadd.f32 %v6550_v27, %v6438_v51  ;;  %v6440_v25 = vadd.f32 %v6439_v16, %v11969_v12 }
 0x35f   : > { %v6443_v48 = vpop.f32.mrf.mxu0 }
 0x360   : > { %v6556_v57 = vpop.f32.mrf.mxu1  ;;  %v12081_v33 = vadd.f32 %v6552_v36, %v6440_v25  ;;  %v6444_v1 = vadd.f32 %v6443_v48, %v11974_v13 }
 0x361   : > { %v6445_v50 = vpop.f32.mrf.mxu0 }
 0x362   : > { %v6558_v21 = vpop.f32.mrf.mxu1  ;;  %v12084_v38 = vadd.f32 %v6556_v57, %v6444_v1  ;;  %v6446_v10 = vadd.f32 %v6445_v50, %v11977_v39 }
 0x363   : > { %v6447_v15 = vpop.f32.mrf.mxu0 }
 0x364   : > { %v6560_v45 = vpop.f32.mrf.mxu1  ;;  %v12087_v2 = vadd.f32 %v6558_v21, %v6446_v10  ;;  %v6448_v43 = vadd.f32 %v6447_v15, %v11980_v61 }
 0x365   : > { %v6449_v59 = vpop.f32.mrf.mxu0 }
 0x366   : > { %v6562_v12 = vpop.f32.mrf.mxu1  ;;  %v12090_v3 = vadd.f32 %v6560_v45, %v6448_v43  ;;  %v6450_v0 = vadd.f32 %v6449_v59, %v11985_v9 }
 0x367   : > { %v6453_v28 = vpop.f32.mrf.mxu0 }
 0x368   : > { %v6566_v13 = vpop.f32.mrf.mxu1  ;;  %v12093_v29 = vadd.f32 %v6562_v12, %v6450_v0  ;;  %v6454_v20 = vadd.f32 %v6453_v28, %v11990_v8 }
 0x369   : > { %v6455_v62 = vpop.f32.mrf.mxu0 }
 0x36a   : > { %v6568_v39 = vpop.f32.mrf.mxu1  ;;  %v12096_v11 = vadd.f32 %v6566_v13, %v6454_v20  ;;  %v6456_v41 = vadd.f32 %v6455_v62, %v11993_v55 }
 0x36b   : > { %v6457_v6 = vpop.f32.mrf.mxu0 }
 0x36c   : > { %v6570_v61 = vpop.f32.mrf.mxu1  ;;  %v12099_v58 = vadd.f32 %v6568_v39, %v6456_v41  ;;  %v6458_v47 = vadd.f32 %v6457_v6, %v11996_v32 }
 0x36d   : > { %v6459_v44 = vpop.f32.mrf.mxu0 }
 0x36e   : > { %v6572_v9 = vpop.f32.mrf.mxu1  ;;  %v12102_v37 = vadd.f32 %v6570_v61, %v6458_v47  ;;  %v6460_v5 = vadd.f32 %v6459_v44, %v12001_v23 }
 0x36f   : > { %v6463_v27 = vpop.f32.mrf.mxu0 }
 0x370   : > { %12831 = vst [vmem:[#allocation32_spill] sm:$0xff] %v12102_v37  ;;  %v6576_v8 = vpop.f32.mrf.mxu1  ;;  %v12105_v51 = vadd.f32 %v6572_v9, %v6460_v5  ;;  %v6464_v16 = vadd.f32 %v6463_v27, %v12006_v53 }
 0x371   : > { %v6465_v36 = vpop.f32.mrf.mxu0 }
 0x372   : > { %12832 = vst [vmem:[#allocation18_spill] sm:$0xff] %v12105_v51  ;;  %v6578_v55 = vpop.f32.mrf.mxu1  ;;  %v12108_v25 = vadd.f32 %v6576_v8, %v6464_v16  ;;  %v6466_v48 = vadd.f32 %v6465_v36, %v12009_v31 }
 0x373   : > { %v6467_v57 = vpop.f32.mrf.mxu0 }
 0x374   : > { %12833 = vst [vmem:[#allocation35_spill] sm:$0xff] %v12108_v25  ;;  %v6580_v32 = vpop.f32.mrf.mxu1  ;;  %v12111_v1 = vadd.f32 %v6578_v55, %v6466_v48  ;;  %v6468_v50 = vadd.f32 %v6467_v57, %v12012_v56 }
 0x375   : > { %v6469_v21 = vpop.f32.mrf.mxu0 }
 0x376   : > { %12834 = vst [vmem:[#allocation33_spill] sm:$0xff] %v12111_v1  ;;  %v6582_v23 = vpop.f32.mrf.mxu1  ;;  %v12114_v10 = vadd.f32 %v6580_v32, %v6468_v50  ;;  %v6470_v15 = vadd.f32 %v6469_v21, %v12017_v35 }
 0x377   : > { %v6473_v45 = vpop.f32.mrf.mxu0 }
 0x378   : > { %12835 = vst [vmem:[#allocation34_spill] sm:$0xff] %v12114_v10  ;;  %v6586_v53 = vpop.f32.mrf.mxu1  ;;  %v12117_v43 = vadd.f32 %v6582_v23, %v6470_v15  ;;  %v6474_v59 = vadd.f32 %v6473_v45, %v12022_v24 }
 0x379   : > { %v6475_v12 = vpop.f32.mrf.mxu0 }
 0x37a   : > { %12836 = vst [vmem:[#allocation19_spill] sm:$0xff] %v12117_v43  ;;  %v6588_v31 = vpop.f32.mrf.mxu1  ;;  %v12120_v0 = vadd.f32 %v6586_v53, %v6474_v59  ;;  %v6476_v28 = vadd.f32 %v6475_v12, %v12025_v52 }
 0x37b   : > { %v6477_v13 = vpop.f32.mrf.mxu0 }
 0x37c   : > { %12837 = vst [vmem:[#allocation37_spill] sm:$0xff] %v12120_v0  ;;  %v6590_v56 = vpop.f32.mrf.mxu1  ;;  %v12123_v20 = vadd.f32 %v6588_v31, %v6476_v28  ;;  %v6478_v62 = vadd.f32 %v6477_v13, %v12028_v49 }
 0x37d   : > { %v6479_v39 = vpop.f32.mrf.mxu0 }
 0x37e   : > { %12838 = vst [vmem:[#allocation36_spill] sm:$0xff] %v12123_v20  ;;  %v6592_v35 = vpop.f32.mrf.mxu1  ;;  %v12126_v41 = vadd.f32 %v6590_v56, %v6478_v62  ;;  %v6480_v6 = vadd.f32 %v6479_v39, %v12033_v30 }
 0x37f   : > { %v6483_v61 = vpop.f32.mrf.mxu0 }
 0x380   : > { %12839 = vst [vmem:[#allocation20_spill] sm:$0xff] %v12126_v41  ;;  %v6596_v24 = vpop.f32.mrf.mxu1  ;;  %v12129_v47 = vadd.f32 %v6592_v35, %v6480_v6  ;;  %v6484_v44 = vadd.f32 %v6483_v61, %v12036_v4 }
 0x381   : > { %v6485_v9 = vpop.f32.mrf.mxu0 }
 0x382   : > { %12840 = vst [vmem:[#allocation39_spill] sm:$0xff] %v12129_v47  ;;  %v6598_v52 = vpop.f32.mrf.mxu1  ;;  %v12132_v5 = vadd.f32 %v6596_v24, %v6484_v44  ;;  %v6486_v27 = vadd.f32 %v6485_v9, %v12039_v26 }
 0x383   : > { %v6487_v8 = vpop.f32.mrf.mxu0 }
 0x384   : > { %12841 = vst [vmem:[#allocation21_spill] sm:$0xff] %v12132_v5  ;;  %v6600_v49 = vpop.f32.mrf.mxu1  ;;  %v12135_v16 = vadd.f32 %v6598_v52, %v6486_v27  ;;  %v6488_v36 = vadd.f32 %v6487_v8, %v12042_v14 }
 0x385   : > { %v6489_v55 = vpop.f32.mrf.mxu0 }
 0x386   : > { %12842 = vst [vmem:[#allocation41_spill] sm:$0xff] %v12135_v16  ;;  %v6602_v30 = vpop.f32.mrf.mxu1  ;;  %v12138_v48 = vadd.f32 %v6600_v49, %v6488_v36  ;;  %v6490_v57 = vadd.f32 %v6489_v55, %v12045_v54 }
 0x387   : > { %v6639_v32 = vpop.f32.mrf.mxu0 }
 0x388   : > { %12843 = vst [vmem:[#allocation38_spill] sm:$0xff] %v12138_v48  ;;  %v12141_v4 = vpop.f32.mrf.mxu1  ;;  %v12143_v50 = vadd.f32 %v6602_v30, %v6490_v57 }
 0x389   : > { %v6641_v21 = vpop.f32.mrf.mxu0 }
 0x38a   : > { %12844 = vst [vmem:[#allocation22_spill] sm:$0xff] %v12143_v50  ;;  %v12145_v23 = vpop.f32.mrf.mxu1 }
 0x38b   : > { %v12147_v26 = vpop.f32.mrf.mxu0 }
 0x38c   : > { %v12149_v15 = vpop.f32.mrf.mxu1 }
 0x38d   : > { %v12151_v45 = vpop.f32.mrf.mxu0 }
 0x38e   : > { %v12153_v14 = vpop.f32.mrf.mxu1 }
 0x38f   : > { %v12155_v53 = vpop.f32.mrf.mxu0 }
 0x390   : > { %v12157_v59 = vpop.f32.mrf.mxu1 }
 0x391   : > { %v12159_v54 = vpop.f32.mrf.mxu0 }
 0x392   : > { %v12161_v12 = vpop.f32.mrf.mxu1 }
 0x393   : > { %v12163_v31 = vpop.f32.mrf.mxu0 }
 0x394   : > { %v12165_v28 = vpop.f32.mrf.mxu1 }
 0x395   : > { %v12167_v13 = vpop.f32.mrf.mxu0 }
 0x396   : > { %v12169_v56 = vpop.f32.mrf.mxu1 }
 0x397   : > { %v12171_v62 = vpop.f32.mrf.mxu0 }
 0x398   : > { %v12173_v39 = vpop.f32.mrf.mxu1 }
 0x399   : > { %v12175_v35 = vpop.f32.mrf.mxu0 }
 0x39a   : > { %v12177_v6 = vpop.f32.mrf.mxu1 }
 0x39b   : > { %v12179_v61 = vpop.f32.mrf.mxu0 }
 0x39c   : > { %v12181_v24 = vpop.f32.mrf.mxu1 }
 0x39d   : > { %v12183_v44 = vpop.f32.mrf.mxu0 }
 0x39e   : > { %v12185_v9 = vpop.f32.mrf.mxu1 }
 0x39f   : > { %v12187_v52 = vpop.f32.mrf.mxu0 }
 0x3a0   : > { %v12189_v27 = vpop.f32.mrf.mxu1 }
 0x3a1   : > { %v12191_v8 = vpop.f32.mrf.mxu0 }
 0x3a2   : > { %v12193_v49 = vpop.f32.mrf.mxu1 }
 0x3a3   : > { %v12195_v36 = vpop.f32.mrf.mxu0 }
 0x3a4   : > { %v12197_v55 = vpop.f32.mrf.mxu1 }
 0x3a5   : > { %v12199_v30 = vpop.f32.mrf.mxu0 }
 0x3a6   : > { %v12201_v57 = vpop.f32.mrf.mxu1 }
 0x3a7   : > { %v12203_v50 = vpop.f32.mrf.mxu0 }
 0x3a8   : > { %v12205_v48 = vpop.f32.mrf.mxu1 }
 0x3a9   : > { %v12207_v16 = vpop.f32.mrf.mxu0 }
 0x3aa   : > { %v12209_v5 = vpop.f32.mrf.mxu1 }
 0x3ab   : > { %12845 = vst [vmem:[#allocation43_spill] sm:$0xff] %v12209_v5  ;;  %v12211_v47 = vpop.f32.mrf.mxu0 }
 0x3ac   : > { %12846 = vst [vmem:[#allocation40_spill] sm:$0xff] %v12211_v47  ;;  %v12213_v41 = vpop.f32.mrf.mxu1 }
 0x3ad   : > { %12847 = vst [vmem:[#allocation42_spill] sm:$0xff] %v12213_v41  ;;  %v12215_v20 = vpop.f32.mrf.mxu0 }
 0x3ae   : > { %12848 = vst [vmem:[#allocation23_spill] sm:$0xff] %v12215_v20  ;;  %v12217_v0 = vpop.f32.mrf.mxu1 }
 0x3af   : > { %12849 = vst [vmem:[#allocation45_spill] sm:$0xff] %v12217_v0  ;;  %v12219_v43 = vpop.f32.mrf.mxu0 }
 0x3b0   : > { %12850 = vst [vmem:[#allocation44_spill] sm:$0xff] %v12219_v43  ;;  %v12221_v10 = vpop.f32.mrf.mxu1 }
 0x3b1   : > { %12851 = vst [vmem:[#allocation24_spill] sm:$0xff] %v12221_v10  ;;  %v12223_v1 = vpop.f32.mrf.mxu0 }
 0x3b2   : > { %12852 = vst [vmem:[#allocation47_spill] sm:$0xff] %v12223_v1  ;;  %v12225_v25 = vpop.f32.mrf.mxu1 }
 0x3b3   : > { %12853 = vst [vmem:[#allocation25_spill] sm:$0xff] %v12225_v25  ;;  %v12227_v51 = vpop.f32.mrf.mxu0 }
 0x3b4   : > { %12854 = vst [vmem:[#allocation49_spill] sm:$0xff] %v12227_v51  ;;  %v12229_v37 = vpop.f32.mrf.mxu1 }
 0x3b5   : > { %12855 = vst [vmem:[#allocation46_spill] sm:$0xff] %v12229_v37  ;;  %v12231_v5 = vpop.f32.mrf.mxu0 }
 0x3b6   : > { %12856 = vst [vmem:[#allocation26_spill] sm:$0xff] %v12231_v5  ;;  %v12233_v47 = vpop.f32.mrf.mxu1 }
 0x3b7   : > { %12857 = vst [vmem:[#allocation51_spill] sm:$0xff] %v12233_v47 }
 0x3b8   : > { %v12235_v41 = vpop.f32.mrf.mxu0  ;;  %v12237_v20 = vpop.f32.mrf.mxu1 }
 0x3b9   : > { %12858 = vst [vmem:[#allocation48_spill] sm:$0xff] %v12237_v20 }
 0x3ba   : > { %v12239_v0 = vpop.f32.mrf.mxu0  ;;  %v12241_v43 = vpop.f32.mrf.mxu1 }
 0x3bb   : > { %12859 = vst [vmem:[#allocation50_spill] sm:$0xff] %v12239_v0  ;;  %12860 = vst [vmem:[#allocation27_spill] sm:$0xff] %v12241_v43  ;;  %v6640_v0 = vadd.f32 %v6639_v32, %v12048_v63  ;;  %v6646_v32 = vadd.f32 %v12151_v45, %v12057_v46 }
 0x3bc   : > { %v12243_v10 = vpop.f32.mrf.mxu0  ;;  %v12245_v1 = vpop.f32.mrf.mxu1 }
 0x3bd   : > { %12861 = vst [vmem:[#allocation53_spill] sm:$0xff] %v12243_v10  ;;  %12862 = vst [vmem:[#allocation52_spill] sm:$0xff] %v12245_v1  ;;  %v6642_v1 = vadd.f32 %v6641_v21, %v12051_v7  ;;  %v6650_v7 = vadd.f32 %v12155_v53, %v12060_v17  ;;  %v641_v21 = vld [vmem:[%s10348_s10 + $0x10] sm:$0xff] }
 0x3be   : > { %v12247_v25 = vpop.f32.mrf.mxu0  ;;  %v12249_v51 = vpop.f32.mrf.mxu1 }
 0x3bf   : > { %12863 = vst [vmem:[#allocation28_spill] sm:$0xff] %v12247_v25  ;;  %12864 = vst [vmem:[#allocation55_spill] sm:$0xff] %v12249_v51  ;;  %v6755_v63 = vadd.f32 %v12145_v23, %v6642_v1  ;;  %v642_v1 = vld [vmem:[%s10348_s10 + $0x18] sm:$0xff]  ;;  %v6763_v53 = vadd.f32 %v12157_v59, %v6650_v7  ;;  %v6656_v59 = vadd.f32 %v12167_v13, %v12069_v22 }
 0x3c0   : > { %v12251_v37 = vpop.f32.mrf.mxu0  ;;  %v6662_v22 = vadd.f32 %v12175_v35, %v12075_v60  ;;  %v6664_v60 = vadd.f32 %v12179_v61, %v12078_v18  ;;  %v6670_v18 = vadd.f32 %v12187_v52, %v12084_v38  ;;  %v657_v61 = vld [vmem:[%s10348_s10 + $0x90] sm:$0xff] }
 0x3c1   : > { %12865 = vst [vmem:[#allocation29_spill] sm:$0xff] %v12251_v37  ;;  %v12253_v5 = vpop.f32.mrf.mxu1 }
 0x3c2   : > { %12866 = vst [vmem:[#allocation54_spill] sm:$0xff] %v12253_v5  ;;  %v12255_v47 = vpop.f32.mrf.mxu0  ;;  %v6753_v5 = vadd.f32 %v12141_v4, %v6640_v0 }
 0x3c3   : > { %12867 = vst [vmem:[#allocation56_spill] sm:$0xff] %v12255_v47  ;;  %v12257_v20 = vpop.f32.mrf.mxu1  ;;  %v6644_v47 = vadd.f32 %v12147_v26, %v12054_v42  ;;  %v6652_v26 = vadd.f32 %v12159_v54, %v12063_v19  ;;  %v646_v54 = vld [vmem:[%s10348_s10 + $0x38] sm:$0xff] }
 0x3c4   : > { %12868 = vst [vmem:[#allocation30_spill] sm:$0xff] %v12257_v20  ;;  %v12260_v43 = vpop.f32.mrf.mxu0 }
 0x3c5   : > { %12869 = vst [vmem:[#allocation58_spill] sm:$0xff] %v12260_v43  ;;  %v12262_v10 = vpop.f32.mrf.mxu1  ;;  %v6757_v0 = vadd.f32 %v12149_v15, %v6644_v47  ;;  %v645_v43 = vld [vmem:[%s10348_s10 + $0x30] sm:$0xff] }
 0x3c6   : > { %12870 = vst [vmem:[#allocation57_spill] sm:$0xff] %v12262_v10  ;;  %v12265_v25 = vpop.f32.mrf.mxu0 }
 0x3c7   : > { %12871 = vst [vmem:[#allocation31_spill] sm:$0xff] %v12265_v25  ;;  %v12267_v51 = vpop.f32.mrf.mxu1 }
 0x3c8   : > { %12872 = vst [vmem:[#allocation60_spill] sm:$0xff] %v12267_v51  ;;  %v6865_v37 = vpop.f32.mrf.mxu0 }
 0x3c9   : > { %v6978_v20 = vpop.f32.mrf.mxu1  ;;  %v6866_v10 = vadd.f32 %v6865_v37, %v6753_v5  ;;  %v6759_v37 = vadd.f32 %v12153_v14, %v6646_v32  ;;  %v6765_v14 = vadd.f32 %v12161_v12, %v6652_v26 }
 0x3ca   : > { %v6867_v51 = vpop.f32.mrf.mxu0 }
 0x3cb   : > { %v6980_v25 = vpop.f32.mrf.mxu1  ;;  %v6979_v4 = vadd.f32 %v6978_v20, %v6866_v10  ;;  %v6868_v42 = vadd.f32 %v6867_v51, %v6755_v63  ;;  %v6654_v51 = vadd.f32 %v12163_v31, %v12066_v40  ;;  %v6660_v40 = vadd.f32 %v12171_v62, %v12072_v34  ;;  %v649_v31 = vld [vmem:[%s10348_s10 + $0x50] sm:$0xff] }
 0x3cc   : > { %v6869_v23 = vpop.f32.mrf.mxu0  ;;  %v6769_v34 = vadd.f32 %v12169_v56, %v6656_v59  ;;  %v6775_v56 = vadd.f32 %v12177_v6, %v6662_v22  ;;  %v6777_v6 = vadd.f32 %v12181_v24, %v6664_v60  ;;  %v6783_v24 = vadd.f32 %v12189_v27, %v6670_v18 }
 0x3cd   : > { %v6982_v46 = vpop.f32.mrf.mxu1  ;;  %v7059_v5 = vadd.f32 %v6979_v4, %v641_v21  ;;  %v6981_v17 = vadd.f32 %v6980_v25, %v6868_v42  ;;  %v6870_v45 = vadd.f32 %v6869_v23, %v6757_v0  ;;  %v6767_v12 = vadd.f32 %v12165_v28, %v6654_v51 }
 0x3ce   : > { %v6871_v47 = vpop.f32.mrf.mxu0  ;;  %v6773_v28 = vadd.f32 %v12173_v39, %v6660_v40  ;;  %v6666_v39 = vadd.f32 %v12183_v44, %v12081_v33  ;;  %v6672_v33 = vadd.f32 %v12191_v8, %v12087_v2  ;;  %v658_v44 = vld [vmem:[%s10348_s10 + $0x98] sm:$0xff]  ;;  %v6674_v2 = vadd.f32 %v12195_v36, %v12090_v3  ;;  %v665_v36 = vld [vmem:[%s10348_s10 + $0xd0] sm:$0xff] }
 0x3cf   : > { %v6984_v15 = vpop.f32.mrf.mxu1  ;;  %7123 = vst [vmem:[%s10348_s10 + $0x10] sm:$0xff] %v7059_v5  ;;  %v7060_v19 = vadd.f32 %v6981_v17, %v642_v1  ;;  %v6983_v10 = vadd.f32 %v6982_v46, %v6870_v45  ;;  %v6872_v20 = vadd.f32 %v6871_v47, %v6759_v37  ;;  %v653_v5 = vld [vmem:[%s10348_s10 + $0x70] sm:$0xff]  ;;  %v6676_v27 = vadd.f32 %v12199_v30, %v12093_v29  ;;  %v666_v30 = vld [vmem:[%s10348_s10 + $0xd8] sm:$0xff] }
 0x3d0   : > { %v6875_v25 = vpop.f32.mrf.mxu0  ;;  %v6779_v38 = vadd.f32 %v12185_v9, %v6666_v39  ;;  %v6785_v9 = vadd.f32 %v12193_v49, %v6672_v33  ;;  %v6680_v3 = vadd.f32 %v12203_v50, %v12096_v11  ;;  %v6787_v49 = vadd.f32 %v12197_v55, %v6674_v2  ;;  %v674_v2 = vld [vmem:[%s10348_s10 + $0x118] sm:$0xff] }
 0x3d1   : > { %v6988_v63 = vpop.f32.mrf.mxu1  ;;  %7124 = vst [vmem:[%s10348_s10 + $0x18] sm:$0xff] %v7060_v19  ;;  %v7063_v32 = vadd.f32 %v6983_v10, %v645_v43  ;;  %v6985_v7 = vadd.f32 %v6984_v15, %v6872_v20  ;;  %v6876_v21 = vadd.f32 %v6875_v25, %v6763_v53  ;;  %v650_v43 = vld [vmem:[%s10348_s10 + $0x58] sm:$0xff]  ;;  %v6682_v29 = vadd.f32 %v12207_v16, %v12099_v58 }
 0x3d2   : > { %v6877_v0 = vpop.f32.mrf.mxu0  ;;  %v654_v15 = vld [vmem:[%s10348_s10 + $0x78] sm:$0xff]  ;;  %v6789_v11 = vadd.f32 %v12201_v57, %v6676_v27  ;;  %v6793_v55 = vadd.f32 %v12205_v48, %v6680_v3  ;;  %v12875_v57 = vld [vmem:[#allocation43_spill] sm:$0xff]  ;;  %v12884_v27 = vld [vmem:[#allocation24_spill] sm:$0xff] }
 0x3d3   : > { %v6990_v4 = vpop.f32.mrf.mxu1  ;;  %7127 = vst [vmem:[%s10348_s10 + $0x30] sm:$0xff] %v7063_v32  ;;  %v7064_v42 = vadd.f32 %v6985_v7, %v646_v54  ;;  %v6989_v26 = vadd.f32 %v6988_v63, %v6876_v21  ;;  %v6878_v1 = vadd.f32 %v6877_v0, %v6765_v14  ;;  %v661_v0 = vld [vmem:[%s10348_s10 + $0xb0] sm:$0xff] }
 0x3d4   : > { %v6879_v13 = vpop.f32.mrf.mxu0 }
 0x3d5   : > { %v6992_v23 = vpop.f32.mrf.mxu1  ;;  %7128 = vst [vmem:[%s10348_s10 + $0x38] sm:$0xff] %v7064_v42  ;;  %v7067_v62 = vadd.f32 %v6989_v26, %v649_v31  ;;  %v6991_v46 = vadd.f32 %v6990_v4, %v6878_v1  ;;  %v6880_v37 = vadd.f32 %v6879_v13, %v6767_v12  ;;  %v662_v1 = vld [vmem:[%s10348_s10 + $0xb8] sm:$0xff] }
 0x3d6   : > { %v6881_v17 = vpop.f32.mrf.mxu0 }
 0x3d7   : > { %v6994_v45 = vpop.f32.mrf.mxu1  ;;  %7131 = vst [vmem:[%s10348_s10 + $0x50] sm:$0xff] %v7067_v62  ;;  %v7068_v35 = vadd.f32 %v6991_v46, %v650_v43  ;;  %v6993_v53 = vadd.f32 %v6992_v23, %v6880_v37  ;;  %v6882_v47 = vadd.f32 %v6881_v17, %v6769_v34 }
 0x3d8   : > { %v6885_v51 = vpop.f32.mrf.mxu0 }
 0x3d9   : > { %v6998_v19 = vpop.f32.mrf.mxu1  ;;  %7132 = vst [vmem:[%s10348_s10 + $0x58] sm:$0xff] %v7068_v35  ;;  %v7071_v10 = vadd.f32 %v6993_v53, %v653_v5  ;;  %v6995_v20 = vadd.f32 %v6994_v45, %v6882_v47  ;;  %v6886_v14 = vadd.f32 %v6885_v51, %v6773_v28  ;;  %v669_v53 = vld [vmem:[%s10348_s10 + $0xf0] sm:$0xff] }
 0x3da   : > { %v6887_v54 = vpop.f32.mrf.mxu0  ;;  %v12874_v51 = vld [vmem:[#allocation40_spill] sm:$0xff] }
 0x3db   : > { %v7000_v25 = vpop.f32.mrf.mxu1  ;;  %7135 = vst [vmem:[%s10348_s10 + $0x70] sm:$0xff] %v7071_v10  ;;  %v7072_v63 = vadd.f32 %v6995_v20, %v654_v15  ;;  %v6999_v59 = vadd.f32 %v6998_v19, %v6886_v14  ;;  %v6888_v32 = vadd.f32 %v6887_v54, %v6775_v56  ;;  %v12873_v15 = vld [vmem:[#allocation32_spill] sm:$0xff]  ;;  %v6795_v10 = vadd.f32 %v12875_v57, %v6682_v29  ;;  %v670_v20 = vld [vmem:[%s10348_s10 + $0xf8] sm:$0xff]  ;;  %v12877_v54 = vld [vmem:[#allocation23_spill] sm:$0xff] }
 0x3dc   : > { %v6889_v7 = vpop.f32.mrf.mxu0  ;;  %v6684_v58 = vadd.f32 %v12874_v51, %v12873_v15  ;;  %v681_v15 = vld [vmem:[%s10348_s10 + $0x150] sm:$0xff] }
 0x3dd   : > { %v7002_v21 = vpop.f32.mrf.mxu1  ;;  %7136 = vst [vmem:[%s10348_s10 + $0x78] sm:$0xff] %v7072_v63  ;;  %v7075_v52 = vadd.f32 %v6999_v59, %v657_v61  ;;  %v7001_v40 = vadd.f32 %v7000_v25, %v6888_v32  ;;  %v6890_v31 = vadd.f32 %v6889_v7, %v6777_v6  ;;  %v12876_v61 = vld [vmem:[#allocation18_spill] sm:$0xff]  ;;  %v12878_v59 = vld [vmem:[#allocation35_spill] sm:$0xff]  ;;  %v12879_v32 = vld [vmem:[#allocation44_spill] sm:$0xff] }
 0x3de   : > { %v6891_v4 = vpop.f32.mrf.mxu0  ;;  %v6686_v48 = vadd.f32 %v12877_v54, %v12876_v61  ;;  %v6690_v33 = vadd.f32 %v12879_v32, %v12878_v59  ;;  %v682_v61 = vld [vmem:[%s10348_s10 + $0x158] sm:$0xff]  ;;  %v12895_v32 = vld [vmem:[#allocation48_spill] sm:$0xff] }
 0x3df   : > { %v7004_v12 = vpop.f32.mrf.mxu1  ;;  %7139 = vst [vmem:[%s10348_s10 + $0x90] sm:$0xff] %v7075_v52  ;;  %v7076_v8 = vadd.f32 %v7001_v40, %v658_v44  ;;  %v7003_v42 = vadd.f32 %v7002_v21, %v6890_v31  ;;  %v6892_v26 = vadd.f32 %v6891_v4, %v6779_v38  ;;  %v673_v44 = vld [vmem:[%s10348_s10 + $0x110] sm:$0xff]  ;;  %v12880_v38 = vld [vmem:[#allocation42_spill] sm:$0xff]  ;;  %v12882_v4 = vld [vmem:[#allocation47_spill] sm:$0xff] }
 0x3e0   : > { %v6895_v22 = vpop.f32.mrf.mxu0  ;;  %v6797_v52 = vadd.f32 %v12880_v38, %v6684_v58  ;;  %v12896_v38 = vld [vmem:[#allocation20_spill] sm:$0xff] }
 0x3e1   : > { %v7008_v43 = vpop.f32.mrf.mxu1  ;;  %7140 = vst [vmem:[%s10348_s10 + $0x98] sm:$0xff] %v7076_v8  ;;  %v7079_v13 = vadd.f32 %v7003_v42, %v661_v0  ;;  %v7005_v23 = vadd.f32 %v7004_v12, %v6892_v26  ;;  %v6896_v34 = vadd.f32 %v6895_v22, %v6783_v24  ;;  %v12881_v0 = vld [vmem:[#allocation33_spill] sm:$0xff] }
 0x3e2   : > { %v6897_v62 = vpop.f32.mrf.mxu0  ;;  %v6692_v12 = vadd.f32 %v12882_v4, %v12881_v0  ;;  %v12883_v26 = vld [vmem:[#allocation45_spill] sm:$0xff]  ;;  %v12898_v4 = vld [vmem:[#allocation27_spill] sm:$0xff] }
 0x3e3   : > { %v7010_v46 = vpop.f32.mrf.mxu1  ;;  %7143 = vst [vmem:[%s10348_s10 + $0xb0] sm:$0xff] %v7079_v13  ;;  %v7080_v37 = vadd.f32 %v7005_v23, %v662_v1  ;;  %v7009_v28 = vadd.f32 %v7008_v43, %v6896_v34  ;;  %v6898_v5 = vadd.f32 %v6897_v62, %v6785_v9  ;;  %v6799_v9 = vadd.f32 %v12883_v26, %v6686_v48  ;;  %v677_v23 = vld [vmem:[%s10348_s10 + $0x130] sm:$0xff]  ;;  %v12886_v62 = vld [vmem:[#allocation49_spill] sm:$0xff]  ;;  %v12899_v26 = vld [vmem:[#allocation39_spill] sm:$0xff] }
 0x3e4   : > { %v6899_v17 = vpop.f32.mrf.mxu0  ;;  %v6803_v13 = vadd.f32 %v12884_v27, %v6690_v33 }
 0x3e5   : > { %v7012_v45 = vpop.f32.mrf.mxu1  ;;  %7144 = vst [vmem:[%s10348_s10 + $0xb8] sm:$0xff] %v7080_v37  ;;  %v7083_v50 = vadd.f32 %v7009_v28, %v665_v36  ;;  %v7011_v60 = vadd.f32 %v7010_v46, %v6898_v5  ;;  %v6900_v35 = vadd.f32 %v6899_v17, %v6787_v49  ;;  %v12885_v36 = vld [vmem:[#allocation34_spill] sm:$0xff]  ;;  %v12887_v5 = vld [vmem:[#allocation25_spill] sm:$0xff] }
 0x3e6   : > { %v6901_v47 = vpop.f32.mrf.mxu0  ;;  %v6694_v46 = vadd.f32 %v12886_v62, %v12885_v36  ;;  %v6805_v29 = vadd.f32 %v12887_v5, %v6692_v12 }
 0x3e7   : > { %v7014_v56 = vpop.f32.mrf.mxu1  ;;  %7147 = vst [vmem:[%s10348_s10 + $0xd0] sm:$0xff] %v7083_v50  ;;  %v7084_v16 = vadd.f32 %v7011_v60, %v666_v30  ;;  %v7013_v19 = vadd.f32 %v7012_v45, %v6900_v35  ;;  %v6902_v39 = vadd.f32 %v6901_v47, %v6789_v11  ;;  %v678_v30 = vld [vmem:[%s10348_s10 + $0x138] sm:$0xff]  ;;  %v12888_v11 = vld [vmem:[#allocation19_spill] sm:$0xff]  ;;  %v12889_v50 = vld [vmem:[#allocation26_spill] sm:$0xff] }
 0x3e8   : > { %v6905_v14 = vpop.f32.mrf.mxu0  ;;  %v6696_v60 = vadd.f32 %v12889_v50, %v12888_v11  ;;  %v12890_v47 = vld [vmem:[#allocation37_spill] sm:$0xff] }
 0x3e9   : > { %v7018_v18 = vpop.f32.mrf.mxu1  ;;  %7148 = vst [vmem:[%s10348_s10 + $0xd8] sm:$0xff] %v7084_v16  ;;  %v7087_v25 = vadd.f32 %v7013_v19, %v669_v53  ;;  %v7015_v6 = vadd.f32 %v7014_v56, %v6902_v39  ;;  %v6906_v63 = vadd.f32 %v6905_v14, %v6793_v55  ;;  %v6700_v56 = vadd.f32 %v12235_v41, %v12890_v47  ;;  %v12891_v16 = vld [vmem:[#allocation46_spill] sm:$0xff] }
 0x3ea   : > { %v6907_v7 = vpop.f32.mrf.mxu0  ;;  %v6807_v19 = vadd.f32 %v12891_v16, %v6694_v46  ;;  %v12893_v14 = vld [vmem:[#allocation50_spill] sm:$0xff]  ;;  %v12903_v46 = vld [vmem:[#allocation52_spill] sm:$0xff] }
 0x3eb   : > { %v7020_v21 = vpop.f32.mrf.mxu1  ;;  %7151 = vst [vmem:[%s10348_s10 + $0xf0] sm:$0xff] %v7087_v25  ;;  %v7088_v40 = vadd.f32 %v7015_v6, %v670_v20  ;;  %v7019_v31 = vadd.f32 %v7018_v18, %v6906_v63  ;;  %v6908_v24 = vadd.f32 %v6907_v7, %v6795_v10  ;;  %v12892_v20 = vld [vmem:[#allocation36_spill] sm:$0xff]  ;;  %v12894_v25 = vld [vmem:[#allocation51_spill] sm:$0xff]  ;;  %v6813_v33 = vadd.f32 %v12895_v32, %v6700_v56  ;;  %v12907_v56 = vld [vmem:[#allocation54_spill] sm:$0xff] }
 0x3ec   : > { %v6909_v8 = vpop.f32.mrf.mxu0  ;;  %v6702_v18 = vadd.f32 %v12893_v14, %v12892_v20  ;;  %v6809_v41 = vadd.f32 %v12894_v25, %v6696_v60  ;;  %v12906_v60 = vld [vmem:[#allocation55_spill] sm:$0xff] }
 0x3ed   : > { %v7022_v42 = vpop.f32.mrf.mxu1  ;;  %7152 = vst [vmem:[%s10348_s10 + $0xf8] sm:$0xff] %v7088_v40  ;;  %v7091_v1 = vadd.f32 %v7019_v31, %v673_v44  ;;  %v7021_v22 = vadd.f32 %v7020_v21, %v6908_v24  ;;  %v6910_v43 = vadd.f32 %v6909_v8, %v6797_v52  ;;  %v685_v44 = vld [vmem:[%s10348_s10 + $0x170] sm:$0xff]  ;;  %v12897_v52 = vld [vmem:[#allocation53_spill] sm:$0xff] }
 0x3ee   : > { %v6911_v34 = vpop.f32.mrf.mxu0  ;;  %v6704_v40 = vadd.f32 %v12897_v52, %v12896_v38  ;;  %v6815_v12 = vadd.f32 %v12898_v4, %v6702_v18  ;;  %v12910_v18 = vld [vmem:[#allocation30_spill] sm:$0xff]  ;;  %v12913_v38 = vld [vmem:[#allocation57_spill] sm:$0xff] }
 0x3ef   : > { %v7024_v3 = vpop.f32.mrf.mxu1  ;;  %7155 = vst [vmem:[%s10348_s10 + $0x110] sm:$0xff] %v7091_v1  ;;  %v7092_v49 = vadd.f32 %v7021_v22, %v674_v2  ;;  %v7023_v37 = vadd.f32 %v7022_v42, %v6910_v43  ;;  %v6912_v28 = vadd.f32 %v6911_v34, %v6799_v9  ;;  %v686_v2 = vld [vmem:[%s10348_s10 + $0x178] sm:$0xff]  ;;  %v12900_v9 = vld [vmem:[#allocation28_spill] sm:$0xff] }
 0x3f0   : > { %v6915_v17 = vpop.f32.mrf.mxu0  ;;  %v6706_v1 = vadd.f32 %v12900_v9, %v12899_v26 }
 0x3f1   : > { %v7028_v45 = vpop.f32.mrf.mxu1  ;;  %7156 = vst [vmem:[%s10348_s10 + $0x118] sm:$0xff] %v7092_v49  ;;  %v7095_v35 = vadd.f32 %v7023_v37, %v677_v23  ;;  %v7025_v55 = vadd.f32 %v7024_v3, %v6912_v28  ;;  %v6916_v53 = vadd.f32 %v6915_v17, %v6803_v13  ;;  %v12901_v13 = vld [vmem:[#allocation21_spill] sm:$0xff]  ;;  %v689_v3 = vld [vmem:[%s10348_s10 + $0x190] sm:$0xff]  ;;  %v6817_v49 = vadd.f32 %v12903_v46, %v6704_v40 }
 0x3f2   : > { %v6917_v51 = vpop.f32.mrf.mxu0  ;;  %v12902_v23 = vld [vmem:[#allocation29_spill] sm:$0xff] }
 0x3f3   : > { %v7030_v58 = vpop.f32.mrf.mxu1  ;;  %7159 = vst [vmem:[%s10348_s10 + $0x130] sm:$0xff] %v7095_v35  ;;  %v7096_v39 = vadd.f32 %v7025_v55, %v678_v30  ;;  %v7029_v57 = vadd.f32 %v7028_v45, %v6916_v53  ;;  %v6918_v10 = vadd.f32 %v6917_v51, %v6805_v29  ;;  %v6710_v34 = vadd.f32 %v12902_v23, %v12901_v13  ;;  %v12904_v29 = vld [vmem:[#allocation41_spill] sm:$0xff]  ;;  %v12905_v30 = vld [vmem:[#allocation56_spill] sm:$0xff] }
 0x3f4   : > { %v6919_v54 = vpop.f32.mrf.mxu0  ;;  %v6712_v17 = vadd.f32 %v12905_v30, %v12904_v29  ;;  %v690_v45 = vld [vmem:[%s10348_s10 + $0x198] sm:$0xff]  ;;  %v6819_v35 = vadd.f32 %v12906_v60, %v6706_v1  ;;  %v693_v51 = vld [vmem:[%s10348_s10 + $0x1b0] sm:$0xff] }
 0x3f5   : > { %v7032_v48 = vpop.f32.mrf.mxu1  ;;  %7160 = vst [vmem:[%s10348_s10 + $0x138] sm:$0xff] %v7096_v39  ;;  %v7099_v6 = vadd.f32 %v7029_v57, %v681_v15  ;;  %v7031_v63 = vadd.f32 %v7030_v58, %v6918_v10  ;;  %v6920_v59 = vadd.f32 %v6919_v54, %v6807_v19  ;;  %v6823_v15 = vadd.f32 %v12907_v56, %v6710_v34  ;;  %v12908_v19 = vld [vmem:[#allocation38_spill] sm:$0xff]  ;;  %v694_v54 = vld [vmem:[%s10348_s10 + $0x1b8] sm:$0xff]  ;;  %v701_v1 = vld [vmem:[%s10348_s10 + $0x1f0] sm:$0xff] }
 0x3f6   : > { %v6921_v7 = vpop.f32.mrf.mxu0  ;;  %v12909_v39 = vld [vmem:[#allocation58_spill] sm:$0xff]  ;;  %v702_v23 = vld [vmem:[%s10348_s10 + $0x1f8] sm:$0xff] }
 0x3f7   : > { %v7034_v21 = vpop.f32.mrf.mxu1  ;;  %7163 = vst [vmem:[%s10348_s10 + $0x150] sm:$0xff] %v7099_v6  ;;  %v7100_v31 = vadd.f32 %v7031_v63, %v682_v61  ;;  %v7033_v24 = vadd.f32 %v7032_v48, %v6920_v59  ;;  %v6922_v0 = vadd.f32 %v6921_v7, %v6809_v41  ;;  %v6714_v57 = vadd.f32 %v12909_v39, %v12908_v19  ;;  %v12911_v41 = vld [vmem:[#allocation22_spill] sm:$0xff]  ;;  %v12912_v6 = vld [vmem:[#allocation31_spill] sm:$0xff] }
 0x3f8   : > { %v6925_v8 = vpop.f32.mrf.mxu0  ;;  %v6825_v61 = vadd.f32 %v12910_v18, %v6712_v17  ;;  %v6716_v63 = vadd.f32 %v12912_v6, %v12911_v41 }
 0x3f9   : > { %v7038_v42 = vpop.f32.mrf.mxu1  ;;  %7164 = vst [vmem:[%s10348_s10 + $0x158] sm:$0xff] %v7100_v31  ;;  %v7103_v22 = vadd.f32 %v7033_v24, %v685_v44  ;;  %v7035_v43 = vadd.f32 %v7034_v21, %v6922_v0  ;;  %v6926_v27 = vadd.f32 %v6925_v8, %v6813_v33  ;;  %v697_v44 = vld [vmem:[%s10348_s10 + $0x1d0] sm:$0xff]  ;;  %v6827_v52 = vadd.f32 %v12913_v38, %v6714_v57  ;;  %v698_v0 = vld [vmem:[%s10348_s10 + $0x1d8] sm:$0xff] }
 0x3fa   : > { %v6927_v36 = vpop.f32.mrf.mxu0 }
 0x3fb   : > { %v7040_v62 = vpop.f32.mrf.mxu1  ;;  %7167 = vst [vmem:[%s10348_s10 + $0x170] sm:$0xff] %v7103_v22  ;;  %v7104_v37 = vadd.f32 %v7035_v43, %v686_v2  ;;  %v7039_v28 = vadd.f32 %v7038_v42, %v6926_v27  ;;  %v6928_v5 = vadd.f32 %v6927_v36, %v6815_v12  ;;  %v12914_v2 = vld [vmem:[#allocation60_spill] sm:$0xff] }
 0x3fc   : > { %v6929_v11 = vpop.f32.mrf.mxu0  ;;  %v6829_v8 = vadd.f32 %v12914_v2, %v6716_v63 }
 0x3fd   : > { %v7042_v50 = vpop.f32.mrf.mxu1  ;;  %7168 = vst [vmem:[%s10348_s10 + $0x178] sm:$0xff] %v7104_v37  ;;  %v7107_v55 = vadd.f32 %v7039_v28, %v689_v3  ;;  %v7041_v53 = vadd.f32 %v7040_v62, %v6928_v5  ;;  %v6930_v47 = vadd.f32 %v6929_v11, %v6817_v49 }
 0x3fe   : > { %v6931_v58 = vpop.f32.mrf.mxu0 }
 0x3ff   : > { %v7044_v16 = vpop.f32.mrf.mxu1  ;;  %7171 = vst [vmem:[%s10348_s10 + $0x190] sm:$0xff] %v7107_v55  ;;  %v7108_v10 = vadd.f32 %v7041_v53, %v690_v45  ;;  %v7043_v20 = vadd.f32 %v7042_v50, %v6930_v47  ;;  %v6932_v14 = vadd.f32 %v6931_v58, %v6819_v35 }
 0x400   : > { %v6935_v48 = vpop.f32.mrf.mxu0 }
 0x401   : > { %v7048_v25 = vpop.f32.mrf.mxu1  ;;  %7172 = vst [vmem:[%s10348_s10 + $0x198] sm:$0xff] %v7108_v10  ;;  %v7111_v59 = vadd.f32 %v7043_v20, %v693_v51  ;;  %v7045_v32 = vadd.f32 %v7044_v16, %v6932_v14  ;;  %v6936_v33 = vadd.f32 %v6935_v48, %v6823_v15 }
 0x402   : > { %v6937_v7 = vpop.f32.mrf.mxu0 }
 0x403   : > { %v7050_v21 = vpop.f32.mrf.mxu1  ;;  %7175 = vst [vmem:[%s10348_s10 + $0x1b0] sm:$0xff] %v7111_v59  ;;  %v7112_v40 = vadd.f32 %v7045_v32, %v694_v54  ;;  %v7049_v31 = vadd.f32 %v7048_v25, %v6936_v33  ;;  %v6938_v24 = vadd.f32 %v6937_v7, %v6825_v61 }
 0x404   : > { %v6939_v4 = vpop.f32.mrf.mxu0 }
 0x405   : > { %v7052_v12 = vpop.f32.mrf.mxu1  ;;  %7176 = vst [vmem:[%s10348_s10 + $0x1b8] sm:$0xff] %v7112_v40  ;;  %v7115_v42 = vadd.f32 %v7049_v31, %v697_v44  ;;  %v7051_v26 = vadd.f32 %v7050_v21, %v6938_v24  ;;  %v6940_v9 = vadd.f32 %v6939_v4, %v6827_v52 }
 0x406   : > { %v6941_v22 = vpop.f32.mrf.mxu0 }
 0x407   : > { %7179 = vst [vmem:[%s10348_s10 + $0x1d0] sm:$0xff] %v7115_v42  ;;  %v7116_v43 = vadd.f32 %v7051_v26, %v698_v0  ;;  %v7053_v27 = vadd.f32 %v7052_v12, %v6940_v9  ;;  %v6942_v13 = vadd.f32 %v6941_v22, %v6829_v8  ;;  %v7054_v34 = vpop.f32.mrf.mxu1 }
 0x409   : > { %7180 = vst [vmem:[%s10348_s10 + $0x1d8] sm:$0xff] %v7116_v43  ;;  %v7119_v3 = vadd.f32 %v7053_v27, %v701_v1  ;;  %v7055_v36 = vadd.f32 %v7054_v34, %v6942_v13  ;;  %7188 = sbr.rel (%p8339_p12) target bundleno = 1083 (0x43b), region = 67 }
 0x40b   : > { %7183 = vst [vmem:[%s10348_s10 + $0x1f0] sm:$0xff] %v7119_v3  ;;  %v7120_v62 = vadd.f32 %v7055_v36, %v702_v23 }
 0x40d   : > { %7184 = vst [vmem:[%s10348_s10 + $0x1f8] sm:$0xff] %v7120_v62 }
 0x40e   : > { %v7255_v46 = vlaneseq  ;;  %v7253_v37 = vld [vmem:[%s567_s9] sm:$0xf]  ;;  %v7190_v29 = vld [vmem:[%s10348_s10 + $0x8] sm:$0xff]  ;;  %v7191_v11 = vld [vmem:[%s10348_s10 + $0x10] sm:$0xff] }
 0x40f   : > { %v7189_v28 = vld [vmem:[%s10348_s10] sm:$0xff]  ;;  %v7192_v50 = vld [vmem:[%s10348_s10 + $0x18] sm:$0xff]  ;;  %v7194_v56 = vld [vmem:[%s10348_s10 + $0x28] sm:$0xff] }
 0x410   : > { %v7256_v49 = vshrl.u32 %v7255_v46, 7  ;;  %v7193_v60 = vld [vmem:[%s10348_s10 + $0x20] sm:$0xff]  ;;  %v7195_v15 = vld [vmem:[%s10348_s10 + $0x30] sm:$0xff]  ;;  %v7196_v51 = vld [vmem:[%s10348_s10 + $0x38] sm:$0xff] }
 0x411   : > { %v7197_v57 = vld [vmem:[%s10348_s10 + $0x40] sm:$0xff]  ;;  %v7198_v10 = vld [vmem:[%s10348_s10 + $0x48] sm:$0xff]  ;;  %v7199_v20 = vld [vmem:[%s10348_s10 + $0x50] sm:$0xff] }
 0x412   : > { %v7257_v5 = vsub.s32 0, %v7256_v49  ;;  %v7261_v30 = vsub.s32 1, %v7256_v49  ;;  %v7265_v17 = vsub.s32 2, %v7256_v49  ;;  %v7269_v45 = vsub.s32 3, %v7256_v49  ;;  %v7200_v48 = vld [vmem:[%s10348_s10 + $0x58] sm:$0xff]  ;;  %v7201_v25 = vld [vmem:[%s10348_s10 + $0x60] sm:$0xff] }
 0x413   : > { %v7202_v41 = vld [vmem:[%s10348_s10 + $0x68] sm:$0xff]  ;;  %v7203_v33 = vld [vmem:[%s10348_s10 + $0x70] sm:$0xff]  ;;  %v7204_v44 = vld [vmem:[%s10348_s10 + $0x78] sm:$0xff] }
 0x414   : > { %v12436_v35 = vrot.slane %v7253_v37, %v7257_v5  ;;  %v12438_v55 = vrot.slane %v7253_v37, %v7261_v30  ;;  %v12440_v53 = vrot.slane %v7253_v37, %v7265_v17  ;;  %v12442_v47 = vrot.slane %v7253_v37, %v7269_v45  ;;  %v7205_v4 = vld [vmem:[%s10348_s10 + $0x80] sm:$0xff]  ;;  %v7206_v12 = vld [vmem:[%s10348_s10 + $0x88] sm:$0xff]  ;;  %v7207_v2 = vld [vmem:[%s10348_s10 + $0x90] sm:$0xff] }
 0x415   : > { %v7208_v1 = vld [vmem:[%s10348_s10 + $0x98] sm:$0xff]  ;;  %v7209_v22 = vld [vmem:[%s10348_s10 + $0xa0] sm:$0xff]  ;;  %v7210_v43 = vld [vmem:[%s10348_s10 + $0xa8] sm:$0xff] }
 0x416   : > { %v7275_v58 = vadd.f32 %v12436_v35, %v7189_v28  ;;  %v7276_v16 = vadd.f32 %v12438_v55, %v7190_v29  ;;  %v7277_v19 = vadd.f32 %v12440_v53, %v7191_v11  ;;  %v7278_v39 = vadd.f32 %v12442_v47, %v7192_v50  ;;  %v7211_v3 = vld [vmem:[%s10348_s10 + $0xb0] sm:$0xff]  ;;  %v7212_v36 = vld [vmem:[%s10348_s10 + $0xb8] sm:$0xff]  ;;  %v7213_v17 = vld [vmem:[%s10348_s10 + $0xc0] sm:$0xff] }
 0x417   : > { %v7279_v14 = vadd.f32 %v12436_v35, %v7193_v60  ;;  %v7280_v18 = vadd.f32 %v12438_v55, %v7194_v56  ;;  %v7281_v61 = vadd.f32 %v12440_v53, %v7195_v15  ;;  %v7282_v54 = vadd.f32 %v12442_v47, %v7196_v51  ;;  %v7214_v45 = vld [vmem:[%s10348_s10 + $0xc8] sm:$0xff]  ;;  %v7215_v11 = vld [vmem:[%s10348_s10 + $0xd0] sm:$0xff]  ;;  %v7216_v51 = vld [vmem:[%s10348_s10 + $0xd8] sm:$0xff] }
 0x418   : > { %v7339_v6 = vmax.f32 %v7275_v58, 0.0  ;;  %v7340_v63 = vmax.f32 %v7276_v16, 0.0  ;;  %v7341_v59 = vmax.f32 %v7277_v19, 0.0  ;;  %v7342_v32 = vmax.f32 %v7278_v39, 0.0  ;;  %v7217_v58 = vld [vmem:[%s10348_s10 + $0xe0] sm:$0xff]  ;;  %v7218_v16 = vld [vmem:[%s10348_s10 + $0xe8] sm:$0xff] }
 0x419   : > { %v7343_v7 = vmax.f32 %v7279_v14, 0.0  ;;  %v7344_v21 = vmax.f32 %v7280_v18, 0.0  ;;  %v7345_v38 = vmax.f32 %v7281_v61, 0.0  ;;  %v7346_v52 = vmax.f32 %v7282_v54, 0.0  ;;  %v7220_v14 = vld [vmem:[%s10348_s10 + $0xf8] sm:$0xff] }
 0x41a   : > { %7403 = vst [vmem:[%s10348_s10] sm:$0xff] %v7339_v6  ;;  %7404 = vst [vmem:[%s10348_s10 + $0x8] sm:$0xff] %v7340_v63  ;;  %v7283_v40 = vadd.f32 %v12436_v35, %v7197_v57  ;;  %v7284_v31 = vadd.f32 %v12438_v55, %v7198_v10  ;;  %v7285_v24 = vadd.f32 %v12440_v53, %v7199_v20  ;;  %v7219_v20 = vld [vmem:[%s10348_s10 + $0xf0] sm:$0xff] }
 0x41b   : > { %7405 = vst [vmem:[%s10348_s10 + $0x10] sm:$0xff] %v7341_v59  ;;  %7406 = vst [vmem:[%s10348_s10 + $0x18] sm:$0xff] %v7342_v32  ;;  %v7286_v0 = vadd.f32 %v12442_v47, %v7200_v48  ;;  %v7287_v8 = vadd.f32 %v12436_v35, %v7201_v25  ;;  %v7288_v42 = vadd.f32 %v12438_v55, %v7202_v41  ;;  %v7221_v59 = vld [vmem:[%s10348_s10 + $0x100] sm:$0xff]  ;;  %v7222_v32 = vld [vmem:[%s10348_s10 + $0x108] sm:$0xff] }
 0x41c   : > { %7407 = vst [vmem:[%s10348_s10 + $0x20] sm:$0xff] %v7343_v7  ;;  %7408 = vst [vmem:[%s10348_s10 + $0x28] sm:$0xff] %v7344_v21  ;;  %v7289_v26 = vadd.f32 %v12440_v53, %v7203_v33  ;;  %v7290_v9 = vadd.f32 %v12442_v47, %v7204_v44  ;;  %v7347_v27 = vmax.f32 %v7283_v40, 0.0  ;;  %v7348_v13 = vmax.f32 %v7284_v31, 0.0  ;;  %v7223_v33 = vld [vmem:[%s10348_s10 + $0x110] sm:$0xff]  ;;  %v7225_v40 = vld [vmem:[%s10348_s10 + $0x120] sm:$0xff] }
 0x41d   : > { %7409 = vst [vmem:[%s10348_s10 + $0x30] sm:$0xff] %v7345_v38  ;;  %7410 = vst [vmem:[%s10348_s10 + $0x38] sm:$0xff] %v7346_v52  ;;  %v7349_v23 = vmax.f32 %v7285_v24, 0.0  ;;  %v7350_v34 = vmax.f32 %v7286_v0, 0.0  ;;  %v7351_v62 = vmax.f32 %v7287_v8, 0.0  ;;  %v7352_v46 = vmax.f32 %v7288_v42, 0.0 }
 0x41e   : > { %v7353_v49 = vmax.f32 %v7289_v26, 0.0  ;;  %v7354_v37 = vmax.f32 %v7290_v9, 0.0  ;;  %7411 = vst [vmem:[%s10348_s10 + $0x40] sm:$0xff] %v7347_v27  ;;  %7412 = vst [vmem:[%s10348_s10 + $0x48] sm:$0xff] %v7348_v13  ;;  %v7291_v28 = vadd.f32 %v12436_v35, %v7205_v4  ;;  %v7292_v5 = vadd.f32 %v12438_v55, %v7206_v12  ;;  %v7224_v52 = vld [vmem:[%s10348_s10 + $0x118] sm:$0xff]  ;;  %v7226_v31 = vld [vmem:[%s10348_s10 + $0x128] sm:$0xff] }
 0x41f   : > { %7413 = vst [vmem:[%s10348_s10 + $0x50] sm:$0xff] %v7349_v23  ;;  %7414 = vst [vmem:[%s10348_s10 + $0x58] sm:$0xff] %v7350_v34  ;;  %v7293_v29 = vadd.f32 %v12440_v53, %v7207_v2  ;;  %v7294_v30 = vadd.f32 %v12442_v47, %v7208_v1  ;;  %v7295_v50 = vadd.f32 %v12436_v35, %v7209_v22  ;;  %v7227_v2 = vld [vmem:[%s10348_s10 + $0x130] sm:$0xff]  ;;  %v7228_v8 = vld [vmem:[%s10348_s10 + $0x138] sm:$0xff] }
 0x420   : > { %7415 = vst [vmem:[%s10348_s10 + $0x60] sm:$0xff] %v7351_v62  ;;  %7416 = vst [vmem:[%s10348_s10 + $0x68] sm:$0xff] %v7352_v46  ;;  %v7296_v60 = vadd.f32 %v12438_v55, %v7210_v43  ;;  %v7297_v56 = vadd.f32 %v12440_v53, %v7211_v3  ;;  %v7298_v15 = vadd.f32 %v12442_v47, %v7212_v36  ;;  %v7355_v19 = vmax.f32 %v7291_v28, 0.0  ;;  %v7229_v23 = vld [vmem:[%s10348_s10 + $0x140] sm:$0xff]  ;;  %v7230_v34 = vld [vmem:[%s10348_s10 + $0x148] sm:$0xff] }
 0x421   : > { %7417 = vst [vmem:[%s10348_s10 + $0x70] sm:$0xff] %v7353_v49  ;;  %7418 = vst [vmem:[%s10348_s10 + $0x78] sm:$0xff] %v7354_v37  ;;  %v7356_v39 = vmax.f32 %v7292_v5, 0.0  ;;  %v7357_v57 = vmax.f32 %v7293_v29, 0.0  ;;  %v7358_v10 = vmax.f32 %v7294_v30, 0.0  ;;  %v7359_v18 = vmax.f32 %v7295_v50, 0.0 }
 0x422   : > { %v7360_v61 = vmax.f32 %v7296_v60, 0.0  ;;  %v7361_v54 = vmax.f32 %v7297_v56, 0.0  ;;  %v7362_v48 = vmax.f32 %v7298_v15, 0.0  ;;  %7419 = vst [vmem:[%s10348_s10 + $0x80] sm:$0xff] %v7355_v19  ;;  %v7299_v25 = vadd.f32 %v12436_v35, %v7213_v17  ;;  %v7231_v3 = vld [vmem:[%s10348_s10 + $0x150] sm:$0xff]  ;;  %v7232_v37 = vld [vmem:[%s10348_s10 + $0x158] sm:$0xff] }
 0x423   : > { %7420 = vst [vmem:[%s10348_s10 + $0x88] sm:$0xff] %v7356_v39  ;;  %7421 = vst [vmem:[%s10348_s10 + $0x90] sm:$0xff] %v7357_v57  ;;  %v7300_v41 = vadd.f32 %v12438_v55, %v7214_v45  ;;  %v7301_v6 = vadd.f32 %v12440_v53, %v7215_v11  ;;  %v7302_v63 = vadd.f32 %v12442_v47, %v7216_v51  ;;  %v7233_v28 = vld [vmem:[%s10348_s10 + $0x160] sm:$0xff]  ;;  %v7234_v5 = vld [vmem:[%s10348_s10 + $0x168] sm:$0xff] }
 0x424   : > { %7422 = vst [vmem:[%s10348_s10 + $0x98] sm:$0xff] %v7358_v10  ;;  %7423 = vst [vmem:[%s10348_s10 + $0xa0] sm:$0xff] %v7359_v18  ;;  %v7303_v44 = vadd.f32 %v12436_v35, %v7217_v58  ;;  %v7304_v7 = vadd.f32 %v12438_v55, %v7218_v16  ;;  %v7305_v21 = vadd.f32 %v12440_v53, %v7219_v20  ;;  %v7363_v24 = vmax.f32 %v7299_v25, 0.0  ;;  %v7235_v11 = vld [vmem:[%s10348_s10 + $0x170] sm:$0xff]  ;;  %v7236_v50 = vld [vmem:[%s10348_s10 + $0x178] sm:$0xff] }
 0x425   : > { %7424 = vst [vmem:[%s10348_s10 + $0xa8] sm:$0xff] %v7360_v61  ;;  %7425 = vst [vmem:[%s10348_s10 + $0xb0] sm:$0xff] %v7361_v54  ;;  %v7306_v38 = vadd.f32 %v12442_v47, %v7220_v14  ;;  %v7364_v0 = vmax.f32 %v7300_v41, 0.0  ;;  %v7365_v4 = vmax.f32 %v7301_v6, 0.0  ;;  %v7366_v12 = vmax.f32 %v7302_v63, 0.0  ;;  %v7237_v57 = vld [vmem:[%s10348_s10 + $0x180] sm:$0xff] }
 0x426   : > { %7426 = vst [vmem:[%s10348_s10 + $0xb8] sm:$0xff] %v7362_v48  ;;  %v7367_v42 = vmax.f32 %v7303_v44, 0.0  ;;  %v7368_v26 = vmax.f32 %v7304_v7, 0.0  ;;  %v7369_v9 = vmax.f32 %v7305_v21, 0.0  ;;  %7427 = vst [vmem:[%s10348_s10 + $0xc0] sm:$0xff] %v7363_v24  ;;  %v7307_v22 = vadd.f32 %v12436_v35, %v7221_v59  ;;  %v7238_v10 = vld [vmem:[%s10348_s10 + $0x188] sm:$0xff] }
 0x427   : > { %v7370_v1 = vmax.f32 %v7306_v38, 0.0  ;;  %7428 = vst [vmem:[%s10348_s10 + $0xc8] sm:$0xff] %v7364_v0  ;;  %7429 = vst [vmem:[%s10348_s10 + $0xd0] sm:$0xff] %v7365_v4  ;;  %v7308_v43 = vadd.f32 %v12438_v55, %v7222_v32  ;;  %v7309_v27 = vadd.f32 %v12440_v53, %v7223_v33  ;;  %v7310_v13 = vadd.f32 %v12442_v47, %v7224_v52  ;;  %v7239_v20 = vld [vmem:[%s10348_s10 + $0x190] sm:$0xff]  ;;  %v7240_v48 = vld [vmem:[%s10348_s10 + $0x198] sm:$0xff] }
 0x428   : > { %7430 = vst [vmem:[%s10348_s10 + $0xd8] sm:$0xff] %v7366_v12  ;;  %7431 = vst [vmem:[%s10348_s10 + $0xe0] sm:$0xff] %v7367_v42  ;;  %v7311_v36 = vadd.f32 %v12436_v35, %v7225_v40  ;;  %v7312_v62 = vadd.f32 %v12438_v55, %v7226_v31  ;;  %v7313_v46 = vadd.f32 %v12440_v53, %v7227_v2  ;;  %v7371_v29 = vmax.f32 %v7307_v22, 0.0  ;;  %v7241_v25 = vld [vmem:[%s10348_s10 + $0x1a0] sm:$0xff]  ;;  %v7242_v41 = vld [vmem:[%s10348_s10 + $0x1a8] sm:$0xff] }
 0x429   : > { %7432 = vst [vmem:[%s10348_s10 + $0xe8] sm:$0xff] %v7368_v26  ;;  %7433 = vst [vmem:[%s10348_s10 + $0xf0] sm:$0xff] %v7369_v9  ;;  %v7314_v49 = vadd.f32 %v12442_v47, %v7228_v8  ;;  %v7372_v30 = vmax.f32 %v7308_v43, 0.0  ;;  %v7373_v17 = vmax.f32 %v7309_v27, 0.0  ;;  %v7374_v45 = vmax.f32 %v7310_v13, 0.0  ;;  %v7243_v33 = vld [vmem:[%s10348_s10 + $0x1b0] sm:$0xff] }
 0x42a   : > { %7434 = vst [vmem:[%s10348_s10 + $0xf8] sm:$0xff] %v7370_v1  ;;  %v7375_v60 = vmax.f32 %v7311_v36, 0.0  ;;  %v7376_v56 = vmax.f32 %v7312_v62, 0.0  ;;  %v7377_v15 = vmax.f32 %v7313_v46, 0.0  ;;  %7435 = vst [vmem:[%s10348_s10 + $0x100] sm:$0xff] %v7371_v29  ;;  %v7315_v58 = vadd.f32 %v12436_v35, %v7229_v23  ;;  %v7244_v44 = vld [vmem:[%s10348_s10 + $0x1b8] sm:$0xff] }
 0x42b   : > { %v7378_v51 = vmax.f32 %v7314_v49, 0.0  ;;  %7436 = vst [vmem:[%s10348_s10 + $0x108] sm:$0xff] %v7372_v30  ;;  %7437 = vst [vmem:[%s10348_s10 + $0x110] sm:$0xff] %v7373_v17  ;;  %v7316_v16 = vadd.f32 %v12438_v55, %v7230_v34  ;;  %v7317_v19 = vadd.f32 %v12440_v53, %v7231_v3  ;;  %v7318_v39 = vadd.f32 %v12442_v47, %v7232_v37  ;;  %v7245_v4 = vld [vmem:[%s10348_s10 + $0x1c0] sm:$0xff]  ;;  %v7246_v12 = vld [vmem:[%s10348_s10 + $0x1c8] sm:$0xff] }
 0x42c   : > { %7438 = vst [vmem:[%s10348_s10 + $0x118] sm:$0xff] %v7374_v45  ;;  %7439 = vst [vmem:[%s10348_s10 + $0x120] sm:$0xff] %v7375_v60  ;;  %v7319_v14 = vadd.f32 %v12436_v35, %v7233_v28  ;;  %v7320_v18 = vadd.f32 %v12438_v55, %v7234_v5  ;;  %v7321_v61 = vadd.f32 %v12440_v53, %v7235_v11  ;;  %v7379_v6 = vmax.f32 %v7315_v58, 0.0  ;;  %v7247_v2 = vld [vmem:[%s10348_s10 + $0x1d0] sm:$0xff]  ;;  %v7248_v1 = vld [vmem:[%s10348_s10 + $0x1d8] sm:$0xff] }
 0x42d   : > { %7440 = vst [vmem:[%s10348_s10 + $0x128] sm:$0xff] %v7376_v56  ;;  %7441 = vst [vmem:[%s10348_s10 + $0x130] sm:$0xff] %v7377_v15  ;;  %v7322_v54 = vadd.f32 %v12442_v47, %v7236_v50  ;;  %v7380_v63 = vmax.f32 %v7316_v16, 0.0  ;;  %v7381_v59 = vmax.f32 %v7317_v19, 0.0  ;;  %v7382_v32 = vmax.f32 %v7318_v39, 0.0  ;;  %v7249_v22 = vld [vmem:[%s10348_s10 + $0x1e0] sm:$0xff] }
 0x42e   : > { %7442 = vst [vmem:[%s10348_s10 + $0x138] sm:$0xff] %v7378_v51  ;;  %v7383_v7 = vmax.f32 %v7319_v14, 0.0  ;;  %v7384_v21 = vmax.f32 %v7320_v18, 0.0  ;;  %v7385_v38 = vmax.f32 %v7321_v61, 0.0  ;;  %7443 = vst [vmem:[%s10348_s10 + $0x140] sm:$0xff] %v7379_v6  ;;  %v7323_v40 = vadd.f32 %v12436_v35, %v7237_v57  ;;  %v7250_v43 = vld [vmem:[%s10348_s10 + $0x1e8] sm:$0xff] }
 0x42f   : > { %v7386_v52 = vmax.f32 %v7322_v54, 0.0  ;;  %7444 = vst [vmem:[%s10348_s10 + $0x148] sm:$0xff] %v7380_v63  ;;  %7445 = vst [vmem:[%s10348_s10 + $0x150] sm:$0xff] %v7381_v59  ;;  %v7324_v31 = vadd.f32 %v12438_v55, %v7238_v10  ;;  %v7325_v24 = vadd.f32 %v12440_v53, %v7239_v20  ;;  %v7326_v0 = vadd.f32 %v12442_v47, %v7240_v48  ;;  %v7251_v3 = vld [vmem:[%s10348_s10 + $0x1f0] sm:$0xff]  ;;  %v7252_v36 = vld [vmem:[%s10348_s10 + $0x1f8] sm:$0xff] }
 0x430   : > { %7446 = vst [vmem:[%s10348_s10 + $0x158] sm:$0xff] %v7382_v32  ;;  %7447 = vst [vmem:[%s10348_s10 + $0x160] sm:$0xff] %v7383_v7  ;;  %v7327_v8 = vadd.f32 %v12436_v35, %v7241_v25  ;;  %v7328_v42 = vadd.f32 %v12438_v55, %v7242_v41  ;;  %v7329_v26 = vadd.f32 %v12440_v53, %v7243_v33  ;;  %v7387_v27 = vmax.f32 %v7323_v40, 0.0 }
 0x431   : > { %7448 = vst [vmem:[%s10348_s10 + $0x168] sm:$0xff] %v7384_v21  ;;  %7449 = vst [vmem:[%s10348_s10 + $0x170] sm:$0xff] %v7385_v38  ;;  %v7330_v9 = vadd.f32 %v12442_v47, %v7244_v44  ;;  %v7388_v13 = vmax.f32 %v7324_v31, 0.0  ;;  %v7389_v23 = vmax.f32 %v7325_v24, 0.0  ;;  %v7390_v34 = vmax.f32 %v7326_v0, 0.0 }
 0x432   : > { %7450 = vst [vmem:[%s10348_s10 + $0x178] sm:$0xff] %v7386_v52  ;;  %v7391_v62 = vmax.f32 %v7327_v8, 0.0  ;;  %v7392_v46 = vmax.f32 %v7328_v42, 0.0  ;;  %v7393_v49 = vmax.f32 %v7329_v26, 0.0  ;;  %7451 = vst [vmem:[%s10348_s10 + $0x180] sm:$0xff] %v7387_v27  ;;  %v7331_v28 = vadd.f32 %v12436_v35, %v7245_v4 }
 0x433   : > { %v7394_v37 = vmax.f32 %v7330_v9, 0.0  ;;  %7452 = vst [vmem:[%s10348_s10 + $0x188] sm:$0xff] %v7388_v13  ;;  %7453 = vst [vmem:[%s10348_s10 + $0x190] sm:$0xff] %v7389_v23  ;;  %v7332_v5 = vadd.f32 %v12438_v55, %v7246_v12  ;;  %v7333_v29 = vadd.f32 %v12440_v53, %v7247_v2  ;;  %v7334_v30 = vadd.f32 %v12442_v47, %v7248_v1 }
 0x434   : > { %7454 = vst [vmem:[%s10348_s10 + $0x198] sm:$0xff] %v7390_v34  ;;  %7455 = vst [vmem:[%s10348_s10 + $0x1a0] sm:$0xff] %v7391_v62  ;;  %v7335_v17 = vadd.f32 %v12436_v35, %v7249_v22  ;;  %v7336_v45 = vadd.f32 %v12438_v55, %v7250_v43  ;;  %v7337_v11 = vadd.f32 %v12440_v53, %v7251_v3  ;;  %v7395_v60 = vmax.f32 %v7331_v28, 0.0 }
 0x435   : > { %7456 = vst [vmem:[%s10348_s10 + $0x1a8] sm:$0xff] %v7392_v46  ;;  %7457 = vst [vmem:[%s10348_s10 + $0x1b0] sm:$0xff] %v7393_v49  ;;  %v7338_v50 = vadd.f32 %v12442_v47, %v7252_v36  ;;  %v7396_v56 = vmax.f32 %v7332_v5, 0.0  ;;  %v7397_v15 = vmax.f32 %v7333_v29, 0.0  ;;  %v7398_v51 = vmax.f32 %v7334_v30, 0.0 }
 0x436   : > { %7458 = vst [vmem:[%s10348_s10 + $0x1b8] sm:$0xff] %v7394_v37  ;;  %v7399_v58 = vmax.f32 %v7335_v17, 0.0  ;;  %v7400_v16 = vmax.f32 %v7336_v45, 0.0  ;;  %v7401_v19 = vmax.f32 %v7337_v11, 0.0  ;;  %7459 = vst [vmem:[%s10348_s10 + $0x1c0] sm:$0xff] %v7395_v60 }
 0x437   : > { %v7402_v39 = vmax.f32 %v7338_v50, 0.0  ;;  %7460 = vst [vmem:[%s10348_s10 + $0x1c8] sm:$0xff] %v7396_v56  ;;  %7461 = vst [vmem:[%s10348_s10 + $0x1d0] sm:$0xff] %v7397_v15 }
 0x438   : > { %7462 = vst [vmem:[%s10348_s10 + $0x1d8] sm:$0xff] %v7398_v51  ;;  %7463 = vst [vmem:[%s10348_s10 + $0x1e0] sm:$0xff] %v7399_v58 }
 0x439   : > { %7464 = vst [vmem:[%s10348_s10 + $0x1e8] sm:$0xff] %v7400_v16  ;;  %7465 = vst [vmem:[%s10348_s10 + $0x1f0] sm:$0xff] %v7401_v19 }
 0x43a   : > { %7466 = vst [vmem:[%s10348_s10 + $0x1f8] sm:$0xff] %v7402_v39 }
 0x43b PF: > { %s8347_s20 = sshll.u32 %s9846_s21, 9  ;;  %s7484_s14 = sshll.u32 %s10348_s10, 4  ;;  %s12638_s14 = int_to_ptr.vmem [resolvable:$true] %s7484_s14 }
 0x43c   : > { %s12635_s19 = scalar_lea.hbm %s12717_s3, %s8347_s20  ;;  %s12642_s17 = scalar_lea.sflag [#allocation5], %s557_s27 }
 0x43d   : > { %s9722_s23 = scalar_lea.vmem %s12638_s14, 8192  ;;  %s9865_s21 = smov [#allocation6]  }
 0x43e   : > { %p9723_p8 = scmp.ne.s32.totalorder %s12638_s14, %s9722_s23  ;;  %s9726_s6 = sshll.u32 %s9865_s21, 4  ;;  %s9727_s6 = int_to_ptr.vmem [resolvable:$false] %s9726_s6 }
 0x43f   : > { %s9728_s11 = scalar_lea.vmem %s9727_s6, 16384  ;;  %p9729_p11 = scmp.lt.s32.totalorder %s12638_s14, %s9727_s6 }
 0x440   : > { %p9724_p9 = pnand %p9723_p8, %p10008_p4  ;;  %p9730_p13 = scmp.lt.s32.totalorder %s9728_s11, %s9722_s23 }
 0x442   : > { %p9725_p10 = pneg %p9724_p9  ;;  %p9731_p0 = por %p9730_p13, %p9729_p11 }
 0x444   : > { %p9732_p1 = pnand %p9731_p0, %p9725_p10 }
 0x446   : > { %9735 = shalt.err (!%p9732_p1)
}
 0x447   : > { %s9736_s25 = scalar_lea.hbm %s12635_s19, 8192  ;;  %s9740_s8 = scalar_lea.hbm %s12717_s3, 16384 }
 0x448   : > { %p9737_p2 = scmp.ne.s32.totalorder %s12635_s19, %s9736_s25  ;;  %p9741_p3 = scmp.lt.s32.totalorder %s12635_s19, %s12717_s3 }
 0x449   : > { %p9742_p12 = scmp.lt.s32.totalorder %s9740_s8, %s9736_s25 }
 0x44a   : > { %p9738_p6 = pnand %p9737_p2, %p10008_p4 }
 0x44b   : > { %p9743_p8 = por %p9742_p12, %p9741_p3 }
 0x44c   : > { %p9739_p7 = pneg %p9738_p6 }
 0x44e   : > { %p9744_p9 = pnand %p9743_p8, %p9739_p7 }
 0x450   : > { %9747 = shalt.err (!%p9744_p9)
}
 0x451   : > { %s9866_s28 = smov 512   ;;  %s9867_s9 = smov 1024  }
 0x452   : > { %s9868_s10 = smov 32  }
 0x453   : > { %8354 = dma.vmem_to_hbm [thread:$0]  (%p10008_p4), %s12638_s14, 8192, %s12635_s19, %s12642_s17, %s9866_s28, %s9867_s9, %s9868_s10  }
 0x454 PF: > { %p8360_p10 = scmp.ge.s32.totalorder %s9858_s24, 2  ;;  %s7499_s26 = sand.u32 1, %s9810_s12  }
 0x455   : > { %s7500_s4 = scalar_lea.sflag [#allocation5], %s7499_s26 }
 0x456   : > { %p8357_p11 = pnand %p8360_p10, %p10012_p5 }
 0x458   : > { %p8358_p13 = pneg %p8357_p11 }
 0x45a   : > { %9805 = dma.done.wait (%p8358_p13), %s7500_s4, 8192  }
 0x45b   : > { %9807 = vsyncadd (%p8358_p13), %s7500_s4, 4294959104  ;;  %s19_s24 = sadd.s32 1, %s9858_s24   ;;  %s12916_s15 = sld [smem:[#allocation9_spill]] }
 0x45c   : > { %p12670_p0 = scmp.ge.s32.totalorder %s19_s24, 18   ;;  %s12917_s14 = sld [smem:[#allocation17_spill]] }
 0x45d   : > { %s12918_s0 = sld [smem:[#allocation10_spill]]  ;;  %s12926_s12 = smov %s9814_s13 }
 0x45e   : > { %s12919_s17 = sld [smem:[#allocation16_spill]]  ;;  %s12930_s20 = smov %s9850_s22 }
 0x45f   : > { %s12920_s18 = sld [smem:[#allocation11_spill]] }
 0x460   : > { %s12921_s19 = sld [smem:[#allocation15_spill]] }
 0x461   : > { %s12922_s21 = sld [smem:[#allocation12_spill]]  ;;  %s12927_s13 = smov %s12916_s15 }
 0x462   : > { %s12923_s30 = sld [smem:[#allocation13_spill]]  ;;  %s12928_s15 = smov %s9826_s16 }
 0x463   : > { %s12924_s23 = sld [smem:[#allocation14_spill]]  ;;  %s12929_s16 = smov %s12918_s0 }
 0x464   :  { %18 = sbr.rel (!%p12670_p0) target bundleno = 12 (0xc), region = 119 }
 0x468   : > { %s12931_s22 = smov %s12923_s30 }
 0x469   :  { %7505 = vsyncpa [#allocation4], 1 }
 0x46a   :  { %7507 = vsyncpa [#allocation4 + $0x1], 1 }
 0x46b   :  { %7508 = vsyncpa [#allocation5], 1 }
 0x46c   :  { %7510 = vsyncpa [#allocation5 + $0x1], 1 }

</bundles_post_ra>
